<compile_context>
chip_gen: v5e
topology: v5e:2x2
jax: 0.10.0
libtpu: 0.0.40
codegen_flags: <defaults>
</compile_context>

<pallas_src>
import jax
import jax.numpy as jnp
from jax import lax
from jax.experimental import pallas as pl
from jax.experimental.pallas import tpu as pltpu


# ---------------------------------------------------------------------------
# In-kernel helpers (operate on VMEM values, per batch element)
# ---------------------------------------------------------------------------

def _conv1x1(x, w, b):
    # x: (H, W, Cin)   w: (Cin, Cout)   b: (1, Cout)
    H, W, C = x.shape
    y = jnp.dot(x.reshape(H * W, C), w, preferred_element_type=jnp.float32) + b
    return y.reshape(H, W, w.shape[1])


def _conv3x3(x, w9, b):
    # 3x3 conv, stride 1, zero padding 1, via im2col -> single matmul.
    # x: (H, W, Cin)   w9: (9*Cin, Cout) flattened (kh, kw, cin)   b: (1, Cout)
    H, W, C = x.shape
    # In-kernel zero padding (concatenate is cheap / well supported).
    zr = jnp.zeros((1, W, C), x.dtype)
    xp = jnp.concatenate([zr, x, zr], axis=0)          # (H+2, W,   C)
    zc = jnp.zeros((H + 2, 1, C), x.dtype)
    xp = jnp.concatenate([zc, xp, zc], axis=1)         # (H+2, W+2, C)
    # im2col: (H*W, 9*C), column order (kh, kw, cin) to match w9 flattening.
    cols = [xp[dy:dy + H, dx:dx + W, :].reshape(H * W, C)
            for dy in range(3) for dx in range(3)]
    patches = jnp.concatenate(cols, axis=1)            # (H*W, 9*C)
    y = jnp.dot(patches, w9, preferred_element_type=jnp.float32) + b
    return y.reshape(H, W, w9.shape[1])


def _up2(x):
    # Nearest-neighbour 2x upsample, done on the VMEM value.
    h, w, C = x.shape
    x = jnp.broadcast_to(x[:, None, :, None, :], (h, 2, w, 2, C))
    return x.reshape(2 * h, 2 * w, C)


def _pool2(x):
    # 2x2 max pool (== adaptive_max_pool2d to half size for even inputs),
    # via reshape + pairwise maxima (no strided ref indexing).
    H2, W2, C = x.shape
    x = x.reshape(H2 // 2, 2, W2 // 2, 2, C)
    x = jnp.maximum(x[:, 0], x[:, 1])                  # (H, W/?, 2, C)
    return jnp.maximum(x[:, :, 0], x[:, :, 1])         # (H, W, C)


# ---------------------------------------------------------------------------
# Fused BiFPN kernel (one grid step == one batch element)
# ---------------------------------------------------------------------------

def _bifpn_kernel(w1_ref, w2_ref,                     # SMEM: (2,), (3,) normalized fusion weights
                  p3_ref, p4_ref, p5_ref,             # (1,H,W,C) level inputs
                  tdw_ref, tdb_ref,                   # (3,C,C), (3,1,C)   1x1 conv params [p3,p4,p5]
                  ow_ref, ob_ref,                     # (3,9C,C), (3,1,C)  3x3 conv params [p3,p4,p5]
                  p3_o_ref, p4_o_ref, p5_o_ref):      # outputs
    p3 = p3_ref[0]
    p4 = p4_ref[0]
    p5 = p5_ref[0]

    # Top-down pathway.
    p4_td = _conv1x1(p4, tdw_ref[1], tdb_ref[1])
    p5_td = _conv1x1(p5, tdw_ref[2], tdb_ref[2])
    p4_td = w1_ref[0] * p4_td + w1_ref[1] * _up2(p5_td)
    p4_td = _conv3x3(p4_td, ow_ref[1], ob_ref[1])

    p3_td = _conv1x1(p3, tdw_ref[0], tdb_ref[0])
    p3_out = w1_ref[0] * p3_td + w1_ref[1] * _up2(p4_td)
    p3_out = _conv3x3(p3_out, ow_ref[0], ob_ref[0])

    # Bottom-up pathway.
    p4_out = w2_ref[0] * p4 + w2_ref[1] * p4_td + w2_ref[2] * _pool2(p3_out)
    p4_out = _conv3x3(p4_out, ow_ref[1], ob_ref[1])

    p5_out = w2_ref[0] * p5 + w2_ref[1] * p5_td + w2_ref[2] * _pool2(p4_out)
    p5_out = _conv3x3(p5_out, ow_ref[2], ob_ref[2])

    p3_o_ref[0] = p3_out
    p4_o_ref[0] = p4_out
    p5_o_ref[0] = p5_out


# ---------------------------------------------------------------------------
# Wrapper / orchestration
# ---------------------------------------------------------------------------

def bifpn_forward(params, p3, p4, p5):
    B, H3, W3, C = p3.shape
    _, H4, W4, _ = p4.shape
    _, H5, W5, _ = p5.shape

    eps = jnp.float32(1e-4)
    w1 = jax.nn.relu(params['w1'])
    w1 = w1 / (jnp.sum(w1) + eps)
    w2 = jax.nn.relu(params['w2'])
    w2 = w2 / (jnp.sum(w2) + eps)

    # Stack per-level conv params (and pre-flatten the 3x3 weights for im2col).
    tdw = jnp.stack([params['p3_td_w'], params['p4_td_w'], params['p5_td_w']])            # (3,C,C)
    tdb = jnp.stack([params['p3_td_b'], params['p4_td_b'], params['p5_td_b']])[:, None, :]  # (3,1,C)
    ow = jnp.stack([params['p3_out_w'].reshape(9 * C, C),
                    params['p4_out_w'].reshape(9 * C, C),
                    params['p5_out_w'].reshape(9 * C, C)])                                 # (3,9C,C)
    ob = jnp.stack([params['p3_out_b'], params['p4_out_b'], params['p5_out_b']])[:, None, :]

    def vspec(h, w):
        return pl.BlockSpec((1, h, w, C), lambda b: (b, 0, 0, 0))

    def full(shp):
        return pl.BlockSpec(shp, lambda b: tuple(0 for _ in shp))

    smem = pl.BlockSpec(memory_space=pltpu.MemorySpace.SMEM)

    out_shapes = (jax.ShapeDtypeStruct((B, H3, W3, C), jnp.float32),
                  jax.ShapeDtypeStruct((B, H4, W4, C), jnp.float32),
                  jax.ShapeDtypeStruct((B, H5, W5, C), jnp.float32))

    p3_out, p4_out, p5_out = pl.pallas_call(
        _bifpn_kernel,
        out_shape=out_shapes,
        grid=(B,),
        in_specs=[smem, smem,
                  vspec(H3, W3), vspec(H4, W4), vspec(H5, W5),
                  full((3, C, C)), full((3, 1, C)),
                  full((3, 9 * C, C)), full((3, 1, C))],
        out_specs=[vspec(H3, W3), vspec(H4, W4), vspec(H5, W5)],
        compiler_params=pltpu.CompilerParams(
            dimension_semantics=("parallel",)),   # v7x: 2 TCs split the batch
    )(w1, w2, p3, p4, p5, tdw, tdb, ow, ob)
    return [p3_out, p4_out, p5_out]


def init_params(key, c):
    ks = jax.random.split(key, 12)
    conv1_w = lambda k: jax.random.normal(k, (c, c), jnp.float32) * 0.1
    conv3_w = lambda k: jax.random.normal(k, (3, 3, c, c), jnp.float32) * 0.1   # HWIO
    bias = lambda k: jax.random.normal(k, (c,), jnp.float32) * 0.1
    return dict(
        p3_td_w=conv1_w(ks[0]), p3_td_b=bias(ks[1]),
        p4_td_w=conv1_w(ks[2]), p4_td_b=bias(ks[3]),
        p5_td_w=conv1_w(ks[4]), p5_td_b=bias(ks[5]),
        p3_out_w=conv3_w(ks[6]), p3_out_b=bias(ks[7]),
        p4_out_w=conv3_w(ks[8]), p4_out_b=bias(ks[9]),
        p5_out_w=conv3_w(ks[10]), p5_out_b=bias(ks[11]),
        # NOTE: the PyTorch module also defines self.p6_out, but it is never
        # used in forward(), so it is intentionally omitted here.
        w1=jnp.ones((2,), jnp.float32),
        w2=jnp.ones((3,), jnp.float32),
    )


# ---------------------------------------------------------------------------
# Pure-JAX reference (mirrors the PyTorch forward) for a correctness check
# ---------------------------------------------------------------------------

def bifpn_ref(params, p3, p4, p5):
    eps = jnp.float32(1e-4)
    w1 = jax.nn.relu(params['w1'])
    w1 = w1 / (jnp.sum(w1) + eps)
    w2 = jax.nn.relu(params['w2'])
    w2 = w2 / (jnp.sum(w2) + eps)

    def conv1(x, w, b):
        return lax.conv_general_dilated(
            x, w[None, None], (1, 1), 'VALID',
            dimension_numbers=('NHWC', 'HWIO', 'NHWC')) + b

    def conv3(x, w, b):
        return lax.conv_general_dilated(
            x, w, (1, 1), [(1, 1), (1, 1)],
            dimension_numbers=('NHWC', 'HWIO', 'NHWC')) + b

    def up2(x):
        return jnp.repeat(jnp.repeat(x, 2, axis=1), 2, axis=2)

    def pool2(x):
        return lax.reduce_window(x, -jnp.inf, lax.max,
                                 (1, 2, 2, 1), (1, 2, 2, 1), 'VALID')

    p4_td = conv1(p4, params['p4_td_w'], params['p4_td_b'])
    p5_td = conv1(p5, params['p5_td_w'], params['p5_td_b'])
    p4_td = w1[0] * p4_td + w1[1] * up2(p5_td)
    p4_td = conv3(p4_td, params['p4_out_w'], params['p4_out_b'])
    p3_td = conv1(p3, params['p3_td_w'], params['p3_td_b'])
    p3_out = w1[0] * p3_td + w1[1] * up2(p4_td)
    p3_out = conv3(p3_out, params['p3_out_w'], params['p3_out_b'])
    p4_out = w2[0] * p4 + w2[1] * p4_td + w2[2] * pool2(p3_out)
    p4_out = conv3(p4_out, params['p4_out_w'], params['p4_out_b'])
    p5_out = w2[0] * p5 + w2[1] * p5_td + w2[2] * pool2(p4_out)
    p5_out = conv3(p5_out, params['p5_out_w'], params['p5_out_b'])
    return [p3_out, p4_out, p5_out]


# ---------------------------------------------------------------------------
# Main
# ---------------------------------------------------------------------------

if __name__ == "__main__":
    key = jax.random.PRNGKey(0)
    kp, k3, k4, k5 = jax.random.split(key, 4)

    B, C = 2, 8            # in_channels == out_channels (required by forward)
    params = init_params(kp, C)

    # Synthetic NCHW inputs (PyTorch convention), transposed to NHWC for kernels.
    p3_nchw = jax.random.normal(k3, (B, C, 16, 16), jnp.float32)
    p4_nchw = jax.random.normal(k4, (B, C, 8, 8), jnp.float32)
    p5_nchw = jax.random.normal(k5, (B, C, 4, 4), jnp.float32)
    to_nhwc = lambda t: jnp.transpose(t, (0, 2, 3, 1))
    p3, p4, p5 = map(to_nhwc, (p3_nchw, p4_nchw, p5_nchw))

    outs = jax.block_until_ready(jax.jit(bifpn_forward)(params, p3, p4, p5))
    refs = bifpn_ref(params, p3, p4, p5)

    for o, r in zip(outs, refs):
        assert o.shape == r.shape, (o.shape, r.shape)
        err = float(jnp.max(jnp.abs(o - r)))
        assert jnp.allclose(o, r, atol=1e-2, rtol=1e-2), f"max abs err {err}"

    print("KERNEL_OK")
</pallas_src>

<mosaic_0001>
module attributes {stable_mosaic.version = 11 : i64} {
  func.func @_bifpn_kernel(%arg0: i32, %arg1: memref<2xf32, #tpu.memory_space<smem>>, %arg2: memref<3xf32, #tpu.memory_space<smem>>, %arg3: memref<1x16x16x8xf32, #tpu.memory_space<vmem>>, %arg4: memref<1x8x8x8xf32, #tpu.memory_space<vmem>>, %arg5: memref<1x4x4x8xf32, #tpu.memory_space<vmem>>, %arg6: memref<3x8x8xf32, #tpu.memory_space<vmem>>, %arg7: memref<3x1x8xf32, #tpu.memory_space<vmem>>, %arg8: memref<3x72x8xf32, #tpu.memory_space<vmem>>, %arg9: memref<3x1x8xf32, #tpu.memory_space<vmem>>, %arg10: memref<1x16x16x8xf32, #tpu.memory_space<vmem>>, %arg11: memref<1x8x8x8xf32, #tpu.memory_space<vmem>>, %arg12: memref<1x4x4x8xf32, #tpu.memory_space<vmem>>) attributes {dimension_semantics = [#tpu.dimension_semantics<parallel>], iteration_bounds = array<i64: 2>, scalar_prefetch = 0 : i64, scratch_operands = 0 : i64, tpu.core_type = #tpu.core_type<tc>, window_params = [{transform_indices = @transform_0, window_bounds = array<i64: 2>}, {transform_indices = @transform_1, window_bounds = array<i64: 3>}, {transform_indices = @transform_2, window_bounds = array<i64: 1, 16, 16, 8>}, {transform_indices = @transform_3, window_bounds = array<i64: 1, 8, 8, 8>}, {transform_indices = @transform_4, window_bounds = array<i64: 1, 4, 4, 8>}, {pipeline_mode = #tpu.pipeline_mode<synchronous>, transform_indices = @transform_5, window_bounds = array<i64: 3, 8, 8>}, {pipeline_mode = #tpu.pipeline_mode<synchronous>, transform_indices = @transform_6, window_bounds = array<i64: 3, 1, 8>}, {pipeline_mode = #tpu.pipeline_mode<synchronous>, transform_indices = @transform_7, window_bounds = array<i64: 3, 72, 8>}, {pipeline_mode = #tpu.pipeline_mode<synchronous>, transform_indices = @transform_8, window_bounds = array<i64: 3, 1, 8>}, {transform_indices = @transform_9, window_bounds = array<i64: 1, 16, 16, 8>}, {transform_indices = @transform_10, window_bounds = array<i64: 1, 8, 8, 8>}, {transform_indices = @transform_11, window_bounds = array<i64: 1, 4, 4, 8>}]} {
    %c0 = arith.constant 0 : index
    %c0_0 = arith.constant 0 : index
    %c0_1 = arith.constant 0 : index
    %c0_2 = arith.constant 0 : index
    %0 = vector.load %arg3[%c0, %c0_0, %c0_1, %c0_2] : memref<1x16x16x8xf32, #tpu.memory_space<vmem>>, vector<1x16x16x8xf32>
    %1 = vector.shape_cast %0 : vector<1x16x16x8xf32> to vector<16x16x8xf32>
    %c0_3 = arith.constant 0 : index
    %c0_4 = arith.constant 0 : index
    %c0_5 = arith.constant 0 : index
    %c0_6 = arith.constant 0 : index
    %2 = vector.load %arg4[%c0_3, %c0_4, %c0_5, %c0_6] : memref<1x8x8x8xf32, #tpu.memory_space<vmem>>, vector<1x8x8x8xf32>
    %3 = vector.shape_cast %2 : vector<1x8x8x8xf32> to vector<8x8x8xf32>
    %c0_7 = arith.constant 0 : index
    %c0_8 = arith.constant 0 : index
    %c0_9 = arith.constant 0 : index
    %c0_10 = arith.constant 0 : index
    %4 = vector.load %arg5[%c0_7, %c0_8, %c0_9, %c0_10] : memref<1x4x4x8xf32, #tpu.memory_space<vmem>>, vector<1x4x4x8xf32>
    %5 = vector.shape_cast %4 : vector<1x4x4x8xf32> to vector<4x4x8xf32>
    %c1 = arith.constant 1 : index
    %c0_11 = arith.constant 0 : index
    %c0_12 = arith.constant 0 : index
    %6 = vector.load %arg6[%c1, %c0_11, %c0_12] : memref<3x8x8xf32, #tpu.memory_space<vmem>>, vector<1x8x8xf32>
    %7 = vector.shape_cast %6 : vector<1x8x8xf32> to vector<8x8xf32>
    %c1_13 = arith.constant 1 : index
    %c0_14 = arith.constant 0 : index
    %c0_15 = arith.constant 0 : index
    %8 = vector.load %arg7[%c1_13, %c0_14, %c0_15] : memref<3x1x8xf32, #tpu.memory_space<vmem>>, vector<1x1x8xf32>
    %9 = vector.shape_cast %8 : vector<1x1x8xf32> to vector<1x8xf32>
    %10 = vector.shape_cast %3 : vector<8x8x8xf32> to vector<64x8xf32>
    %cst = arith.constant dense<0.000000e+00> : vector<64x8xf32>
    %11 = tpu.matmul %10, %7, %cst {dimension_numbers = #tpu.dot_dimension_numbers<[1], [0], [0], [1], [0, 0, 1, 1], [], []>} : vector<64x8xf32>, vector<8x8xf32>, vector<64x8xf32> -> vector<64x8xf32>
    %12 = vector.broadcast %9 : vector<1x8xf32> to vector<64x8xf32>
    %13 = arith.addf %11, %12 : vector<64x8xf32>
    %14 = vector.shape_cast %13 : vector<64x8xf32> to vector<8x8x8xf32>
    %c2 = arith.constant 2 : index
    %c0_16 = arith.constant 0 : index
    %c0_17 = arith.constant 0 : index
    %15 = vector.load %arg6[%c2, %c0_16, %c0_17] : memref<3x8x8xf32, #tpu.memory_space<vmem>>, vector<1x8x8xf32>
    %16 = vector.shape_cast %15 : vector<1x8x8xf32> to vector<8x8xf32>
    %c2_18 = arith.constant 2 : index
    %c0_19 = arith.constant 0 : index
    %c0_20 = arith.constant 0 : index
    %17 = vector.load %arg7[%c2_18, %c0_19, %c0_20] : memref<3x1x8xf32, #tpu.memory_space<vmem>>, vector<1x1x8xf32>
    %18 = vector.shape_cast %17 : vector<1x1x8xf32> to vector<1x8xf32>
    %19 = vector.shape_cast %5 : vector<4x4x8xf32> to vector<16x8xf32>
    %cst_21 = arith.constant dense<0.000000e+00> : vector<16x8xf32>
    %20 = tpu.matmul %19, %16, %cst_21 {dimension_numbers = #tpu.dot_dimension_numbers<[1], [0], [0], [1], [0, 0, 1, 1], [], []>} : vector<16x8xf32>, vector<8x8xf32>, vector<16x8xf32> -> vector<16x8xf32>
    %21 = vector.broadcast %18 : vector<1x8xf32> to vector<16x8xf32>
    %22 = arith.addf %20, %21 : vector<16x8xf32>
    %23 = vector.shape_cast %22 : vector<16x8xf32> to vector<4x4x8xf32>
    %c0_22 = arith.constant 0 : index
    %24 = memref.load %arg1[%c0_22] : memref<2xf32, #tpu.memory_space<smem>>
    %25 = vector.broadcast %24 : f32 to vector<8x8x8xf32>
    %26 = arith.mulf %25, %14 : vector<8x8x8xf32>
    %c1_23 = arith.constant 1 : index
    %27 = memref.load %arg1[%c1_23] : memref<2xf32, #tpu.memory_space<smem>>
    %28 = vector.shape_cast %23 : vector<4x4x8xf32> to vector<4x1x4x1x8xf32>
    %29 = vector.shape_cast %28 : vector<4x1x4x1x8xf32> to vector<4x1x4x1x8xf32>
    %30 = vector.broadcast %29 : vector<4x1x4x1x8xf32> to vector<4x2x4x2x8xf32>
    %31 = vector.shape_cast %30 : vector<4x2x4x2x8xf32> to vector<8x8x8xf32>
    %32 = vector.broadcast %27 : f32 to vector<8x8x8xf32>
    %33 = arith.mulf %32, %31 : vector<8x8x8xf32>
    %34 = arith.addf %26, %33 : vector<8x8x8xf32>
    %c1_24 = arith.constant 1 : index
    %c0_25 = arith.constant 0 : index
    %c0_26 = arith.constant 0 : index
    %35 = vector.load %arg8[%c1_24, %c0_25, %c0_26] : memref<3x72x8xf32, #tpu.memory_space<vmem>>, vector<1x72x8xf32>
    %36 = vector.shape_cast %35 : vector<1x72x8xf32> to vector<72x8xf32>
    %c1_27 = arith.constant 1 : index
    %c0_28 = arith.constant 0 : index
    %c0_29 = arith.constant 0 : index
    %37 = vector.load %arg9[%c1_27, %c0_28, %c0_29] : memref<3x1x8xf32, #tpu.memory_space<vmem>>, vector<1x1x8xf32>
    %38 = vector.shape_cast %37 : vector<1x1x8xf32> to vector<1x8xf32>
    %cst_30 = arith.constant 0.000000e+00 : f32
    %39 = vector.broadcast %cst_30 : f32 to vector<1x8x8xf32>
    %40 = tpu.concatenate %39, %34, %39 in 0 : vector<1x8x8xf32>, vector<8x8x8xf32>, vector<1x8x8xf32> -> vector<10x8x8xf32>
    %cst_31 = arith.constant 0.000000e+00 : f32
    %41 = vector.broadcast %cst_31 : f32 to vector<10x1x8xf32>
    %42 = tpu.concatenate %41, %40, %41 in 1 : vector<10x1x8xf32>, vector<10x8x8xf32>, vector<10x1x8xf32> -> vector<10x10x8xf32>
    %43 = vector.extract_strided_slice %42 {offsets = [0, 0, 0], sizes = [8, 8, 8], strides = [1, 1, 1]} : vector<10x10x8xf32> to vector<8x8x8xf32>
    %44 = vector.shape_cast %43 : vector<8x8x8xf32> to vector<64x8xf32>
    %45 = vector.extract_strided_slice %42 {offsets = [0, 1, 0], sizes = [8, 8, 8], strides = [1, 1, 1]} : vector<10x10x8xf32> to vector<8x8x8xf32>
    %46 = vector.shape_cast %45 : vector<8x8x8xf32> to vector<64x8xf32>
    %47 = vector.extract_strided_slice %42 {offsets = [0, 2, 0], sizes = [8, 8, 8], strides = [1, 1, 1]} : vector<10x10x8xf32> to vector<8x8x8xf32>
    %48 = vector.shape_cast %47 : vector<8x8x8xf32> to vector<64x8xf32>
    %49 = vector.extract_strided_slice %42 {offsets = [1, 0, 0], sizes = [8, 8, 8], strides = [1, 1, 1]} : vector<10x10x8xf32> to vector<8x8x8xf32>
    %50 = vector.shape_cast %49 : vector<8x8x8xf32> to vector<64x8xf32>
    %51 = vector.extract_strided_slice %42 {offsets = [1, 1, 0], sizes = [8, 8, 8], strides = [1, 1, 1]} : vector<10x10x8xf32> to vector<8x8x8xf32>
    %52 = vector.shape_cast %51 : vector<8x8x8xf32> to vector<64x8xf32>
    %53 = vector.extract_strided_slice %42 {offsets = [1, 2, 0], sizes = [8, 8, 8], strides = [1, 1, 1]} : vector<10x10x8xf32> to vector<8x8x8xf32>
    %54 = vector.shape_cast %53 : vector<8x8x8xf32> to vector<64x8xf32>
    %55 = vector.extract_strided_slice %42 {offsets = [2, 0, 0], sizes = [8, 8, 8], strides = [1, 1, 1]} : vector<10x10x8xf32> to vector<8x8x8xf32>
    %56 = vector.shape_cast %55 : vector<8x8x8xf32> to vector<64x8xf32>
    %57 = vector.extract_strided_slice %42 {offsets = [2, 1, 0], sizes = [8, 8, 8], strides = [1, 1, 1]} : vector<10x10x8xf32> to vector<8x8x8xf32>
    %58 = vector.shape_cast %57 : vector<8x8x8xf32> to vector<64x8xf32>
    %59 = vector.extract_strided_slice %42 {offsets = [2, 2, 0], sizes = [8, 8, 8], strides = [1, 1, 1]} : vector<10x10x8xf32> to vector<8x8x8xf32>
    %60 = vector.shape_cast %59 : vector<8x8x8xf32> to vector<64x8xf32>
    %61 = tpu.concatenate %44, %46, %48, %50, %52, %54, %56, %58, %60 in 1 : vector<64x8xf32>, vector<64x8xf32>, vector<64x8xf32>, vector<64x8xf32>, vector<64x8xf32>, vector<64x8xf32>, vector<64x8xf32>, vector<64x8xf32>, vector<64x8xf32> -> vector<64x72xf32>
    %cst_32 = arith.constant dense<0.000000e+00> : vector<64x8xf32>
    %62 = tpu.matmul %61, %36, %cst_32 {dimension_numbers = #tpu.dot_dimension_numbers<[1], [0], [0], [1], [0, 0, 1, 1], [], []>} : vector<64x72xf32>, vector<72x8xf32>, vector<64x8xf32> -> vector<64x8xf32>
    %63 = vector.broadcast %38 : vector<1x8xf32> to vector<64x8xf32>
    %64 = arith.addf %62, %63 : vector<64x8xf32>
    %65 = vector.shape_cast %64 : vector<64x8xf32> to vector<8x8x8xf32>
    %c0_33 = arith.constant 0 : index
    %c0_34 = arith.constant 0 : index
    %c0_35 = arith.constant 0 : index
    %66 = vector.load %arg6[%c0_33, %c0_34, %c0_35] : memref<3x8x8xf32, #tpu.memory_space<vmem>>, vector<1x8x8xf32>
    %67 = vector.shape_cast %66 : vector<1x8x8xf32> to vector<8x8xf32>
    %c0_36 = arith.constant 0 : index
    %c0_37 = arith.constant 0 : index
    %c0_38 = arith.constant 0 : index
    %68 = vector.load %arg7[%c0_36, %c0_37, %c0_38] : memref<3x1x8xf32, #tpu.memory_space<vmem>>, vector<1x1x8xf32>
    %69 = vector.shape_cast %68 : vector<1x1x8xf32> to vector<1x8xf32>
    %70 = vector.shape_cast %1 : vector<16x16x8xf32> to vector<256x8xf32>
    %cst_39 = arith.constant dense<0.000000e+00> : vector<256x8xf32>
    %71 = tpu.matmul %70, %67, %cst_39 {dimension_numbers = #tpu.dot_dimension_numbers<[1], [0], [0], [1], [0, 0, 1, 1], [], []>} : vector<256x8xf32>, vector<8x8xf32>, vector<256x8xf32> -> vector<256x8xf32>
    %72 = vector.broadcast %69 : vector<1x8xf32> to vector<256x8xf32>
    %73 = arith.addf %71, %72 : vector<256x8xf32>
    %74 = vector.shape_cast %73 : vector<256x8xf32> to vector<16x16x8xf32>
    %c0_40 = arith.constant 0 : index
    %75 = memref.load %arg1[%c0_40] : memref<2xf32, #tpu.memory_space<smem>>
    %76 = vector.broadcast %75 : f32 to vector<16x16x8xf32>
    %77 = arith.mulf %76, %74 : vector<16x16x8xf32>
    %c1_41 = arith.constant 1 : index
    %78 = memref.load %arg1[%c1_41] : memref<2xf32, #tpu.memory_space<smem>>
    %79 = vector.shape_cast %65 : vector<8x8x8xf32> to vector<8x1x8x1x8xf32>
    %80 = vector.shape_cast %79 : vector<8x1x8x1x8xf32> to vector<8x1x8x1x8xf32>
    %81 = vector.broadcast %80 : vector<8x1x8x1x8xf32> to vector<8x2x8x2x8xf32>
    %82 = vector.shape_cast %81 : vector<8x2x8x2x8xf32> to vector<16x16x8xf32>
    %83 = vector.broadcast %78 : f32 to vector<16x16x8xf32>
    %84 = arith.mulf %83, %82 : vector<16x16x8xf32>
    %85 = arith.addf %77, %84 : vector<16x16x8xf32>
    %c0_42 = arith.constant 0 : index
    %c0_43 = arith.constant 0 : index
    %c0_44 = arith.constant 0 : index
    %86 = vector.load %arg8[%c0_42, %c0_43, %c0_44] : memref<3x72x8xf32, #tpu.memory_space<vmem>>, vector<1x72x8xf32>
    %87 = vector.shape_cast %86 : vector<1x72x8xf32> to vector<72x8xf32>
    %c0_45 = arith.constant 0 : index
    %c0_46 = arith.constant 0 : index
    %c0_47 = arith.constant 0 : index
    %88 = vector.load %arg9[%c0_45, %c0_46, %c0_47] : memref<3x1x8xf32, #tpu.memory_space<vmem>>, vector<1x1x8xf32>
    %89 = vector.shape_cast %88 : vector<1x1x8xf32> to vector<1x8xf32>
    %cst_48 = arith.constant 0.000000e+00 : f32
    %90 = vector.broadcast %cst_48 : f32 to vector<1x16x8xf32>
    %91 = tpu.concatenate %90, %85, %90 in 0 : vector<1x16x8xf32>, vector<16x16x8xf32>, vector<1x16x8xf32> -> vector<18x16x8xf32>
    %cst_49 = arith.constant 0.000000e+00 : f32
    %92 = vector.broadcast %cst_49 : f32 to vector<18x1x8xf32>
    %93 = tpu.concatenate %92, %91, %92 in 1 : vector<18x1x8xf32>, vector<18x16x8xf32>, vector<18x1x8xf32> -> vector<18x18x8xf32>
    %94 = vector.extract_strided_slice %93 {offsets = [0, 0, 0], sizes = [16, 16, 8], strides = [1, 1, 1]} : vector<18x18x8xf32> to vector<16x16x8xf32>
    %95 = vector.shape_cast %94 : vector<16x16x8xf32> to vector<256x8xf32>
    %96 = vector.extract_strided_slice %93 {offsets = [0, 1, 0], sizes = [16, 16, 8], strides = [1, 1, 1]} : vector<18x18x8xf32> to vector<16x16x8xf32>
    %97 = vector.shape_cast %96 : vector<16x16x8xf32> to vector<256x8xf32>
    %98 = vector.extract_strided_slice %93 {offsets = [0, 2, 0], sizes = [16, 16, 8], strides = [1, 1, 1]} : vector<18x18x8xf32> to vector<16x16x8xf32>
    %99 = vector.shape_cast %98 : vector<16x16x8xf32> to vector<256x8xf32>
    %100 = vector.extract_strided_slice %93 {offsets = [1, 0, 0], sizes = [16, 16, 8], strides = [1, 1, 1]} : vector<18x18x8xf32> to vector<16x16x8xf32>
    %101 = vector.shape_cast %100 : vector<16x16x8xf32> to vector<256x8xf32>
    %102 = vector.extract_strided_slice %93 {offsets = [1, 1, 0], sizes = [16, 16, 8], strides = [1, 1, 1]} : vector<18x18x8xf32> to vector<16x16x8xf32>
    %103 = vector.shape_cast %102 : vector<16x16x8xf32> to vector<256x8xf32>
    %104 = vector.extract_strided_slice %93 {offsets = [1, 2, 0], sizes = [16, 16, 8], strides = [1, 1, 1]} : vector<18x18x8xf32> to vector<16x16x8xf32>
    %105 = vector.shape_cast %104 : vector<16x16x8xf32> to vector<256x8xf32>
    %106 = vector.extract_strided_slice %93 {offsets = [2, 0, 0], sizes = [16, 16, 8], strides = [1, 1, 1]} : vector<18x18x8xf32> to vector<16x16x8xf32>
    %107 = vector.shape_cast %106 : vector<16x16x8xf32> to vector<256x8xf32>
    %108 = vector.extract_strided_slice %93 {offsets = [2, 1, 0], sizes = [16, 16, 8], strides = [1, 1, 1]} : vector<18x18x8xf32> to vector<16x16x8xf32>
    %109 = vector.shape_cast %108 : vector<16x16x8xf32> to vector<256x8xf32>
    %110 = vector.extract_strided_slice %93 {offsets = [2, 2, 0], sizes = [16, 16, 8], strides = [1, 1, 1]} : vector<18x18x8xf32> to vector<16x16x8xf32>
    %111 = vector.shape_cast %110 : vector<16x16x8xf32> to vector<256x8xf32>
    %112 = tpu.concatenate %95, %97, %99, %101, %103, %105, %107, %109, %111 in 1 : vector<256x8xf32>, vector<256x8xf32>, vector<256x8xf32>, vector<256x8xf32>, vector<256x8xf32>, vector<256x8xf32>, vector<256x8xf32>, vector<256x8xf32>, vector<256x8xf32> -> vector<256x72xf32>
    %cst_50 = arith.constant dense<0.000000e+00> : vector<256x8xf32>
    %113 = tpu.matmul %112, %87, %cst_50 {dimension_numbers = #tpu.dot_dimension_numbers<[1], [0], [0], [1], [0, 0, 1, 1], [], []>} : vector<256x72xf32>, vector<72x8xf32>, vector<256x8xf32> -> vector<256x8xf32>
    %114 = vector.broadcast %89 : vector<1x8xf32> to vector<256x8xf32>
    %115 = arith.addf %113, %114 : vector<256x8xf32>
    %116 = vector.shape_cast %115 : vector<256x8xf32> to vector<16x16x8xf32>
    %c0_51 = arith.constant 0 : index
    %117 = memref.load %arg2[%c0_51] : memref<3xf32, #tpu.memory_space<smem>>
    %118 = vector.broadcast %117 : f32 to vector<8x8x8xf32>
    %119 = arith.mulf %118, %3 : vector<8x8x8xf32>
    %c1_52 = arith.constant 1 : index
    %120 = memref.load %arg2[%c1_52] : memref<3xf32, #tpu.memory_space<smem>>
    %121 = vector.broadcast %120 : f32 to vector<8x8x8xf32>
    %122 = arith.mulf %121, %65 : vector<8x8x8xf32>
    %123 = arith.addf %119, %122 : vector<8x8x8xf32>
    %c2_53 = arith.constant 2 : index
    %124 = memref.load %arg2[%c2_53] : memref<3xf32, #tpu.memory_space<smem>>
    %125 = vector.shape_cast %116 : vector<16x16x8xf32> to vector<8x2x8x2x8xf32>
    %126 = vector.extract_strided_slice %125 {offsets = [0, 0, 0, 0, 0], sizes = [8, 1, 8, 2, 8], strides = [1, 1, 1, 1, 1]} : vector<8x2x8x2x8xf32> to vector<8x1x8x2x8xf32>
    %127 = vector.shape_cast %126 : vector<8x1x8x2x8xf32> to vector<8x8x2x8xf32>
    %128 = vector.extract_strided_slice %125 {offsets = [0, 1, 0, 0, 0], sizes = [8, 1, 8, 2, 8], strides = [1, 1, 1, 1, 1]} : vector<8x2x8x2x8xf32> to vector<8x1x8x2x8xf32>
    %129 = vector.shape_cast %128 : vector<8x1x8x2x8xf32> to vector<8x8x2x8xf32>
    %130 = arith.maximumf %127, %129 : vector<8x8x2x8xf32>
    %131 = vector.extract_strided_slice %130 {offsets = [0, 0, 0, 0], sizes = [8, 8, 1, 8], strides = [1, 1, 1, 1]} : vector<8x8x2x8xf32> to vector<8x8x1x8xf32>
    %132 = vector.shape_cast %131 : vector<8x8x1x8xf32> to vector<8x8x8xf32>
    %133 = vector.extract_strided_slice %130 {offsets = [0, 0, 1, 0], sizes = [8, 8, 1, 8], strides = [1, 1, 1, 1]} : vector<8x8x2x8xf32> to vector<8x8x1x8xf32>
    %134 = vector.shape_cast %133 : vector<8x8x1x8xf32> to vector<8x8x8xf32>
    %135 = arith.maximumf %132, %134 : vector<8x8x8xf32>
    %136 = vector.broadcast %124 : f32 to vector<8x8x8xf32>
    %137 = arith.mulf %136, %135 : vector<8x8x8xf32>
    %138 = arith.addf %123, %137 : vector<8x8x8xf32>
    %c1_54 = arith.constant 1 : index
    %c0_55 = arith.constant 0 : index
    %c0_56 = arith.constant 0 : index
    %139 = vector.load %arg8[%c1_54, %c0_55, %c0_56] : memref<3x72x8xf32, #tpu.memory_space<vmem>>, vector<1x72x8xf32>
    %140 = vector.shape_cast %139 : vector<1x72x8xf32> to vector<72x8xf32>
    %c1_57 = arith.constant 1 : index
    %c0_58 = arith.constant 0 : index
    %c0_59 = arith.constant 0 : index
    %141 = vector.load %arg9[%c1_57, %c0_58, %c0_59] : memref<3x1x8xf32, #tpu.memory_space<vmem>>, vector<1x1x8xf32>
    %142 = vector.shape_cast %141 : vector<1x1x8xf32> to vector<1x8xf32>
    %cst_60 = arith.constant 0.000000e+00 : f32
    %143 = vector.broadcast %cst_60 : f32 to vector<1x8x8xf32>
    %144 = tpu.concatenate %143, %138, %143 in 0 : vector<1x8x8xf32>, vector<8x8x8xf32>, vector<1x8x8xf32> -> vector<10x8x8xf32>
    %cst_61 = arith.constant 0.000000e+00 : f32
    %145 = vector.broadcast %cst_61 : f32 to vector<10x1x8xf32>
    %146 = tpu.concatenate %145, %144, %145 in 1 : vector<10x1x8xf32>, vector<10x8x8xf32>, vector<10x1x8xf32> -> vector<10x10x8xf32>
    %147 = vector.extract_strided_slice %146 {offsets = [0, 0, 0], sizes = [8, 8, 8], strides = [1, 1, 1]} : vector<10x10x8xf32> to vector<8x8x8xf32>
    %148 = vector.shape_cast %147 : vector<8x8x8xf32> to vector<64x8xf32>
    %149 = vector.extract_strided_slice %146 {offsets = [0, 1, 0], sizes = [8, 8, 8], strides = [1, 1, 1]} : vector<10x10x8xf32> to vector<8x8x8xf32>
    %150 = vector.shape_cast %149 : vector<8x8x8xf32> to vector<64x8xf32>
    %151 = vector.extract_strided_slice %146 {offsets = [0, 2, 0], sizes = [8, 8, 8], strides = [1, 1, 1]} : vector<10x10x8xf32> to vector<8x8x8xf32>
    %152 = vector.shape_cast %151 : vector<8x8x8xf32> to vector<64x8xf32>
    %153 = vector.extract_strided_slice %146 {offsets = [1, 0, 0], sizes = [8, 8, 8], strides = [1, 1, 1]} : vector<10x10x8xf32> to vector<8x8x8xf32>
    %154 = vector.shape_cast %153 : vector<8x8x8xf32> to vector<64x8xf32>
    %155 = vector.extract_strided_slice %146 {offsets = [1, 1, 0], sizes = [8, 8, 8], strides = [1, 1, 1]} : vector<10x10x8xf32> to vector<8x8x8xf32>
    %156 = vector.shape_cast %155 : vector<8x8x8xf32> to vector<64x8xf32>
    %157 = vector.extract_strided_slice %146 {offsets = [1, 2, 0], sizes = [8, 8, 8], strides = [1, 1, 1]} : vector<10x10x8xf32> to vector<8x8x8xf32>
    %158 = vector.shape_cast %157 : vector<8x8x8xf32> to vector<64x8xf32>
    %159 = vector.extract_strided_slice %146 {offsets = [2, 0, 0], sizes = [8, 8, 8], strides = [1, 1, 1]} : vector<10x10x8xf32> to vector<8x8x8xf32>
    %160 = vector.shape_cast %159 : vector<8x8x8xf32> to vector<64x8xf32>
    %161 = vector.extract_strided_slice %146 {offsets = [2, 1, 0], sizes = [8, 8, 8], strides = [1, 1, 1]} : vector<10x10x8xf32> to vector<8x8x8xf32>
    %162 = vector.shape_cast %161 : vector<8x8x8xf32> to vector<64x8xf32>
    %163 = vector.extract_strided_slice %146 {offsets = [2, 2, 0], sizes = [8, 8, 8], strides = [1, 1, 1]} : vector<10x10x8xf32> to vector<8x8x8xf32>
    %164 = vector.shape_cast %163 : vector<8x8x8xf32> to vector<64x8xf32>
    %165 = tpu.concatenate %148, %150, %152, %154, %156, %158, %160, %162, %164 in 1 : vector<64x8xf32>, vector<64x8xf32>, vector<64x8xf32>, vector<64x8xf32>, vector<64x8xf32>, vector<64x8xf32>, vector<64x8xf32>, vector<64x8xf32>, vector<64x8xf32> -> vector<64x72xf32>
    %cst_62 = arith.constant dense<0.000000e+00> : vector<64x8xf32>
    %166 = tpu.matmul %165, %140, %cst_62 {dimension_numbers = #tpu.dot_dimension_numbers<[1], [0], [0], [1], [0, 0, 1, 1], [], []>} : vector<64x72xf32>, vector<72x8xf32>, vector<64x8xf32> -> vector<64x8xf32>
    %167 = vector.broadcast %142 : vector<1x8xf32> to vector<64x8xf32>
    %168 = arith.addf %166, %167 : vector<64x8xf32>
    %169 = vector.shape_cast %168 : vector<64x8xf32> to vector<8x8x8xf32>
    %c0_63 = arith.constant 0 : index
    %170 = memref.load %arg2[%c0_63] : memref<3xf32, #tpu.memory_space<smem>>
    %171 = vector.broadcast %170 : f32 to vector<4x4x8xf32>
    %172 = arith.mulf %171, %5 : vector<4x4x8xf32>
    %c1_64 = arith.constant 1 : index
    %173 = memref.load %arg2[%c1_64] : memref<3xf32, #tpu.memory_space<smem>>
    %174 = vector.broadcast %173 : f32 to vector<4x4x8xf32>
    %175 = arith.mulf %174, %23 : vector<4x4x8xf32>
    %176 = arith.addf %172, %175 : vector<4x4x8xf32>
    %c2_65 = arith.constant 2 : index
    %177 = memref.load %arg2[%c2_65] : memref<3xf32, #tpu.memory_space<smem>>
    %178 = vector.shape_cast %169 : vector<8x8x8xf32> to vector<4x2x4x2x8xf32>
    %179 = vector.extract_strided_slice %178 {offsets = [0, 0, 0, 0, 0], sizes = [4, 1, 4, 2, 8], strides = [1, 1, 1, 1, 1]} : vector<4x2x4x2x8xf32> to vector<4x1x4x2x8xf32>
    %180 = vector.shape_cast %179 : vector<4x1x4x2x8xf32> to vector<4x4x2x8xf32>
    %181 = vector.extract_strided_slice %178 {offsets = [0, 1, 0, 0, 0], sizes = [4, 1, 4, 2, 8], strides = [1, 1, 1, 1, 1]} : vector<4x2x4x2x8xf32> to vector<4x1x4x2x8xf32>
    %182 = vector.shape_cast %181 : vector<4x1x4x2x8xf32> to vector<4x4x2x8xf32>
    %183 = arith.maximumf %180, %182 : vector<4x4x2x8xf32>
    %184 = vector.extract_strided_slice %183 {offsets = [0, 0, 0, 0], sizes = [4, 4, 1, 8], strides = [1, 1, 1, 1]} : vector<4x4x2x8xf32> to vector<4x4x1x8xf32>
    %185 = vector.shape_cast %184 : vector<4x4x1x8xf32> to vector<4x4x8xf32>
    %186 = vector.extract_strided_slice %183 {offsets = [0, 0, 1, 0], sizes = [4, 4, 1, 8], strides = [1, 1, 1, 1]} : vector<4x4x2x8xf32> to vector<4x4x1x8xf32>
    %187 = vector.shape_cast %186 : vector<4x4x1x8xf32> to vector<4x4x8xf32>
    %188 = arith.maximumf %185, %187 : vector<4x4x8xf32>
    %189 = vector.broadcast %177 : f32 to vector<4x4x8xf32>
    %190 = arith.mulf %189, %188 : vector<4x4x8xf32>
    %191 = arith.addf %176, %190 : vector<4x4x8xf32>
    %c2_66 = arith.constant 2 : index
    %c0_67 = arith.constant 0 : index
    %c0_68 = arith.constant 0 : index
    %192 = vector.load %arg8[%c2_66, %c0_67, %c0_68] : memref<3x72x8xf32, #tpu.memory_space<vmem>>, vector<1x72x8xf32>
    %193 = vector.shape_cast %192 : vector<1x72x8xf32> to vector<72x8xf32>
    %c2_69 = arith.constant 2 : index
    %c0_70 = arith.constant 0 : index
    %c0_71 = arith.constant 0 : index
    %194 = vector.load %arg9[%c2_69, %c0_70, %c0_71] : memref<3x1x8xf32, #tpu.memory_space<vmem>>, vector<1x1x8xf32>
    %195 = vector.shape_cast %194 : vector<1x1x8xf32> to vector<1x8xf32>
    %cst_72 = arith.constant 0.000000e+00 : f32
    %196 = vector.broadcast %cst_72 : f32 to vector<1x4x8xf32>
    %197 = tpu.concatenate %196, %191, %196 in 0 : vector<1x4x8xf32>, vector<4x4x8xf32>, vector<1x4x8xf32> -> vector<6x4x8xf32>
    %cst_73 = arith.constant 0.000000e+00 : f32
    %198 = vector.broadcast %cst_73 : f32 to vector<6x1x8xf32>
    %199 = tpu.concatenate %198, %197, %198 in 1 : vector<6x1x8xf32>, vector<6x4x8xf32>, vector<6x1x8xf32> -> vector<6x6x8xf32>
    %200 = vector.extract_strided_slice %199 {offsets = [0, 0, 0], sizes = [4, 4, 8], strides = [1, 1, 1]} : vector<6x6x8xf32> to vector<4x4x8xf32>
    %201 = vector.shape_cast %200 : vector<4x4x8xf32> to vector<16x8xf32>
    %202 = vector.extract_strided_slice %199 {offsets = [0, 1, 0], sizes = [4, 4, 8], strides = [1, 1, 1]} : vector<6x6x8xf32> to vector<4x4x8xf32>
    %203 = vector.shape_cast %202 : vector<4x4x8xf32> to vector<16x8xf32>
    %204 = vector.extract_strided_slice %199 {offsets = [0, 2, 0], sizes = [4, 4, 8], strides = [1, 1, 1]} : vector<6x6x8xf32> to vector<4x4x8xf32>
    %205 = vector.shape_cast %204 : vector<4x4x8xf32> to vector<16x8xf32>
    %206 = vector.extract_strided_slice %199 {offsets = [1, 0, 0], sizes = [4, 4, 8], strides = [1, 1, 1]} : vector<6x6x8xf32> to vector<4x4x8xf32>
    %207 = vector.shape_cast %206 : vector<4x4x8xf32> to vector<16x8xf32>
    %208 = vector.extract_strided_slice %199 {offsets = [1, 1, 0], sizes = [4, 4, 8], strides = [1, 1, 1]} : vector<6x6x8xf32> to vector<4x4x8xf32>
    %209 = vector.shape_cast %208 : vector<4x4x8xf32> to vector<16x8xf32>
    %210 = vector.extract_strided_slice %199 {offsets = [1, 2, 0], sizes = [4, 4, 8], strides = [1, 1, 1]} : vector<6x6x8xf32> to vector<4x4x8xf32>
    %211 = vector.shape_cast %210 : vector<4x4x8xf32> to vector<16x8xf32>
    %212 = vector.extract_strided_slice %199 {offsets = [2, 0, 0], sizes = [4, 4, 8], strides = [1, 1, 1]} : vector<6x6x8xf32> to vector<4x4x8xf32>
    %213 = vector.shape_cast %212 : vector<4x4x8xf32> to vector<16x8xf32>
    %214 = vector.extract_strided_slice %199 {offsets = [2, 1, 0], sizes = [4, 4, 8], strides = [1, 1, 1]} : vector<6x6x8xf32> to vector<4x4x8xf32>
    %215 = vector.shape_cast %214 : vector<4x4x8xf32> to vector<16x8xf32>
    %216 = vector.extract_strided_slice %199 {offsets = [2, 2, 0], sizes = [4, 4, 8], strides = [1, 1, 1]} : vector<6x6x8xf32> to vector<4x4x8xf32>
    %217 = vector.shape_cast %216 : vector<4x4x8xf32> to vector<16x8xf32>
    %218 = tpu.concatenate %201, %203, %205, %207, %209, %211, %213, %215, %217 in 1 : vector<16x8xf32>, vector<16x8xf32>, vector<16x8xf32>, vector<16x8xf32>, vector<16x8xf32>, vector<16x8xf32>, vector<16x8xf32>, vector<16x8xf32>, vector<16x8xf32> -> vector<16x72xf32>
    %cst_74 = arith.constant dense<0.000000e+00> : vector<16x8xf32>
    %219 = tpu.matmul %218, %193, %cst_74 {dimension_numbers = #tpu.dot_dimension_numbers<[1], [0], [0], [1], [0, 0, 1, 1], [], []>} : vector<16x72xf32>, vector<72x8xf32>, vector<16x8xf32> -> vector<16x8xf32>
    %220 = vector.broadcast %195 : vector<1x8xf32> to vector<16x8xf32>
    %221 = arith.addf %219, %220 : vector<16x8xf32>
    %222 = vector.shape_cast %221 : vector<16x8xf32> to vector<4x4x8xf32>
    %c0_75 = arith.constant 0 : index
    %c0_76 = arith.constant 0 : index
    %c0_77 = arith.constant 0 : index
    %c0_78 = arith.constant 0 : index
    %223 = vector.load %arg10[%c0_75, %c0_76, %c0_77, %c0_78] : memref<1x16x16x8xf32, #tpu.memory_space<vmem>>, vector<1x16x16x8xf32>
    %224 = vector.shape_cast %223 : vector<1x16x16x8xf32> to vector<16x16x8xf32>
    %225 = vector.shape_cast %116 : vector<16x16x8xf32> to vector<1x16x16x8xf32>
    tpu.vector_store %arg10[%c0_75, %c0_76, %c0_77, %c0_78], %225 {strides = array<i32>} : memref<1x16x16x8xf32, #tpu.memory_space<vmem>>, vector<1x16x16x8xf32>,
    %c0_79 = arith.constant 0 : index
    %c0_80 = arith.constant 0 : index
    %c0_81 = arith.constant 0 : index
    %c0_82 = arith.constant 0 : index
    %226 = vector.load %arg11[%c0_79, %c0_80, %c0_81, %c0_82] : memref<1x8x8x8xf32, #tpu.memory_space<vmem>>, vector<1x8x8x8xf32>
    %227 = vector.shape_cast %226 : vector<1x8x8x8xf32> to vector<8x8x8xf32>
    %228 = vector.shape_cast %169 : vector<8x8x8xf32> to vector<1x8x8x8xf32>
    tpu.vector_store %arg11[%c0_79, %c0_80, %c0_81, %c0_82], %228 {strides = array<i32>} : memref<1x8x8x8xf32, #tpu.memory_space<vmem>>, vector<1x8x8x8xf32>,
    %c0_83 = arith.constant 0 : index
    %c0_84 = arith.constant 0 : index
    %c0_85 = arith.constant 0 : index
    %c0_86 = arith.constant 0 : index
    %229 = vector.load %arg12[%c0_83, %c0_84, %c0_85, %c0_86] : memref<1x4x4x8xf32, #tpu.memory_space<vmem>>, vector<1x4x4x8xf32>
    %230 = vector.shape_cast %229 : vector<1x4x4x8xf32> to vector<4x4x8xf32>
    %231 = vector.shape_cast %222 : vector<4x4x8xf32> to vector<1x4x4x8xf32>
    tpu.vector_store %arg12[%c0_83, %c0_84, %c0_85, %c0_86], %231 {strides = array<i32>} : memref<1x4x4x8xf32, #tpu.memory_space<vmem>>, vector<1x4x4x8xf32>,
    return
  }
  func.func @transform_0(%arg0: i32) -> i32 {
    %c0_i32 = arith.constant 0 : i32
    %c0_i32_0 = arith.constant 0 : i32
    return %c0_i32 : i32
  }
  func.func @transform_1(%arg0: i32) -> i32 {
    %c0_i32 = arith.constant 0 : i32
    %c0_i32_0 = arith.constant 0 : i32
    return %c0_i32 : i32
  }
  func.func @transform_2(%arg0: i32) -> (i32, i32, i32, i32) {
    %c0_i32 = arith.constant 0 : i32
    %c0_i32_0 = arith.constant 0 : i32
    %c0_i32_1 = arith.constant 0 : i32
    %c0_i32_2 = arith.constant 0 : i32
    return %arg0, %c0_i32, %c0_i32_0, %c0_i32_1 : i32, i32, i32, i32
  }
  func.func @transform_3(%arg0: i32) -> (i32, i32, i32, i32) {
    %c0_i32 = arith.constant 0 : i32
    %c0_i32_0 = arith.constant 0 : i32
    %c0_i32_1 = arith.constant 0 : i32
    %c0_i32_2 = arith.constant 0 : i32
    return %arg0, %c0_i32, %c0_i32_0, %c0_i32_1 : i32, i32, i32, i32
  }
  func.func @transform_4(%arg0: i32) -> (i32, i32, i32, i32) {
    %c0_i32 = arith.constant 0 : i32
    %c0_i32_0 = arith.constant 0 : i32
    %c0_i32_1 = arith.constant 0 : i32
    %c0_i32_2 = arith.constant 0 : i32
    return %arg0, %c0_i32, %c0_i32_0, %c0_i32_1 : i32, i32, i32, i32
  }
  func.func @transform_5(%arg0: i32) -> (i32, i32, i32) {
    %c0_i32 = arith.constant 0 : i32
    %c0_i32_0 = arith.constant 0 : i32
    %c0_i32_1 = arith.constant 0 : i32
    %c0_i32_2 = arith.constant 0 : i32
    return %c0_i32, %c0_i32_0, %c0_i32_1 : i32, i32, i32
  }
  func.func @transform_6(%arg0: i32) -> (i32, i32, i32) {
    %c0_i32 = arith.constant 0 : i32
    %c0_i32_0 = arith.constant 0 : i32
    %c0_i32_1 = arith.constant 0 : i32
    %c0_i32_2 = arith.constant 0 : i32
    return %c0_i32, %c0_i32_0, %c0_i32_1 : i32, i32, i32
  }
  func.func @transform_7(%arg0: i32) -> (i32, i32, i32) {
    %c0_i32 = arith.constant 0 : i32
    %c0_i32_0 = arith.constant 0 : i32
    %c0_i32_1 = arith.constant 0 : i32
    %c0_i32_2 = arith.constant 0 : i32
    return %c0_i32, %c0_i32_0, %c0_i32_1 : i32, i32, i32
  }
  func.func @transform_8(%arg0: i32) -> (i32, i32, i32) {
    %c0_i32 = arith.constant 0 : i32
    %c0_i32_0 = arith.constant 0 : i32
    %c0_i32_1 = arith.constant 0 : i32
    %c0_i32_2 = arith.constant 0 : i32
    return %c0_i32, %c0_i32_0, %c0_i32_1 : i32, i32, i32
  }
  func.func @transform_9(%arg0: i32) -> (i32, i32, i32, i32) {
    %c0_i32 = arith.constant 0 : i32
    %c0_i32_0 = arith.constant 0 : i32
    %c0_i32_1 = arith.constant 0 : i32
    %c0_i32_2 = arith.constant 0 : i32
    return %arg0, %c0_i32, %c0_i32_0, %c0_i32_1 : i32, i32, i32, i32
  }
  func.func @transform_10(%arg0: i32) -> (i32, i32, i32, i32) {
    %c0_i32 = arith.constant 0 : i32
    %c0_i32_0 = arith.constant 0 : i32
    %c0_i32_1 = arith.constant 0 : i32
    %c0_i32_2 = arith.constant 0 : i32
    return %arg0, %c0_i32, %c0_i32_0, %c0_i32_1 : i32, i32, i32, i32
  }
  func.func @transform_11(%arg0: i32) -> (i32, i32, i32, i32) {
    %c0_i32 = arith.constant 0 : i32
    %c0_i32_0 = arith.constant 0 : i32
    %c0_i32_1 = arith.constant 0 : i32
    %c0_i32_2 = arith.constant 0 : i32
    return %arg0, %c0_i32, %c0_i32_0, %c0_i32_1 : i32, i32, i32, i32
  }
}

</mosaic_0001>

<bundles_post_ra>
// kernel: bifpn_forward.1
= control target key start
LH: loop header
LB: loop body
LE: loop exit
PB: predicated region body
PF: predicated region fallthrough
CT: control target
= control target key end

     0   :  { %s9830_s0 = inlined_call_operand.vmem [shape: f32[2], index: 0, kind: input, shape index: {}]   ;;  %s9831_s1 = inlined_call_operand.vmem [shape: f32[3], index: 1, kind: input, shape index: {}]   ;;  %s9832_s2 = inlined_call_operand.vmem [shape: f32[2,16,16,8], index: 2, kind: input, shape index: {}]   ;;  %s9833_s3 = inlined_call_operand.vmem [shape: f32[2,8,8,8], index: 3, kind: input, shape index: {}]   ;;  %s9834_s4 = inlined_call_operand.vmem [shape: f32[2,4,4,8], index: 4, kind: input, shape index: {}]   ;;  %s9835_s5 = inlined_call_operand.vmem [shape: f32[3,8,8], index: 5, kind: input, shape index: {}]   ;;  %s9836_s6 = inlined_call_operand.vmem [shape: f32[3,1,8], index: 6, kind: input, shape index: {}]   ;;  %s9837_s7 = inlined_call_operand.vmem [shape: f32[3,72,8], index: 7, kind: input, shape index: {}]   ;;  %s9838_s8 = inlined_call_operand.vmem [shape: f32[3,1,8], index: 8, kind: input, shape index: {}]   ;;  %s9839_s9 = inlined_call_operand.vmem [shape: f32[2,16,16,8], index: 9, kind: output, shape index: {0}]   ;;  %s9840_s10 = inlined_call_operand.hbm [shape: f32[2,8,8,8], index: 10, kind: output, shape index: {1}]   ;;  %s9841_s11 = inlined_call_operand.hbm [shape: f32[2,4,4,8], index: 11, kind: output, shape index: {2}]  }
   0x1   :  { %9941 = sst [smem:[#allocation78_spill]] %s9830_s0 }
   0x2   :  { %9942 = sst [smem:[#allocation79_spill]] %s9831_s1 }
   0x3   :  { %9943 = sst [smem:[#allocation80_spill]] %s9832_s2 }
   0x4   :  { %9944 = sst [smem:[#allocation81_spill]] %s9833_s3 }
   0x5   :  { %9945 = sst [smem:[#allocation82_spill]] %s9834_s4 }
   0x6   :  { %9946 = sst [smem:[#allocation83_spill]] %s9835_s5 }
   0x7   :  { %9947 = sst [smem:[#allocation84_spill]] %s9836_s6 }
   0x8   :  { %17 = vsyncpa [#allocation4], 0 }
   0x9   :  { %18 = vsyncpa [#allocation6], 0 }
   0xa   :  { %19 = vsyncpa [#allocation3], 0 }
   0xb   :  { %21 = vsyncpa [#allocation3 + $0x1], 0 }
   0xc   :  { %22 = vsyncpa [#allocation9], 0 }
   0xd   :  { %24 = vsyncpa [#allocation9 + $0x1], 0  ;;  %s6303_s17 = smov 0   ;;  %s6305_s18 = smov 0  }
   0xe   :  { %s6307_s19 = smov 0   ;;  %s6309_s20 = smov 0  }
   0xf LB: > { %s6324_s21 = sadd.s32 4294967295, %s6228_s20   ;;  %s5740_s22 = sadd.s32 4294967294, %s6228_s20   ;;  %s6228_s20 = sphi %s6309_s20, %s10210_s20   ;;  %s6224_s19 = sphi %s6307_s19, %s10209_s19   ;;  %s6220_s18 = sphi %s6305_s18, %s10208_s18   ;;  %s6216_s17 = sphi %s6303_s17, %s10207_s17  }
  0x10   : > { %s6328_s23 = sadd.s32 1, %s6228_s20   ;;  %s267_s24 = sadd.s32 1, %s6224_s19 }
  0x11   : > { %s264_s25 = ssub.s32 %s6228_s20, %s6328_s23  ;;  %p277_p0 = scmp.ne.s32.totalorder %s6224_s19, %s6220_s18 }
  0x12   : > { %p265_p1 = scmp.eq.s32.totalorder %s264_s25, 0  ;;  %p278_p2 = scmp.eq.s32.totalorder %s6324_s21, 1 }
  0x13   : > { %p283_p3 = scmp.ne.s32.totalorder %s6220_s18, %s6216_s17  ;;  %p284_p4 = scmp.eq.s32.totalorder %s5740_s22, 1 }
  0x14   : > { %s6339_s26 = scalar_select %p265_p1, %s6224_s19, %s267_s24  }
  0x15   : > { %p6341_p5 = por %p278_p2, %p277_p0  ;;  %p6345_p6 = por %p284_p4, %p283_p3 }
  0x16   : > { %p5741_p7 = scmp.ge.s32.totalorder %s6228_s20, 1  ;;  %p317_p8 = scmp.lt.s32.totalorder %s6228_s20, 3 }
  0x17   : > { %p6017_p9 = scmp.eq.s32.totalorder %s6324_s21, 0  ;;  %s9950_s0 = sld [smem:[#allocation78_spill]] }
  0x18   : > { %p318_p10 = pnand %p5741_p7, %p317_p8  ;;  %s9951_s1 = sld [smem:[#allocation79_spill]] }
  0x19   : > { %s6230_s16 = smov [#allocation2]   ;;  %s6231_s22 = smov [#allocation5]  }
  0x1a   : > { %p6003_p11 = pneg %p318_p10 }
  0x1c   : > { %p6004_p12 = pnand %p6017_p9, %p6003_p11  ;;  %388 = sbr.rel (%p318_p10) target bundleno = 2072 (0x818), region = 56 }
  0x1d   : > { %s329_s12 = sshll.u32 %s9950_s0, 4  ;;  %s330_s12 = int_to_ptr.vmem [resolvable:$true] %s329_s12 }
  0x1e   : > { %s339_s15 = sshll.u32 %s9951_s1, 4  ;;  %s340_s15 = int_to_ptr.vmem [resolvable:$true] %s339_s15 }
  0x1f   : > { %6006 = dma.vmem_to_smem (!%p6004_p12), %s330_s12, 16, %s6230_s16, [#allocation4]  }
  0x20   : > { %6009 = dma.vmem_to_smem (!%p6004_p12), %s340_s15, 16, %s6231_s22, [#allocation6]  }
  0x21   : > { %6199 = dma.done.wait (%p6017_p9), [#allocation4], 16  }
  0x22   : > { %6201 = vsyncadd (%p6017_p9), [#allocation4], 4294967280 }
  0x23   : > { %6203 = dma.done.wait (%p6017_p9), [#allocation6], 16  }
  0x24   : > { %6205 = vsyncadd (%p6017_p9), [#allocation6], 4294967280 }
  0x25   : > { %400 = sfence }
  0x26   : > { %s9952_s5 = sld [smem:[#allocation83_spill]]  ;;  %p455_p13 = scmp.lt.s32.totalorder %s6324_s21, 1  ;;  %vm526_vm0 = vcmask 64512   ;;  %vm9932_vm1 = vcmask 1040384   ;;  %v6232_v14 = vmov 0.0   ;;  %vm895_vm2 = vcmask 1045504  }
  0x27   : > { %s9953_s4 = sld [smem:[#allocation82_spill]]  ;;  %v6414_v15 = vrot.slane %v6232_v14, 7  ;;  %s9853_s29 = smov 16   ;;  %vm9931_vm3 = vcmask 1046528   ;;  %vm1128_vm4 = vcmask 130048   ;;  %vm1137_vm5 = vcmask 195584  }
  0x28   : > { %s6376_s12 = scalar_select %p455_p13, %s6324_s21, 1  ;;  %vm1146_vm6 = vcmask 261120   ;;  %vm1155_vm7 = vcmask 326656   ;;  %vm1164_vm8 = vcmask 392192   ;;  %vm1173_vm9 = vcmask 457728  }
  0x29   : > { %s9954_s3 = sld [smem:[#allocation81_spill]]  ;;  %9959 = vst [vmem:[#allocation18_spill] sm:$0xff] %v6414_v15  ;;  %v6418_v16 = vsel %vm9932_vm1, 0.0, %v6414_v15  ;;  %v845_v17 = vsel %vm9932_vm1, %v6414_v15, 0.0  ;;  %v2336_v18 = vrot.slane %v6414_v15, 2  ;;  %s9848_s30 = smov 48  }
  0x2a   : > { %s5977_s13 = sshll.u32 %s6376_s12, 4  ;;  %s5976_s14 = sshll.u32 %s6376_s12, 6  ;;  %v896_v19 = vrot.slane %v6418_v16, 2  ;;  %v897_v20 = vrot.slane %v845_v17, 2  ;;  %v871_v24 = vrot.slane %v6418_v16, 1  ;;  %v872_v25 = vrot.slane %v845_v17, 1 }
  0x2b   : > { %v2258_v26 = vrot.slane %v6414_v15, 1  ;;  %s9846_s15 = smov 64   ;;  %s5772_s16 = sld [smem:[#allocation2 + $0x1]]  ;;  %vm1182_vm10 = vcmask 523264   ;;  %vm1194_vm11 = vcmask 588800   ;;  %vm9925_vm12 = vcmask 1044480  }
  0x2c   : > { %v5768_v0 = vld [vmem:[%s9952_s5 + $0x10] sm:$0xff]  ;;  %v5758_v1 = vld [vmem:[%s9952_s5 + $0x8] sm:$0xff]  ;;  %v898_v21 = vsel %vm895_vm2, %v896_v19, %v897_v20  ;;  %v6426_v22 = vsel %vm895_vm2, %v896_v19, %v2336_v18  ;;  %v873_v27 = vsel %vm9931_vm3, %v871_v24, %v872_v25  ;;  %v6444_v31 = vsel %vm895_vm2, %v2336_v18, %v897_v20  ;;  %s9964_s6 = sld [smem:[#allocation84_spill]]  ;;  %s9968_s24 = smov 8  }
  0x2d   : > { %631 = vmatpush.msra.mxu2 %v5768_v0  ;;  %566 = vmatpush.msra.mxu0 %v5758_v1  ;;  %s469_s22 = scalar_lea.vmem %s9953_s4, %s5977_s13  ;;  %9960 = vst [vmem:[#allocation19_spill] sm:$0xff] %v6426_v22  ;;  %v6072_v23 = vpack.i.bf16 %v6426_v22, %v898_v21  ;;  %s9857_s13 = smov 56   ;;  %v6438_v29 = vsel %vm9931_vm3, %v871_v24, %v2258_v26  ;;  %vm9940_vm13 = vcmask 1041409   ;;  %vm9927_vm14 = vcmask 1042434  }
  0x2e   : > { %v6388_v2 = vld [vmem:[%s469_s22] sm:$0xf]  ;;  %v6390_v3 = vld [vmem:[%s469_s22 + $0x4] sm:$0xf]  ;;  %v6396_v5 = vld [vmem:[%s469_s22 + $0x8] sm:$0xf]  ;;  %1086 = vrot.lane.b32.xlu1 %v873_v27, %s9857_s13  ;;  %v6067_v30 = vpack.i.bf16 %v6438_v29, %v873_v27  ;;  %v6447_v32 = vsel %vm9931_vm3, %v2258_v26, %v872_v25 }
  0x2f   : > { %s6386_s0 = scalar_lea.vmem %s9954_s3, %s5976_s14  ;;  %9955 = vst [vmem:[#allocation14_spill] sm:$0xff] %v6388_v2  ;;  %v6398_v6 = vld [vmem:[%s469_s22 + $0xc] sm:$0xf]  ;;  %6073 = vrot.lane.b32.xlu2 %v6072_v23, %s9853_s29  ;;  %s9842_s14 = smov 8   ;;  %vm9926_vm15 = vcmask 1043459  }
  0x30   : > { %9956 = vst [vmem:[#allocation15_spill] sm:$0xff] %v6390_v3  ;;  %v507_v4 = vld [vmem:[%s6386_s0] sm:$0xff]  ;;  %v508_v7 = vld [vmem:[%s6386_s0 + $0x8] sm:$0xff]  ;;  %v509_v9 = vld [vmem:[%s6386_s0 + $0x10] sm:$0xff]  ;;  %6068 = vrot.lane.b32.xlu0 %v6067_v30, %s9842_s14  ;;  %s645_s25 = sld [smem:[#allocation2]]  ;;  %s9851_s22 = smov 32  }
  0x31   : > { %603 = vst [vmem:[#allocation1] ss:$2 sm:$0xff] %v6388_v2  ;;  %5760 = vmatmul.msk.f32.vlgmr.msra.gmra.mxu0 %vm526_vm0, %v507_v4  ;;  %v510_v11 = vld [vmem:[%s6386_s0 + $0x18] sm:$0xff]  ;;  %v511_v12 = vld [vmem:[%s6386_s0 + $0x20] sm:$0xff]  ;;  %v512_v13 = vld [vmem:[%s6386_s0 + $0x28] sm:$0xff]  ;;  %v6465_v40 = vstv %s5772_s16  ;;  %s9844_s16 = smov 24  }
  0x32   : > { %605 = vst [vmem:[#allocation1 + $0x1] ss:$2 sm:$0xff] %v6390_v3  ;;  %v513_v28 = vld [vmem:[%s6386_s0 + $0x30] sm:$0xff]  ;;  %v6457_v33 = vld [vmem:[%s9964_s6 + $0x2] ss:$0 sm:$0xff]  ;;  %v514_v46 = vld [vmem:[%s6386_s0 + $0x38] sm:$0xff] }
  0x33   : > { %9957 = vst [vmem:[#allocation16_spill] sm:$0xff] %v6396_v5  ;;  %v6473_v47 = vld [vmem:[%s9964_s6 + $0x1] ss:$0 sm:$0xff]  ;;  %s9969_s2 = sld [smem:[#allocation80_spill]]  ;;  %s9975_s1 = smov 48  }
  0x34   : > { %9958 = vst [vmem:[#allocation17_spill] sm:$0xff] %v6398_v6  ;;  %s3659_s3 = sld [smem:[#allocation5]] }
  0x35   : > { %607 = vst [vmem:[#allocation1 + $0x10] ss:$2 sm:$0xff] %v6396_v5 }
  0x36   : > { %609 = vst [vmem:[#allocation1 + $0x11] ss:$2 sm:$0xff] %v6398_v6  ;;  %2428 = vrot.lane.b32.xlu1 %v6447_v32, %s9842_s14  ;;  %v6483_v55 = vstv %s645_s25  ;;  %s9855_s25 = smov 40  }
  0x37   : > { %1062 = vrot.lane.b32.xlu2 %v6418_v16, %s9848_s30  ;;  %9961 = vst [vmem:[#allocation20_spill] sm:$0xff] %v6438_v29 }
  0x38   : > { %9962 = vst [vmem:[#allocation21_spill] sm:$0xff] %v6444_v31  ;;  %1110 = vrot.lane.b32.xlu0 %v898_v21, %s9846_s15 }
  0x39   : > { %v610_v8 = vld.sshfl [vmem:[#allocation1] sm:$0xff pattern:$0x75316420]  ;;  %5761 = vmatmul.msk.f32.gmra.mxu0 %vm526_vm0, %v508_v7  ;;  %9963 = vst [vmem:[#allocation22_spill] sm:$0xff] %v6447_v32 }
  0x3a   : > { %5770 = vmatmul.msk.f32.vlgmr.msra.gmra.mxu2 %vm526_vm0, %v610_v8 }
  0x3d   : > { %v611_v10 = vld.sshfl [vmem:[#allocation1 + $0x10] sm:$0xff pattern:$0x75316420] }
  0x3f   : > { %2524 = vrot.lane.b32.xlu2 %v6444_v31, %s9853_s29 }
  0x41   : > { %5762 = vmatmul.msk.f32.gmra.mxu0 %vm526_vm0, %v509_v9 }
  0x42   : > { %5771 = vmatmul.msk.f32.gmra.mxu2 %vm526_vm0, %v611_v10 }
  0x49   : > { %5763 = vmatmul.msk.f32.gmra.mxu0 %vm526_vm0, %v510_v11 }
  0x51   : > { %5764 = vmatmul.msk.f32.gmra.mxu0 %vm526_vm0, %v511_v12 }
  0x59   : > { %5765 = vmatmul.msk.f32.gmra.mxu0 %vm526_vm0, %v512_v13 }
  0x61   : > { %5766 = vmatmul.msk.f32.gmra.mxu0 %vm526_vm0, %v513_v28 }
  0x69   : > { %5767 = vmatmul.msk.f32.gmra.mxu0 %vm526_vm0, %v514_v46 }
  0xae   : > { %v568_v36 = vpop.f32.mrf.mxu0 }
  0xaf   : > { %v569_v53 = vadd.f32 %v6473_v47, %v568_v36 }
  0xb1   : > { %v647_v60 = vmul.f32 %v6483_v55, %v569_v53 }
  0xb6   : > { %v571_v57 = vpop.f32.mrf.mxu0 }
  0xb7   : > { %v572_v62 = vadd.f32 %v6473_v47, %v571_v57 }
  0xb9   : > { %v648_v9 = vmul.f32 %v6483_v55, %v572_v62 }
  0xbd   : > { %v633_v34 = vpop.f32.mrf.mxu2 }
  0xbe   : > { %v6460_v35 = vadd.f32 %v6457_v33, %v633_v34  ;;  %v574_v13 = vpop.f32.mrf.mxu0 }
  0xbf   : > { %v575_v30 = vadd.f32 %v6473_v47, %v574_v13 }
  0xc0   : > { %9965 = vst [vmem:[#allocation23_spill] sm:$0xff] %v6460_v35  ;;  %v656_v37 = vrot.slane %v6460_v35, 1  ;;  %v657_v38 = vrot.slane %v6460_v35, 2  ;;  %v658_v39 = vrot.slane %v6460_v35, 3  ;;  %v668_v41 = vperm.slane %v6460_v35, 0 }
  0xc1   : > { %v9860_v51 = vrot.slane %v6460_v35, 4  ;;  %v659_v52 = vrot.slane %v6460_v35, 5  ;;  %v660_v54 = vrot.slane %v6460_v35, 6  ;;  %v661_v56 = vrot.slane %v6460_v35, 7 }
  0xc2   : > { %v669_v42 = vperm.slane %v656_v37, 0  ;;  %v670_v43 = vperm.slane %v657_v38, 0  ;;  %v671_v44 = vperm.slane %v658_v39, 0  ;;  %v701_v45 = vmul.f32 %v6465_v40, %v668_v41 }
  0xc3   : > { %v672_v58 = vperm.slane %v9860_v51, 0  ;;  %v673_v59 = vperm.slane %v659_v52, 0  ;;  %v674_v61 = vperm.slane %v660_v54, 0  ;;  %v675_v63 = vperm.slane %v661_v56, 0 }
  0xc4   : > { %v702_v48 = vmul.f32 %v6465_v40, %v669_v42  ;;  %v703_v49 = vmul.f32 %v6465_v40, %v670_v43  ;;  %v704_v50 = vmul.f32 %v6465_v40, %v671_v44  ;;  %733 = vst [vmem:[#allocation1] ss:$4 sm:$0xff] %v701_v45  ;;  %v649_v39 = vmul.f32 %v6483_v55, %v575_v30 }
  0xc5   : > { %742 = vst [vmem:[#allocation1 + $0x20] ss:$4 sm:$0xff] %v701_v45  ;;  %v705_v0 = vmul.f32 %v6465_v40, %v672_v58  ;;  %v706_v1 = vmul.f32 %v6465_v40, %v673_v59  ;;  %v707_v7 = vmul.f32 %v6465_v40, %v674_v61  ;;  %v708_v10 = vmul.f32 %v6465_v40, %v675_v63  ;;  %v636_v58 = vpop.f32.mrf.mxu2 }
  0xc6   : > { %735 = vst [vmem:[#allocation1 + $0x1] ss:$4 sm:$0xff] %v702_v48  ;;  %v577_v28 = vpop.f32.mrf.mxu0  ;;  %v6541_v59 = vadd.f32 %v6457_v33, %v636_v58  ;;  %v6593_v58 = vpop.permute.xlu2 %6073 }
  0xc7   : > { %737 = vst [vmem:[#allocation1 + $0x2] ss:$4 sm:$0xff] %v703_v49  ;;  %v578_v36 = vadd.f32 %v6473_v47, %v577_v28 }
  0xc8   : > { %739 = vst [vmem:[#allocation1 + $0x3] ss:$4 sm:$0xff] %v704_v50  ;;  %v662_v62 = vrot.slane %v6541_v59, 1  ;;  %v663_v63 = vrot.slane %v6541_v59, 2 }
  0xc9   : > { %744 = vst [vmem:[#allocation1 + $0x21] ss:$4 sm:$0xff] %v702_v48  ;;  %v650_v41 = vmul.f32 %v6483_v55, %v578_v36 }
  0xca   : > { %746 = vst [vmem:[#allocation1 + $0x22] ss:$4 sm:$0xff] %v703_v49 }
  0xcb   : > { %748 = vst [vmem:[#allocation1 + $0x23] ss:$4 sm:$0xff] %v704_v50 }
  0xcc   : > { %9966 = vst [vmem:[#allocation24_spill] sm:$0xff] %v6541_v59 }
  0xcf   : > { %v740_v4 = vld.sshfl [vmem:[#allocation1] sm:$0xff pattern:$0x73625140] }
  0xd0   : > { %750 = vst [vmem:[#allocation1] ss:$4 sm:$0xff] %v705_v0  ;;  %v788_v8 = vadd.f32 %v740_v4, %v647_v60  ;;  %v677_v4 = vperm.slane %v662_v62, 0 }
  0xd1   : > { %751 = vst [vmem:[#allocation1 + $0x1] ss:$4 sm:$0xff] %v706_v1 }
  0xd2   : > { %752 = vst [vmem:[#allocation1 + $0x2] ss:$4 sm:$0xff] %v707_v7  ;;  %v818_v11 = vrot.slane %v788_v8, 7  ;;  %v749_v12 = vld.sshfl [vmem:[#allocation1 + $0x20] sm:$0xff pattern:$0x73625140] }
  0xd3   : > { %753 = vst [vmem:[#allocation1 + $0x3] ss:$4 sm:$0xff] %v708_v10  ;;  %v789_v14 = vadd.f32 %v749_v12, %v648_v9 }
  0xd4   : > { %755 = vst [vmem:[#allocation1 + $0x20] ss:$4 sm:$0xff] %v705_v0  ;;  %v846_v17 = vsel %vm9932_vm1, %v818_v11, 0.0  ;;  %v6497_v18 = vsel %vm9932_vm1, 0.0, %v818_v11  ;;  %v664_v0 = vrot.slane %v6541_v59, 3  ;;  %v710_v11 = vmul.f32 %v6465_v40, %v677_v4 }
  0xd5   : > { %756 = vst [vmem:[#allocation1 + $0x21] ss:$4 sm:$0xff] %v706_v1  ;;  %976 = vrot.lane.b32.xlu1 %v6497_v18, %s9844_s16  ;;  %v874_v19 = vrot.slane %v6497_v18, 1  ;;  %v875_v20 = vrot.slane %v846_v17, 1  ;;  %v819_v21 = vrot.slane %v789_v14, 7  ;;  %v899_v25 = vrot.slane %v6497_v18, 2 }
  0xd6   : > { %757 = vst [vmem:[#allocation1 + $0x22] ss:$4 sm:$0xff] %v707_v7  ;;  %v900_v26 = vrot.slane %v846_v17, 2  ;;  %v676_v1 = vperm.slane %v6541_v59, 0  ;;  %v678_v7 = vperm.slane %v663_v63, 0  ;;  %v679_v8 = vperm.slane %v664_v0, 0 }
  0xd7   : > { %758 = vst [vmem:[#allocation1 + $0x23] ss:$4 sm:$0xff] %v708_v10  ;;  %v876_v23 = vsel %vm9931_vm3, %v874_v19, %v875_v20  ;;  %v6504_v24 = vsel %vm9932_vm1, 0.0, %v819_v21  ;;  %v847_v27 = vsel %vm9932_vm1, %v819_v21, 0.0  ;;  %v9859_v10 = vrot.slane %v6541_v59, 4 }
  0xd8   : > { %930 = vrot.lane.b32.xlu0 %v876_v23, %s9842_s14  ;;  %978 = vrot.lane.b32.xlu2 %v6504_v24, %s9844_s16  ;;  %v901_v34 = vsel %vm895_vm2, %v899_v25, %v900_v26  ;;  %v877_v37 = vrot.slane %v6504_v24, 1  ;;  %v878_v38 = vrot.slane %v847_v27, 1  ;;  %v902_v43 = vrot.slane %v6504_v24, 2 }
  0xd9   : > { %v903_v44 = vrot.slane %v847_v27, 2  ;;  %v709_v9 = vmul.f32 %v6465_v40, %v676_v1  ;;  %v711_v12 = vmul.f32 %v6465_v40, %v678_v7  ;;  %v712_v13 = vmul.f32 %v6465_v40, %v679_v8  ;;  %v6605_v1 = vpop.permute.xlu2 %1062 }
  0xda   : > { %v879_v42 = vsel %vm9931_vm3, %v877_v37, %v878_v38  ;;  %v754_v45 = vld.sshfl [vmem:[#allocation1] sm:$0xff pattern:$0x73625140]  ;;  %v665_v17 = vrot.slane %v6541_v59, 5  ;;  %v666_v19 = vrot.slane %v6541_v59, 6  ;;  %v667_v20 = vrot.slane %v6541_v59, 7 }
  0xdb   : > { %v790_v48 = vadd.f32 %v754_v45, %v649_v39  ;;  %v904_v50 = vsel %vm895_vm2, %v902_v43, %v903_v44  ;;  %760 = vst [vmem:[#allocation1] ss:$4 sm:$0xff] %v709_v9  ;;  %v680_v25 = vperm.slane %v9859_v10, 0  ;;  %v580_v45 = vpop.f32.mrf.mxu0 }
  0xdc   : > { %761 = vst [vmem:[#allocation1 + $0x1] ss:$4 sm:$0xff] %v710_v11  ;;  %v681_v26 = vperm.slane %v665_v17, 0  ;;  %v682_v27 = vperm.slane %v666_v19, 0  ;;  %v683_v28 = vperm.slane %v667_v20, 0 }
  0xdd   : > { %1048 = vrot.lane.b32.xlu1 %v6504_v24, %s9848_s30  ;;  %v820_v52 = vrot.slane %v790_v48, 7  ;;  %762 = vst [vmem:[#allocation1 + $0x2] ss:$4 sm:$0xff] %v711_v12  ;;  %v713_v37 = vmul.f32 %v6465_v40, %v680_v25 }
  0xde   : > { %v759_v46 = vld.sshfl [vmem:[#allocation1 + $0x20] sm:$0xff pattern:$0x73625140]  ;;  %763 = vst [vmem:[#allocation1 + $0x3] ss:$4 sm:$0xff] %v712_v13  ;;  %v714_v38 = vmul.f32 %v6465_v40, %v681_v26  ;;  %v715_v39 = vmul.f32 %v6465_v40, %v682_v27  ;;  %v6645_v27 = vpop.permute.xlu1 %1086 }
  0xdf   : > { %v791_v49 = vadd.f32 %v759_v46, %v650_v41  ;;  %v6535_v57 = vsel %vm9932_vm1, 0.0, %v820_v52  ;;  %v848_v14 = vsel %vm9932_vm1, %v820_v52, 0.0  ;;  %765 = vst [vmem:[#allocation1 + $0x20] ss:$4 sm:$0xff] %v709_v9  ;;  %v716_v41 = vmul.f32 %v6465_v40, %v683_v28 }
  0xe0   : > { %954 = vrot.lane.b32.xlu0 %v901_v34, %s9853_s29  ;;  %1024 = vrot.lane.b32.xlu2 %v901_v34, %s9855_s25  ;;  %v905_v21 = vrot.slane %v6535_v57, 2  ;;  %766 = vst [vmem:[#allocation1 + $0x21] ss:$4 sm:$0xff] %v710_v11  ;;  %v880_v34 = vrot.slane %v6535_v57, 1  ;;  %v881_v36 = vrot.slane %v848_v14, 1 }
  0xe1   : > { %v821_v53 = vrot.slane %v791_v49, 7  ;;  %767 = vst [vmem:[#allocation1 + $0x22] ss:$4 sm:$0xff] %v711_v12 }
  0xe2   : > { %768 = vst [vmem:[#allocation1 + $0x23] ss:$4 sm:$0xff] %v712_v13  ;;  %v882_v43 = vsel %vm9931_vm3, %v880_v34, %v881_v36  ;;  %v6623_v13 = vpop.permute.xlu2 %2524  ;;  %v6651_v36 = vpop.permute.xlu0 %6068 }
  0xe3   : > { %v6529_v54 = vsel %vm9932_vm1, 0.0, %v821_v53  ;;  %v6532_v56 = vsel %vm9932_vm1, %v821_v53, 0.0  ;;  %v583_v52 = vpop.f32.mrf.mxu0  ;;  %9967 = vst [vmem:[#allocation25_spill] sm:$0xff] %v6605_v1 }
  0xe4   : > { %v883_v60 = vrot.slane %v6529_v54, 1  ;;  %v884_v61 = vrot.slane %v6532_v56, 1  ;;  %v908_v46 = vrot.slane %v6529_v54, 2  ;;  %v909_v48 = vrot.slane %v6532_v56, 2  ;;  %9970 = vst [vmem:[#allocation26_spill] sm:$0xff] %v6645_v27 }
  0xe5   : > { %932 = vrot.lane.b32.xlu1 %v879_v42, %s9842_s14  ;;  %v584_v56 = vadd.f32 %v6473_v47, %v583_v52 }
  0xe6   : > { %v6551_v33 = vsel %vm9931_vm3, %v883_v60, %v884_v61  ;;  %v910_v49 = vsel %vm895_vm2, %v908_v46, %v909_v48  ;;  %v1260_v60 = vld [vmem:[%s9952_s5] sm:$0xff]  ;;  %s6146_s5 = scalar_lea.hbm %s9840_s10, 128 }
  0xe7   : > { %1376 = vmatpush.msrb.mxu0 %v1260_v60  ;;  %5981 = vmatpush.msra.mxu3 %v1260_v60  ;;  %v652_v62 = vmul.f32 %v6483_v55, %v584_v56  ;;  %v5778_v60 = vld [vmem:[%s9837_s7 + $0x70] sm:$0xff] }
  0xe8   : > { %1000 = vrot.lane.b32.xlu0 %v876_v23, %s9851_s22  ;;  %1096 = vrot.lane.b32.xlu2 %v904_v50, %s9846_s15  ;;  %v906_v23 = vrot.slane %v848_v14, 2 }
  0xe9   : > { %v769_v44 = vld.sshfl [vmem:[#allocation1 + $0x20] sm:$0xff pattern:$0x73625140] }
  0xea   : > { %v907_v30 = vsel %vm895_vm2, %v905_v21, %v906_v23  ;;  %775 = vst [vmem:[#allocation1 + $0x20] ss:$4 sm:$0xff] %v713_v37  ;;  %v793_v0 = vadd.f32 %v769_v44, %v652_v62  ;;  %v6664_v44 = vpop.permute.xlu1 %2428 }
  0xeb   : > { %776 = vst [vmem:[#allocation1 + $0x21] ss:$4 sm:$0xff] %v714_v38 }
  0xec   : > { %777 = vst [vmem:[#allocation1 + $0x22] ss:$4 sm:$0xff] %v715_v39  ;;  %v823_v7 = vrot.slane %v793_v0, 7  ;;  %v5776_v0 = vld [vmem:[%s9837_s7 + $0x60] sm:$0xff] }
  0xed   : > { %956 = vrot.lane.b32.xlu1 %v904_v50, %s9853_s29  ;;  %778 = vst [vmem:[#allocation1 + $0x23] ss:$4 sm:$0xff] %v716_v41 }
  0xee   : > { %v851_v9 = vsel %vm9932_vm1, %v823_v7, 0.0 }
  0xef   : > { %v890_v17 = vrot.slane %v851_v9, 1 }
  0xf0   : > { %1026 = vrot.lane.b32.xlu0 %v904_v50, %s9855_s25  ;;  %1050 = vrot.lane.b32.xlu2 %v6535_v57, %s9848_s30  ;;  %v581_v50 = vadd.f32 %v6473_v47, %v580_v45  ;;  %v5780_v45 = vld [vmem:[%s9837_s7 + $0x80] sm:$0xff] }
  0xf2   : > { %v651_v53 = vmul.f32 %v6483_v55, %v581_v50 }
  0xf5   : > { %1002 = vrot.lane.b32.xlu1 %v879_v42, %s9851_s22 }
  0xf8   : > { %1072 = vrot.lane.b32.xlu0 %v879_v42, %s9857_s13  ;;  %936 = vrot.lane.b32.xlu2 %v6551_v33, %s9842_s14  ;;  %v764_v42 = vld.sshfl [vmem:[#allocation1] sm:$0xff pattern:$0x73625140] }
  0xf9   : > { %770 = vst [vmem:[#allocation1] ss:$4 sm:$0xff] %v713_v37  ;;  %v792_v61 = vadd.f32 %v764_v42, %v651_v53  ;;  %v586_v37 = vpop.f32.mrf.mxu0  ;;  %v5779_v53 = vld [vmem:[%s9837_s7 + $0x78] sm:$0xff] }
  0xfa   : > { %771 = vst [vmem:[#allocation1 + $0x1] ss:$4 sm:$0xff] %v714_v38 }
  0xfb   : > { %772 = vst [vmem:[#allocation1 + $0x2] ss:$4 sm:$0xff] %v715_v39  ;;  %v822_v63 = vrot.slane %v792_v61, 7  ;;  %v587_v39 = vadd.f32 %v6473_v47, %v586_v37  ;;  %v5777_v61 = vld [vmem:[%s9837_s7 + $0x68] sm:$0xff] }
  0xfc   : > { %773 = vst [vmem:[#allocation1 + $0x3] ss:$4 sm:$0xff] %v716_v41 }
  0xfd   : > { %982 = vrot.lane.b32.xlu1 %v6529_v54, %s9844_s16  ;;  %v6609_v4 = vsel %vm9932_vm1, 0.0, %v822_v63  ;;  %v850_v8 = vsel %vm9932_vm1, %v822_v63, 0.0  ;;  %v653_v46 = vmul.f32 %v6483_v55, %v587_v39 }
  0xfe   : > { %v911_v11 = vrot.slane %v6609_v4, 2  ;;  %v912_v12 = vrot.slane %v850_v8, 2  ;;  %v886_v20 = vrot.slane %v6609_v4, 1  ;;  %v887_v21 = vrot.slane %v850_v8, 1 }
 0x100   : > { %980 = vrot.lane.b32.xlu0 %v6535_v57, %s9844_s16  ;;  %958 = vrot.lane.b32.xlu2 %v907_v30, %s9853_s29  ;;  %v913_v19 = vsel %vm895_vm2, %v911_v11, %v912_v12  ;;  %v888_v25 = vsel %vm9931_vm3, %v886_v20, %v887_v21 }
 0x101   : > { %v589_v12 = vpop.f32.mrf.mxu0 }
 0x103   : > { %v774_v48 = vld.sshfl [vmem:[#allocation1] sm:$0xff pattern:$0x73625140] }
 0x104   : > { %v794_v50 = vadd.f32 %v774_v48, %v653_v46 }
 0x105   : > { %934 = vrot.lane.b32.xlu1 %v882_v43, %s9842_s14  ;;  %s9850_s14 = sshll.u32 %s6376_s12, 8 }
 0x106   : > { %v824_v62 = vrot.slane %v794_v50, 7 }
 0x108   : > { %1052 = vrot.lane.b32.xlu0 %v6529_v54, %s9848_s30  ;;  %1004 = vrot.lane.b32.xlu2 %v882_v43, %s9851_s22  ;;  %v6699_v8 = vsel %vm9932_vm1, 0.0, %v824_v62 }
 0x109   : > { %v917_v20 = vrot.slane %v6699_v8, 2 }
 0x10d   : > { %1028 = vrot.lane.b32.xlu1 %v907_v30, %s9855_s25 }
 0x110   : > { %960 = vrot.lane.b32.xlu0 %v910_v49, %s9853_s29  ;;  %1030 = vrot.lane.b32.xlu2 %v910_v49, %s9855_s25 }
 0x115   : > { %1074 = vrot.lane.b32.xlu1 %v882_v43, %s9857_s13  ;;  %v5781_v43 = vld [vmem:[%s9837_s7 + $0x88] sm:$0xff] }
 0x116   : > { %1226 = vmatpush.msrb.mxu2 %v5781_v43  ;;  %4942 = vmatpush.msra.mxu0 %v5781_v43 }
 0x118   : > { %1006 = vrot.lane.b32.xlu0 %v6551_v33, %s9851_s22  ;;  %1076 = vrot.lane.b32.xlu2 %v6551_v33, %s9857_s13  ;;  %v6617_v33 = vsel %vm9932_vm1, 0.0, %v823_v7 }
 0x119   : > { %v889_v14 = vrot.slane %v6617_v33, 1  ;;  %v914_v28 = vrot.slane %v6617_v33, 2  ;;  %1227 = vmatpush.msrb.mxu2 %v5780_v45  ;;  %4943 = vmatpush.msra.mxu0 %v5780_v45 }
 0x11b   : > { %v891_v23 = vsel %vm9931_vm3, %v889_v14, %v890_v17  ;;  %1228 = vmatpush.msrb.mxu2 %v5779_v53  ;;  %4944 = vmatpush.msra.mxu0 %v5779_v53  ;;  %v5775_v14 = vld [vmem:[%s9837_s7 + $0x58] sm:$0xff] }
 0x11d   : > { %1100 = vrot.lane.b32.xlu1 %v910_v49, %s9846_s15  ;;  %v6672_v49 = vpop.permute.xlu0 %1110  ;;  %1229 = vmatpush.msrb.mxu2 %v5778_v60 }
 0x11e   : > { %9971 = vst [vmem:[#allocation27_spill] sm:$0xff] %v6672_v49  ;;  %4945 = vmatpush.msra.mxu0 %v5778_v60 }
 0x11f   : > { %1230 = vmatpush.msrb.mxu2 %v5777_v61 }
 0x120   : > { %1098 = vrot.lane.b32.xlu0 %v907_v30, %s9846_s15  ;;  %984 = vrot.lane.b32.xlu2 %v6609_v4, %s9844_s16  ;;  %v915_v30 = vrot.slane %v851_v9, 2  ;;  %s9972_s15 = smov 32   ;;  %v852_v9 = vsel %vm9932_vm1, %v824_v62, 0.0  ;;  %v6070_v62 = vunpack.i.l.bf16 %v6651_v36 }
 0x121   : > { %4946 = vmatpush.msra.mxu0 %v5777_v61  ;;  %1231 = vmatpush.msrb.mxu2 %v5776_v0  ;;  %v918_v21 = vrot.slane %v852_v9, 2 }
 0x122   : > { %v916_v38 = vsel %vm895_vm2, %v914_v28, %v915_v30  ;;  %v893_v28 = vrot.slane %v852_v9, 1  ;;  %v590_v30 = vadd.f32 %v6473_v47, %v589_v12  ;;  %v6075_v9 = vunpack.i.l.bf16 %v6593_v58 }
 0x123   : > { %4947 = vmatpush.msra.mxu0 %v5776_v0  ;;  %1232 = vmatpush.msrb.mxu2 %v5775_v14  ;;  %v919_v37 = vsel %vm895_vm2, %v917_v20, %v918_v21 }
 0x124   : > { %v654_v47 = vmul.f32 %v6483_v55, %v590_v30 }
 0x125   : > { %1054 = vrot.lane.b32.xlu1 %v6609_v4, %s9848_s30  ;;  %4948 = vmatpush.msra.mxu0 %v5775_v14 }
 0x128   : > { %986 = vrot.lane.b32.xlu0 %v6617_v33, %s9844_s16  ;;  %1056 = vrot.lane.b32.xlu2 %v6617_v33, %s9848_s30  ;;  %s6641_s30 = scalar_lea.vmem %s9969_s2, %s9850_s14  ;;  %s9974_s16 = smov 24  }
 0x129   : > { %v483_v34 = vld [vmem:[%s6641_s30 + $0x40] sm:$0xff]  ;;  %v484_v42 = vld [vmem:[%s6641_s30 + $0x48] sm:$0xff]  ;;  %v485_v56 = vld [vmem:[%s6641_s30 + $0x50] sm:$0xff]  ;;  %s9977_s2 = smov 16  }
 0x12a   : > { %5799 = vmatmul.msk.f32.vlgmr.msra.gmra.mxu3 %vm526_vm0, %v483_v34  ;;  %v486_v17 = vld [vmem:[%s6641_s30 + $0x58] sm:$0xff]  ;;  %v475_v45 = vld [vmem:[%s6641_s30] sm:$0xff]  ;;  %v476_v53 = vld [vmem:[%s6641_s30 + $0x8] sm:$0xff] }
 0x12b   : > { %v487_v46 = vld [vmem:[%s6641_s30 + $0x60] sm:$0xff]  ;;  %5791 = vmatmul.msk.f32.vlgmr.msrb.gmra.mxu0 %vm526_vm0, %v475_v45  ;;  %v488_v61 = vld [vmem:[%s6641_s30 + $0x68] sm:$0xff]  ;;  %v489_v30 = vld [vmem:[%s6641_s30 + $0x70] sm:$0xff] }
 0x12d   : > { %962 = vrot.lane.b32.xlu1 %v913_v19, %s9853_s29 }
 0x130   : > { %940 = vrot.lane.b32.xlu0 %v891_v23, %s9968_s24  ;;  %938 = vrot.lane.b32.xlu2 %v888_v25, %s9968_s24 }
 0x132   : > { %v6643_v26 = vpop.permute.xlu2 %978  ;;  %5800 = vmatmul.msk.f32.gmra.mxu3 %vm526_vm0, %v484_v42  ;;  %v779_v42 = vld.sshfl [vmem:[#allocation1 + $0x20] sm:$0xff pattern:$0x73625140] }
 0x133   : > { %v795_v48 = vadd.f32 %v779_v42, %v654_v47  ;;  %5792 = vmatmul.msk.f32.gmra.mxu0 %vm526_vm0, %v476_v53  ;;  %v478_v53 = vld [vmem:[%s6641_s30 + $0x18] sm:$0xff] }
 0x135   : > { %1008 = vrot.lane.b32.xlu1 %v888_v25, %s9851_s22  ;;  %s9973_s22 = smov 64   ;;  %v825_v60 = vrot.slane %v795_v48, 7 }
 0x137   : > { %v853_v12 = vsel %vm9932_vm1, %v825_v60, 0.0  ;;  %v844_v14 = vsel %vm9932_vm1, 0.0, %v825_v60 }
 0x138   : > { %1032 = vrot.lane.b32.xlu0 %v913_v19, %s9855_s25  ;;  %964 = vrot.lane.b32.xlu2 %v916_v38, %s9853_s29  ;;  %v925_v20 = vrot.slane %v844_v14, 2  ;;  %v926_v21 = vrot.slane %v853_v12, 2  ;;  %v922_v45 = vrot.slane %v844_v14, 1 }
 0x13a   : > { %v6657_v41 = vpop.permute.xlu2 %1024  ;;  %5801 = vmatmul.msk.f32.gmra.mxu3 %vm526_vm0, %v485_v56  ;;  %v927_v42 = vsel %vm895_vm2, %v925_v20, %v926_v21 }
 0x13d   : > { %1034 = vrot.lane.b32.xlu1 %v916_v38, %s9855_s25  ;;  %s9976_s25 = smov 40  }
 0x140   : > { %1078 = vrot.lane.b32.xlu0 %v888_v25, %s9857_s13  ;;  %1010 = vrot.lane.b32.xlu2 %v891_v23, %s9972_s15  ;;  %v892_v25 = vrot.slane %v6699_v8, 1 }
 0x142   : > { %v6675_v52 = vpop.permute.xlu2 %1096  ;;  %5802 = vmatmul.msk.f32.gmra.mxu3 %vm526_vm0, %v486_v17  ;;  %v894_v39 = vsel %vm9931_vm3, %v892_v25, %v893_v28  ;;  %v1120_v17 = vsel %vm526_vm0, %v6418_v16, %v6070_v62  ;;  %v490_v62 = vld [vmem:[%s6641_s30 + $0x78] sm:$0xff] }
 0x143   : > { %v6760_v25 = vsel %vm1128_vm4, %v1120_v17, %v6075_v9  ;;  %v479_v17 = vld [vmem:[%s6641_s30 + $0x20] sm:$0xff] }
 0x144   : > { %9979 = vst [vmem:[#allocation28_spill] sm:$0xff] %v6760_v25 }
 0x145   : > { %1080 = vrot.lane.b32.xlu1 %v891_v23, %s9857_s13  ;;  %v5773_v23 = vld [vmem:[%s9837_s7 + $0x48] sm:$0xff]  ;;  %s9978_s13 = smov 56  }
 0x147   : > { %v6689_v63 = vpop.permute.xlu1 %976 }
 0x148   : > { %1104 = vrot.lane.b32.xlu0 %v916_v38, %s9973_s22  ;;  %1102 = vrot.lane.b32.xlu2 %v913_v19, %s9973_s22  ;;  %v5774_v19 = vld [vmem:[%s9837_s7 + $0x50] sm:$0xff] }
 0x149   : > { %1233 = vmatpush.msrb.mxu2 %v5774_v19  ;;  %4949 = vmatpush.msra.mxu0 %v5774_v19 }
 0x14a   : > { %v6696_v7 = vpop.permute.xlu0 %930  ;;  %v6702_v11 = vpop.permute.xlu2 %1050  ;;  %5803 = vmatmul.msk.f32.gmra.mxu3 %vm526_vm0, %v487_v46  ;;  %v923_v46 = vrot.slane %v853_v12, 1 }
 0x14b   : > { %1234 = vmatpush.msrb.mxu2 %v5773_v23  ;;  %4950 = vmatpush.msra.mxu0 %v5773_v23  ;;  %v477_v23 = vld [vmem:[%s6641_s30 + $0x10] sm:$0xff] }
 0x14c   : > { %5793 = vmatmul.msk.f32.gmra.mxu0 %vm526_vm0, %v477_v23 }
 0x14d   : > { %988 = vrot.lane.b32.xlu1 %v6699_v8, %s9974_s16 }
 0x14f   : > { %v6720_v34 = vpop.permute.xlu1 %1048 }
 0x150   : > { %1058 = vrot.lane.b32.xlu0 %v6699_v8, %s9975_s1  ;;  %1036 = vrot.lane.b32.xlu2 %v919_v37, %s9976_s25 }
 0x152   : > { %v6726_v38 = vpop.permute.xlu0 %954  ;;  %v6730_v43 = vpop.permute.xlu2 %936  ;;  %5804 = vmatmul.msk.f32.gmra.mxu3 %vm526_vm0, %v488_v61  ;;  %v924_v61 = vsel %vm9931_vm3, %v922_v45, %v923_v46  ;;  %v493_v46 = vld [vmem:[%s6641_s30 + $0x90] sm:$0xff] }
 0x154   : > { %5794 = vmatmul.msk.f32.gmra.mxu0 %vm526_vm0, %v478_v53  ;;  %v1121_v53 = vsel %vm526_vm0, %v6497_v18, %v6696_v7 }
 0x155   : > { %942 = vrot.lane.b32.xlu1 %v894_v39, %s9968_s24 }
 0x157   : > { %v6737_v50 = vpop.permute.xlu1 %932 }
 0x158   : > { %966 = vrot.lane.b32.xlu0 %v919_v37, %s9977_s2  ;;  %1082 = vrot.lane.b32.xlu2 %v894_v39, %s9978_s13  ;;  %v1122_v18 = vsel %vm526_vm0, %v6504_v24, %v6737_v50 }
 0x15a   : > { %v1001_v56 = vpop.permute.xlu0 %1000  ;;  %v6744_v0 = vpop.permute.xlu2 %958  ;;  %5805 = vmatmul.msk.f32.gmra.mxu3 %vm526_vm0, %v489_v30  ;;  %v492_v30 = vld [vmem:[%s6641_s30 + $0x88] sm:$0xff] }
 0x15c   : > { %5795 = vmatmul.msk.f32.gmra.mxu0 %vm526_vm0, %v479_v17  ;;  %v482_v17 = vld [vmem:[%s6641_s30 + $0x38] sm:$0xff] }
 0x15d   : > { %1106 = vrot.lane.b32.xlu1 %v919_v37, %s9973_s22  ;;  %v1138_v37 = vsel %vm1137_vm5, %v6760_v25, %v6689_v63 }
 0x15f   : > { %v6754_v19 = vpop.permute.xlu1 %956 }
 0x160   : > { %1012 = vrot.lane.b32.xlu0 %v894_v39, %s9972_s15  ;;  %990 = vrot.lane.b32.xlu2 %v844_v14, %s9974_s16  ;;  %v1147_v39 = vsel %vm1146_vm6, %v1138_v37, %v1001_v56  ;;  %v480_v37 = vld [vmem:[%s6641_s30 + $0x28] sm:$0xff] }
 0x161   : > { %v1156_v63 = vsel %vm1155_vm7, %v1147_v39, %v6657_v41 }
 0x162   : > { %v6762_v28 = vpop.permute.xlu0 %1026  ;;  %v6770_v47 = vpop.permute.xlu2 %1004  ;;  %v1165_v56 = vsel %vm1164_vm8, %v1156_v63, %v6720_v34  ;;  %5806 = vmatmul.msk.f32.gmra.mxu3 %vm526_vm0, %v490_v62  ;;  %v481_v63 = vld [vmem:[%s6641_s30 + $0x30] sm:$0xff] }
 0x164   : > { %5796 = vmatmul.msk.f32.gmra.mxu0 %vm526_vm0, %v480_v37 }
 0x165   : > { %1060 = vrot.lane.b32.xlu1 %v844_v14, %s9975_s1 }
 0x167   : > { %v1003_v48 = vpop.permute.xlu1 %1002 }
 0x168   : > { %1038 = vrot.lane.b32.xlu0 %v927_v42, %s9976_s25  ;;  %1108 = vrot.lane.b32.xlu2 %v927_v42, %s9973_s22 }
 0x16a   : > { %v1073_v60 = vpop.permute.xlu0 %1072  ;;  %v6791_v34 = vpop.permute.xlu2 %1030 }
 0x16b   : > { %v1174_v41 = vsel %vm1173_vm9, %v1165_v56, %v1073_v60  ;;  %v1130_v56 = vsel %vm1128_vm4, %v1121_v53, %v6726_v38 }
 0x16c   : > { %v1183_v9 = vsel %vm1182_vm10, %v1174_v41, %v6675_v52  ;;  %v491_v52 = vld [vmem:[%s6641_s30 + $0x80] sm:$0xff]  ;;  %5797 = vmatmul.msk.f32.gmra.mxu0 %vm526_vm0, %v481_v63  ;;  %v1139_v41 = vsel %vm1137_vm5, %v1130_v56, %v6643_v26  ;;  %v1131_v26 = vsel %vm1128_vm4, %v1122_v18, %v6754_v19 }
 0x16d   : > { %1014 = vrot.lane.b32.xlu1 %v924_v61, %s9972_s15  ;;  %5783 = vmatmul.msk.f32.vlgmr.msrb.gmra.mxu2 %vm1194_vm11, %v1183_v9  ;;  %v1148_v9 = vsel %vm1146_vm6, %v1139_v41, %v1003_v48  ;;  %v495_v63 = vld [vmem:[%s6641_s30 + $0xa0] sm:$0xff] }
 0x16e   : > { %5807 = vmatmul.msk.f32.gmra.mxu3 %vm526_vm0, %v491_v52  ;;  %v494_v52 = vld [vmem:[%s6641_s30 + $0x98] sm:$0xff]  ;;  %v1157_v7 = vsel %vm1155_vm7, %v1148_v9, %v6762_v28 }
 0x16f   : > { %v6793_v12 = vpop.permute.xlu1 %982 }
 0x170   : > { %1084 = vrot.lane.b32.xlu0 %v924_v61, %s9978_s13 }
 0x172   : > { %v981_v14 = vpop.permute.xlu0 %980  ;;  %v1077_v21 = vpop.permute.xlu2 %1076 }
 0x173   : > { %v1140_v48 = vsel %vm1137_vm5, %v1131_v26, %v981_v14  ;;  %v498_v26 = vld [vmem:[%s6641_s30 + $0xb8] sm:$0xff] }
 0x174   : > { %5798 = vmatmul.msk.f32.gmra.mxu0 %vm526_vm0, %v482_v17  ;;  %v1149_v24 = vsel %vm1146_vm6, %v1140_v48, %v6770_v47 }
 0x176   : > { %5808 = vmatmul.msk.f32.gmra.mxu3 %vm526_vm0, %v492_v30  ;;  %v1166_v30 = vsel %vm1164_vm8, %v1157_v7, %v6702_v11 }
 0x177   : > { %v935_v20 = vpop.permute.xlu1 %934 }
 0x17a   : > { %v1053_v23 = vpop.permute.xlu0 %1052  ;;  %v6804_v42 = vpop.permute.xlu2 %984 }
 0x17e   : > { %5809 = vmatmul.msk.f32.gmra.mxu3 %vm526_vm0, %v493_v46 }
 0x17f   : > { %v1029_v39 = vpop.permute.xlu1 %1028 }
 0x180   : > { %v1158_v19 = vsel %vm1155_vm7, %v1149_v24, %v1029_v39 }
 0x181   : > { %v1167_v14 = vsel %vm1164_vm8, %v1158_v19, %v1053_v23  ;;  %v1123_v23 = vsel %vm526_vm0, %v6535_v57, %v935_v20  ;;  %v1124_v57 = vsel %vm526_vm0, %v6529_v54, %v6730_v43 }
 0x182   : > { %v961_v45 = vpop.permute.xlu0 %960  ;;  %v1057_v61 = vpop.permute.xlu2 %1056  ;;  %v1176_v56 = vsel %vm1173_vm9, %v1167_v14, %v1077_v21  ;;  %v1132_v18 = vsel %vm1128_vm4, %v1123_v23, %v6744_v0 }
 0x183   : > { %v1133_v20 = vsel %vm1128_vm4, %v1124_v57, %v961_v45 }
 0x186   : > { %5810 = vmatmul.msk.f32.gmra.mxu3 %vm526_vm0, %v494_v52  ;;  %v497_v52 = vld [vmem:[%s6641_s30 + $0xb0] sm:$0xff] }
 0x187   : > { %v1075_v60 = vpop.permute.xlu1 %1074 }
 0x188   : > { %v1175_v37 = vsel %vm1173_vm9, %v1166_v30, %v1075_v60  ;;  %v496_v60 = vld [vmem:[%s6641_s30 + $0xa8] sm:$0xff] }
 0x18a   : > { %v1007_v62 = vpop.permute.xlu0 %1006  ;;  %v939_v28 = vpop.permute.xlu2 %938 }
 0x18e   : > { %5811 = vmatmul.msk.f32.gmra.mxu3 %vm526_vm0, %v495_v63 }
 0x18f   : > { %v1101_v38 = vpop.permute.xlu1 %1100 }
 0x190   : > { %v1185_v47 = vsel %vm1182_vm10, %v1176_v56, %v1101_v38  ;;  %v1141_v38 = vsel %vm1137_vm5, %v1132_v18, %v6793_v12  ;;  %v1125_v56 = vsel %vm526_vm0, %v6609_v4, %v939_v28 }
 0x191   : > { %v1150_v48 = vsel %vm1146_vm6, %v1141_v38, %v1007_v62  ;;  %v499_v62 = vld [vmem:[%s6641_s30 + $0xc0] sm:$0xff] }
 0x192   : > { %v1099_v46 = vpop.permute.xlu0 %1098  ;;  %v6845_v41 = vpop.permute.xlu2 %964 }
 0x193   : > { %v1184_v50 = vsel %vm1182_vm10, %v1175_v37, %v1099_v46  ;;  %v1159_v37 = vsel %vm1155_vm7, %v1150_v48, %v6791_v34  ;;  %v502_v48 = vld [vmem:[%s6641_s30 + $0xd8] sm:$0xff] }
 0x194   : > { %5784 = vmatmul.msk.f32.gmra.mxu2 %vm1194_vm11, %v1184_v50  ;;  %v1142_v50 = vsel %vm1137_vm5, %v1133_v20, %v6804_v42  ;;  %v500_v42 = vld [vmem:[%s6641_s30 + $0xc8] sm:$0xff] }
 0x196   : > { %5812 = vmatmul.msk.f32.gmra.mxu3 %vm526_vm0, %v496_v60 }
 0x197   : > { %v1055_v11 = vpop.permute.xlu1 %1054 }
 0x198   : > { %v1168_v46 = vsel %vm1164_vm8, %v1159_v37, %v1055_v11 }
 0x19a   : > { %v987_v53 = vpop.permute.xlu0 %986  ;;  %v1011_v21 = vpop.permute.xlu2 %1010 }
 0x19c   : > { %5785 = vmatmul.msk.f32.gmra.mxu2 %vm1194_vm11, %v1185_v47 }
 0x19e   : > { %5813 = vmatmul.msk.f32.gmra.mxu3 %vm526_vm0, %v497_v52 }
 0x19f   : > { %v963_v39 = vpop.permute.xlu1 %962 }
 0x1a0   : > { %v1134_v60 = vsel %vm1128_vm4, %v1125_v56, %v963_v39 }
 0x1a2   : > { %v941_v9 = vpop.permute.xlu0 %940  ;;  %v1103_v0 = vpop.permute.xlu2 %1102 }
 0x1a6   : > { %5814 = vmatmul.msk.f32.gmra.mxu3 %vm526_vm0, %v498_v26 }
 0x1a7   : > { %v1009_v17 = vpop.permute.xlu1 %1008 }
 0x1a8   : > { %v1151_v54 = vsel %vm1146_vm6, %v1142_v50, %v1009_v17  ;;  %v1143_v17 = vsel %vm1137_vm5, %v1134_v60, %v987_v53  ;;  %v1378_v60 = vpop.f32.mrf.mxu0 }
 0x1aa   : > { %v1033_v7 = vpop.permute.xlu0 %1032  ;;  %v1037_v52 = vpop.permute.xlu2 %1036 }
 0x1ab   : > { %v1160_v43 = vsel %vm1155_vm7, %v1151_v54, %v1033_v7  ;;  %v1152_v7 = vsel %vm1146_vm6, %v1143_v17, %v1011_v21  ;;  %v1126_v21 = vsel %vm526_vm0, %v6617_v33, %v941_v9 }
 0x1ac   : > { %v1169_v45 = vsel %vm1164_vm8, %v1160_v43, %v1057_v61  ;;  %v501_v61 = vld [vmem:[%s6641_s30 + $0xd0] sm:$0xff] }
 0x1ae   : > { %5815 = vmatmul.msk.f32.gmra.mxu3 %vm526_vm0, %v499_v62 }
 0x1af   : > { %v1035_v30 = vpop.permute.xlu1 %1034 }
 0x1b0   : > { %v1161_v38 = vsel %vm1155_vm7, %v1152_v7, %v1035_v30 }
 0x1b2   : > { %v1079_v24 = vpop.permute.xlu0 %1078  ;;  %v1083_v28 = vpop.permute.xlu2 %1082 }
 0x1b3   : > { %v1177_v12 = vsel %vm1173_vm9, %v1168_v46, %v1079_v24 }
 0x1b4   : > { %v1186_v63 = vsel %vm1182_vm10, %v1177_v12, %v1103_v0  ;;  %v503_v0 = vld [vmem:[%s6641_s30 + $0xe0] sm:$0xff]  ;;  %v1135_v12 = vsel %vm1128_vm4, %v1126_v21, %v6845_v41 }
 0x1b5   : > { %5786 = vmatmul.msk.f32.gmra.mxu2 %vm1194_vm11, %v1186_v63 }
 0x1b6   : > { %5816 = vmatmul.msk.f32.gmra.mxu3 %vm526_vm0, %v500_v42 }
 0x1b7   : > { %v1081_v34 = vpop.permute.xlu1 %1080 }
 0x1b8   : > { %v1178_v19 = vsel %vm1173_vm9, %v1169_v45, %v1081_v34  ;;  %v504_v45 = vld [vmem:[%s6641_s30 + $0xe8] sm:$0xff] }
 0x1ba   : > { %v1105_v14 = vpop.permute.xlu0 %1104  ;;  %v991_v30 = vpop.permute.xlu2 %990 }
 0x1bb   : > { %v1187_v11 = vsel %vm1182_vm10, %v1178_v19, %v1105_v14 }
 0x1bd   : > { %5787 = vmatmul.msk.f32.gmra.mxu2 %vm1194_vm11, %v1187_v11 }
 0x1be   : > { %5817 = vmatmul.msk.f32.gmra.mxu3 %vm526_vm0, %v501_v61 }
 0x1bf   : > { %v989_v47 = vpop.permute.xlu1 %988 }
 0x1c0   : > { %v1144_v50 = vsel %vm1137_vm5, %v1135_v12, %v989_v47  ;;  %v505_v47 = vld [vmem:[%s6641_s30 + $0xf0] sm:$0xff] }
 0x1c2   : > { %v1059_v23 = vpop.permute.xlu0 %1058  ;;  %v1109_v34 = vpop.permute.xlu2 %1108 }
 0x1c3   : > { %v1170_v4 = vsel %vm1164_vm8, %v1161_v38, %v1059_v23  ;;  %v6928_v23 = vld [vmem:[%s9838_s8 + $0x1] ss:$0 sm:$0xff] }
 0x1c4   : > { %v1179_v39 = vsel %vm1173_vm9, %v1170_v4, %v1083_v28 }
 0x1c6   : > { %5818 = vmatmul.msk.f32.gmra.mxu3 %vm526_vm0, %v502_v48 }
 0x1c7   : > { %v943_v18 = vpop.permute.xlu1 %942 }
 0x1c8   : > { %v1127_v24 = vsel %vm526_vm0, %v6699_v8, %v943_v18  ;;  %v506_v18 = vld [vmem:[%s6641_s30 + $0xf8] sm:$0xff]  ;;  %s5855_s30 = sld [smem:[#allocation5 + $0x1]] }
 0x1ca   : > { %v967_v26 = vpop.permute.xlu0 %966 }
 0x1cb   : > { %v1136_v62 = vsel %vm1128_vm4, %v1127_v24, %v967_v26  ;;  %v1381_v24 = vpop.f32.mrf.mxu0 }
 0x1cc   : > { %v1145_v33 = vsel %vm1137_vm5, %v1136_v62, %v991_v30 }
 0x1ce   : > { %5819 = vmatmul.msk.f32.gmra.mxu3 %vm526_vm0, %v503_v0 }
 0x1cf   : > { %v1107_v57 = vpop.permute.xlu1 %1106 }
 0x1d0   : > { %v1188_v53 = vsel %vm1182_vm10, %v1179_v39, %v1107_v57 }
 0x1d1   : > { %5788 = vmatmul.msk.f32.gmra.mxu2 %vm1194_vm11, %v1188_v53 }
 0x1d2   : > { %v1013_v20 = vpop.permute.xlu0 %1012 }
 0x1d3   : > { %v1153_v63 = vsel %vm1146_vm6, %v1144_v50, %v1013_v20 }
 0x1d4   : > { %v1162_v43 = vsel %vm1155_vm7, %v1153_v63, %v1037_v52 }
 0x1d6   : > { %5820 = vmatmul.msk.f32.gmra.mxu3 %vm526_vm0, %v504_v45  ;;  %v6946_v45 = vstv %s3659_s3 }
 0x1d7   : > { %v1061_v37 = vpop.permute.xlu1 %1060  ;;  %9980 = vst [vmem:[#allocation29_spill] sm:$0xff] %v6946_v45 }
 0x1d8   : > { %v1171_v8 = vsel %vm1164_vm8, %v1162_v43, %v1061_v37 }
 0x1da   : > { %v1039_v46 = vpop.permute.xlu0 %1038 }
 0x1de   : > { %5821 = vmatmul.msk.f32.gmra.mxu3 %vm526_vm0, %v505_v47 }
 0x1df   : > { %v1015_v9 = vpop.permute.xlu1 %1014 }
 0x1e0   : > { %v1154_v54 = vsel %vm1146_vm6, %v1145_v33, %v1015_v9  ;;  %v6941_v9 = vld [vmem:[%s9964_s6] ss:$0 sm:$0xff] }
 0x1e1   : > { %v1163_v41 = vsel %vm1155_vm7, %v1154_v54, %v1039_v46 }
 0x1e2   : > { %v1085_v19 = vpop.permute.xlu0 %1084  ;;  %v1172_v42 = vsel %vm1164_vm8, %v1163_v41, %v6605_v1 }
 0x1e3   : > { %v1180_v14 = vsel %vm1173_vm9, %v1171_v8, %v1085_v19  ;;  %v1181_v56 = vsel %vm1173_vm9, %v1172_v42, %v6645_v27  ;;  %v1379_v8 = vadd.f32 %v6941_v9, %v1378_v60  ;;  %v6083_v19 = vld [vmem:[%s6386_s0] sm:$0xff]  ;;  %v1384_v42 = vpop.f32.mrf.mxu0 }
 0x1e4   : > { %v1189_v11 = vsel %vm1182_vm10, %v1180_v14, %v1109_v34  ;;  %v1190_v52 = vsel %vm1182_vm10, %v1181_v56, %v6672_v49  ;;  %v3661_v41 = vmul.f32 %v6083_v19, %v6946_v45  ;;  %v1382_v14 = vadd.f32 %v6941_v9, %v1381_v24 }
 0x1e5   : > { %5789 = vmatmul.msk.f32.gmra.mxu2 %vm1194_vm11, %v1189_v11  ;;  %v6952_v11 = vstv %s5855_s30  ;;  %v1474_v47 = vmul.f32 %v1379_v8, %v6483_v55  ;;  %s10010_s30 = sshll.u32 %s6376_s12, 8  ;;  %s8068_s12 = sld [smem:[#allocation5 + $0x2]] }
 0x1e6   : > { %5822 = vmatmul.msk.f32.gmra.mxu3 %vm526_vm0, %v506_v18  ;;  %9981 = vst [vmem:[#allocation30_spill] sm:$0xff] %v6952_v11  ;;  %v1475_v18 = vmul.f32 %v1382_v14, %v6483_v55 }
 0x1ed   : > { %5790 = vmatmul.msk.f32.gmra.mxu2 %vm1194_vm11, %v1190_v52 }
 0x1f0   : > { %v1236_v61 = vpop.f32.mrf.mxu2 }
 0x1f1   : > { %v1237_v17 = vadd.f32 %v6928_v23, %v1236_v61 }
 0x1f3   : > { %v1514_v7 = vrot.slane %v1237_v17, 1  ;;  %v1515_v26 = vrot.slane %v1237_v17, 2  ;;  %v1516_v38 = vrot.slane %v1237_v17, 3  ;;  %v1517_v48 = vrot.slane %v1237_v17, 4 }
 0x1f4   : > { %v1518_v4 = vrot.slane %v1237_v17, 5  ;;  %v1519_v28 = vrot.slane %v1237_v17, 6  ;;  %v1520_v39 = vrot.slane %v1237_v17, 7  ;;  %v1570_v57 = vperm.slane %v1237_v17, 0 }
 0x1f5   : > { %v1571_v53 = vperm.slane %v1514_v7, 0  ;;  %v1572_v20 = vperm.slane %v1515_v26, 0  ;;  %v1573_v37 = vperm.slane %v1516_v38, 0  ;;  %v1574_v21 = vperm.slane %v1517_v48, 0 }
 0x1f6   : > { %v1575_v30 = vperm.slane %v1518_v4, 0  ;;  %v1576_v0 = vperm.slane %v1519_v28, 0  ;;  %v1698_v46 = vmul.f32 %v1570_v57, %v6465_v40  ;;  %v1577_v12 = vperm.slane %v1520_v39, 0  ;;  %v1387_v4 = vpop.f32.mrf.mxu0 }
 0x1f7   : > { %v1699_v62 = vmul.f32 %v1571_v53, %v6465_v40  ;;  %v1700_v50 = vmul.f32 %v1572_v20, %v6465_v40  ;;  %v1701_v63 = vmul.f32 %v1573_v37, %v6465_v40  ;;  %v1702_v33 = vmul.f32 %v1574_v21, %v6465_v40 }
 0x1f8   : > { %1826 = vst [vmem:[#allocation1] ss:$4 sm:$0xff] %v1698_v46  ;;  %v1703_v54 = vmul.f32 %v1575_v30, %v6465_v40  ;;  %v1704_v43 = vmul.f32 %v1576_v0, %v6465_v40  ;;  %v1705_v34 = vmul.f32 %v1577_v12, %v6465_v40  ;;  %v3671_v56 = vmul.f32 %v6952_v11, %v1237_v17 }
 0x1f9   : > { %1828 = vst [vmem:[#allocation1 + $0x1] ss:$4 sm:$0xff] %v1699_v62  ;;  %v1385_v21 = vadd.f32 %v6941_v9, %v1384_v42  ;;  %v1388_v30 = vadd.f32 %v6941_v9, %v1387_v4 }
 0x1fa   : > { %1830 = vst [vmem:[#allocation1 + $0x2] ss:$4 sm:$0xff] %v1700_v50  ;;  %v6956_v61 = vadd.f32 %v3671_v56, %v3661_v41 }
 0x1fb   : > { %1832 = vst [vmem:[#allocation1 + $0x3] ss:$4 sm:$0xff] %v1701_v63  ;;  %v1476_v24 = vmul.f32 %v1385_v21, %v6483_v55  ;;  %v1477_v12 = vmul.f32 %v1388_v30, %v6483_v55 }
 0x1fc   : > { %1834 = vst [vmem:[#allocation1 + $0x20] ss:$4 sm:$0xff] %v1702_v33 }
 0x1fd   : > { %1836 = vst [vmem:[#allocation1 + $0x21] ss:$4 sm:$0xff] %v1703_v54 }
 0x1fe   : > { %1838 = vst [vmem:[#allocation1 + $0x22] ss:$4 sm:$0xff] %v1704_v43 }
 0x1ff   : > { %1840 = vst [vmem:[#allocation1 + $0x23] ss:$4 sm:$0xff] %v1705_v34 }
 0x200   : > { %9982 = vst [vmem:[#allocation31_spill] sm:$0xff] %v6956_v61 }
 0x202   : > { %v1841_v52 = vld.sshfl [vmem:[#allocation1] sm:$0xff pattern:$0x73625140] }
 0x203   : > { %1843 = vst [vmem:[#allocation1] ss:$4 sm:$0xff] %v1698_v46  ;;  %v2025_v60 = vadd.f32 %v1841_v52, %v1474_v47 }
 0x204   : > { %1844 = vst [vmem:[#allocation1 + $0x1] ss:$4 sm:$0xff] %v1699_v62 }
 0x205   : > { %1845 = vst [vmem:[#allocation1 + $0x2] ss:$4 sm:$0xff] %v1700_v50  ;;  %v2100_v7 = vrot.slane %v2025_v60, 7 }
 0x206   : > { %v1842_v26 = vld.sshfl [vmem:[#allocation1 + $0x20] sm:$0xff pattern:$0x73625140]  ;;  %1846 = vst [vmem:[#allocation1 + $0x3] ss:$4 sm:$0xff] %v1701_v63 }
 0x207   : > { %1847 = vst [vmem:[#allocation1 + $0x20] ss:$4 sm:$0xff] %v1702_v33  ;;  %v2026_v38 = vadd.f32 %v1842_v26, %v1475_v18  ;;  %v6960_v48 = vsel %vm9932_vm1, 0.0, %v2100_v7 }
 0x208   : > { %1848 = vst [vmem:[#allocation1 + $0x21] ss:$4 sm:$0xff] %v1703_v54  ;;  %2618 = vrot.lane.b32.xlu2 %v6960_v48, %s9974_s16  ;;  %v2339_v62 = vrot.slane %v6960_v48, 2  ;;  %v2261_v33 = vrot.slane %v6960_v48, 1 }
 0x209   : > { %1849 = vst [vmem:[#allocation1 + $0x22] ss:$4 sm:$0xff] %v1704_v43  ;;  %v2101_v17 = vrot.slane %v2026_v38, 7 }
 0x20a   : > { %1850 = vst [vmem:[#allocation1 + $0x23] ss:$4 sm:$0xff] %v1705_v34 }
 0x20b   : > { %v6965_v28 = vsel %vm9932_vm1, %v2100_v7, %v2101_v17  ;;  %v2212_v39 = vsel %vm9932_vm1, %v2101_v17, 0.0 }
 0x20c   : > { %v2340_v57 = vrot.slane %v6965_v28, 2  ;;  %v2342_v53 = vrot.slane %v2212_v39, 2  ;;  %v2262_v20 = vrot.slane %v6965_v28, 1  ;;  %v2264_v37 = vrot.slane %v2212_v39, 1 }
 0x20d   : > { %v1851_v50 = vld.sshfl [vmem:[#allocation1] sm:$0xff pattern:$0x73625140] }
 0x20e   : > { %v2343_v0 = vsel %vm895_vm2, %v2340_v57, %v2342_v53  ;;  %v6974_v46 = vsel %vm9931_vm3, %v2262_v20, %v2264_v37  ;;  %v2027_v54 = vadd.f32 %v1851_v50, %v1476_v24  ;;  %v2341_v34 = vsel %vm895_vm2, %v2339_v62, %v2340_v57 }
 0x20f   : > { %2528 = vrot.lane.b32.xlu1 %v2343_v0, %s9977_s2  ;;  %2432 = vrot.lane.b32.xlu0 %v6974_v46, %s9968_s24  ;;  %v2263_v8 = vsel %vm9931_vm3, %v2261_v33, %v2262_v20 }
 0x210   : > { %2620 = vrot.lane.b32.xlu2 %v6965_v28, %s9974_s16  ;;  %v2103_v14 = vrot.slane %v2027_v54, 7 }
 0x211   : > { %v1852_v63 = vld.sshfl [vmem:[#allocation1 + $0x20] sm:$0xff pattern:$0x73625140] }
 0x212   : > { %v2028_v43 = vadd.f32 %v1852_v63, %v1477_v12  ;;  %v7002_v63 = vsel %vm9932_vm1, 0.0, %v2103_v14 }
 0x214   : > { %v2104_v42 = vrot.slane %v2028_v43, 7 }
 0x216   : > { %v6996_v62 = vsel %vm9932_vm1, %v2103_v14, %v2104_v42 }
 0x217   : > { %2810 = vrot.lane.b32.xlu1 %v2341_v34, %s9976_s25  ;;  %2526 = vrot.lane.b32.xlu0 %v2341_v34, %s9977_s2  ;;  %v1239_v19 = vpop.f32.mrf.mxu2  ;;  %v2267_v34 = vrot.slane %v6996_v62, 1 }
 0x218   : > { %2430 = vrot.lane.b32.xlu2 %v2263_v8, %s9968_s24  ;;  %v1240_v41 = vadd.f32 %v6928_v23, %v1239_v19  ;;  %v6084_v19 = vld [vmem:[%s6386_s0 + $0x8] sm:$0xff] }
 0x219   : > { %v3662_v14 = vmul.f32 %v6084_v19, %v6946_v45 }
 0x21a   : > { %v1521_v56 = vrot.slane %v1240_v41, 1  ;;  %v1522_v47 = vrot.slane %v1240_v41, 2  ;;  %v1523_v52 = vrot.slane %v1240_v41, 3  ;;  %v1524_v60 = vrot.slane %v1240_v41, 4 }
 0x21b   : > { %v1525_v18 = vrot.slane %v1240_v41, 5  ;;  %v1526_v7 = vrot.slane %v1240_v41, 6  ;;  %v1527_v26 = vrot.slane %v1240_v41, 7  ;;  %v1578_v38 = vperm.slane %v1240_v41, 0 }
 0x21c   : > { %v1579_v17 = vperm.slane %v1521_v56, 0  ;;  %v1580_v4 = vperm.slane %v1522_v47, 0  ;;  %v1581_v39 = vperm.slane %v1523_v52, 0  ;;  %v1582_v57 = vperm.slane %v1524_v60, 0 }
 0x21d   : > { %v1583_v53 = vperm.slane %v1525_v18, 0  ;;  %v1584_v20 = vperm.slane %v1526_v7, 0  ;;  %v1706_v37 = vmul.f32 %v1578_v38, %v6465_v40  ;;  %v1585_v21 = vperm.slane %v1527_v26, 0 }
 0x21e   : > { %v1707_v30 = vmul.f32 %v1579_v17, %v6465_v40  ;;  %v1708_v24 = vmul.f32 %v1580_v4, %v6465_v40  ;;  %v1709_v12 = vmul.f32 %v1581_v39, %v6465_v40  ;;  %v1710_v50 = vmul.f32 %v1582_v57, %v6465_v40  ;;  %v1390_v17 = vpop.f32.mrf.mxu0  ;;  %v6085_v4 = vld [vmem:[%s6386_s0 + $0x10] sm:$0xff] }
 0x21f   : > { %1853 = vst [vmem:[#allocation1] ss:$4 sm:$0xff] %v1706_v37  ;;  %2812 = vrot.lane.b32.xlu1 %v2343_v0, %s9976_s25  ;;  %2714 = vrot.lane.b32.xlu0 %v2263_v8, %s9972_s15  ;;  %v1711_v33 = vmul.f32 %v1583_v53, %v6465_v40  ;;  %v1712_v54 = vmul.f32 %v1584_v20, %v6465_v40  ;;  %v2266_v0 = vrot.slane %v7002_v63, 1  ;;  %v1242_v8 = vpop.f32.mrf.mxu2  ;;  %v7019_v47 = vsel %vm9932_vm1, %v2104_v42, 0.0 }
 0x220   : > { %1854 = vst [vmem:[#allocation1 + $0x1] ss:$4 sm:$0xff] %v1707_v30  ;;  %2906 = vrot.lane.b32.xlu2 %v7002_v63, %s9975_s1  ;;  %v1713_v43 = vmul.f32 %v1585_v21, %v6465_v40  ;;  %v1243_v52 = vadd.f32 %v6928_v23, %v1242_v8  ;;  %v3672_v60 = vmul.f32 %v6952_v11, %v1240_v41  ;;  %v2344_v42 = vrot.slane %v7002_v63, 2 }
 0x221   : > { %1855 = vst [vmem:[#allocation1 + $0x2] ss:$4 sm:$0xff] %v1708_v24  ;;  %v7016_v56 = vsel %vm9931_vm3, %v2266_v0, %v2267_v34  ;;  %v2345_v7 = vrot.slane %v6996_v62, 2  ;;  %v2347_v26 = vrot.slane %v7019_v47, 2  ;;  %v3663_v39 = vmul.f32 %v6085_v4, %v6946_v45 }
 0x222   : > { %1856 = vst [vmem:[#allocation1 + $0x3] ss:$4 sm:$0xff] %v1709_v12  ;;  %v7034_v38 = vadd.f32 %v3672_v60, %v3662_v14  ;;  %v1529_v41 = vrot.slane %v1243_v52, 2  ;;  %v1530_v53 = vrot.slane %v1243_v52, 3  ;;  %v1531_v21 = vrot.slane %v1243_v52, 4 }
 0x223   : > { %1857 = vst [vmem:[#allocation1 + $0x20] ss:$4 sm:$0xff] %v1710_v50  ;;  %v7039_v20 = vsel %vm895_vm2, %v2344_v42, %v2345_v7  ;;  %v1586_v0 = vperm.slane %v1243_v52, 0  ;;  %v1534_v19 = vrot.slane %v1243_v52, 7 }
 0x224   : > { %1858 = vst [vmem:[#allocation1 + $0x21] ss:$4 sm:$0xff] %v1711_v33  ;;  %v1588_v8 = vperm.slane %v1529_v41, 0  ;;  %v1589_v14 = vperm.slane %v1530_v53, 0  ;;  %v1590_v60 = vperm.slane %v1531_v21, 0 }
 0x225   : > { %1859 = vst [vmem:[#allocation1 + $0x22] ss:$4 sm:$0xff] %v1712_v54  ;;  %v1714_v42 = vmul.f32 %v1586_v0, %v6465_v40  ;;  %v1593_v41 = vperm.slane %v1534_v19, 0 }
 0x226   : > { %1860 = vst [vmem:[#allocation1 + $0x23] ss:$4 sm:$0xff] %v1713_v43  ;;  %v1393_v4 = vpop.f32.mrf.mxu0  ;;  %v1716_v10 = vmul.f32 %v1588_v8, %v6465_v40  ;;  %v1718_v53 = vmul.f32 %v1590_v60, %v6465_v40  ;;  %v2269_v8 = vrot.slane %v7019_v47, 1 }
 0x227   : > { %2434 = vrot.lane.b32.xlu1 %v7016_v56, %s9968_s24  ;;  %2716 = vrot.lane.b32.xlu0 %v6974_v46, %s9972_s15  ;;  %9983 = vst [vmem:[#allocation32_spill] sm:$0xff] %v7034_v38  ;;  %v1528_v46 = vrot.slane %v1243_v52, 1 }
 0x228   : > { %2908 = vrot.lane.b32.xlu2 %v6996_v62, %s9975_s1 }
 0x229   : > { %v7029_v18 = vld.sshfl [vmem:[#allocation1] sm:$0xff pattern:$0x73625140] }
 0x22a   : > { %1863 = vst [vmem:[#allocation1] ss:$4 sm:$0xff] %v1706_v37  ;;  %v7042_v37 = vsel %vm895_vm2, %v2345_v7, %v2347_v26 }
 0x22b   : > { %1864 = vst [vmem:[#allocation1 + $0x1] ss:$4 sm:$0xff] %v1707_v30  ;;  %v3673_v30 = vmul.f32 %v6952_v11, %v1243_v52 }
 0x22c   : > { %1865 = vst [vmem:[#allocation1 + $0x2] ss:$4 sm:$0xff] %v1708_v24  ;;  %v1532_v24 = vrot.slane %v1243_v52, 5 }
 0x22d   : > { %v1862_v57 = vld.sshfl [vmem:[#allocation1 + $0x20] sm:$0xff pattern:$0x73625140]  ;;  %1866 = vst [vmem:[#allocation1 + $0x3] ss:$4 sm:$0xff] %v1709_v12  ;;  %v1587_v12 = vperm.slane %v1528_v46, 0 }
 0x22e   : > { %1867 = vst [vmem:[#allocation1 + $0x20] ss:$4 sm:$0xff] %v1710_v50  ;;  %v1533_v50 = vrot.slane %v1243_v52, 6  ;;  %v1591_v26 = vperm.slane %v1532_v24, 0  ;;  %v1717_v52 = vmul.f32 %v1589_v14, %v6465_v40 }
 0x22f   : > { %1868 = vst [vmem:[#allocation1 + $0x21] ss:$4 sm:$0xff] %v1711_v33  ;;  %3095 = vrot.lane.b32.xlu1 %v7039_v20, %s9973_s22  ;;  %2532 = vrot.lane.b32.xlu0 %v7042_v37, %s9977_s2  ;;  %v7051_v33 = vadd.f32 %v3673_v30, %v3663_v39  ;;  %v1394_v39 = vadd.f32 %v6941_v9, %v1393_v4 }
 0x230   : > { %1869 = vst [vmem:[#allocation1 + $0x22] ss:$4 sm:$0xff] %v1712_v54  ;;  %2622 = vrot.lane.b32.xlu2 %v7002_v63, %s9974_s16  ;;  %v1715_v54 = vmul.f32 %v1587_v12, %v6465_v40  ;;  %v1592_v46 = vperm.slane %v1533_v50, 0  ;;  %v1719_v0 = vmul.f32 %v1591_v26, %v6465_v40  ;;  %v1721_v50 = vmul.f32 %v1593_v41, %v6465_v40 }
 0x231   : > { %1870 = vst [vmem:[#allocation1 + $0x23] ss:$4 sm:$0xff] %v1713_v43  ;;  %v1391_v43 = vadd.f32 %v6941_v9, %v1390_v17  ;;  %v1479_v12 = vmul.f32 %v1394_v39, %v6483_v55  ;;  %v2270_v26 = vsel %vm9931_vm3, %v2267_v34, %v2269_v8 }
 0x232   : > { %9984 = vst [vmem:[#allocation33_spill] sm:$0xff] %v7051_v33  ;;  %v1720_v17 = vmul.f32 %v1592_v46, %v6465_v40 }
 0x233   : > { %v1478_v24 = vmul.f32 %v1391_v43, %v6483_v55  ;;  %v2030_v60 = vadd.f32 %v1862_v57, %v1479_v12 }
 0x234   : > { %v7054_v7 = vld.sshfl [vmem:[#allocation1] sm:$0xff pattern:$0x73625140] }
 0x235   : > { %1873 = vst [vmem:[#allocation1] ss:$4 sm:$0xff] %v1714_v42  ;;  %v7080_v14 = vadd.f32 %v7029_v18, %v1478_v24  ;;  %v2107_v57 = vrot.slane %v2030_v60, 7 }
 0x236   : > { %1874 = vst [vmem:[#allocation1 + $0x1] ss:$4 sm:$0xff] %v1715_v54 }
 0x237   : > { %1875 = vst [vmem:[#allocation1 + $0x2] ss:$4 sm:$0xff] %v1716_v10  ;;  %3097 = vrot.lane.b32.xlu1 %v7042_v37, %s9973_s22  ;;  %2999 = vrot.lane.b32.xlu0 %v7016_v56, %s9978_s13  ;;  %v2106_v18 = vrot.slane %v7080_v14, 7  ;;  %v7106_v14 = vsel %vm9932_vm1, %v2107_v57, 0.0 }
 0x238   : > { %v7066_v21 = vld.sshfl [vmem:[#allocation1 + $0x20] sm:$0xff pattern:$0x73625140]  ;;  %1876 = vst [vmem:[#allocation1 + $0x3] ss:$4 sm:$0xff] %v1717_v52  ;;  %2624 = vrot.lane.b32.xlu2 %v6996_v62, %s9974_s16  ;;  %v1245_v30 = vpop.f32.mrf.mxu2 }
 0x239   : > { %1877 = vst [vmem:[#allocation1 + $0x20] ss:$4 sm:$0xff] %v1718_v53  ;;  %v7077_v19 = vadd.f32 %v6928_v23, %v1245_v30  ;;  %v7103_v8 = vsel %vm9932_vm1, %v2106_v18, %v2107_v57 }
 0x23a   : > { %1878 = vst [vmem:[#allocation1 + $0x21] ss:$4 sm:$0xff] %v1719_v0  ;;  %v9987_v35 = vrot.slane %v7103_v8, 2 }
 0x23b   : > { %1879 = vst [vmem:[#allocation1 + $0x22] ss:$4 sm:$0xff] %v1720_v17  ;;  %v1535_v47 = vrot.slane %v7077_v19, 1  ;;  %v1536_v46 = vrot.slane %v7077_v19, 2  ;;  %v1537_v34 = vrot.slane %v7077_v19, 3  ;;  %v1538_v43 = vrot.slane %v7077_v19, 4 }
 0x23c   : > { %1880 = vst [vmem:[#allocation1 + $0x23] ss:$4 sm:$0xff] %v1721_v50  ;;  %v1540_v30 = vrot.slane %v7077_v19, 6 }
 0x23d   : > { %v1595_v41 = vperm.slane %v1535_v47, 0  ;;  %v1596_v24 = vperm.slane %v1536_v46, 0  ;;  %v1597_v12 = vperm.slane %v1537_v34, 0 }
 0x23e   : > { %v1600_v60 = vperm.slane %v1540_v30, 0 }
 0x23f   : > { %v7085_v4 = vld.sshfl [vmem:[#allocation1] sm:$0xff pattern:$0x73625140]  ;;  %2814 = vrot.lane.b32.xlu1 %v7039_v20, %s9976_s25  ;;  %3001 = vrot.lane.b32.xlu0 %v2270_v26, %s9978_s13  ;;  %v1724_v47 = vmul.f32 %v1596_v24, %v6465_v40  ;;  %v1725_v34 = vmul.f32 %v1597_v12, %v6465_v40 }
 0x240   : > { %1883 = vst [vmem:[#allocation1] ss:$4 sm:$0xff] %v1714_v42  ;;  %2436 = vrot.lane.b32.xlu2 %v2270_v26, %s9968_s24  ;;  %v1594_v42 = vperm.slane %v7077_v19, 0  ;;  %v1248_v46 = vpop.f32.mrf.mxu2  ;;  %v1728_v30 = vmul.f32 %v1600_v60, %v6465_v40  ;;  %v6087_v24 = vld [vmem:[%s6386_s0 + $0x20] sm:$0xff]  ;;  %v7144_v60 = vsel %vm9932_vm1, 0.0, %v2106_v18 }
 0x241   : > { %1884 = vst [vmem:[#allocation1 + $0x1] ss:$4 sm:$0xff] %v1715_v54  ;;  %v1539_v54 = vrot.slane %v7077_v19, 5 }
 0x242   : > { %1885 = vst [vmem:[#allocation1 + $0x2] ss:$4 sm:$0xff] %v1716_v10  ;;  %v1541_v10 = vrot.slane %v7077_v19, 7 }
 0x243   : > { %v7096_v39 = vld.sshfl [vmem:[#allocation1 + $0x20] sm:$0xff pattern:$0x73625140]  ;;  %1886 = vst [vmem:[#allocation1 + $0x3] ss:$4 sm:$0xff] %v1717_v52  ;;  %v1598_v52 = vperm.slane %v1538_v43, 0 }
 0x244   : > { %1887 = vst [vmem:[#allocation1 + $0x20] ss:$4 sm:$0xff] %v1718_v53  ;;  %v1722_v53 = vmul.f32 %v1594_v42, %v6465_v40  ;;  %v1601_v57 = vperm.slane %v1541_v10, 0  ;;  %v6086_v42 = vld [vmem:[%s6386_s0 + $0x18] sm:$0xff]  ;;  %v3665_v10 = vmul.f32 %v6087_v24, %v6946_v45 }
 0x245   : > { %1888 = vst [vmem:[#allocation1 + $0x21] ss:$4 sm:$0xff] %v1719_v0  ;;  %v1599_v0 = vperm.slane %v1539_v54, 0  ;;  %v1726_v43 = vmul.f32 %v1598_v52, %v6465_v40  ;;  %v3664_v54 = vmul.f32 %v6086_v42, %v6946_v45 }
 0x246   : > { %1889 = vst [vmem:[#allocation1 + $0x22] ss:$4 sm:$0xff] %v1720_v17  ;;  %v1723_v17 = vmul.f32 %v1595_v41, %v6465_v40  ;;  %v1729_v52 = vmul.f32 %v1601_v57, %v6465_v40 }
 0x247   : > { %1890 = vst [vmem:[#allocation1 + $0x23] ss:$4 sm:$0xff] %v1721_v50  ;;  %2816 = vrot.lane.b32.xlu1 %v7042_v37, %s9976_s25  ;;  %2718 = vrot.lane.b32.xlu0 %v7016_v56, %s9972_s15  ;;  %v2272_v37 = vrot.slane %v7103_v8, 1  ;;  %v2274_v56 = vrot.slane %v7106_v14, 1  ;;  %v1727_v41 = vmul.f32 %v1599_v0, %v6465_v40  ;;  %v3674_v0 = vmul.f32 %v6952_v11, %v7077_v19 }
 0x248   : > { %2530 = vrot.lane.b32.xlu2 %v7039_v20, %s9977_s2  ;;  %v7127_v20 = vadd.f32 %v6928_v23, %v1248_v46  ;;  %v2349_v19 = vrot.slane %v7144_v60, 2 }
 0x249   : > { %v7136_v51 = vsel %vm9931_vm3, %v2272_v37, %v2274_v56  ;;  %v7146_v46 = vadd.f32 %v3674_v0, %v3664_v54  ;;  %v9861_v56 = vrot.slane %v7103_v8, 2  ;;  %v1396_v0 = vpop.f32.mrf.mxu0 }
 0x24a   : > { %v7117_v50 = vld.sshfl [vmem:[#allocation1] sm:$0xff pattern:$0x73625140]  ;;  %v3675_v57 = vmul.f32 %v6952_v11, %v7127_v20  ;;  %v1548_v59 = vrot.slane %v7127_v20, 7 }
 0x24b   : > { %1893 = vst [vmem:[#allocation1] ss:$4 sm:$0xff] %v1722_v53  ;;  %v7162_v54 = vsel %vm895_vm2, %v2349_v19, %v9861_v56  ;;  %v1602_v19 = vperm.slane %v7127_v20, 0 }
 0x24c   : > { %1894 = vst [vmem:[#allocation1 + $0x1] ss:$4 sm:$0xff] %v1723_v17  ;;  %v7155_v42 = vadd.f32 %v3675_v57, %v3665_v10  ;;  %v1542_v10 = vrot.slane %v7127_v20, 1  ;;  %v1543_v57 = vrot.slane %v7127_v20, 2 }
 0x24d   : > { %1895 = vst [vmem:[#allocation1 + $0x2] ss:$4 sm:$0xff] %v1724_v47 }
 0x24e   : > { %v7132_v12 = vld.sshfl [vmem:[#allocation1 + $0x20] sm:$0xff pattern:$0x73625140]  ;;  %1896 = vst [vmem:[#allocation1 + $0x3] ss:$4 sm:$0xff] %v1725_v34  ;;  %v1604_v56 = vperm.slane %v1543_v57, 0 }
 0x24f   : > { %1897 = vst [vmem:[#allocation1 + $0x20] ss:$4 sm:$0xff] %v1726_v43  ;;  %2440 = vrot.lane.b32.xlu1 %v7136_v51, %s9968_s24  ;;  %2720 = vrot.lane.b32.xlu0 %v2270_v26, %s9972_s15  ;;  %v2271_v26 = vrot.slane %v7144_v60, 1 }
 0x250   : > { %1898 = vst [vmem:[#allocation1 + $0x21] ss:$4 sm:$0xff] %v1727_v41  ;;  %2910 = vrot.lane.b32.xlu2 %v7144_v60, %s9975_s1 }
 0x251   : > { %9985 = vst [vmem:[#allocation34_spill] sm:$0xff] %v7146_v46  ;;  %v7165_v24 = vsel %vm9931_vm3, %v2271_v26, %v2272_v37  ;;  %v1545_v37 = vrot.slane %v7127_v20, 4  ;;  %v1603_v26 = vperm.slane %v1542_v10, 0 }
 0x252   : > { %1899 = vst [vmem:[#allocation1 + $0x22] ss:$4 sm:$0xff] %v1728_v30 }
 0x253   : > { %1900 = vst [vmem:[#allocation1 + $0x23] ss:$4 sm:$0xff] %v1729_v52  ;;  %v1606_v5 = vperm.slane %v1545_v37, 0  ;;  %v1731_v10 = vmul.f32 %v1603_v26, %v6465_v40  ;;  %v1399_v26 = vpop.f32.mrf.mxu0 }
 0x254   : > { %9986 = vst [vmem:[#allocation35_spill] sm:$0xff] %v7155_v42  ;;  %v1251_v6 = vpop.f32.mrf.mxu2 }
 0x255   : > { %v7157_v18 = vld.sshfl [vmem:[#allocation1] sm:$0xff pattern:$0x73625140]  ;;  %v7192_v57 = vadd.f32 %v6928_v23, %v1251_v6  ;;  %v1734_v6 = vmul.f32 %v1606_v5, %v6465_v40 }
 0x256   : > { %1903 = vst [vmem:[#allocation1] ss:$4 sm:$0xff] %v1722_v53 }
 0x257   : > { %1904 = vst [vmem:[#allocation1 + $0x1] ss:$4 sm:$0xff] %v1723_v17  ;;  %2534 = vrot.lane.b32.xlu1 %v7162_v54, %s9977_s2  ;;  %2438 = vrot.lane.b32.xlu0 %v7165_v24, %s9968_s24  ;;  %v1544_v17 = vrot.slane %v7127_v20, 3  ;;  %v3676_v3 = vmul.f32 %v6952_v11, %v7192_v57 }
 0x258   : > { %1905 = vst [vmem:[#allocation1 + $0x2] ss:$4 sm:$0xff] %v1724_v47  ;;  %2912 = vrot.lane.b32.xlu2 %v7103_v8, %s9975_s1  ;;  %v1546_v47 = vrot.slane %v7127_v20, 5 }
 0x259   : > { %1906 = vst [vmem:[#allocation1 + $0x3] ss:$4 sm:$0xff] %v1725_v34  ;;  %v1547_v34 = vrot.slane %v7127_v20, 6  ;;  %v1732_v20 = vmul.f32 %v1604_v56, %v6465_v40 }
 0x25a   : > { %v7172_v53 = vld.sshfl [vmem:[#allocation1 + $0x20] sm:$0xff pattern:$0x73625140] }
 0x25b   : > { %1907 = vst [vmem:[#allocation1 + $0x20] ss:$4 sm:$0xff] %v1726_v43  ;;  %v1605_v43 = vperm.slane %v1544_v17, 0  ;;  %v1608_v49 = vperm.slane %v1547_v34, 0  ;;  %v6088_v17 = vld [vmem:[%s6386_s0 + $0x28] sm:$0xff] }
 0x25c   : > { %1908 = vst [vmem:[#allocation1 + $0x21] ss:$4 sm:$0xff] %v1727_v41  ;;  %v1730_v41 = vmul.f32 %v1602_v19, %v6465_v40  ;;  %v3666_v37 = vmul.f32 %v6088_v17, %v6946_v45  ;;  %v1609_v19 = vperm.slane %v1548_v59, 0  ;;  %v1397_v17 = vadd.f32 %v6941_v9, %v1396_v0 }
 0x25d   : > { %1909 = vst [vmem:[#allocation1 + $0x22] ss:$4 sm:$0xff] %v1728_v30  ;;  %v1733_v27 = vmul.f32 %v1605_v43, %v6465_v40  ;;  %v1736_v59 = vmul.f32 %v1608_v49, %v6465_v40 }
 0x25e   : > { %1910 = vst [vmem:[#allocation1 + $0x23] ss:$4 sm:$0xff] %v1729_v52  ;;  %v1607_v52 = vperm.slane %v1546_v47, 0  ;;  %v2352_v47 = vrot.slane %v7106_v14, 2  ;;  %v1400_v14 = vadd.f32 %v6941_v9, %v1399_v26  ;;  %v1737_v5 = vmul.f32 %v1609_v19, %v6465_v40 }
 0x25f   : > { %3099 = vrot.lane.b32.xlu1 %v7162_v54, %s9973_s22  ;;  %3003 = vrot.lane.b32.xlu0 %v7165_v24, %s9978_s13  ;;  %v7216_v2 = vadd.f32 %v3676_v3, %v3666_v37  ;;  %v1480_v49 = vmul.f32 %v1397_v17, %v6483_v55  ;;  %v1549_v37 = vrot.slane %v7192_v57, 1  ;;  %v1550_v26 = vrot.slane %v7192_v57, 2 }
 0x260   : > { %v7188_v30 = vld.sshfl [vmem:[#allocation1] sm:$0xff pattern:$0x73625140]  ;;  %2626 = vrot.lane.b32.xlu2 %v7144_v60, %s9974_s16  ;;  %v1735_v56 = vmul.f32 %v1607_v52, %v6465_v40  ;;  %v2353_v52 = vsel %vm895_vm2, %v9987_v35, %v2352_v47  ;;  %v1481_v0 = vmul.f32 %v1400_v14, %v6483_v55  ;;  %v1553_v17 = vrot.slane %v7192_v57, 5 }
 0x261   : > { %1913 = vst [vmem:[#allocation1] ss:$4 sm:$0xff] %v1730_v41  ;;  %v2031_v3 = vadd.f32 %v7054_v7, %v1480_v49  ;;  %v1552_v7 = vrot.slane %v7192_v57, 4  ;;  %v1611_v14 = vperm.slane %v1549_v37, 0 }
 0x262   : > { %1914 = vst [vmem:[#allocation1 + $0x1] ss:$4 sm:$0xff] %v1731_v10  ;;  %v7209_v43 = vpop.permute.xlu2 %2618  ;;  %v2032_v35 = vadd.f32 %v7066_v21, %v1481_v0  ;;  %v1610_v21 = vperm.slane %v7192_v57, 0 }
 0x263   : > { %1915 = vst [vmem:[#allocation1 + $0x2] ss:$4 sm:$0xff] %v1732_v20  ;;  %v1614_v0 = vperm.slane %v1552_v7, 0 }
 0x264   : > { %1916 = vst [vmem:[#allocation1 + $0x3] ss:$4 sm:$0xff] %v1733_v27 }
 0x265   : > { %v7202_v34 = vld.sshfl [vmem:[#allocation1 + $0x20] sm:$0xff pattern:$0x73625140]  ;;  %9988 = vst [vmem:[#allocation36_spill] sm:$0xff] %v7216_v2 }
 0x266   : > { %1917 = vst [vmem:[#allocation1 + $0x20] ss:$4 sm:$0xff] %v1734_v6 }
 0x267   : > { %1918 = vst [vmem:[#allocation1 + $0x21] ss:$4 sm:$0xff] %v1735_v56  ;;  %3101 = vrot.lane.b32.xlu1 %v2353_v52, %s9973_s22  ;;  %3005 = vrot.lane.b32.xlu0 %v7136_v51, %s9978_s13 }
 0x268   : > { %1919 = vst [vmem:[#allocation1 + $0x22] ss:$4 sm:$0xff] %v1736_v59  ;;  %2628 = vrot.lane.b32.xlu2 %v7103_v8, %s9974_s16 }
 0x269   : > { %1920 = vst [vmem:[#allocation1 + $0x23] ss:$4 sm:$0xff] %v1737_v5 }
 0x26a   : > { %v7233_v2 = vpop.permute.xlu2 %2620 }
 0x26b   : > { %v7225_v19 = vld.sshfl [vmem:[#allocation1] sm:$0xff pattern:$0x73625140] }
 0x26c   : > { %1923 = vst [vmem:[#allocation1] ss:$4 sm:$0xff] %v1730_v41  ;;  %v1551_v41 = vrot.slane %v7192_v57, 3 }
 0x26d   : > { %1924 = vst [vmem:[#allocation1 + $0x1] ss:$4 sm:$0xff] %v1731_v10  ;;  %v2109_v10 = vrot.slane %v2031_v3, 7  ;;  %v1738_v3 = vmul.f32 %v1610_v21, %v6465_v40 }
 0x26e   : > { %1925 = vst [vmem:[#allocation1 + $0x2] ss:$4 sm:$0xff] %v1732_v20  ;;  %v2110_v20 = vrot.slane %v2032_v35, 7  ;;  %v6089_v35 = vld [vmem:[%s6386_s0 + $0x30] sm:$0xff] }
 0x26f   : > { %1926 = vst [vmem:[#allocation1 + $0x3] ss:$4 sm:$0xff] %v1733_v27  ;;  %2818 = vrot.lane.b32.xlu1 %v7162_v54, %s9976_s25  ;;  %2722 = vrot.lane.b32.xlu0 %v7165_v24, %s9972_s15  ;;  %v1254_v27 = vpop.f32.mrf.mxu2  ;;  %v1554_v54 = vrot.slane %v7192_v57, 6  ;;  %v1555_v24 = vrot.slane %v7192_v57, 7 }
 0x270   : > { %v7230_v47 = vld.sshfl [vmem:[#allocation1 + $0x20] sm:$0xff pattern:$0x73625140]  ;;  %2536 = vrot.lane.b32.xlu2 %v2353_v52, %s9977_s2  ;;  %v7247_v49 = vadd.f32 %v6928_v23, %v1254_v27  ;;  %v7253_v37 = vsel %vm9932_vm1, %v2109_v10, %v2110_v20  ;;  %v2215_v57 = vsel %vm9932_vm1, %v2110_v20, 0.0 }
 0x271   : > { %1927 = vst [vmem:[#allocation1 + $0x20] ss:$4 sm:$0xff] %v1734_v6  ;;  %v1612_v6 = vperm.slane %v1550_v26, 0  ;;  %v1739_v26 = vmul.f32 %v1611_v14, %v6465_v40  ;;  %v1617_v7 = vperm.slane %v1555_v24, 0  ;;  %v1742_v14 = vmul.f32 %v1614_v0, %v6465_v40 }
 0x272   : > { %1928 = vst [vmem:[#allocation1 + $0x21] ss:$4 sm:$0xff] %v1735_v56  ;;  %v1613_v56 = vperm.slane %v1551_v41, 0  ;;  %v1616_v41 = vperm.slane %v1554_v54, 0  ;;  %v7267_v20 = vpop.permute.xlu2 %2430  ;;  %v7270_v54 = vsel %vm9932_vm1, 0.0, %v2109_v10  ;;  %v9875_v10 = vrot.slane %v7253_v37, 1 }
 0x273   : > { %1929 = vst [vmem:[#allocation1 + $0x22] ss:$4 sm:$0xff] %v1736_v59  ;;  %v3667_v59 = vmul.f32 %v6089_v35, %v6946_v45  ;;  %v1740_v27 = vmul.f32 %v1612_v6, %v6465_v40  ;;  %v2279_v35 = vrot.slane %v2215_v57, 1  ;;  %v1745_v25 = vmul.f32 %v1617_v7, %v6465_v40 }
 0x274   : > { %1930 = vst [vmem:[#allocation1 + $0x23] ss:$4 sm:$0xff] %v1737_v5  ;;  %v1615_v5 = vperm.slane %v1553_v17, 0  ;;  %v1741_v21 = vmul.f32 %v1613_v56, %v6465_v40  ;;  %v3677_v17 = vmul.f32 %v6952_v11, %v7247_v49  ;;  %v1744_v0 = vmul.f32 %v1616_v41, %v6465_v40 }
 0x275   : > { %9989 = vst [vmem:[#allocation37_spill] sm:$0xff] %v7253_v37  ;;  %v1618_v29 = vperm.slane %v7247_v49, 0  ;;  %v1562_v33 = vrot.slane %v7247_v49, 7 }
 0x276   : > { %v7255_v42 = vld.sshfl [vmem:[#allocation1] sm:$0xff pattern:$0x73625140]  ;;  %9990 = vst [vmem:[#allocation38_spill] sm:$0xff] %v7270_v54  ;;  %v1743_v24 = vmul.f32 %v1615_v5, %v6465_v40  ;;  %v7278_v56 = vadd.f32 %v3677_v17, %v3667_v59  ;;  %v7294_v59 = vsel %vm9931_vm3, %v9875_v10, %v2279_v35  ;;  %v2354_v17 = vrot.slane %v7270_v54, 2 }
 0x277   : > { %1933 = vst [vmem:[#allocation1] ss:$4 sm:$0xff] %v1738_v3  ;;  %2820 = vrot.lane.b32.xlu1 %v2353_v52, %s9976_s25  ;;  %2724 = vrot.lane.b32.xlu0 %v7136_v51, %s9972_s15  ;;  %v2355_v52 = vrot.slane %v7253_v37, 2  ;;  %v2357_v51 = vrot.slane %v2215_v57, 2  ;;  %v1257_v1 = vpop.f32.mrf.mxu2  ;;  %v6090_v57 = vld [vmem:[%s6386_s0 + $0x38] sm:$0xff]  ;;  %v1557_v35 = vrot.slane %v7247_v49, 2  ;;  %s7861_s0 = scalar_lea.vmem %s9839_s9, %s10010_s30 }
 0x278   : > { %1934 = vst [vmem:[#allocation1 + $0x1] ss:$4 sm:$0xff] %v1739_v26  ;;  %2914 = vrot.lane.b32.xlu2 %v7270_v54, %s9975_s1  ;;  %v7287_v46 = vadd.f32 %v6928_v23, %v1257_v1  ;;  %v3668_v41 = vmul.f32 %v6090_v57, %v6946_v45  ;;  %v1556_v1 = vrot.slane %v7247_v49, 1  ;;  %v1558_v57 = vrot.slane %v7247_v49, 3  ;;  %s9450_s30 = sand.u32 1, %s6220_s18  }
 0x279   : > { %1935 = vst [vmem:[#allocation1 + $0x2] ss:$4 sm:$0xff] %v1740_v27  ;;  %v7284_v5 = vsel %vm895_vm2, %v2355_v52, %v2357_v51  ;;  %v1402_v51 = vpop.f32.mrf.mxu3  ;;  %v1559_v45 = vrot.slane %v7247_v49, 4  ;;  %s5748_s14 = sshll.u32 %s9450_s30, 6 }
 0x27a   : > { %1936 = vst [vmem:[#allocation1 + $0x3] ss:$4 sm:$0xff] %v1741_v21  ;;  %v7303_v23 = vpop.permute.xlu2 %2906  ;;  %v3678_v10 = vmul.f32 %v6952_v11, %v7287_v46  ;;  %v1619_v22 = vperm.slane %v1556_v1, 0  ;;  %v2356_v11 = vsel %vm895_vm2, %v2354_v17, %v2355_v52  ;;  %v1621_v38 = vperm.slane %v1558_v57, 0 }
 0x27b   : > { %v7273_v6 = vld.sshfl [vmem:[#allocation1 + $0x20] sm:$0xff pattern:$0x73625140]  ;;  %9991 = vst [vmem:[#allocation39_spill] sm:$0xff] %v7278_v56  ;;  %v1403_v57 = vadd.f32 %v6941_v9, %v1402_v51 }
 0x27c   : > { %1937 = vst [vmem:[#allocation1 + $0x20] ss:$4 sm:$0xff] %v1742_v14  ;;  %v7319_v31 = vadd.f32 %v3678_v10, %v3668_v41  ;;  %v1747_v41 = vmul.f32 %v1619_v22, %v6465_v40 }
 0x27d   : > { %1938 = vst [vmem:[#allocation1 + $0x21] ss:$4 sm:$0xff] %v1743_v24 }
 0x27e   : > { %1939 = vst [vmem:[#allocation1 + $0x22] ss:$4 sm:$0xff] %v1744_v0 }
 0x27f   : > { %1940 = vst [vmem:[#allocation1 + $0x23] ss:$4 sm:$0xff] %v1745_v25  ;;  %2540 = vrot.lane.b32.xlu1 %v7284_v5, %s9977_s2  ;;  %2444 = vrot.lane.b32.xlu0 %v7294_v59, %s9968_s24 }
 0x280   : > { %2916 = vrot.lane.b32.xlu2 %v7253_v37, %s9975_s1  ;;  %9994 = vst [vmem:[#allocation42_spill] sm:$0xff] %v7319_v31 }
 0x281   : > { %v7300_v7 = vld.sshfl [vmem:[#allocation1] sm:$0xff pattern:$0x73625140]  ;;  %v7315_v56 = vpop.permute.xlu1 %2528  ;;  %v7317_v32 = vpop.permute.xlu0 %2432 }
 0x282   : > { %9992 = vst [vmem:[#allocation40_spill] sm:$0xff] %v7300_v7 }
 0x283   : > { %1943 = vst [vmem:[#allocation1] ss:$4 sm:$0xff] %v1738_v3 }
 0x284   : > { %1944 = vst [vmem:[#allocation1 + $0x1] ss:$4 sm:$0xff] %v1739_v26  ;;  %v1560_v26 = vrot.slane %v7247_v49, 5 }
 0x285   : > { %1945 = vst [vmem:[#allocation1 + $0x2] ss:$4 sm:$0xff] %v1740_v27  ;;  %v1561_v27 = vrot.slane %v7247_v49, 6  ;;  %v1625_v49 = vperm.slane %v1562_v33, 0 }
 0x286   : > { %v7312_v3 = vld.sshfl [vmem:[#allocation1 + $0x20] sm:$0xff pattern:$0x73625140]  ;;  %1946 = vst [vmem:[#allocation1 + $0x3] ss:$4 sm:$0xff] %v1741_v21  ;;  %v1620_v21 = vperm.slane %v1557_v35, 0  ;;  %v1749_v35 = vmul.f32 %v1621_v38, %v6465_v40 }
 0x287   : > { %9993 = vst [vmem:[#allocation41_spill] sm:$0xff] %v7312_v3  ;;  %3103 = vrot.lane.b32.xlu1 %v2356_v11, %s9973_s22  ;;  %2538 = vrot.lane.b32.xlu0 %v2356_v11, %s9977_s2  ;;  %v1623_v10 = vperm.slane %v1560_v26, 0  ;;  %v1624_v52 = vperm.slane %v1561_v27, 0  ;;  %v9996_v38 = vrot.slane %v7253_v37, 1  ;;  %v1753_v51 = vmul.f32 %v1625_v49, %v6465_v40 }
 0x288   : > { %1947 = vst [vmem:[#allocation1 + $0x20] ss:$4 sm:$0xff] %v1742_v14  ;;  %v1622_v14 = vperm.slane %v1559_v45, 0  ;;  %2630 = vrot.lane.b32.xlu2 %v7270_v54, %s9974_s16  ;;  %v1748_v1 = vmul.f32 %v1620_v21, %v6465_v40  ;;  %v1405_v45 = vpop.f32.mrf.mxu3 }
 0x289   : > { %1948 = vst [vmem:[#allocation1 + $0x21] ss:$4 sm:$0xff] %v1743_v24  ;;  %v1746_v24 = vmul.f32 %v1618_v29, %v6465_v40  ;;  %v1406_v26 = vadd.f32 %v6941_v9, %v1405_v45  ;;  %v1751_v29 = vmul.f32 %v1623_v10, %v6465_v40  ;;  %v1752_v27 = vmul.f32 %v1624_v52, %v6465_v40  ;;  %v7344_v21 = vpop.permute.xlu1 %2810  ;;  %v7346_v33 = vpop.permute.xlu0 %2526 }
 0x28a   : > { %1949 = vst [vmem:[#allocation1 + $0x22] ss:$4 sm:$0xff] %v1744_v0  ;;  %v2276_v0 = vrot.slane %v7270_v54, 1  ;;  %v1750_v22 = vmul.f32 %v1622_v14, %v6465_v40  ;;  %v1482_v10 = vmul.f32 %v1403_v57, %v6483_v55 }
 0x28b   : > { %1950 = vst [vmem:[#allocation1 + $0x23] ss:$4 sm:$0xff] %v1745_v25  ;;  %v7337_v25 = vpop.permute.xlu2 %2908  ;;  %v1483_v52 = vmul.f32 %v1406_v26, %v6483_v55 }
 0x28c   : > { %v2278_v14 = vsel %vm9931_vm3, %v2276_v0, %v9996_v38  ;;  %v2033_v0 = vadd.f32 %v7085_v4, %v1482_v10  ;;  %v1563_v4 = vrot.slane %v7287_v46, 1  ;;  %v1564_v10 = vrot.slane %v7287_v46, 2 }
 0x28d   : > { %v7334_v17 = vld.sshfl [vmem:[#allocation1] sm:$0xff pattern:$0x73625140]  ;;  %v7365_v49 = vadd.f32 %v7096_v39, %v1483_v52  ;;  %v1626_v52 = vperm.slane %v7287_v46, 0 }
 0x28e   : > { %9995 = vst [vmem:[#allocation43_spill] sm:$0xff] %v7334_v17  ;;  %v2112_v26 = vrot.slane %v2033_v0, 7  ;;  %v1627_v0 = vperm.slane %v1563_v4, 0 }
 0x28f   : > { %1953 = vst [vmem:[#allocation1] ss:$4 sm:$0xff] %v1746_v24  ;;  %3105 = vrot.lane.b32.xlu1 %v7284_v5, %s9973_s22  ;;  %3007 = vrot.lane.b32.xlu0 %v2278_v14, %s9978_s13  ;;  %v9885_v61 = vrot.slane %v7365_v49, 7 }
 0x290   : > { %1954 = vst [vmem:[#allocation1 + $0x1] ss:$4 sm:$0xff] %v1747_v41  ;;  %2632 = vrot.lane.b32.xlu2 %v7253_v37, %s9974_s16  ;;  %v7401_v37 = vsel %vm9932_vm1, 0.0, %v2112_v26 }
 0x291   : > { %1955 = vst [vmem:[#allocation1 + $0x2] ss:$4 sm:$0xff] %v1748_v1  ;;  %v7369_v31 = vpop.permute.xlu1 %2812  ;;  %v7371_v57 = vpop.permute.xlu0 %2714 }
 0x292   : > { %1956 = vst [vmem:[#allocation1 + $0x3] ss:$4 sm:$0xff] %v1749_v35  ;;  %v7354_v9 = vld.sshfl [vmem:[#allocation1 + $0x20] sm:$0xff pattern:$0x73625140] }
 0x293   : > { %9997 = vst [vmem:[#allocation44_spill] sm:$0xff] %v7354_v9  ;;  %v7361_v45 = vpop.permute.xlu2 %2622 }
 0x294   : > { %1957 = vst [vmem:[#allocation1 + $0x20] ss:$4 sm:$0xff] %v1750_v22 }
 0x295   : > { %1958 = vst [vmem:[#allocation1 + $0x21] ss:$4 sm:$0xff] %v1751_v29 }
 0x296   : > { %1959 = vst [vmem:[#allocation1 + $0x22] ss:$4 sm:$0xff] %v1752_v27 }
 0x297   : > { %1960 = vst [vmem:[#allocation1 + $0x23] ss:$4 sm:$0xff] %v1753_v51  ;;  %2822 = vrot.lane.b32.xlu1 %v2356_v11, %s9976_s25  ;;  %3009 = vrot.lane.b32.xlu0 %v7294_v59, %s9978_s13  ;;  %v1565_v11 = vrot.slane %v7287_v46, 3 }
 0x298   : > { %2442 = vrot.lane.b32.xlu2 %v2278_v14, %s9968_s24 }
 0x299   : > { %v7367_v38 = vld.sshfl [vmem:[#allocation1] sm:$0xff pattern:$0x73625140]  ;;  %v1629_v54 = vperm.slane %v1565_v11, 0  ;;  %v7419_v11 = vmul.f32 %v1627_v0, %v6465_v40 }
 0x29a   : > { %9998 = vst [vmem:[#allocation45_spill] sm:$0xff] %v7367_v38  ;;  %v7394_v38 = vpop.permute.xlu1 %2434 }
 0x29b   : > { %1963 = vst [vmem:[#allocation1] ss:$4 sm:$0xff] %v1746_v24  ;;  %v7383_v24 = vpop.permute.xlu2 %2624 }
 0x29c   : > { %1964 = vst [vmem:[#allocation1 + $0x1] ss:$4 sm:$0xff] %v1747_v41  ;;  %v1566_v41 = vrot.slane %v7287_v46, 4 }
 0x29d   : > { %1965 = vst [vmem:[#allocation1 + $0x2] ss:$4 sm:$0xff] %v1748_v1  ;;  %v7390_v1 = vsel %vm9932_vm1, %v2112_v26, %v9885_v61  ;;  %v6071_v61 = vunpack.i.h.bf16 %v6651_v36 }
 0x29e   : > { %1966 = vst [vmem:[#allocation1 + $0x3] ss:$4 sm:$0xff] %v1749_v35  ;;  %v7379_v39 = vld.sshfl [vmem:[#allocation1 + $0x20] sm:$0xff pattern:$0x73625140]  ;;  %v1567_v35 = vrot.slane %v7287_v46, 5 }
 0x29f   : > { %9999 = vst [vmem:[#allocation46_spill] sm:$0xff] %v7379_v39  ;;  %v1628_v39 = vperm.slane %v1564_v10, 0  ;;  %2824 = vrot.lane.b32.xlu1 %v7284_v5, %s9976_s25  ;;  %2726 = vrot.lane.b32.xlu0 %v2278_v14, %s9972_s15  ;;  %v1630_v4 = vperm.slane %v1566_v41, 0  ;;  %v7410_v10 = vmul.f32 %v1626_v52, %v6465_v40  ;;  %v2064_v5 = vld [vmem:[%s9837_s7 + $0x38] sm:$0xff]  ;;  %v2063_v14 = vld [vmem:[%s9837_s7 + $0x30] sm:$0xff]  ;;  %v2281_v41 = vrot.slane %v7401_v37, 1 }
 0x2a0   : > { %1967 = vst [vmem:[#allocation1 + $0x20] ss:$4 sm:$0xff] %v1750_v22  ;;  %v1568_v22 = vrot.slane %v7287_v46, 6  ;;  %v1631_v26 = vperm.slane %v1567_v35, 0  ;;  %2918 = vrot.lane.b32.xlu2 %v7401_v37, %s9975_s1  ;;  %v6076_v52 = vunpack.i.h.bf16 %v6593_v58  ;;  %v7432_v35 = vpop.f32.mrf.mxu3  ;;  %v3191_v0 = vsel %vm526_vm0, %v6418_v16, %v6071_v61  ;;  %v2062_v58 = vld [vmem:[%s9837_s7 + $0x28] sm:$0xff] }
 0x2a1   : > { %1968 = vst [vmem:[#allocation1 + $0x21] ss:$4 sm:$0xff] %v1751_v29  ;;  %v7396_v29 = vpop.permute.xlu0 %2716 }
 0x2a2   : > { %1969 = vst [vmem:[#allocation1 + $0x22] ss:$4 sm:$0xff] %v1752_v27  ;;  %v1569_v27 = vrot.slane %v7287_v46, 7  ;;  %v1632_v9 = vperm.slane %v1568_v22, 0  ;;  %v1759_v61 = vmul.f32 %v1631_v26, %v6465_v40  ;;  %v10003_v26 = vrot.slane %v7365_v49, 7 }
 0x2a3   : > { %1970 = vst [vmem:[#allocation1 + $0x23] ss:$4 sm:$0xff] %v1753_v51  ;;  %v2065_v51 = vld [vmem:[%s9837_s7 + $0x40] sm:$0xff]  ;;  %v7438_v17 = vpop.permute.xlu2 %2436 }
 0x2a4   : > { %3553 = vmatpush.msra.mxu1 %v2065_v51  ;;  %5982 = vmatpush.msra.mxu2 %v2065_v51  ;;  %v7429_v51 = vmul.f32 %v1628_v39, %v6465_v40  ;;  %v1633_v36 = vperm.slane %v1569_v27, 0  ;;  %v7444_v39 = vmul.f32 %v1630_v4, %v6465_v40  ;;  %v10002_v27 = vrot.slane %v7390_v1, 1 }
 0x2a5   : > { %v7416_v46 = vld.sshfl [vmem:[#allocation1] sm:$0xff pattern:$0x73625140]  ;;  %v3223_v4 = vsel %vm1128_vm4, %v3191_v0, %v6076_v52  ;;  %v1760_v3 = vmul.f32 %v1632_v9, %v6465_v40  ;;  %v7468_v7 = vsel %vm9932_vm1, %v10003_v26, 0.0  ;;  %v2060_v9 = vld [vmem:[%s9837_s7 + $0x18] sm:$0xff] }
 0x2a6   : > { %10000 = vst [vmem:[#allocation47_spill] sm:$0xff] %v7416_v46  ;;  %3554 = vmatpush.msra.mxu1 %v2064_v5  ;;  %5983 = vmatpush.msra.mxu2 %v2064_v5  ;;  %v1757_v46 = vmul.f32 %v1629_v54, %v6465_v40  ;;  %v2061_v54 = vld [vmem:[%s9837_s7 + $0x20] sm:$0xff]  ;;  %v7456_v5 = vsel %vm9931_vm3, %v2281_v41, %v10002_v27  ;;  %v2058_v27 = vld [vmem:[%s9837_s7 + $0x8] sm:$0xff] }
 0x2a7   : > { %1973 = vst [vmem:[#allocation1] ss:$4 sm:$0xff] %v7410_v10  ;;  %2446 = vrot.lane.b32.xlu1 %v7456_v5, %s9968_s24  ;;  %v3255_v41 = vsel %vm1137_vm5, %v3223_v4, %v7209_v43  ;;  %v1761_v52 = vmul.f32 %v1633_v36, %v6465_v40  ;;  %2728 = vrot.lane.b32.xlu0 %v7294_v59, %s9972_s15  ;;  %v2059_v43 = vld [vmem:[%s9837_s7 + $0x10] sm:$0xff]  ;;  %v2359_v40 = vrot.slane %v7401_v37, 2  ;;  %v2360_v36 = vrot.slane %v7390_v1, 2 }
 0x2a8   : > { %1974 = vst [vmem:[#allocation1 + $0x1] ss:$4 sm:$0xff] %v7419_v11  ;;  %3555 = vmatpush.msra.mxu1 %v2063_v14  ;;  %5984 = vmatpush.msra.mxu2 %v2063_v14  ;;  %v3096_v14 = vpop.permute.xlu1 %3095  ;;  %v3287_v49 = vsel %vm1146_vm6, %v3255_v41, %v7371_v57  ;;  %v2362_v59 = vrot.slane %v7468_v7, 2  ;;  %v3192_v57 = vsel %vm526_vm0, %v6414_v15, %v6664_v44  ;;  %v2057_v44 = vld [vmem:[%s9837_s7] sm:$0xff] }
 0x2a9   : > { %1975 = vst [vmem:[#allocation1 + $0x2] ss:$4 sm:$0xff] %v7429_v51  ;;  %2920 = vrot.lane.b32.xlu2 %v7390_v1, %s9975_s1  ;;  %v3319_v0 = vsel %vm1155_vm7, %v3287_v49, %v7344_v21  ;;  %v7505_v26 = vsel %vm895_vm2, %v2359_v40, %v2360_v36  ;;  %v3224_v21 = vsel %vm1128_vm4, %v3192_v57, %v6623_v13 }
 0x2aa   : > { %v7447_v22 = vld.sshfl [vmem:[#allocation1 + $0x20] sm:$0xff pattern:$0x73625140]  ;;  %1976 = vst [vmem:[#allocation1 + $0x3] ss:$4 sm:$0xff] %v1757_v46  ;;  %3556 = vmatpush.msra.mxu1 %v2062_v58  ;;  %5985 = vmatpush.msra.mxu2 %v2062_v58  ;;  %v3351_v49 = vsel %vm1164_vm8, %v3319_v0, %v7303_v23  ;;  %v3256_v40 = vsel %vm1137_vm5, %v3224_v21, %v7233_v2 }
 0x2ab   : > { %10001 = vst [vmem:[#allocation48_spill] sm:$0xff] %v7447_v22  ;;  %v7461_v22 = vpop.permute.xlu0 %2532  ;;  %v7493_v58 = vpop.permute.xlu2 %2530  ;;  %v3288_v23 = vsel %vm1146_vm6, %v3256_v40, %v7396_v29  ;;  %v7535_v29 = vsel %vm9925_vm12, %v6418_v16, 0.0  ;;  %vm9928_vm12 = vcmask 1044484  }
 0x2ac   : > { %1977 = vst [vmem:[#allocation1 + $0x20] ss:$4 sm:$0xff] %v7444_v39  ;;  %3557 = vmatpush.msra.mxu1 %v2061_v54  ;;  %5986 = vmatpush.msra.mxu2 %v2061_v54  ;;  %v1411_v54 = vpop.f32.mrf.mxu3  ;;  %v3320_v2 = vsel %vm1155_vm7, %v3288_v23, %v7369_v31 }
 0x2ad   : > { %1978 = vst [vmem:[#allocation1 + $0x21] ss:$4 sm:$0xff] %v1759_v61 }
 0x2ae   : > { %1979 = vst [vmem:[#allocation1 + $0x22] ss:$4 sm:$0xff] %v1760_v3  ;;  %3558 = vmatpush.msra.mxu1 %v2060_v9  ;;  %5987 = vmatpush.msra.mxu2 %v2060_v9 }
 0x2af   : > { %1980 = vst [vmem:[#allocation1 + $0x23] ss:$4 sm:$0xff] %v1761_v52  ;;  %3107 = vrot.lane.b32.xlu1 %v7505_v26, %s9973_s22 }
 0x2b0   : > { %3559 = vmatpush.msra.mxu1 %v2059_v43  ;;  %v3098_v41 = vpop.permute.xlu1 %3097  ;;  %5988 = vmatpush.msra.mxu2 %v2059_v43  ;;  %10004 = vst [vmem:[#allocation49_spill] sm:$0xff] %v7535_v29 }
 0x2b1   : > { %v7498_v4 = vld.sshfl [vmem:[#allocation1] sm:$0xff pattern:$0x73625140]  ;;  %2634 = vrot.lane.b32.xlu2 %v7401_v37, %s9974_s16 }
 0x2b2   : > { %1983 = vst [vmem:[#allocation1] ss:$4 sm:$0xff] %v7410_v10  ;;  %3560 = vmatpush.msra.mxu1 %v2058_v27  ;;  %v2363_v10 = vsel %vm895_vm2, %v2360_v36, %v2362_v59  ;;  %5989 = vmatpush.msra.mxu2 %v2058_v27  ;;  %v2284_v59 = vrot.slane %v7468_v7, 1 }
 0x2b3   : > { %1984 = vst [vmem:[#allocation1 + $0x1] ss:$4 sm:$0xff] %v7419_v11  ;;  %v3000_v9 = vpop.permute.xlu0 %2999  ;;  %2544 = vrot.lane.b32.xlu0 %v2363_v10, %s9977_s2 }
 0x2b4   : > { %1985 = vst [vmem:[#allocation1 + $0x2] ss:$4 sm:$0xff] %v7429_v51  ;;  %v3383_v13 = vsel %vm1173_vm9, %v3351_v49, %v3000_v9  ;;  %3561 = vmatpush.msra.mxu1 %v2057_v44  ;;  %5990 = vmatpush.msra.mxu2 %v2057_v44  ;;  %v7540_v51 = vld [vmem:[%s9964_s6] ss:$0 sm:$0xff] }
 0x2b5   : > { %1986 = vst [vmem:[#allocation1 + $0x3] ss:$4 sm:$0xff] %v1757_v46  ;;  %v3415_v57 = vsel %vm1182_vm10, %v3383_v13, %v3096_v14  ;;  %v7531_v46 = vpop.permute.xlu2 %2910  ;;  %v3352_v14 = vsel %vm1164_vm8, %v3320_v2, %v7337_v25 }
 0x2b6   : > { %v7520_v11 = vld.sshfl [vmem:[#allocation1 + $0x20] sm:$0xff pattern:$0x73625140]  ;;  %5823 = vmatmul.msk.f32.vlgmr.msra.gmra.mxu1 %vm1194_vm11, %v3415_v57 }
 0x2b7   : > { %1987 = vst [vmem:[#allocation1 + $0x20] ss:$4 sm:$0xff] %v7444_v39  ;;  %v1409_v39 = vadd.f32 %v7540_v51, %v7432_v35  ;;  %3109 = vrot.lane.b32.xlu1 %v2363_v10, %s9973_s22 }
 0x2b8   : > { %1988 = vst [vmem:[#allocation1 + $0x21] ss:$4 sm:$0xff] %v1759_v61  ;;  %v2815_v61 = vpop.permute.xlu1 %2814 }
 0x2b9   : > { %1989 = vst [vmem:[#allocation1 + $0x22] ss:$4 sm:$0xff] %v1760_v3  ;;  %v1412_v3 = vadd.f32 %v7540_v51, %v1411_v54  ;;  %2636 = vrot.lane.b32.xlu2 %v7390_v1, %s9974_s16  ;;  %v1484_v25 = vmul.f32 %v1409_v39, %v6483_v55 }
 0x2ba   : > { %1990 = vst [vmem:[#allocation1 + $0x23] ss:$4 sm:$0xff] %v1761_v52  ;;  %v7548_v52 = vpop.f32.mrf.mxu3 }
 0x2bb   : > { %v3002_v31 = vpop.permute.xlu0 %3001  ;;  %3011 = vrot.lane.b32.xlu0 %v7456_v5, %s9978_s13  ;;  %v1485_v36 = vmul.f32 %v1412_v3, %v6483_v55  ;;  %v2035_v27 = vadd.f32 %v7117_v50, %v1484_v25 }
 0x2bc   : > { %v7550_v16 = vld.sshfl [vmem:[#allocation1] sm:$0xff pattern:$0x73625140]  ;;  %v3384_v43 = vsel %vm1173_vm9, %v3352_v14, %v3002_v31  ;;  %v3193_v14 = vsel %vm526_vm0, %v6960_v48, %v7267_v20 }
 0x2bd   : > { %10005 = vst [vmem:[#allocation50_spill] sm:$0xff] %v7550_v16  ;;  %v3416_v35 = vsel %vm1182_vm10, %v3384_v43, %v3098_v41  ;;  %v2913_v0 = vpop.permute.xlu2 %2912  ;;  %v2036_v54 = vadd.f32 %v7132_v12, %v1485_v36  ;;  %v10006_v41 = vrot.slane %v7390_v1, 1  ;;  %v2115_v7 = vrot.slane %v2035_v27, 7  ;;  %v10019_v16 = vld [vmem:[#allocation43_spill] sm:$0xff] }
 0x2be   : > { %5298 = vst [vmem:[#allocation1] ss:$2 sm:$0xff] %v7535_v29  ;;  %5824 = vmatmul.msk.f32.gmra.mxu1 %vm1194_vm11, %v3416_v35 }
 0x2bf   : > { %2826 = vrot.lane.b32.xlu1 %v7505_v26, %s9976_s25  ;;  %v2285_v9 = vsel %vm9931_vm3, %v10006_v41, %v2284_v59  ;;  %v2116_v40 = vrot.slane %v2036_v54, 7  ;;  %v7607_v35 = vsel %vm9932_vm1, 0.0, %v2115_v7  ;;  %v3194_v59 = vsel %vm526_vm0, %v6965_v28, %v7317_v32 }
 0x2c0   : > { %v2817_v44 = vpop.permute.xlu1 %2816  ;;  %v2364_v20 = vrot.slane %v7607_v35, 2  ;;  %v2286_v36 = vrot.slane %v7607_v35, 1  ;;  %v3226_v41 = vsel %vm1128_vm4, %v3194_v59, %v7315_v56 }
 0x2c1   : > { %2448 = vrot.lane.b32.xlu2 %v2285_v9, %s9968_s24  ;;  %v7577_v12 = vsel %vm9932_vm1, %v2115_v7, %v2116_v40  ;;  %v2217_v13 = vsel %vm9932_vm1, %v2116_v40, 0.0  ;;  %v3258_v28 = vsel %vm1137_vm5, %v3226_v41, %v7383_v24 }
 0x2c2   : > { %v7571_v49 = vpop.f32.mrf.mxu3  ;;  %v2287_v2 = vrot.slane %v7577_v12, 1  ;;  %v2289_v39 = vrot.slane %v2217_v13, 1 }
 0x2c3   : > { %v2719_v21 = vpop.permute.xlu0 %2718  ;;  %3013 = vrot.lane.b32.xlu0 %v2285_v9, %s9978_s13  ;;  %v1418_v59 = vadd.f32 %v7540_v51, %v7571_v49 }
 0x2c4   : > { %v7596_v43 = vsel %vm9931_vm3, %v2287_v2, %v2289_v39  ;;  %v2288_v32 = vsel %vm9931_vm3, %v2286_v36, %v2287_v2  ;;  %v1415_v36 = vadd.f32 %v7540_v51, %v7548_v52 }
 0x2c5   : > { %v7574_v50 = vpop.permute.xlu2 %2626 }
 0x2c7   : > { %2828 = vrot.lane.b32.xlu1 %v2363_v10, %s9976_s25 }
 0x2c8   : > { %v7580_v23 = vpop.permute.xlu1 %2440 }
 0x2c9   : > { %2542 = vrot.lane.b32.xlu2 %v7505_v26, %s9977_s2 }
 0x2ca   : > { %v7588_v3 = vpop.f32.mrf.mxu3 }
 0x2cb   : > { %v2721_v57 = vpop.permute.xlu0 %2720  ;;  %2730 = vrot.lane.b32.xlu0 %v7456_v5, %s9972_s15  ;;  %v3225_v5 = vsel %vm1128_vm4, %v3193_v14, %v7346_v33  ;;  %v2365_v33 = vrot.slane %v7577_v12, 2 }
 0x2cc   : > { %v3257_v25 = vsel %vm1137_vm5, %v3225_v5, %v7361_v45  ;;  %v3290_v39 = vsel %vm1146_vm6, %v3258_v28, %v2721_v57 }
 0x2cd   : > { %v7590_v31 = vpop.permute.xlu2 %2628  ;;  %v3289_v48 = vsel %vm1146_vm6, %v3257_v25, %v2719_v21  ;;  %v2366_v21 = vsel %vm895_vm2, %v2364_v20, %v2365_v33 }
 0x2ce   : > { %v3321_v27 = vsel %vm1155_vm7, %v3289_v48, %v2815_v61 }
 0x2cf   : > { %2452 = vrot.lane.b32.xlu1 %v7596_v43, %s9968_s24  ;;  %v3353_v40 = vsel %vm1164_vm8, %v3321_v27, %v7531_v46  ;;  %v3322_v46 = vsel %vm1155_vm7, %v3290_v39, %v2817_v44  ;;  %v2367_v44 = vrot.slane %v2217_v13, 2  ;;  %v1486_v13 = vmul.f32 %v1415_v36, %v6483_v55 }
 0x2d0   : > { %v7600_v10 = vpop.permute.xlu1 %2534  ;;  %v3354_v24 = vsel %vm1164_vm8, %v3322_v46, %v2913_v0 }
 0x2d1   : > { %2922 = vrot.lane.b32.xlu2 %v7607_v35, %s9975_s1  ;;  %v2368_v0 = vsel %vm895_vm2, %v2365_v33, %v2367_v44  ;;  %v1487_v33 = vmul.f32 %v1418_v59, %v6483_v55  ;;  %v2037_v49 = vadd.f32 %v7157_v18, %v1486_v13 }
 0x2d2   : > { %v7624_v54 = vpop.f32.mrf.mxu3 }
 0x2d3   : > { %v7602_v26 = vpop.permute.xlu0 %2438  ;;  %2732 = vrot.lane.b32.xlu0 %v2285_v9, %s9972_s15 }
 0x2d5   : > { %v7622_v45 = vpop.permute.xlu2 %2536 }
 0x2d7   : > { %2546 = vrot.lane.b32.xlu1 %v2366_v21, %s9977_s2 }
 0x2d8   : > { %v3100_v9 = vpop.permute.xlu1 %3099 }
 0x2d9   : > { %2924 = vrot.lane.b32.xlu2 %v7577_v12, %s9975_s1 }
 0x2da   : > { %v7647_v25 = vpop.f32.mrf.mxu3 }
 0x2db   : > { %v3004_v7 = vpop.permute.xlu0 %3003  ;;  %2450 = vrot.lane.b32.xlu0 %v2288_v32, %s9968_s24 }
 0x2dc   : > { %v3385_v61 = vsel %vm1173_vm9, %v3353_v40, %v3004_v7  ;;  %v2038_v7 = vadd.f32 %v7172_v53, %v1487_v33 }
 0x2dd   : > { %v3417_v56 = vsel %vm1182_vm10, %v3385_v61, %v3100_v9  ;;  %v7643_v14 = vpop.permute.xlu2 %2914  ;;  %v2118_v61 = vrot.slane %v2037_v49, 7 }
 0x2de   : > { %5825 = vmatmul.msk.f32.gmra.mxu1 %vm1194_vm11, %v3417_v56  ;;  %v2119_v39 = vrot.slane %v2038_v7, 7 }
 0x2df   : > { %3111 = vrot.lane.b32.xlu1 %v2366_v21, %s9973_s22 }
 0x2e0   : > { %v3102_v2 = vpop.permute.xlu1 %3101  ;;  %v2218_v18 = vsel %vm9932_vm1, %v2119_v39, 0.0 }
 0x2e1   : > { %2638 = vrot.lane.b32.xlu2 %v7607_v35, %s9974_s16 }
 0x2e2   : > { %v7665_v9 = vpop.f32.mrf.mxu3 }
 0x2e3   : > { %v3006_v5 = vpop.permute.xlu0 %3005  ;;  %3015 = vrot.lane.b32.xlu0 %v2288_v32, %s9978_s13 }
 0x2e4   : > { %v3386_v57 = vsel %vm1173_vm9, %v3354_v24, %v3006_v5  ;;  %v2372_v24 = vrot.slane %v2218_v18, 2 }
 0x2e5   : > { %v3418_v48 = vsel %vm1182_vm10, %v3386_v57, %v3102_v2  ;;  %v7655_v20 = vpop.permute.xlu2 %2916  ;;  %v7683_v2 = vsel %vm9932_vm1, %v2118_v61, %v2119_v39  ;;  %v3196_v39 = vsel %vm526_vm0, %v6996_v62, %v7438_v17 }
 0x2e6   : > { %5826 = vmatmul.msk.f32.gmra.mxu1 %vm1194_vm11, %v3418_v48  ;;  %10007 = vst [vmem:[#allocation51_spill] sm:$0xff] %v7683_v2  ;;  %v2292_v57 = vrot.slane %v7683_v2, 1  ;;  %v2294_v48 = vrot.slane %v2218_v18, 1  ;;  %v3228_v18 = vsel %vm1128_vm4, %v3196_v39, %v7461_v22 }
 0x2e7   : > { %3113 = vrot.lane.b32.xlu1 %v2368_v0, %s9973_s22 }
 0x2e8   : > { %v2819_v27 = vpop.permute.xlu1 %2818  ;;  %v7714_v49 = vsel %vm9931_vm3, %v2292_v57, %v2294_v48 }
 0x2e9   : > { %2640 = vrot.lane.b32.xlu2 %v7577_v12, %s9974_s16 }
 0x2ea   : > { %v7678_v56 = vpop.f32.mrf.mxu3 }
 0x2eb   : > { %v2723_v41 = vpop.permute.xlu0 %2722  ;;  %3017 = vrot.lane.b32.xlu0 %v7596_v43, %s9978_s13 }
 0x2ed   : > { %v7671_v52 = vpop.permute.xlu2 %2630 }
 0x2ef   : > { %2830 = vrot.lane.b32.xlu1 %v2366_v21, %s9976_s25  ;;  %v7694_v21 = vsel %vm9932_vm1, 0.0, %v2118_v61 }
 0x2f0   : > { %v2821_v40 = vpop.permute.xlu1 %2820  ;;  %10008 = vst [vmem:[#allocation52_spill] sm:$0xff] %v7694_v21  ;;  %v2291_v22 = vrot.slane %v7694_v21, 1 }
 0x2f1   : > { %2548 = vrot.lane.b32.xlu2 %v2368_v0, %s9977_s2 }
 0x2f2   : > { %v7702_v36 = vpop.f32.mrf.mxu3 }
 0x2f3   : > { %v2725_v28 = vpop.permute.xlu0 %2724  ;;  %2734 = vrot.lane.b32.xlu0 %v2288_v32, %s9972_s15  ;;  %v2370_v32 = vrot.slane %v7683_v2, 2 }
 0x2f5   : > { %v7680_v46 = vpop.permute.xlu2 %2632 }
 0x2f7   : > { %2832 = vrot.lane.b32.xlu1 %v2368_v0, %s9976_s25  ;;  %v2373_v0 = vsel %vm895_vm2, %v2370_v32, %v2372_v24 }
 0x2f8   : > { %v7686_v53 = vpop.permute.xlu1 %2540 }
 0x2f9   : > { %2926 = vrot.lane.b32.xlu2 %v7694_v21, %s9975_s1 }
 0x2fb   : > { %v7688_v5 = vpop.permute.xlu0 %2444  ;;  %2736 = vrot.lane.b32.xlu0 %v7596_v43, %s9972_s15  ;;  %v3195_v43 = vsel %vm526_vm0, %v7002_v63, %v7394_v38  ;;  %v2369_v38 = vrot.slane %v7694_v21, 2 }
 0x2fc   : > { %v3227_v59 = vsel %vm1128_vm4, %v3195_v43, %v7493_v58  ;;  %v7736_v43 = vpop.f32.mrf.mxu3 }
 0x2fd   : > { %v7700_v44 = vpop.permute.xlu2 %2442  ;;  %v3259_v7 = vsel %vm1137_vm5, %v3227_v59, %v7574_v50  ;;  %v2371_v50 = vsel %vm895_vm2, %v2369_v38, %v2370_v32  ;;  %v2293_v38 = vsel %vm9931_vm3, %v2291_v22, %v2292_v57 }
 0x2fe   : > { %v3291_v63 = vsel %vm1146_vm6, %v3259_v7, %v2723_v41  ;;  %v1424_v7 = vadd.f32 %v7540_v51, %v7624_v54 }
 0x2ff   : > { %2552 = vrot.lane.b32.xlu1 %v2373_v0, %s9977_s2  ;;  %v3323_v58 = vsel %vm1155_vm7, %v3291_v63, %v2819_v27  ;;  %v3260_v27 = vsel %vm1137_vm5, %v3228_v18, %v7590_v31  ;;  %v1421_v31 = vadd.f32 %v7540_v51, %v7588_v3 }
 0x300   : > { %v3104_v13 = vpop.permute.xlu1 %3103  ;;  %v3355_v48 = vsel %vm1164_vm8, %v3323_v58, %v7643_v14  ;;  %v3292_v62 = vsel %vm1146_vm6, %v3260_v27, %v2725_v28  ;;  %v1489_v54 = vmul.f32 %v1424_v7, %v6483_v55 }
 0x301   : > { %2928 = vrot.lane.b32.xlu2 %v7683_v2, %s9975_s1  ;;  %v3324_v14 = vsel %vm1155_vm7, %v3292_v62, %v2821_v40  ;;  %v1488_v3 = vmul.f32 %v1421_v31, %v6483_v55  ;;  %v3197_v31 = vsel %vm526_vm0, %v7144_v60, %v7602_v26 }
 0x302   : > { %v2040_v18 = vadd.f32 %v7202_v34, %v1489_v54 }
 0x303   : > { %v7710_v33 = vpop.permute.xlu0 %2538  ;;  %2456 = vrot.lane.b32.xlu0 %v7714_v49, %s9968_s24  ;;  %v2039_v57 = vadd.f32 %v7188_v30, %v1488_v3 }
 0x304   : > { %v7762_v39 = vpop.f32.mrf.mxu3  ;;  %v2122_v27 = vrot.slane %v2040_v18, 7 }
 0x305   : > { %v7725_v61 = vpop.permute.xlu2 %2918 }
 0x306   : > { %v2219_v26 = vsel %vm9932_vm1, %v2122_v27, 0.0 }
 0x307   : > { %3115 = vrot.lane.b32.xlu1 %v2371_v50, %s9973_s22  ;;  %v2377_v18 = vrot.slane %v2219_v26, 2 }
 0x308   : > { %v3106_v24 = vpop.permute.xlu1 %3105 }
 0x309   : > { %2642 = vrot.lane.b32.xlu2 %v7694_v21, %s9974_s16 }
 0x30b   : > { %v3008_v41 = vpop.permute.xlu0 %3007  ;;  %2550 = vrot.lane.b32.xlu0 %v2371_v50, %s9977_s2 }
 0x30c   : > { %v3387_v59 = vsel %vm1173_vm9, %v3355_v48, %v3008_v41  ;;  %v2121_v48 = vrot.slane %v2039_v57, 7 }
 0x30d   : > { %v3419_v17 = vsel %vm1182_vm10, %v3387_v59, %v3104_v13  ;;  %v7749_v32 = vpop.permute.xlu2 %2920  ;;  %v3356_v13 = vsel %vm1164_vm8, %v3324_v14, %v7655_v20  ;;  %v7779_v59 = vpop.f32.mrf.mxu3 }
 0x30e   : > { %5827 = vmatmul.msk.f32.gmra.mxu1 %vm1194_vm11, %v3419_v17  ;;  %v7784_v30 = vsel %vm9932_vm1, %v2121_v48, %v2122_v27  ;;  %v3198_v27 = vsel %vm526_vm0, %v7103_v8, %v7580_v23 }
 0x30f   : > { %3117 = vrot.lane.b32.xlu1 %v2373_v0, %s9973_s22  ;;  %v2297_v14 = vrot.slane %v7784_v30, 1  ;;  %v2375_v54 = vrot.slane %v7784_v30, 2 }
 0x310   : > { %v2823_v28 = vpop.permute.xlu1 %2822 }
 0x311   : > { %2644 = vrot.lane.b32.xlu2 %v7683_v2, %s9974_s16  ;;  %v10021_v2 = vld [vmem:[#allocation44_spill] sm:$0xff] }
 0x313   : > { %v3010_v63 = vpop.permute.xlu0 %3009  ;;  %3019 = vrot.lane.b32.xlu0 %v2293_v38, %s9978_s13 }
 0x314   : > { %v3388_v58 = vsel %vm1173_vm9, %v3356_v13, %v3010_v63 }
 0x315   : > { %v3420_v40 = vsel %vm1182_vm10, %v3388_v58, %v3106_v24  ;;  %v7769_v20 = vpop.permute.xlu2 %2634  ;;  %v7804_v63 = vpop.f32.mrf.mxu3  ;;  %v3229_v58 = vsel %vm1128_vm4, %v3197_v31, %v7600_v10  ;;  %v3230_v31 = vsel %vm1128_vm4, %v3198_v27, %v7622_v45 }
 0x316   : > { %5828 = vmatmul.msk.f32.gmra.mxu1 %vm1194_vm11, %v3420_v40  ;;  %v3262_v23 = vsel %vm1137_vm5, %v3230_v31, %v7680_v46 }
 0x317   : > { %2834 = vrot.lane.b32.xlu1 %v2371_v50, %s9976_s25  ;;  %v7790_v50 = vsel %vm9932_vm1, 0.0, %v2121_v48 }
 0x318   : > { %v7773_v41 = vpop.permute.xlu1 %2824  ;;  %10009 = vst [vmem:[#allocation53_spill] sm:$0xff] %v7790_v50  ;;  %v2296_v22 = vrot.slane %v7790_v50, 1  ;;  %v2374_v10 = vrot.slane %v7790_v50, 2 }
 0x319   : > { %2454 = vrot.lane.b32.xlu2 %v2293_v38, %s9968_s24 }
 0x31a   : > { %v7809_v13 = vsel %vm9931_vm3, %v2296_v22, %v2297_v14  ;;  %v7844_v22 = vsel %vm895_vm2, %v2374_v10, %v2375_v54 }
 0x31b   : > { %v2727_v24 = vpop.permute.xlu0 %2726  ;;  %3021 = vrot.lane.b32.xlu0 %v7714_v49, %s9978_s13 }
 0x31d   : > { %v7781_v62 = vpop.permute.xlu2 %2636  ;;  %v7863_v8 = vpop.f32.mrf.mxu3 }
 0x31f   : > { %2836 = vrot.lane.b32.xlu1 %v2373_v0, %s9976_s25  ;;  %v1427_v0 = vadd.f32 %v7540_v51, %v7647_v25  ;;  %v3261_v25 = vsel %vm1137_vm5, %v3229_v58, %v7671_v52 }
 0x320   : > { %v7786_v34 = vpop.permute.xlu1 %2446  ;;  %v3293_v3 = vsel %vm1146_vm6, %v3261_v25, %v2727_v24 }
 0x321   : > { %2930 = vrot.lane.b32.xlu2 %v7790_v50, %s9975_s1  ;;  %v3325_v52 = vsel %vm1155_vm7, %v3293_v3, %v2823_v28 }
 0x323   : > { %v2729_v17 = vpop.permute.xlu0 %2728  ;;  %2738 = vrot.lane.b32.xlu0 %v2293_v38, %s9972_s15  ;;  %v1430_v38 = vadd.f32 %v7540_v51, %v7665_v9  ;;  %v1490_v9 = vmul.f32 %v1427_v0, %v6483_v55 }
 0x325   : > { %v7800_v7 = vpop.permute.xlu2 %2448  ;;  %v1491_v57 = vmul.f32 %v1430_v38, %v6483_v55  ;;  %v2041_v24 = vadd.f32 %v7225_v19, %v1490_v9  ;;  %v3357_v38 = vsel %vm1164_vm8, %v3325_v52, %v7725_v61  ;;  %v7853_v19 = vsel %vm895_vm2, %v2375_v54, %v2377_v18 }
 0x327   : > { %2458 = vrot.lane.b32.xlu1 %v7809_v13, %s9968_s24  ;;  %v2042_v58 = vadd.f32 %v7230_v47, %v1491_v57  ;;  %v3294_v47 = vsel %vm1146_vm6, %v3262_v23, %v2729_v17  ;;  %v2124_v9 = vrot.slane %v2041_v24, 7  ;;  %v2299_v17 = vrot.slane %v2219_v26, 1 }
 0x328   : > { %v3108_v40 = vpop.permute.xlu1 %3107  ;;  %v3326_v10 = vsel %vm1155_vm7, %v3294_v47, %v7773_v41  ;;  %v1433_v57 = vadd.f32 %v7540_v51, %v7678_v56 }
 0x329   : > { %2932 = vrot.lane.b32.xlu2 %v7784_v30, %s9975_s1  ;;  %v2125_v46 = vrot.slane %v2042_v58, 7  ;;  %v3358_v24 = vsel %vm1164_vm8, %v3326_v10, %v7749_v32  ;;  %v7909_v31 = vsel %vm9931_vm3, %v2297_v14, %v2299_v17  ;;  %v1439_v14 = vadd.f32 %v7540_v51, %v7736_v43 }
 0x32a   : > { %v1492_v23 = vmul.f32 %v1433_v57, %v6483_v55 }
 0x32b   : > { %v7815_v60 = vpop.permute.xlu0 %2544  ;;  %2740 = vrot.lane.b32.xlu0 %v7714_v49, %s9972_s15  ;;  %v7837_v49 = vld [vmem:[%s9838_s8] ss:$0 sm:$0xff]  ;;  %v7896_v41 = vsel %vm9932_vm1, %v2124_v9, %v2125_v46  ;;  %v2220_v26 = vsel %vm9932_vm1, %v2125_v46, 0.0  ;;  %v7931_v46 = vsel %vm9932_vm1, 0.0, %v2124_v9 }
 0x32c   : > { %10011 = vst [vmem:[#allocation54_spill] sm:$0xff] %v7896_v41  ;;  %v2304_v58 = vrot.slane %v2220_v26, 1  ;;  %v2380_v9 = vrot.slane %v7896_v41, 2 }
 0x32d   : > { %v7832_v48 = vpop.permute.xlu2 %2542  ;;  %10013 = vst [vmem:[#allocation56_spill] sm:$0xff] %v7931_v46 }
 0x32f   : > { %3119 = vrot.lane.b32.xlu1 %v7844_v22, %s9973_s22 }
 0x330   : > { %v3110_v28 = vpop.permute.xlu1 %3109 }
 0x331   : > { %2646 = vrot.lane.b32.xlu2 %v7790_v50, %s9974_s16 }
 0x333   : > { %v3012_v0 = vpop.permute.xlu0 %3011  ;;  %v3563_v61 = vpop.f32.mrf.mxu1  ;;  %2556 = vrot.lane.b32.xlu0 %v7853_v19, %s9977_s2 }
 0x334   : > { %v3389_v45 = vsel %vm1173_vm9, %v3357_v38, %v3012_v0  ;;  %v7872_v25 = vadd.f32 %v7837_v49, %v3563_v61  ;;  %v1453_v0 = vpop.f32.mrf.mxu3  ;;  %v2302_v38 = vrot.slane %v7896_v41, 1  ;;  %v1442_v61 = vadd.f32 %v7540_v51, %v7762_v39 }
 0x335   : > { %v3421_v3 = vsel %vm1182_vm10, %v3389_v45, %v3108_v40  ;;  %v7883_v54 = vpop.permute.xlu2 %2922  ;;  %v1436_v40 = vadd.f32 %v7540_v51, %v7702_v36  ;;  %v1494_v39 = vmul.f32 %v1439_v14, %v6483_v55 }
 0x336   : > { %5829 = vmatmul.msk.f32.gmra.mxu1 %vm1194_vm11, %v3421_v3  ;;  %5477 = vst.msk [vmem:[%s7861_s0] sm:$0xff] %vm526_vm0, %v7872_v25  ;;  %v7927_v47 = vsel %vm9931_vm3, %v2302_v38, %v2304_v58  ;;  %v2043_v3 = vadd.f32 %v7255_v42, %v1492_v23  ;;  %v1495_v57 = vmul.f32 %v1442_v61, %v6483_v55  ;;  %v2379_v42 = vrot.slane %v7931_v46, 2  ;;  %v10014_v58 = vld [vmem:[#allocation40_spill] sm:$0xff]  ;;  %v10015_v61 = vld [vmem:[#allocation41_spill] sm:$0xff] }
 0x337   : > { %3121 = vrot.lane.b32.xlu1 %v7853_v19, %s9973_s22  ;;  %v1493_v45 = vmul.f32 %v1436_v40, %v6483_v55  ;;  %10012 = vst [vmem:[#allocation55_spill] sm:$0xff] %v7927_v47  ;;  %v2045_v23 = vadd.f32 %v10014_v58, %v1494_v39 }
 0x338   : > { %v7889_v18 = vpop.permute.xlu1 %2826  ;;  %v2127_v40 = vrot.slane %v2043_v3, 7  ;;  %v7957_v14 = vsel %vm895_vm2, %v2379_v42, %v2380_v9  ;;  %v2046_v3 = vadd.f32 %v10015_v61, %v1495_v57 }
 0x339   : > { %2460 = vrot.lane.b32.xlu2 %v7909_v31, %s9968_s24  ;;  %v2044_v43 = vadd.f32 %v7273_v6, %v1493_v45  ;;  %v1445_v6 = vadd.f32 %v7540_v51, %v7779_v59  ;;  %v2382_v45 = vrot.slane %v2220_v26, 2  ;;  %v2130_v42 = vrot.slane %v2045_v23, 7 }
 0x33a   : > { %v7981_v61 = vsel %vm9932_vm1, 0.0, %v2127_v40  ;;  %v1454_v23 = vadd.f32 %v7540_v51, %v1453_v0 }
 0x33b   : > { %v3014_v52 = vpop.permute.xlu0 %3013  ;;  %v3566_v27 = vpop.f32.mrf.mxu1  ;;  %3023 = vrot.lane.b32.xlu0 %v7809_v13, %s9978_s13  ;;  %v1496_v39 = vmul.f32 %v1445_v6, %v6483_v55  ;;  %v7978_v58 = vsel %vm895_vm2, %v2380_v9, %v2382_v45  ;;  %10018 = vst [vmem:[#allocation57_spill] sm:$0xff] %v7981_v61  ;;  %v2306_v45 = vrot.slane %v7981_v61, 1 }
 0x33c   : > { %v3390_v56 = vsel %vm1173_vm9, %v3358_v24, %v3014_v52  ;;  %v7903_v36 = vadd.f32 %v7837_v49, %v3566_v27  ;;  %v2301_v52 = vrot.slane %v7931_v46, 1  ;;  %v2128_v24 = vrot.slane %v2044_v43, 7  ;;  %10017 = vst [vmem:[#allocation41_spill] sm:$0xff] %v7978_v58 }
 0x33d   : > { %v3422_v32 = vsel %vm1182_vm10, %v3390_v56, %v3110_v28  ;;  %v7920_v28 = vpop.permute.xlu2 %2924  ;;  %v1456_v56 = vpop.f32.mrf.mxu3  ;;  %v2047_v50 = vadd.f32 %v10019_v16, %v1496_v39 }
 0x33e   : > { %5830 = vmatmul.msk.f32.gmra.mxu1 %vm1194_vm11, %v3422_v32  ;;  %5478 = vst.msk [vmem:[%s7861_s0 + $0x8] sm:$0xff] %vm526_vm0, %v7903_v36  ;;  %v1448_v32 = vadd.f32 %v7540_v51, %v7804_v63  ;;  %v7967_v59 = vsel %vm9931_vm3, %v2301_v52, %v2302_v38  ;;  %v7970_v63 = vsel %vm9932_vm1, %v2127_v40, %v2128_v24  ;;  %v2221_v26 = vsel %vm9932_vm1, %v2128_v24, 0.0 }
 0x33f   : > { %2464 = vrot.lane.b32.xlu1 %v7927_v47, %s9968_s24  ;;  %10016 = vst [vmem:[#allocation40_spill] sm:$0xff] %v7970_v63  ;;  %v2385_v38 = vrot.slane %v7970_v63, 2  ;;  %v2387_v52 = vrot.slane %v2221_v26, 2  ;;  %v2131_v24 = vrot.slane %v2046_v3, 7  ;;  %v2307_v6 = vrot.slane %v7970_v63, 1 }
 0x340   : > { %v7933_v10 = vpop.permute.xlu1 %2828  ;;  %v1497_v57 = vmul.f32 %v1448_v32, %v6483_v55  ;;  %v2309_v15 = vrot.slane %v2221_v26, 1  ;;  %v1451_v32 = vadd.f32 %v7540_v51, %v7863_v8  ;;  %v7993_v40 = vsel %vm9932_vm1, 0.0, %v2130_v42  ;;  %v10022_v26 = vld [vmem:[#allocation38_spill] sm:$0xff] }
 0x341   : > { %2554 = vrot.lane.b32.xlu2 %v7844_v22, %s9977_s2  ;;  %10020 = vst [vmem:[#allocation43_spill] sm:$0xff] %v7993_v40  ;;  %v1457_v3 = vadd.f32 %v7540_v51, %v1456_v56  ;;  %v3199_v16 = vsel %vm526_vm0, %v10022_v26, %v7700_v44  ;;  %v8003_v8 = vsel %vm895_vm2, %v2385_v38, %v2387_v52  ;;  %v2222_v56 = vsel %vm9932_vm1, %v2131_v24, 0.0 }
 0x342   : > { %v2048_v21 = vadd.f32 %v10021_v2, %v1497_v57  ;;  %10023 = vst [vmem:[#allocation44_spill] sm:$0xff] %v8003_v8  ;;  %v8006_v39 = vsel %vm9932_vm1, %v2130_v42, %v2131_v24  ;;  %v3231_v0 = vsel %vm1128_vm4, %v3199_v16, %v7710_v33  ;;  %v8018_v44 = vsel %vm9931_vm3, %v2307_v6, %v2309_v15 }
 0x343   : > { %v7935_v17 = vpop.permute.xlu0 %2730  ;;  %3025 = vrot.lane.b32.xlu0 %v7909_v31, %s9978_s13  ;;  %10024 = vst [vmem:[#allocation38_spill] sm:$0xff] %v8006_v39  ;;  %v2133_v57 = vrot.slane %v2047_v50, 7  ;;  %v3263_v42 = vsel %vm1137_vm5, %v3231_v0, %v7769_v20  ;;  %v2311_v33 = vrot.slane %v7993_v40, 1  ;;  %v8030_v26 = vsel %vm9931_vm3, %v2306_v45, %v2307_v6  ;;  %v10027_v50 = vld [vmem:[#allocation37_spill] sm:$0xff] }
 0x344   : > { %10025 = vst [vmem:[#allocation58_spill] sm:$0xff] %v8018_v44  ;;  %v3295_v52 = vsel %vm1146_vm6, %v3263_v42, %v7935_v17  ;;  %v2312_v15 = vrot.slane %v8006_v39, 1  ;;  %v2134_v24 = vrot.slane %v2048_v21, 7  ;;  %v3200_v20 = vsel %vm526_vm0, %v10027_v50, %v7688_v5 }
 0x345   : > { %v7951_v27 = vpop.permute.xlu2 %2638  ;;  %v1459_v63 = vpop.f32.mrf.mxu3  ;;  %10026 = vst [vmem:[#allocation59_spill] sm:$0xff] %v8030_v26  ;;  %v2314_v16 = vrot.slane %v2222_v56, 1  ;;  %v2390_v0 = vrot.slane %v8006_v39, 2  ;;  %v1498_v17 = vmul.f32 %v1451_v32, %v6483_v55  ;;  %v1499_v6 = vmul.f32 %v1454_v23, %v6483_v55 }
 0x346   : > { %v1460_v47 = vadd.f32 %v7540_v51, %v1459_v63  ;;  %v2384_v63 = vrot.slane %v7981_v61, 2  ;;  %v2392_v45 = vrot.slane %v2222_v56, 2  ;;  %v8043_v42 = vsel %vm9932_vm1, 0.0, %v2133_v57 }
 0x347   : > { %2558 = vrot.lane.b32.xlu1 %v7957_v14, %s9977_s2  ;;  %v8046_v21 = vmul.f32 %v1457_v3, %v6483_v55  ;;  %v3327_v50 = vsel %vm1155_vm7, %v3295_v52, %v7889_v18  ;;  %v3232_v32 = vsel %vm1128_vm4, %v3200_v20, %v7686_v53  ;;  %v8058_v23 = vsel %vm9931_vm3, %v2311_v33, %v2312_v15  ;;  %v10035_v20 = vld [vmem:[#allocation45_spill] sm:$0xff] }
 0x348   : > { %v7960_v29 = vpop.permute.xlu1 %2452  ;;  %v8049_v5 = vmul.f32 %v1460_v47, %v6483_v55  ;;  %10029 = vst [vmem:[#allocation60_spill] sm:$0xff] %v8058_v23  ;;  %v8061_v56 = vsel %vm895_vm2, %v2384_v63, %v2385_v38  ;;  %v8064_v3 = vsel %vm9932_vm1, %v2133_v57, %v2134_v24  ;;  %v3264_v47 = vsel %vm1137_vm5, %v3232_v32, %v7781_v62 }
 0x349   : > { %2560 = vrot.lane.b32.xlu2 %v7978_v58, %s9977_s2  ;;  %10030 = vst [vmem:[#allocation61_spill] sm:$0xff] %v8061_v56  ;;  %v8071_v18 = vsel %vm9931_vm3, %v2312_v15, %v2314_v16  ;;  %v2223_v52 = vsel %vm9932_vm1, %v2134_v24, 0.0  ;;  %v3359_v57 = vsel %vm1164_vm8, %v3327_v50, %v7883_v54  ;;  %v8084_v62 = vsel %vm895_vm2, %v2390_v0, %v2392_v45  ;;  %v10036_v54 = vld [vmem:[#allocation46_spill] sm:$0xff] }
 0x34a   : > { %10031 = vst [vmem:[#allocation62_spill] sm:$0xff] %v8064_v3  ;;  %v2394_v15 = vrot.slane %v8043_v42, 2  ;;  %v8092_v16 = vadd.f32 %v10035_v20, %v1498_v17  ;;  %v8095_v50 = vadd.f32 %v10036_v54, %v1499_v6  ;;  %v2319_v32 = vrot.slane %v2223_v52, 1 }
 0x34b   : > { %v7962_v43 = vpop.permute.xlu0 %2732  ;;  %2462 = vrot.lane.b32.xlu0 %v7967_v59, %s9968_s24  ;;  %10032 = vst [vmem:[#allocation63_spill] sm:$0xff] %v8071_v18  ;;  %v2316_v54 = vrot.slane %v8043_v42, 1 }
 0x34c   : > { %v3296_v38 = vsel %vm1146_vm6, %v3264_v47, %v7962_v43  ;;  %10034 = vst [vmem:[#allocation65_spill] sm:$0xff] %v8084_v62  ;;  %v2317_v43 = vrot.slane %v8064_v3, 1  ;;  %v2395_v47 = vrot.slane %v8064_v3, 2 }
 0x34d   : > { %v7990_v9 = vpop.permute.xlu2 %2640  ;;  %v3328_v17 = vsel %vm1155_vm7, %v3296_v38, %v7933_v10  ;;  %v2137_v38 = vrot.slane %v8095_v50, 7 }
 0x34e   : > { %v8125_v61 = vsel %vm895_vm2, %v2394_v15, %v2395_v47 }
 0x34f   : > { %2564 = vrot.lane.b32.xlu1 %v8003_v8, %s9977_s2 }
 0x350   : > { %v8011_v58 = vpop.permute.xlu1 %2546 }
 0x351   : > { %2466 = vrot.lane.b32.xlu2 %v8030_v26, %s9968_s24 }
 0x353   : > { %v8013_v2 = vpop.permute.xlu0 %2450  ;;  %2468 = vrot.lane.b32.xlu0 %v8018_v44, %s9968_s24  ;;  %v2389_v44 = vrot.slane %v7993_v40, 2  ;;  %v2397_v40 = vrot.slane %v2223_v52, 2 }
 0x355   : > { %v8053_v39 = vpop.permute.xlu2 %2548  ;;  %v8075_v53 = vsel %vm895_vm2, %v2389_v44, %v2390_v0  ;;  %v8136_v15 = vsel %vm895_vm2, %v2395_v47, %v2397_v40  ;;  %v3725_v47 = vrot.slane %v7903_v36, 6 }
 0x356   : > { %10028 = vst [vmem:[#allocation37_spill] sm:$0xff] %v8053_v39 }
 0x357   : > { %10033 = vst [vmem:[#allocation64_spill] sm:$0xff] %v8075_v53  ;;  %2470 = vrot.lane.b32.xlu1 %v8058_v23, %s9968_s24  ;;  %v3722_v23 = vrot.slane %v7872_v25, 6 }
 0x358   : > { %v3112_v33 = vpop.permute.xlu1 %3111  ;;  %10038 = vst [vmem:[#allocation46_spill] sm:$0xff] %v8136_v15 }
 0x359   : > { %2472 = vrot.lane.b32.xlu2 %v8071_v18, %s9968_s24 }
 0x35b   : > { %v3016_v63 = vpop.permute.xlu0 %3015  ;;  %v3569_v44 = vpop.f32.mrf.mxu1  ;;  %2562 = vrot.lane.b32.xlu0 %v8061_v56, %s9977_s2  ;;  %v8117_v56 = vstv %s8068_s12  ;;  %s9474_s12 = scalar_lea.vmem [#allocation7], %s5748_s14 }
 0x35c   : > { %v3391_v24 = vsel %vm1173_vm9, %v3359_v57, %v3016_v63  ;;  %v3570_v0 = vadd.f32 %v7837_v49, %v3569_v44  ;;  %v3720_v63 = vrot.slane %v7872_v25, 2  ;;  %v3721_v57 = vrot.slane %v7872_v25, 4 }
 0x35d   : > { %v3423_v45 = vsel %vm1182_vm10, %v3391_v24, %v3112_v33  ;;  %v8111_v20 = vpop.permute.xlu2 %2926 }
 0x35e   : > { %5831 = vmatmul.msk.f32.gmra.mxu1 %vm1194_vm11, %v3423_v45  ;;  %v3726_v6 = vrot.slane %v3570_v0, 2  ;;  %v3727_v33 = vrot.slane %v3570_v0, 4  ;;  %v3728_v24 = vrot.slane %v3570_v0, 6  ;;  %v3912_v44 = vmax.f32 %v7872_v25, %v3570_v0  ;;  %5479 = vst.msk [vmem:[%s7861_s0 + $0x10] sm:$0xff] %vm526_vm0, %v3570_v0 }
 0x35f   : > { %v3360_v25 = vsel %vm1164_vm8, %v3328_v17, %v7920_v28  ;;  %v8122_v0 = vsel %vm9931_vm3, %v2317_v43, %v2319_v32  ;;  %v8133_v28 = vsel %vm9931_vm3, %v2316_v54, %v2317_v43  ;;  %v10039_v32 = vrot.slane %v8092_v16, 7 }
 0x360   : > { %v3913_v45 = vmax.f32 %v3720_v63, %v3726_v6  ;;  %v3914_v8 = vmax.f32 %v3721_v57, %v3727_v33  ;;  %v3915_v26 = vmax.f32 %v3722_v23, %v3728_v24  ;;  %v5857_v18 = vrot.slane %v3912_v44, 9  ;;  %10037 = vst [vmem:[#allocation45_spill] sm:$0xff] %v8122_v0  ;;  %v3114_v50 = vpop.permute.xlu1 %3113  ;;  %2476 = vrot.lane.b32.xlu1 %v8122_v0, %s9968_s24 }
 0x361   : > { %2566 = vrot.lane.b32.xlu2 %v8075_v53, %s9977_s2 }
 0x362   : > { %v5858_v52 = vrot.slane %v3913_v45, 9  ;;  %v5859_v41 = vrot.slane %v3914_v8, 9  ;;  %v5860_v10 = vrot.slane %v3915_v26, 9  ;;  %v4232_v39 = vmax.f32 %v3912_v44, %v5857_v18 }
 0x363   : > { %v3018_v63 = vpop.permute.xlu0 %3017  ;;  %v3572_v57 = vpop.f32.mrf.mxu1  ;;  %2568 = vrot.lane.b32.xlu0 %v8084_v62, %s9977_s2  ;;  %v8141_v18 = vsel %vm9932_vm1, %v10039_v32, %v2137_v38  ;;  %v3723_v44 = vrot.slane %v7903_v36, 2 }
 0x364   : > { %v3392_v23 = vsel %vm1173_vm9, %v3360_v25, %v3018_v63  ;;  %10040 = vst [vmem:[#allocation66_spill] sm:$0xff] %v8141_v18  ;;  %v4233_v17 = vmax.f32 %v3913_v45, %v5858_v52  ;;  %v4234_v6 = vmax.f32 %v3914_v8, %v5859_v41  ;;  %v4235_v33 = vmax.f32 %v3915_v26, %v5860_v10 }
 0x365   : > { %v4297_v24 = vmul.f32 %v8117_v56, %v4232_v39  ;;  %v3724_v25 = vrot.slane %v7903_v36, 4  ;;  %v3573_v43 = vadd.f32 %v7837_v49, %v3572_v57  ;;  %v3424_v40 = vsel %vm1182_vm10, %v3392_v23, %v3114_v50  ;;  %v1462_v39 = vpop.f32.mrf.mxu3  ;;  %v8158_v50 = vpop.permute.xlu2 %2928 }
 0x366   : > { %v4298_v54 = vmul.f32 %v8117_v56, %v4233_v17  ;;  %v4299_v41 = vmul.f32 %v8117_v56, %v4234_v6  ;;  %v4300_v8 = vmul.f32 %v8117_v56, %v4235_v33  ;;  %5832 = vmatmul.msk.f32.gmra.mxu1 %vm1194_vm11, %v3424_v40  ;;  %v10041_v40 = vld [vmem:[#allocation47_spill] sm:$0xff] }
 0x367   : > { %v3729_v26 = vrot.slane %v3573_v43, 2  ;;  %v3730_v10 = vrot.slane %v3573_v43, 4  ;;  %v3731_v45 = vrot.slane %v3573_v43, 6  ;;  %v3916_v52 = vmax.f32 %v7903_v36, %v3573_v43  ;;  %5480 = vst.msk [vmem:[%s7861_s0 + $0x18] sm:$0xff] %vm526_vm0, %v3573_v43 }
 0x368   : > { %v4425_v63 = vperm.slane %v4297_v24, 0  ;;  %v4426_v23 = vperm.slane %v4298_v54, 0  ;;  %v4427_v57 = vperm.slane %v4299_v41, 0  ;;  %v8162_v62 = vadd.f32 %v10041_v40, %v8046_v21  ;;  %v8164_v53 = vpop.permute.xlu1 %2830  ;;  %2570 = vrot.lane.b32.xlu1 %v8125_v61, %s9977_s2 }
 0x369   : > { %v3917_v32 = vmax.f32 %v3723_v44, %v3729_v26  ;;  %v3918_v17 = vmax.f32 %v3724_v25, %v3730_v10  ;;  %v3919_v6 = vmax.f32 %v3725_v47, %v3731_v45  ;;  %v5861_v33 = vrot.slane %v3916_v52, 9  ;;  %v10042_v44 = vld [vmem:[#allocation48_spill] sm:$0xff]  ;;  %2572 = vrot.lane.b32.xlu2 %v8136_v15, %s9977_s2 }
 0x36a   : > { %v8171_v36 = vsel %vm9932_vm1, %v2137_v38, 0.0  ;;  %v4490_v24 = vsel %vm9940_vm13, %v4426_v23, %v4425_v63  ;;  %v2052_v25 = vadd.f32 %v10042_v44, %v8049_v5  ;;  %v4428_v54 = vperm.slane %v4300_v8, 0 }
 0x36b   : > { %v8166_v0 = vpop.permute.xlu0 %2734  ;;  %v5862_v43 = vrot.slane %v3917_v32, 9  ;;  %v5863_v47 = vrot.slane %v3918_v17, 9  ;;  %v4236_v21 = vmax.f32 %v3916_v52, %v5861_v33  ;;  %2474 = vrot.lane.b32.xlu0 %v8133_v28, %s9968_s24  ;;  %v5864_v41 = vrot.slane %v3919_v6, 9 }
 0x36c   : > { %v4492_v26 = vsel %vm9927_vm14, %v4427_v57, %v4490_v24  ;;  %v10043_v45 = vrot.slane %v8092_v16, 7  ;;  %v2322_v63 = vrot.slane %v8141_v18, 1  ;;  %v2324_v8 = vrot.slane %v8171_v36, 1 }
 0x36d   : > { %v4237_v10 = vmax.f32 %v3917_v32, %v5862_v43  ;;  %v4301_v38 = vmul.f32 %v8117_v56, %v4236_v21  ;;  %v4238_v52 = vmax.f32 %v3918_v17, %v5863_v47  ;;  %v4239_v23 = vmax.f32 %v3919_v6, %v5864_v41  ;;  %v8190_v32 = vpop.permute.xlu2 %2642  ;;  %v1465_v47 = vpop.f32.mrf.mxu3 }
 0x36e   : > { %v8185_v5 = vsel %vm9932_vm1, 0.0, %v10043_v45  ;;  %v4494_v57 = vsel %vm9926_vm15, %v4428_v54, %v4492_v26  ;;  %v2139_v16 = vrot.slane %v8162_v62, 7  ;;  %v2140_v44 = vrot.slane %v2052_v25, 7 }
 0x36f   : > { %10044 = vst [vmem:[#allocation47_spill] sm:$0xff] %v8185_v5  ;;  %v4429_v33 = vperm.slane %v4301_v38, 0  ;;  %v4302_v40 = vmul.f32 %v8117_v56, %v4237_v10  ;;  %v4303_v24 = vmul.f32 %v8117_v56, %v4238_v52  ;;  %v2321_v17 = vrot.slane %v8185_v5, 1 }
 0x370   : > { %v4304_v43 = vmul.f32 %v8117_v56, %v4239_v23  ;;  %vm4497_vm15 = vcmask 1045509   ;;  %v1463_v41 = vadd.f32 %v7540_v51, %v1462_v39  ;;  %v1466_v26 = vadd.f32 %v7540_v51, %v1465_v47  ;;  %v8200_v10 = vpop.permute.xlu1 %2832  ;;  %2662 = vrot.lane.b32.xlu1 %v8043_v42, %s9974_s16 }
 0x371   : > { %v4430_v21 = vperm.slane %v4302_v40, 0  ;;  %v4431_v6 = vperm.slane %v4303_v24, 0  ;;  %v4496_v54 = vsel %vm9928_vm12, %v4429_v33, %v4494_v57  ;;  %v8207_v62 = vsel %vm9931_vm3, %v2322_v63, %v2324_v8 }
 0x372   : > { %vm4499_vm14 = vcmask 1046534   ;;  %v4432_v25 = vperm.slane %v4304_v43, 0  ;;  %vm4501_vm12 = vcmask 1047559   ;;  %v8213_v51 = vsel %vm9931_vm3, %v2321_v17, %v2322_v63  ;;  %v10045_v17 = vld [vmem:[#allocation31_spill] sm:$0xff] }
 0x373   : > { %v8202_v38 = vpop.permute.xlu0 %2736  ;;  %2480 = vrot.lane.b32.xlu0 %v8207_v62, %s9968_s24  ;;  %v4498_v45 = vsel %vm4497_vm15, %v4430_v21, %v4496_v54  ;;  %v2400_v39 = vrot.slane %v8141_v18, 2  ;;  %v8218_v23 = vsel %vm9932_vm1, %v2139_v16, %v2140_v44  ;;  %v8221_v8 = vsel %vm9932_vm1, %v2140_v44, 0.0  ;;  %2478 = vrot.lane.b32.xlu2 %v8213_v51, %s9968_s24 }
 0x374   : > { %v4500_v52 = vsel %vm4499_vm14, %v4431_v6, %v4498_v45  ;;  %v2402_v57 = vrot.slane %v8171_v36, 2  ;;  %v1502_v63 = vmul.f32 %v1463_v41, %v6483_v55  ;;  %v1503_v40 = vmul.f32 %v1466_v26, %v6483_v55 }
 0x375   : > { %v4502_v33 = vsel %vm4501_vm12, %v4432_v25, %v4500_v52  ;;  %v2399_v24 = vrot.slane %v8185_v5, 2  ;;  %v8233_v47 = vpop.permute.xlu2 %2644  ;;  %v2327_v44 = vrot.slane %v8218_v23, 1  ;;  %v2329_v21 = vrot.slane %v8221_v8, 1 }
 0x376   : > { %v8231_v43 = vadd.f32 %v4502_v33, %v10045_v17  ;;  %v8238_v6 = vsel %vm895_vm2, %v2400_v39, %v2402_v57  ;;  %v2053_v36 = vadd.f32 %v7498_v4, %v1502_v63  ;;  %v2054_v54 = vadd.f32 %v7520_v11, %v1503_v40 }
 0x377   : > { %v8249_v25 = vsel %vm895_vm2, %v2399_v24, %v2400_v39  ;;  %v8252_v45 = vsel %vm9932_vm1, 0.0, %v2139_v16  ;;  %v8257_v4 = vsel %vm9931_vm3, %v2327_v44, %v2329_v21  ;;  %v3201_v16 = vsel %vm526_vm0, %v7401_v37, %v7786_v34 }
 0x378   : > { %10046 = vst [vmem:[#allocation48_spill] sm:$0xff] %v8231_v43  ;;  %v8242_v41 = vpop.permute.xlu1 %2552  ;;  %2576 = vrot.lane.b32.xlu1 %v8238_v6, %s9977_s2  ;;  %v2326_v11 = vrot.slane %v8252_v45, 1  ;;  %v2142_v52 = vrot.slane %v2053_v36, 7  ;;  %v2143_v57 = vrot.slane %v2054_v54, 7  ;;  %v3233_v24 = vsel %vm1128_vm4, %v3201_v16, %v7832_v48 }
 0x379   : > { %10047 = vst [vmem:[#allocation31_spill] sm:$0xff] %v8252_v45  ;;  %v3265_v34 = vsel %vm1137_vm5, %v3233_v24, %v7951_v27 }
 0x37a   : > { %v8268_v39 = vsel %vm9931_vm3, %v2326_v11, %v2327_v44  ;;  %v8271_v63 = vsel %vm9932_vm1, %v2142_v52, %v2143_v57  ;;  %v8274_v40 = vsel %vm9932_vm1, %v2143_v57, 0.0  ;;  %v8283_v37 = vsel %vm9932_vm1, 0.0, %v2142_v52 }
 0x37b   : > { %v8244_v26 = vpop.permute.xlu0 %2456  ;;  %2574 = vrot.lane.b32.xlu0 %v8249_v25, %s9977_s2  ;;  %2484 = vrot.lane.b32.xlu2 %v8257_v4, %s9968_s24  ;;  %v3297_v44 = vsel %vm1146_vm6, %v3265_v34, %v8166_v0  ;;  %v2332_v48 = vrot.slane %v8271_v63, 1  ;;  %v2334_v36 = vrot.slane %v8274_v40, 1  ;;  %v2331_v54 = vrot.slane %v8283_v37, 1 }
 0x37c   : > { %v3329_v11 = vsel %vm1155_vm7, %v3297_v44, %v8164_v53  ;;  %vm10060_vm1 = vcmask 1043459  }
 0x37d   : > { %v8262_v33 = vpop.permute.xlu2 %2454  ;;  %v8304_v27 = vsel %vm9931_vm3, %v2332_v48, %v2334_v36  ;;  %v3361_v16 = vsel %vm1164_vm8, %v3329_v11, %v8111_v20  ;;  %v8313_v53 = vsel %vm9931_vm3, %v2331_v54, %v2332_v48  ;;  %vm10059_vm3 = vcmask 1042434  }
 0x380   : > { %v3116_v17 = vpop.permute.xlu1 %3115  ;;  %2482 = vrot.lane.b32.xlu1 %v8268_v39, %s9968_s24 }
 0x383   : > { %v8278_v21 = vpop.permute.xlu0 %2550  ;;  %2742 = vrot.lane.b32.xlu0 %v7809_v13, %s9972_s15  ;;  %2838 = vrot.lane.b32.xlu2 %v7844_v22, %s9976_s25  ;;  %v3202_v13 = vsel %vm526_vm0, %v7390_v1, %v7800_v7 }
 0x384   : > { %v3234_v22 = vsel %vm1128_vm4, %v3202_v13, %v7815_v60 }
 0x385   : > { %v8298_v52 = vpop.permute.xlu2 %2930  ;;  %v3266_v1 = vsel %vm1137_vm5, %v3234_v22, %v7990_v9 }
 0x386   : > { %v3298_v60 = vsel %vm1146_vm6, %v3266_v1, %v8202_v38  ;;  %v3203_v1 = vsel %vm526_vm0, %v7607_v35, %v8013_v2  ;;  %v3204_v35 = vsel %vm526_vm0, %v7577_v12, %v7960_v29 }
 0x387   : > { %v3330_v9 = vsel %vm1155_vm7, %v3298_v60, %v8200_v10 }
 0x388   : > { %v3118_v0 = vpop.permute.xlu1 %3117  ;;  %2488 = vrot.lane.b32.xlu1 %v8304_v27, %s9968_s24  ;;  %v3362_v36 = vsel %vm1164_vm8, %v3330_v9, %v8158_v50 }
 0x38b   : > { %v3020_v57 = vpop.permute.xlu0 %3019  ;;  %v3575_v24 = vpop.f32.mrf.mxu1  ;;  %2486 = vrot.lane.b32.xlu0 %v8313_v53, %s9968_s24  ;;  %2854 = vrot.lane.b32.xlu2 %v8125_v61, %s9976_s25 }
 0x38c   : > { %v3393_v7 = vsel %vm1173_vm9, %v3361_v16, %v3020_v57  ;;  %v8323_v20 = vadd.f32 %v7837_v49, %v3575_v24  ;;  %v3235_v24 = vsel %vm1128_vm4, %v3203_v1, %v8011_v58 }
 0x38d   : > { %v3425_v34 = vsel %vm1182_vm10, %v3393_v7, %v3116_v17  ;;  %v8334_v44 = vpop.permute.xlu2 %2932  ;;  %v3267_v9 = vsel %vm1137_vm5, %v3235_v24, %v8190_v32 }
 0x38e   : > { %5833 = vmatmul.msk.f32.gmra.mxu1 %vm1194_vm11, %v3425_v34  ;;  %5481 = vst.msk [vmem:[%s7861_s0 + $0x20] sm:$0xff] %vm526_vm0, %v8323_v20  ;;  %v3733_v24 = vrot.slane %v8323_v20, 4 }
 0x390   : > { %v2835_v38 = vpop.permute.xlu1 %2834  ;;  %2934 = vrot.lane.b32.xlu1 %v7931_v46, %s9975_s1 }
 0x393   : > { %v3022_v48 = vpop.permute.xlu0 %3021  ;;  %v3578_v54 = vpop.f32.mrf.mxu1  ;;  %2758 = vrot.lane.b32.xlu0 %v8133_v28, %s9972_s15  ;;  %3123 = vrot.lane.b32.xlu2 %v7957_v14, %s9973_s22 }
 0x394   : > { %v3394_v17 = vsel %vm1173_vm9, %v3362_v36, %v3022_v48  ;;  %v8344_v11 = vadd.f32 %v7837_v49, %v3578_v54  ;;  %v10050_v48 = vld [vmem:[#allocation37_spill] sm:$0xff] }
 0x395   : > { %v3426_v10 = vsel %vm1182_vm10, %v3394_v17, %v3118_v0  ;;  %v8353_v50 = vpop.permute.xlu2 %2646  ;;  %v3236_v36 = vsel %vm1128_vm4, %v3204_v35, %v10050_v48 }
 0x396   : > { %5834 = vmatmul.msk.f32.gmra.mxu1 %vm1194_vm11, %v3426_v10  ;;  %5482 = vst.msk [vmem:[%s7861_s0 + $0x28] sm:$0xff] %vm526_vm0, %v8344_v11  ;;  %v3268_v32 = vsel %vm1137_vm5, %v3236_v36, %v8233_v47 }
 0x398   : > { %v2837_v13 = vpop.permute.xlu1 %2836  ;;  %2950 = vrot.lane.b32.xlu1 %v8185_v5, %s9975_s1 }
 0x39b   : > { %v2739_v22 = vpop.permute.xlu0 %2738  ;;  %3027 = vrot.lane.b32.xlu0 %v7967_v59, %s9978_s13  ;;  %2648 = vrot.lane.b32.xlu2 %v7784_v30, %s9974_s16 }
 0x39d   : > { %v8361_v0 = vpop.permute.xlu2 %2460 }
 0x3a0   : > { %v8363_v57 = vpop.permute.xlu1 %2458  ;;  %3139 = vrot.lane.b32.xlu1 %v8249_v25, %s9973_s22 }
 0x3a3   : > { %v2741_v16 = vpop.permute.xlu0 %2740  ;;  %3043 = vrot.lane.b32.xlu0 %v8213_v51, %s9978_s13  ;;  %2840 = vrot.lane.b32.xlu2 %v7853_v19, %s9976_s25  ;;  %v3299_v19 = vsel %vm1146_vm6, %v3267_v9, %v2739_v22  ;;  %v10051_v22 = vld [vmem:[#allocation54_spill] sm:$0xff] }
 0x3a4   : > { %v3331_v58 = vsel %vm1155_vm7, %v3299_v19, %v2835_v38  ;;  %v10052_v38 = vld [vmem:[#allocation45_spill] sm:$0xff] }
 0x3a5   : > { %v8374_v7 = vpop.permute.xlu2 %2554  ;;  %v3363_v10 = vsel %vm1164_vm8, %v3331_v58, %v8298_v52  ;;  %v3734_v52 = vrot.slane %v8323_v20, 6  ;;  %v10053_v19 = vld [vmem:[#allocation41_spill] sm:$0xff] }
 0x3a8   : > { %v3120_v60 = vpop.permute.xlu1 %3119  ;;  %2664 = vrot.lane.b32.xlu1 %v8064_v3, %s9974_s16 }
 0x3ab   : > { %v8378_v34 = vpop.permute.xlu0 %2556  ;;  %2744 = vrot.lane.b32.xlu0 %v7909_v31, %s9972_s15  ;;  %2856 = vrot.lane.b32.xlu2 %v8136_v15, %s9976_s25  ;;  %v3300_v31 = vsel %vm1146_vm6, %v3268_v32, %v2741_v16  ;;  %v3732_v16 = vrot.slane %v8323_v20, 2 }
 0x3ac   : > { %10048 = vst [vmem:[#allocation67_spill] sm:$0xff] %v8378_v34  ;;  %v3332_v9 = vsel %vm1155_vm7, %v3300_v31, %v2837_v13 }
 0x3ad   : > { %v8393_v2 = vpop.permute.xlu2 %2560  ;;  %v3364_v13 = vsel %vm1164_vm8, %v3332_v9, %v8334_v44 }
 0x3ae   : > { %10049 = vst [vmem:[#allocation68_spill] sm:$0xff] %v8393_v2 }
 0x3b0   : > { %v3122_v17 = vpop.permute.xlu1 %3121  ;;  %2936 = vrot.lane.b32.xlu1 %v10051_v22, %s9975_s1 }
 0x3b3   : > { %v3024_v54 = vpop.permute.xlu0 %3023  ;;  %v3581_v12 = vpop.f32.mrf.mxu1  ;;  %2760 = vrot.lane.b32.xlu0 %v10052_v38, %s9972_s15  ;;  %3125 = vrot.lane.b32.xlu2 %v10053_v19, %s9973_s22 }
 0x3b4   : > { %v3395_v29 = vsel %vm1173_vm9, %v3363_v10, %v3024_v54  ;;  %v3582_v1 = vadd.f32 %v7837_v49, %v3581_v12 }
 0x3b5   : > { %v3427_v47 = vsel %vm1182_vm10, %v3395_v29, %v3120_v60  ;;  %v8419_v60 = vpop.permute.xlu2 %2466 }
 0x3b6   : > { %5835 = vmatmul.msk.f32.gmra.mxu1 %vm1194_vm11, %v3427_v47  ;;  %v3738_v35 = vrot.slane %v3582_v1, 2  ;;  %v3739_v58 = vrot.slane %v3582_v1, 4  ;;  %v3740_v48 = vrot.slane %v3582_v1, 6  ;;  %v3920_v36 = vmax.f32 %v8323_v20, %v3582_v1  ;;  %5483 = vst.msk [vmem:[%s7861_s0 + $0x30] sm:$0xff] %vm526_vm0, %v3582_v1 }
 0x3b7   : > { %10054 = vst [vmem:[#allocation37_spill] sm:$0xff] %v8419_v60 }
 0x3b8   : > { %v3921_v32 = vmax.f32 %v3732_v16, %v3738_v35  ;;  %v3922_v54 = vmax.f32 %v3733_v24, %v3739_v58  ;;  %v3923_v10 = vmax.f32 %v3734_v52, %v3740_v48  ;;  %v5865_v29 = vrot.slane %v3920_v36, 9  ;;  %v8423_v43 = vpop.permute.xlu1 %2464  ;;  %2952 = vrot.lane.b32.xlu1 %v8141_v18, %s9975_s1  ;;  %v10056_v16 = vld [vmem:[#allocation55_spill] sm:$0xff] }
 0x3b9   : > { %10055 = vst [vmem:[#allocation41_spill] sm:$0xff] %v8423_v43  ;;  %v3735_v35 = vrot.slane %v8344_v11, 2 }
 0x3ba   : > { %v5866_v31 = vrot.slane %v3921_v32, 9  ;;  %v5867_v12 = vrot.slane %v3922_v54, 9  ;;  %v5868_v47 = vrot.slane %v3923_v10, 9  ;;  %v4240_v2 = vmax.f32 %v3920_v36, %v5865_v29 }
 0x3bb   : > { %v3026_v15 = vpop.permute.xlu0 %3025  ;;  %v3584_v1 = vpop.f32.mrf.mxu1  ;;  %3029 = vrot.lane.b32.xlu0 %v10056_v16, %s9978_s13  ;;  %2650 = vrot.lane.b32.xlu2 %v7931_v46, %s9974_s16  ;;  %v3737_v36 = vrot.slane %v8344_v11, 6 }
 0x3bc   : > { %v3396_v20 = vsel %vm1173_vm9, %v3364_v13, %v3026_v15  ;;  %v4241_v24 = vmax.f32 %v3921_v32, %v5866_v31  ;;  %v4242_v52 = vmax.f32 %v3922_v54, %v5867_v12  ;;  %v4243_v44 = vmax.f32 %v3923_v10, %v5868_v47 }
 0x3bd   : > { %v4305_v9 = vmul.f32 %v8117_v56, %v4240_v2  ;;  %v3585_v58 = vadd.f32 %v7837_v49, %v3584_v1  ;;  %v3428_v48 = vsel %vm1182_vm10, %v3396_v20, %v3122_v17  ;;  %v3736_v15 = vrot.slane %v8344_v11, 4  ;;  %v8444_v17 = vpop.permute.xlu2 %2472 }
 0x3be   : > { %v4306_v32 = vmul.f32 %v8117_v56, %v4241_v24  ;;  %v4307_v54 = vmul.f32 %v8117_v56, %v4242_v52  ;;  %5836 = vmatmul.msk.f32.gmra.mxu1 %vm1194_vm11, %v3428_v48  ;;  %v4308_v31 = vmul.f32 %v8117_v56, %v4243_v44 }
 0x3bf   : > { %v3741_v2 = vrot.slane %v3585_v58, 2  ;;  %v3742_v10 = vrot.slane %v3585_v58, 4  ;;  %v3743_v29 = vrot.slane %v3585_v58, 6  ;;  %v3924_v13 = vmax.f32 %v8344_v11, %v3585_v58  ;;  %5484 = vst.msk [vmem:[%s7861_s0 + $0x38] sm:$0xff] %vm526_vm0, %v3585_v58 }
 0x3c0   : > { %v4433_v12 = vperm.slane %v4305_v9, 0  ;;  %v4434_v47 = vperm.slane %v4306_v32, 0  ;;  %v4435_v20 = vperm.slane %v4307_v54, 0  ;;  %v8448_v43 = vpop.permute.xlu1 %2558  ;;  %3141 = vrot.lane.b32.xlu1 %v8238_v6, %s9973_s22  ;;  %v4436_v9 = vperm.slane %v4308_v31, 0 }
 0x3c1   : > { %v3925_v1 = vmax.f32 %v3735_v35, %v3741_v2  ;;  %v3926_v24 = vmax.f32 %v3736_v15, %v3742_v10  ;;  %v3927_v60 = vmax.f32 %v3737_v36, %v3743_v29  ;;  %v5869_v52 = vrot.slane %v3924_v13, 9  ;;  %10057 = vst [vmem:[#allocation55_spill] sm:$0xff] %v8448_v43 }
 0x3c2   : > { %v4503_v48 = vsel %vm9940_vm13, %v4434_v47, %v4433_v12 }
 0x3c3   : > { %v8450_v46 = vpop.permute.xlu0 %2462  ;;  %v5870_v11 = vrot.slane %v3925_v1, 9  ;;  %v5871_v58 = vrot.slane %v3926_v24, 9  ;;  %v5872_v38 = vrot.slane %v3927_v60, 9  ;;  %v4244_v44 = vmax.f32 %v3924_v13, %v5869_v52  ;;  %3045 = vrot.lane.b32.xlu0 %v8207_v62, %s9978_s13  ;;  %2842 = vrot.lane.b32.xlu2 %v7957_v14, %s9976_s25 }
 0x3c4   : > { %10058 = vst [vmem:[#allocation69_spill] sm:$0xff] %v8450_v46  ;;  %v4504_v35 = vsel %vm10059_vm3, %v4435_v20, %v4503_v48  ;;  %vm10061_vm3 = vcmask 1044484  }
 0x3c5   : > { %v4245_v15 = vmax.f32 %v3925_v1, %v5870_v11  ;;  %v4246_v36 = vmax.f32 %v3926_v24, %v5871_v58  ;;  %v4309_v32 = vmul.f32 %v8117_v56, %v4244_v44  ;;  %v4247_v54 = vmax.f32 %v3927_v60, %v5872_v38  ;;  %v8461_v29 = vpop.permute.xlu2 %2566  ;;  %v10064_v11 = vld [vmem:[#allocation32_spill] sm:$0xff] }
 0x3c6   : > { %v4505_v2 = vsel %vm10060_vm1, %v4436_v9, %v4504_v35  ;;  %vm10087_vm1 = vcmask 1042434  }
 0x3c7   : > { %v4437_v10 = vperm.slane %v4309_v32, 0  ;;  %v4310_v13 = vmul.f32 %v8117_v56, %v4245_v15  ;;  %v4311_v12 = vmul.f32 %v8117_v56, %v4246_v36  ;;  %v4312_v31 = vmul.f32 %v8117_v56, %v4247_v54  ;;  %v10069_v15 = vld [vmem:[#allocation61_spill] sm:$0xff] }
 0x3c8   : > { %v8467_v24 = vpop.permute.xlu1 %2564  ;;  %2666 = vrot.lane.b32.xlu1 %v8185_v5, %s9974_s16 }
 0x3c9   : > { %v4438_v47 = vperm.slane %v4310_v13, 0  ;;  %v4439_v20 = vperm.slane %v4311_v12, 0  ;;  %v4506_v1 = vsel %vm10061_vm3, %v4437_v10, %v4505_v2  ;;  %10062 = vst [vmem:[#allocation70_spill] sm:$0xff] %v8467_v24  ;;  %v4440_v14 = vperm.slane %v4312_v31, 0  ;;  %v10072_v2 = vld [vmem:[#allocation59_spill] sm:$0xff] }
 0x3ca   : > { %v2405_v13 = vrot.slane %v8218_v23, 2  ;;  %v2407_v24 = vrot.slane %v8221_v8, 2  ;;  %v10083_v8 = vld [vmem:[#allocation52_spill] sm:$0xff]  ;;  %vm10088_vm3 = vcmask 1043459  }
 0x3cb   : > { %v8469_v52 = vpop.permute.xlu0 %2468  ;;  %2746 = vrot.lane.b32.xlu0 %v7967_v59, %s9972_s15  ;;  %v4507_v38 = vsel %vm4497_vm15, %v4438_v47, %v4506_v1  ;;  %2858 = vrot.lane.b32.xlu2 %v8249_v25, %s9976_s25  ;;  %v10068_v59 = vld [vmem:[#allocation57_spill] sm:$0xff] }
 0x3cc   : > { %10063 = vst [vmem:[#allocation71_spill] sm:$0xff] %v8469_v52  ;;  %v4508_v60 = vsel %vm4499_vm14, %v4439_v20, %v4507_v38  ;;  %v8568_v52 = vsel %vm895_vm2, %v2405_v13, %v2407_v24  ;;  %v3205_v24 = vsel %vm526_vm0, %v10083_v8, %v8262_v33 }
 0x3cd   : > { %v4509_v48 = vsel %vm4501_vm12, %v4440_v14, %v4508_v60  ;;  %v8483_v44 = vpop.permute.xlu2 %2572 }
 0x3ce   : > { %v8481_v58 = vadd.f32 %v4509_v48, %v10064_v11  ;;  %10066 = vst [vmem:[#allocation72_spill] sm:$0xff] %v8483_v44 }
 0x3d0   : > { %10065 = vst [vmem:[#allocation32_spill] sm:$0xff] %v8481_v58  ;;  %v2471_v9 = vpop.permute.xlu1 %2470  ;;  %2938 = vrot.lane.b32.xlu1 %v10068_v59, %s9975_s1 }
 0x3d3   : > { %v8485_v35 = vpop.permute.xlu0 %2562  ;;  %2762 = vrot.lane.b32.xlu0 %v8213_v51, %s9972_s15  ;;  %3127 = vrot.lane.b32.xlu2 %v10069_v15, %s9973_s22  ;;  %v2404_v51 = vrot.slane %v8252_v45, 2 }
 0x3d4   : > { %10067 = vst [vmem:[#allocation73_spill] sm:$0xff] %v8485_v35 }
 0x3d5   : > { %v8493_v25 = vpop.permute.xlu2 %2478  ;;  %v8516_v31 = vsel %vm895_vm2, %v2404_v51, %v2405_v13  ;;  %v10078_v51 = vld [vmem:[#allocation44_spill] sm:$0xff]  ;;  %v3237_v13 = vsel %vm1128_vm4, %v3205_v24, %v8278_v21  ;;  %v8599_v21 = vld [vmem:[%s9838_s8] ss:$0 sm:$0xff] }
 0x3d6   : > { %10070 = vst [vmem:[#allocation61_spill] sm:$0xff] %v8493_v25 }
 0x3d8   : > { %v8495_v36 = vpop.permute.xlu1 %2476  ;;  %2954 = vrot.lane.b32.xlu1 %v8252_v45, %s9975_s1 }
 0x3d9   : > { %10071 = vst [vmem:[#allocation74_spill] sm:$0xff] %v8495_v36 }
 0x3db   : > { %v8497_v32 = vpop.permute.xlu0 %2568  ;;  %v3587_v54 = vpop.f32.mrf.mxu1  ;;  %3031 = vrot.lane.b32.xlu0 %v10072_v2, %s9978_s13  ;;  %2652 = vrot.lane.b32.xlu2 %v10051_v22, %s9974_s16 }
 0x3dc   : > { %v8504_v10 = vadd.f32 %v7837_v49, %v3587_v54  ;;  %v10077_v54 = vld [vmem:[#allocation40_spill] sm:$0xff] }
 0x3dd   : > { %v8513_v12 = vpop.permute.xlu2 %2484 }
 0x3de   : > { %5485 = vst.msk [vmem:[%s7861_s0 + $0x40] sm:$0xff] %vm526_vm0, %v8504_v10  ;;  %v3744_v24 = vrot.slane %v8504_v10, 2 }
 0x3df   : > { %10073 = vst [vmem:[#allocation59_spill] sm:$0xff] %v8513_v12  ;;  %v10080_v12 = vld [vmem:[#allocation58_spill] sm:$0xff] }
 0x3e0   : > { %v8518_v47 = vpop.permute.xlu1 %2570  ;;  %3143 = vrot.lane.b32.xlu1 %v8516_v31, %s9973_s22 }
 0x3e3   : > { %v8520_v20 = vpop.permute.xlu0 %2474  ;;  %v3590_v1 = vpop.f32.mrf.mxu1  ;;  %3047 = vrot.lane.b32.xlu0 %v8268_v39, %s9978_s13  ;;  %2844 = vrot.lane.b32.xlu2 %v10053_v19, %s9976_s25 }
 0x3e4   : > { %v8527_v14 = vadd.f32 %v7837_v49, %v3590_v1 }
 0x3e5   : > { %v2839_v38 = vpop.permute.xlu2 %2838 }
 0x3e6   : > { %5486 = vst.msk [vmem:[%s7861_s0 + $0x48] sm:$0xff] %vm526_vm0, %v8527_v14 }
 0x3e8   : > { %v2663_v60 = vpop.permute.xlu1 %2662  ;;  %2668 = vrot.lane.b32.xlu1 %v8141_v18, %s9974_s16 }
 0x3eb   : > { %v8534_v48 = vpop.permute.xlu0 %2480  ;;  %2748 = vrot.lane.b32.xlu0 %v10056_v16, %s9972_s15  ;;  %2860 = vrot.lane.b32.xlu2 %v8238_v6, %s9976_s25 }
 0x3ec   : > { %10074 = vst [vmem:[#allocation75_spill] sm:$0xff] %v8534_v48 }
 0x3ed   : > { %v8542_v49 = vpop.permute.xlu2 %2854 }
 0x3f0   : > { %v8544_v11 = vpop.permute.xlu1 %2576  ;;  %2940 = vrot.lane.b32.xlu1 %v10077_v54, %s9975_s1 }
 0x3f1   : > { %10075 = vst [vmem:[#allocation76_spill] sm:$0xff] %v8544_v11  ;;  %v3269_v11 = vsel %vm1137_vm5, %v3237_v13, %v8353_v50  ;;  %v3745_v50 = vrot.slane %v8504_v10, 4  ;;  %v3746_v13 = vrot.slane %v8504_v10, 6 }
 0x3f3   : > { %v8546_v19 = vpop.permute.xlu0 %2574  ;;  %2764 = vrot.lane.b32.xlu0 %v8207_v62, %s9972_s15  ;;  %3129 = vrot.lane.b32.xlu2 %v10078_v51, %s9973_s22 }
 0x3f4   : > { %10076 = vst [vmem:[#allocation77_spill] sm:$0xff] %v8546_v19 }
 0x3f5   : > { %v8554_v1 = vpop.permute.xlu2 %3123 }
 0x3f8   : > { %v8556_v16 = vpop.permute.xlu1 %2482  ;;  %2956 = vrot.lane.b32.xlu1 %v8218_v23, %s9975_s1 }
 0x3f9   : > { %10079 = vst [vmem:[#allocation40_spill] sm:$0xff] %v8556_v16 }
 0x3fb   : > { %v2743_v6 = vpop.permute.xlu0 %2742  ;;  %3033 = vrot.lane.b32.xlu0 %v10080_v12, %s9978_s13  ;;  %2654 = vrot.lane.b32.xlu2 %v10068_v59, %s9974_s16 }
 0x3fc   : > { %v3301_v33 = vsel %vm1146_vm6, %v3269_v11, %v2743_v6 }
 0x3fd   : > { %v8565_v62 = vpop.permute.xlu2 %2648 }
 0x400   : > { %v8570_v35 = vpop.permute.xlu1 %2488  ;;  %3145 = vrot.lane.b32.xlu1 %v8568_v52, %s9973_s22 }
 0x401   : > { %10081 = vst [vmem:[#allocation44_spill] sm:$0xff] %v8570_v35 }
 0x403   : > { %v8572_v16 = vpop.permute.xlu0 %2486  ;;  %3049 = vrot.lane.b32.xlu0 %v8257_v4, %s9978_s13  ;;  %2846 = vrot.lane.b32.xlu2 %v10069_v15, %s9976_s25  ;;  %v10084_v15 = vld [vmem:[#allocation43_spill] sm:$0xff] }
 0x404   : > { %10082 = vst [vmem:[#allocation58_spill] sm:$0xff] %v8572_v16  ;;  %v3213_v48 = vsel %vm526_vm0, %v10084_v15, %v2471_v9 }
 0x405   : > { %v8580_v59 = vpop.permute.xlu2 %2840  ;;  %v3245_v6 = vsel %vm1128_vm4, %v3213_v48, %v8461_v29 }
 0x406   : > { %v3277_v43 = vsel %vm1137_vm5, %v3245_v6, %v2663_v60 }
 0x408   : > { %v2935_v35 = vpop.permute.xlu1 %2934  ;;  %2670 = vrot.lane.b32.xlu1 %v8252_v45, %s9974_s16 }
 0x40b   : > { %v2759_v16 = vpop.permute.xlu0 %2758  ;;  %v3593_v18 = vpop.f32.mrf.mxu1  ;;  %2750 = vrot.lane.b32.xlu0 %v10072_v2, %s9972_s15  ;;  %2862 = vrot.lane.b32.xlu2 %v8516_v31, %s9976_s25 }
 0x40c   : > { %v3594_v8 = vadd.f32 %v8599_v21, %v3593_v18  ;;  %v3333_v18 = vsel %vm1155_vm7, %v3301_v33, %v2839_v38  ;;  %v3309_v29 = vsel %vm1146_vm6, %v3277_v43, %v2759_v16 }
 0x40d   : > { %v8613_v22 = vpop.permute.xlu2 %2856  ;;  %v3365_v46 = vsel %vm1164_vm8, %v3333_v18, %v2935_v35 }
 0x40e   : > { %v3750_v2 = vrot.slane %v3594_v8, 2  ;;  %v3751_v9 = vrot.slane %v3594_v8, 4  ;;  %v3752_v45 = vrot.slane %v3594_v8, 6  ;;  %v3928_v11 = vmax.f32 %v8504_v10, %v3594_v8  ;;  %5487 = vst.msk [vmem:[%s7861_s0 + $0x50] sm:$0xff] %vm526_vm0, %v3594_v8 }
 0x410   : > { %v3929_v58 = vmax.f32 %v3744_v24, %v3750_v2  ;;  %v3930_v19 = vmax.f32 %v3745_v50, %v3751_v9  ;;  %v3931_v5 = vmax.f32 %v3746_v13, %v3752_v45  ;;  %v5873_v25 = vrot.slane %v3928_v11, 9  ;;  %v2951_v8 = vpop.permute.xlu1 %2950  ;;  %2942 = vrot.lane.b32.xlu1 %v10084_v15, %s9975_s1 }
 0x411   : > { %v3748_v24 = vrot.slane %v8527_v14, 4 }
 0x412   : > { %v5874_v44 = vrot.slane %v3929_v58, 9  ;;  %v5875_v3 = vrot.slane %v3930_v19, 9  ;;  %v5876_v10 = vrot.slane %v3931_v5, 9  ;;  %v4248_v36 = vmax.f32 %v3928_v11, %v5873_v25 }
 0x413   : > { %v3028_v34 = vpop.permute.xlu0 %3027  ;;  %v3596_v48 = vpop.f32.mrf.mxu1  ;;  %2766 = vrot.lane.b32.xlu0 %v8268_v39, %s9972_s15  ;;  %v3747_v25 = vrot.slane %v8527_v14, 2  ;;  %v3749_v39 = vrot.slane %v8527_v14, 6 }
 0x414   : > { %v3397_v38 = vsel %vm1173_vm9, %v3365_v46, %v3028_v34  ;;  %v4249_v45 = vmax.f32 %v3929_v58, %v5874_v44  ;;  %v4250_v60 = vmax.f32 %v3930_v19, %v5875_v3  ;;  %v4251_v35 = vmax.f32 %v3931_v5, %v5876_v10  ;;  %v10085_v46 = vld [vmem:[#allocation64_spill] sm:$0xff] }
 0x415   : > { %v4313_v33 = vmul.f32 %v8117_v56, %v4248_v36  ;;  %v3597_v50 = vadd.f32 %v8599_v21, %v3596_v48  ;;  %v3429_v43 = vsel %vm1182_vm10, %v3397_v38, %v8554_v1  ;;  %3131 = vrot.lane.b32.xlu2 %v10085_v46, %s9973_s22  ;;  %v3341_v34 = vsel %vm1155_vm7, %v3309_v29, %v8542_v49  ;;  %v8640_v1 = vpop.permute.xlu2 %3125 }
 0x416   : > { %v4314_v3 = vmul.f32 %v8117_v56, %v4249_v45  ;;  %v4315_v5 = vmul.f32 %v8117_v56, %v4250_v60  ;;  %5837 = vmatmul.msk.f32.gmra.mxu1 %vm1194_vm11, %v3429_v43  ;;  %v4316_v16 = vmul.f32 %v8117_v56, %v4251_v35  ;;  %v3373_v29 = vsel %vm1164_vm8, %v3341_v34, %v2951_v8 }
 0x417   : > { %v3753_v58 = vrot.slane %v3597_v50, 2  ;;  %v3754_v44 = vrot.slane %v3597_v50, 4  ;;  %v3755_v36 = vrot.slane %v3597_v50, 6  ;;  %v3932_v19 = vmax.f32 %v8527_v14, %v3597_v50  ;;  %5488 = vst.msk [vmem:[%s7861_s0 + $0x58] sm:$0xff] %vm526_vm0, %v3597_v50 }
 0x418   : > { %v4441_v13 = vperm.slane %v4313_v33, 0  ;;  %v4442_v2 = vperm.slane %v4314_v3, 0  ;;  %v4443_v9 = vperm.slane %v4315_v5, 0  ;;  %v3140_v38 = vpop.permute.xlu1 %3139  ;;  %2958 = vrot.lane.b32.xlu1 %v8283_v37, %s9975_s1  ;;  %v2409_v14 = vrot.slane %v8283_v37, 2 }
 0x419   : > { %v3933_v11 = vmax.f32 %v3747_v25, %v3753_v58  ;;  %v3934_v6 = vmax.f32 %v3748_v24, %v3754_v44  ;;  %v3935_v18 = vmax.f32 %v3749_v39, %v3755_v36  ;;  %v5877_v49 = vrot.slane %v3932_v19, 9  ;;  %v10086_v25 = vld [vmem:[#allocation60_spill] sm:$0xff] }
 0x41a   : > { %v4510_v10 = vsel %vm9940_vm13, %v4442_v2, %v4441_v13  ;;  %v4444_v24 = vperm.slane %v4316_v16, 0  ;;  %v2410_v43 = vrot.slane %v8271_v63, 2 }
 0x41b   : > { %v3044_v48 = vpop.permute.xlu0 %3043  ;;  %v5878_v45 = vrot.slane %v3933_v11, 9  ;;  %v5879_v60 = vrot.slane %v3934_v6, 9  ;;  %v5880_v35 = vrot.slane %v3935_v18, 9  ;;  %v4252_v33 = vmax.f32 %v3932_v19, %v5877_v49  ;;  %3035 = vrot.lane.b32.xlu0 %v10086_v25, %s9978_s13 }
 0x41c   : > { %v3405_v50 = vsel %vm1173_vm9, %v3373_v29, %v3044_v48  ;;  %v4511_v8 = vsel %vm10087_vm1, %v4443_v9, %v4510_v10  ;;  %vm10089_vm1 = vcmask 1044484  }
 0x41d   : > { %v4253_v39 = vmax.f32 %v3933_v11, %v5878_v45  ;;  %v4254_v3 = vmax.f32 %v3934_v6, %v5879_v60  ;;  %v4255_v5 = vmax.f32 %v3935_v18, %v5880_v35  ;;  %v4317_v34 = vmul.f32 %v8117_v56, %v4252_v33  ;;  %2656 = vrot.lane.b32.xlu2 %v10077_v54, %s9974_s16  ;;  %v8661_v13 = vpop.permute.xlu2 %2650  ;;  %v10090_v45 = vld [vmem:[#allocation33_spill] sm:$0xff]  ;;  %v10091_v33 = vld [vmem:[#allocation51_spill] sm:$0xff] }
 0x41e   : > { %v3437_v58 = vsel %vm1182_vm10, %v3405_v50, %v3140_v38  ;;  %v4512_v44 = vsel %vm10088_vm3, %v4444_v24, %v4511_v8  ;;  %v8667_v11 = vsel %vm895_vm2, %v2409_v14, %v2410_v43  ;;  %v3206_v24 = vsel %vm526_vm0, %v10091_v33, %v8244_v26 }
 0x41f   : > { %v4318_v36 = vmul.f32 %v8117_v56, %v4253_v39  ;;  %v4319_v19 = vmul.f32 %v8117_v56, %v4254_v3  ;;  %v4445_v16 = vperm.slane %v4317_v34, 0  ;;  %5845 = vmatmul.msk.f32.vlgmr.msra.gmra.mxu2 %vm1194_vm11, %v3437_v58  ;;  %v4320_v2 = vmul.f32 %v8117_v56, %v4255_v5 }
 0x420   : > { %v2665_v49 = vpop.permute.xlu1 %2664  ;;  %3147 = vrot.lane.b32.xlu1 %v8667_v11, %s9973_s22  ;;  %vm10097_vm3 = vcmask 1040384  }
 0x421   : > { %v4446_v9 = vperm.slane %v4318_v36, 0  ;;  %v4447_v6 = vperm.slane %v4319_v19, 0  ;;  %v4513_v18 = vsel %vm10089_vm1, %v4445_v16, %v4512_v44  ;;  %v4448_v29 = vperm.slane %v4320_v2, 0  ;;  %vm10098_vm1 = vmmov %vm10097_vm3 }
 0x423   : > { %v2745_v10 = vpop.permute.xlu0 %2744  ;;  %3051 = vrot.lane.b32.xlu0 %v8313_v53, %s9978_s13  ;;  %v4514_v38 = vsel %vm4497_vm15, %v4446_v9, %v4513_v18 }
 0x424   : > { %v4515_v48 = vsel %vm4499_vm14, %v4447_v6, %v4514_v38  ;;  %v10094_v38 = vld [vmem:[#allocation63_spill] sm:$0xff] }
 0x425   : > { %2848 = vrot.lane.b32.xlu2 %v10078_v51, %s9976_s25  ;;  %v4516_v14 = vsel %vm4501_vm12, %v4448_v29, %v4515_v48  ;;  %v8682_v35 = vpop.permute.xlu2 %2842  ;;  %v3238_v51 = vsel %vm1128_vm4, %v3206_v24, %v8242_v41  ;;  %v10092_v41 = vld [vmem:[#allocation38_spill] sm:$0xff] }
 0x426   : > { %v8680_v60 = vadd.f32 %v4516_v14, %v10090_v45  ;;  %v3270_v39 = vsel %vm1137_vm5, %v3238_v51, %v8565_v62  ;;  %v3214_v62 = vsel %vm526_vm0, %v10092_v41, %v8444_v17  ;;  %v10093_v17 = vld [vmem:[#allocation65_spill] sm:$0xff] }
 0x427   : > { %v3302_v3 = vsel %vm1146_vm6, %v3270_v39, %v2745_v10 }
 0x428   : > { %v2937_v50 = vpop.permute.xlu1 %2936  ;;  %2672 = vrot.lane.b32.xlu1 %v8218_v23, %s9974_s16  ;;  %v3334_v5 = vsel %vm1155_vm7, %v3302_v3, %v8580_v59  ;;  %v3246_v59 = vsel %vm1128_vm4, %v3214_v62, %v8497_v32 }
 0x429   : > { %v3366_v34 = vsel %vm1164_vm8, %v3334_v5, %v2937_v50  ;;  %v3278_v2 = vsel %vm1137_vm5, %v3246_v59, %v2665_v49  ;;  %v1992_v5 = vld.sshfl [vmem:[#allocation1 + $0x20] sm:$0xff pattern:$0x73625140] }
 0x42b   : > { %v2761_v8 = vpop.permute.xlu0 %2760  ;;  %2752 = vrot.lane.b32.xlu0 %v10080_v12, %s9972_s15 }
 0x42c   : > { %v3310_v9 = vsel %vm1146_vm6, %v3278_v2, %v2761_v8 }
 0x42d   : > { %2864 = vrot.lane.b32.xlu2 %v8568_v52, %s9976_s25  ;;  %v8698_v26 = vpop.permute.xlu2 %2858  ;;  %v3342_v6 = vsel %vm1155_vm7, %v3310_v9, %v8613_v22  ;;  %v2412_v22 = vrot.slane %v8274_v40, 2  ;;  %v6093_v40 = vld [vmem:[%s9964_s6] ss:$0 sm:$0xff]  ;;  %v3215_v9 = vsel %vm526_vm0, %v8043_v42, %v8520_v20 }
 0x42f   : > { %v8750_v24 = vsel %vm895_vm2, %v2410_v43, %v2412_v22 }
 0x430   : > { %v2953_v12 = vpop.permute.xlu1 %2952  ;;  %2944 = vrot.lane.b32.xlu1 %v10092_v41, %s9975_s1 }
 0x433   : > { %v3030_v58 = vpop.permute.xlu0 %3029  ;;  %v3599_v36 = vpop.f32.mrf.mxu1  ;;  %2768 = vrot.lane.b32.xlu0 %v8257_v4, %s9972_s15 }
 0x434   : > { %v3398_v44 = vsel %vm1173_vm9, %v3366_v34, %v3030_v58  ;;  %v8714_v19 = vadd.f32 %v8599_v21, %v3599_v36  ;;  %v1468_v4 = vpop.f32.mrf.mxu3  ;;  %v10095_v58 = vld [vmem:[#allocation53_spill] sm:$0xff] }
 0x435   : > { %v3430_v16 = vsel %vm1182_vm10, %v3398_v44, %v8640_v1  ;;  %3133 = vrot.lane.b32.xlu2 %v10093_v17, %s9973_s22  ;;  %v3128_v32 = vpop.permute.xlu2 %3127  ;;  %v3374_v1 = vsel %vm1164_vm8, %v3342_v6, %v2953_v12  ;;  %v3207_v62 = vsel %vm526_vm0, %v10095_v58, %v8363_v57  ;;  %v10096_v44 = vld [vmem:[#allocation50_spill] sm:$0xff]  ;;  %v10100_v58 = vld [vmem:[#allocation67_spill] sm:$0xff] }
 0x436   : > { %5838 = vmatmul.msk.f32.gmra.mxu1 %vm1194_vm11, %v3430_v16  ;;  %5489 = vst.msk [vmem:[%s7861_s0 + $0x60] sm:$0xff] %vm526_vm0, %v8714_v19  ;;  %v3239_v59 = vsel %vm1128_vm4, %v3207_v62, %v8374_v7 }
 0x438   : > { %v3142_v18 = vpop.permute.xlu1 %3141  ;;  %2960 = vrot.lane.b32.xlu1 %v8271_v63, %s9975_s1 }
 0x43b   : > { %v3046_v49 = vpop.permute.xlu0 %3045  ;;  %v3602_v29 = vpop.f32.mrf.mxu1  ;;  %3037 = vrot.lane.b32.xlu0 %v10094_v38, %s9978_s13 }
 0x43c   : > { %v3406_v10 = vsel %vm1173_vm9, %v3374_v1, %v3046_v49  ;;  %v8735_v48 = vadd.f32 %v8599_v21, %v3602_v29  ;;  %v1471_v33 = vpop.f32.mrf.mxu3 }
 0x43d   : > { %v3438_v14 = vsel %vm1182_vm10, %v3406_v10, %v3142_v18  ;;  %2658 = vrot.lane.b32.xlu2 %v10084_v15, %s9974_s16  ;;  %v8745_v45 = vpop.permute.xlu2 %2652  ;;  %v1469_v15 = vadd.f32 %v6093_v40, %v1468_v4  ;;  %v1472_v51 = vadd.f32 %v6093_v40, %v1471_v33  ;;  %v3247_v18 = vsel %vm1128_vm4, %v3215_v9, %v8518_v47  ;;  %v10104_v9 = vld [vmem:[#allocation45_spill] sm:$0xff] }
 0x43e   : > { %5846 = vmatmul.msk.f32.gmra.mxu2 %vm1194_vm11, %v3438_v14  ;;  %5490 = vst.msk [vmem:[%s7861_s0 + $0x68] sm:$0xff] %vm526_vm0, %v8735_v48 }
 0x43f   : > { %v1504_v43 = vmul.f32 %v1469_v15, %v6483_v55  ;;  %v1505_v3 = vmul.f32 %v1472_v51, %v6483_v55  ;;  %v3271_v55 = vsel %vm1137_vm5, %v3239_v59, %v8661_v13 }
 0x440   : > { %v2667_v50 = vpop.permute.xlu1 %2666  ;;  %3149 = vrot.lane.b32.xlu1 %v8750_v24, %s9973_s22 }
 0x441   : > { %v2055_v36 = vadd.f32 %v10096_v44, %v1504_v43  ;;  %v8775_v16 = vadd.f32 %v1992_v5, %v1505_v3  ;;  %v3279_v49 = vsel %vm1137_vm5, %v3247_v18, %v2667_v50 }
 0x443   : > { %v2747_v8 = vpop.permute.xlu0 %2746  ;;  %3053 = vrot.lane.b32.xlu0 %v8304_v27, %s9978_s13  ;;  %v2145_v57 = vrot.slane %v2055_v36, 7  ;;  %v10102_v36 = vld [vmem:[#allocation62_spill] sm:$0xff] }
 0x445   : > { %2674 = vrot.lane.b32.xlu2 %v8283_v37, %s9974_s16  ;;  %v8761_v39 = vpop.permute.xlu2 %2844  ;;  %v8800_v20 = vsel %vm10097_vm3, 0.0, %v2145_v57  ;;  %vm10099_vm3 = vcmask 1046528  }
 0x446   : > { %v2421_v47 = vrot.slane %v8800_v20, 2 }
 0x448   : > { %v2939_v34 = vpop.permute.xlu1 %2938  ;;  %2754 = vrot.lane.b32.xlu1 %v10086_v25, %s9972_s15  ;;  %v3303_v25 = vsel %vm1146_vm6, %v3271_v55, %v2747_v8 }
 0x449   : > { %v3335_v7 = vsel %vm1155_vm7, %v3303_v25, %v8682_v35 }
 0x44a   : > { %v3367_v4 = vsel %vm1164_vm8, %v3335_v7, %v2939_v34 }
 0x44b   : > { %v2763_v12 = vpop.permute.xlu0 %2762  ;;  %2578 = vrot.lane.b32.xlu0 %v8516_v31, %s9977_s2  ;;  %v2146_v31 = vrot.slane %v8775_v16, 7 }
 0x44d   : > { %2946 = vrot.lane.b32.xlu2 %v8043_v42, %s9975_s1  ;;  %v8782_v2 = vpop.permute.xlu2 %2860  ;;  %v8803_v35 = vsel %vm10098_vm1, %v2145_v57, %v2146_v31  ;;  %v2227_v57 = vsel %vm10098_vm1, %v2146_v31, 0.0 }
 0x450   : > { %v2955_v13 = vpop.permute.xlu1 %2954  ;;  %2770 = vrot.lane.b32.xlu1 %v8313_v53, %s9972_s15  ;;  %v3311_v53 = vsel %vm1146_vm6, %v3279_v49, %v2763_v12  ;;  %v3208_v12 = vsel %vm526_vm0, %v7784_v30, %v8361_v0 }
 0x451   : > { %v3343_v10 = vsel %vm1155_vm7, %v3311_v53, %v8698_v26  ;;  %v2416_v26 = vrot.slane %v8800_v20, 1  ;;  %v3240_v62 = vsel %vm1128_vm4, %v3208_v12, %v10100_v58 }
 0x452   : > { %v3375_v29 = vsel %vm1164_vm8, %v3343_v10, %v2955_v13  ;;  %v2424_v10 = vrot.slane %v2227_v57, 2 }
 0x453   : > { %v3032_v6 = vpop.permute.xlu0 %3031  ;;  %2850 = vrot.lane.b32.xlu0 %v10085_v46, %s9976_s25 }
 0x454   : > { %v3399_v1 = vsel %vm1173_vm9, %v3367_v4, %v3032_v6  ;;  %v2419_v4 = vrot.slane %v2227_v57, 1 }
 0x455   : > { %v3431_v42 = vsel %vm1182_vm10, %v3399_v1, %v3128_v32  ;;  %2962 = vrot.lane.b32.xlu2 %v8800_v20, %s9975_s1  ;;  %v3130_v46 = vpop.permute.xlu2 %3129  ;;  %v2422_v32 = vrot.slane %v8803_v35, 2 }
 0x456   : > { %5839 = vmatmul.msk.f32.gmra.mxu1 %vm1194_vm11, %v3431_v42 }
 0x457   : > { %v8824_v8 = vsel %vm895_vm2, %v2421_v47, %v2422_v32  ;;  %v10105_v47 = vld [vmem:[#allocation46_spill] sm:$0xff] }
 0x458   : > { %v3144_v14 = vpop.permute.xlu1 %3143  ;;  %3039 = vrot.lane.b32.xlu1 %v8133_v28, %s9978_s13  ;;  %v2417_v28 = vrot.slane %v8803_v35, 1 }
 0x45a   : > { %v8832_v15 = vsel %vm10099_vm3, %v2416_v26, %v2417_v28  ;;  %v2420_v49 = vsel %vm10099_vm3, %v2417_v28, %v2419_v4  ;;  %v2425_v28 = vsel %vm895_vm2, %v2422_v32, %v2424_v10  ;;  %vm10116_vm3 = vmmov %vm10098_vm1 }
 0x45b   : > { %v3048_v22 = vpop.permute.xlu0 %3047  ;;  %2866 = vrot.lane.b32.xlu0 %v8667_v11, %s9976_s25 }
 0x45c   : > { %v3407_v33 = vsel %vm1173_vm9, %v3375_v29, %v3048_v22  ;;  %v10107_v22 = vld [vmem:[#allocation56_spill] sm:$0xff] }
 0x45d   : > { %v3439_v50 = vsel %vm1182_vm10, %v3407_v33, %v3144_v14  ;;  %3151 = vrot.lane.b32.xlu2 %v8824_v8, %s9973_s22  ;;  %v2655_v40 = vpop.permute.xlu2 %2654  ;;  %v10106_v14 = vld [vmem:[#allocation69_spill] sm:$0xff] }
 0x45e   : > { %5847 = vmatmul.msk.f32.gmra.mxu2 %vm1194_vm11, %v3439_v50  ;;  %v3209_v33 = vsel %vm526_vm0, %v10107_v22, %v10106_v14  ;;  %v10117_v14 = vld [vmem:[#allocation32_spill] sm:$0xff] }
 0x45f   : > { %v4577_v22 = vrot.slane %v10117_v14, 7 }
 0x460   : > { %v2669_v51 = vpop.permute.xlu1 %2668  ;;  %3055 = vrot.lane.b32.xlu1 %v8832_v15, %s9978_s13 }
 0x463   : > { %v2749_v43 = vpop.permute.xlu0 %2748  ;;  %3135 = vrot.lane.b32.xlu0 %v8125_v61, %s9973_s22  ;;  %v3272_v61 = vsel %vm1137_vm5, %v3240_v62, %v8745_v45  ;;  %v10103_v45 = vld [vmem:[#allocation72_spill] sm:$0xff] }
 0x465   : > { %2756 = vrot.lane.b32.xlu2 %v10094_v38, %s9972_s15  ;;  %v2847_v3 = vpop.permute.xlu2 %2846  ;;  %v3304_v38 = vsel %vm1146_vm6, %v3272_v61, %v2749_v43  ;;  %v10110_v61 = vld [vmem:[#allocation61_spill] sm:$0xff] }
 0x466   : > { %v3336_v0 = vsel %vm1155_vm7, %v3304_v38, %v8761_v39  ;;  %v10111_v38 = vld [vmem:[#allocation47_spill] sm:$0xff] }
 0x468   : > { %v2941_v5 = vpop.permute.xlu1 %2940  ;;  %2580 = vrot.lane.b32.xlu1 %v8568_v52, %s9977_s2  ;;  %v10101_v52 = vld [vmem:[#allocation74_spill] sm:$0xff] }
 0x469   : > { %v3216_v30 = vsel %vm526_vm0, %v10102_v36, %v10101_v52 }
 0x46a   : > { %v3248_v55 = vsel %vm1128_vm4, %v3216_v30, %v10103_v45  ;;  %v10112_v30 = vld [vmem:[#allocation77_spill] sm:$0xff] }
 0x46b   : > { %v2765_v34 = vpop.permute.xlu0 %2764  ;;  %2660 = vrot.lane.b32.xlu0 %v10092_v41, %s9974_s16  ;;  %v3368_v41 = vsel %vm1164_vm8, %v3336_v0, %v2941_v5  ;;  %v3280_v39 = vsel %vm1137_vm5, %v3248_v55, %v2669_v51  ;;  %v10108_v51 = vld [vmem:[#allocation55_spill] sm:$0xff]  ;;  %v10109_v5 = vld [vmem:[#allocation20_spill] sm:$0xff] }
 0x46d   : > { %2772 = vrot.lane.b32.xlu2 %v8304_v27, %s9972_s15  ;;  %v8854_v44 = vpop.permute.xlu2 %2862 }
 0x470   : > { %v2957_v59 = vpop.permute.xlu1 %2956  ;;  %2852 = vrot.lane.b32.xlu1 %v10093_v17, %s9976_s25  ;;  %v3312_v17 = vsel %vm1146_vm6, %v3280_v39, %v2765_v34  ;;  %v10114_v39 = vld [vmem:[#allocation18_spill] sm:$0xff] }
 0x471   : > { %v3344_v13 = vsel %vm1155_vm7, %v3312_v17, %v8782_v2 }
 0x472   : > { %v3376_v6 = vsel %vm1164_vm8, %v3344_v13, %v2957_v59 }
 0x473   : > { %v3034_v16 = vpop.permute.xlu0 %3033  ;;  %2676 = vrot.lane.b32.xlu0 %v8271_v63, %s9974_s16 }
 0x474   : > { %v3400_v27 = vsel %vm1173_vm9, %v3368_v41, %v3034_v16 }
 0x475   : > { %v3432_v25 = vsel %vm1182_vm10, %v3400_v27, %v3130_v46  ;;  %3041 = vrot.lane.b32.xlu2 %v10104_v9, %s9978_s13  ;;  %v3132_v7 = vpop.permute.xlu2 %3131  ;;  %v10115_v9 = vld [vmem:[#allocation48_spill] sm:$0xff] }
 0x476   : > { %5840 = vmatmul.msk.f32.gmra.mxu1 %vm1194_vm11, %v3432_v25  ;;  %v4576_v17 = vrot.slane %v10115_v9, 7 }
 0x478   : > { %v3146_v1 = vpop.permute.xlu1 %3145  ;;  %2868 = vrot.lane.b32.xlu1 %v8750_v24, %s9976_s25 }
 0x47b   : > { %v3050_v18 = vpop.permute.xlu0 %3049  ;;  %2948 = vrot.lane.b32.xlu0 %v10102_v36, %s9975_s1 }
 0x47c   : > { %v3408_v31 = vsel %vm1173_vm9, %v3376_v6, %v3050_v18  ;;  %v8962_v18 = vsel %vm10098_vm1, 0.0, %v4576_v17 }
 0x47d   : > { %v3440_v42 = vsel %vm1182_vm10, %v3408_v31, %v3146_v1  ;;  %3057 = vrot.lane.b32.xlu2 %v2420_v49, %s9978_s13  ;;  %v8888_v2 = vpop.permute.xlu2 %2656  ;;  %v3756_v1 = vrot.slane %v8714_v19, 2 }
 0x47e   : > { %5848 = vmatmul.msk.f32.gmra.mxu2 %vm1194_vm11, %v3440_v42 }
 0x480   : > { %v2671_v53 = vpop.permute.xlu1 %2670  ;;  %3137 = vrot.lane.b32.xlu1 %v10105_v47, %s9973_s22  ;;  %v3757_v47 = vrot.slane %v8714_v19, 4 }
 0x483   : > { %v2751_v46 = vpop.permute.xlu0 %2750  ;;  %2964 = vrot.lane.b32.xlu0 %v8803_v35, %s9975_s1 }
 0x485   : > { %2678 = vrot.lane.b32.xlu2 %v8800_v20, %s9974_s16  ;;  %v8896_v29 = vpop.permute.xlu2 %2848  ;;  %v3241_v20 = vsel %vm1128_vm4, %v3209_v33, %v10108_v51  ;;  %v10118_v33 = vld [vmem:[#allocation41_spill] sm:$0xff] }
 0x486   : > { %v3273_v43 = vsel %vm1137_vm5, %v3241_v20, %v2655_v40  ;;  %v3217_v40 = vsel %vm526_vm0, %v10111_v38, %v10110_v61 }
 0x487   : > { %v3305_v34 = vsel %vm1146_vm6, %v3273_v43, %v2751_v46  ;;  %v4600_v46 = vsel %vm10116_vm3, %v4576_v17, 0.0  ;;  %vm10123_vm3 = vmmov %vm10098_vm1 }
 0x488   : > { %v2943_v50 = vpop.permute.xlu1 %2942  ;;  %2582 = vrot.lane.b32.xlu1 %v8667_v11, %s9977_s2  ;;  %v3337_v11 = vsel %vm1155_vm7, %v3305_v34, %v2847_v3  ;;  %v3249_v3 = vsel %vm1128_vm4, %v3217_v40, %v10112_v30  ;;  %v8986_v40 = vsel %vm10098_vm1, 0.0, %v4577_v22  ;;  %vm10124_vm1 = vcmask 1046528  }
 0x489   : > { %v3369_v58 = vsel %vm1164_vm8, %v3337_v11, %v2943_v50  ;;  %v3281_v59 = vsel %vm1137_vm5, %v3249_v3, %v2671_v53  ;;  %v10119_v50 = vld [vmem:[#allocation54_spill] sm:$0xff]  ;;  %v4622_v11 = vrot.slane %v8962_v18, 1  ;;  %v4625_v9 = vrot.slane %v8986_v40, 1 }
 0x48b   : > { %v2767_v26 = vpop.permute.xlu0 %2766  ;;  %3153 = vrot.lane.b32.xlu0 %v2425_v28, %s9973_s22 }
 0x48d   : > { %3059 = vrot.lane.b32.xlu2 %v10109_v5, %s9978_s13  ;;  %v8913_v12 = vpop.permute.xlu2 %2864  ;;  %v10120_v5 = vld [vmem:[#allocation21_spill] sm:$0xff] }
 0x490   : > { %v2959_v32 = vpop.permute.xlu1 %2958  ;;  %2870 = vrot.lane.b32.xlu1 %v8824_v8, %s9976_s25  ;;  %v3313_v8 = vsel %vm1146_vm6, %v3281_v59, %v2767_v26  ;;  %v3210_v26 = vsel %vm526_vm0, %v10119_v50, %v10118_v33  ;;  %v3761_v33 = vrot.slane %v8735_v48, 6 }
 0x493   : > { %v3036_v62 = vpop.permute.xlu0 %3035  ;;  %v3605_v36 = vpop.f32.mrf.mxu1  ;;  %2774 = vrot.lane.b32.xlu0 %v8832_v15, %s9972_s15  ;;  %v3345_v15 = vsel %vm1155_vm7, %v3313_v8, %v8854_v44 }
 0x494   : > { %v3401_v52 = vsel %vm1173_vm9, %v3369_v58, %v3036_v62  ;;  %v3606_v0 = vadd.f32 %v8599_v21, %v3605_v36  ;;  %v3377_v27 = vsel %vm1164_vm8, %v3345_v15, %v2959_v32  ;;  %v4643_v58 = vrot.slane %v8962_v18, 2  ;;  %v10121_v32 = vld [vmem:[#allocation22_spill] sm:$0xff] }
 0x495   : > { %v3433_v41 = vsel %vm1182_vm10, %v3401_v52, %v3132_v7  ;;  %2680 = vrot.lane.b32.xlu2 %v8803_v35, %s9974_s16  ;;  %v8936_v16 = vpop.permute.xlu2 %3133  ;;  %v10113_v35 = vld [vmem:[#allocation19_spill] sm:$0xff]  ;;  %v4644_v62 = vrot.slane %v4600_v46, 2  ;;  %v10122_v52 = vld [vmem:[#allocation68_spill] sm:$0xff] }
 0x496   : > { %5841 = vmatmul.msk.f32.gmra.mxu1 %vm1194_vm11, %v3433_v41  ;;  %5491 = vst.msk [vmem:[%s7861_s0 + $0x70] sm:$0xff] %vm526_vm0, %v3606_v0  ;;  %v3762_v7 = vrot.slane %v3606_v0, 2  ;;  %v3763_v31 = vrot.slane %v3606_v0, 4  ;;  %v3936_v10 = vmax.f32 %v8714_v19, %v3606_v0  ;;  %v3242_v36 = vsel %vm1128_vm4, %v3210_v26, %v10122_v52 }
 0x497   : > { %v3274_v30 = vsel %vm1137_vm5, %v3242_v36, %v8888_v2  ;;  %v4601_v41 = vsel %vm10123_vm3, %v4577_v22, 0.0  ;;  %v8999_v15 = vsel %vm895_vm2, %v4643_v58, %v4644_v62  ;;  %vm10128_vm3 = vmmov %vm10124_vm1 }
 0x498   : > { %v3148_v45 = vpop.permute.xlu1 %3147  ;;  %2584 = vrot.lane.b32.xlu1 %v8750_v24, %s9977_s2  ;;  %v3937_v42 = vmax.f32 %v3756_v1, %v3762_v7  ;;  %v3938_v51 = vmax.f32 %v3757_v47, %v3763_v31  ;;  %v5881_v38 = vrot.slane %v3936_v10, 9  ;;  %v4626_v17 = vrot.slane %v4601_v41, 1  ;;  %v10127_v7 = vld [vmem:[#allocation76_spill] sm:$0xff] }
 0x499   : > { %v3759_v47 = vrot.slane %v8735_v48, 2 }
 0x49a   : > { %v5882_v20 = vrot.slane %v3937_v42, 9  ;;  %v5883_v3 = vrot.slane %v3938_v51, 9 }
 0x49b   : > { %v3052_v55 = vpop.permute.xlu0 %3051  ;;  %3155 = vrot.lane.b32.xlu0 %v10113_v35, %s9973_s22  ;;  %v10125_v35 = vld [vmem:[#allocation75_spill] sm:$0xff] }
 0x49c   : > { %v3409_v25 = vsel %vm1173_vm9, %v3377_v27, %v3052_v55 }
 0x49d   : > { %v3441_v57 = vsel %vm1182_vm10, %v3409_v25, %v3148_v45  ;;  %2966 = vrot.lane.b32.xlu2 %v10114_v39, %s9975_s1  ;;  %v8950_v44 = vpop.permute.xlu2 %2658  ;;  %v4256_v45 = vmax.f32 %v3936_v10, %v5881_v38  ;;  %v4646_v25 = vrot.slane %v8986_v40, 2  ;;  %v4647_v39 = vrot.slane %v4601_v41, 2 }
 0x49e   : > { %5849 = vmatmul.msk.f32.gmra.mxu2 %vm1194_vm11, %v3441_v57  ;;  %v10126_v57 = vld [vmem:[#allocation66_spill] sm:$0xff] }
 0x49f   : > { %v3218_v2 = vsel %vm526_vm0, %v10126_v57, %v10125_v35  ;;  %v4321_v50 = vmul.f32 %v8117_v56, %v4256_v45  ;;  %v4648_v36 = vsel %vm895_vm2, %v4646_v25, %v4647_v39  ;;  %v4627_v45 = vsel %vm10128_vm3, %v4625_v9, %v4626_v17 }
 0x4a0   : > { %v8953_v24 = vpop.permute.xlu1 %2672  ;;  %2872 = vrot.lane.b32.xlu1 %v2425_v28, %s9976_s25  ;;  %v3758_v28 = vrot.slane %v8714_v19, 6  ;;  %v4623_v19 = vrot.slane %v4600_v46, 1 }
 0x4a1   : > { %v4449_v52 = vperm.slane %v4321_v50, 0 }
 0x4a2   : > { %v3629_v4 = vpop.f32.mrf.mxu2  ;;  %v4624_v55 = vsel %vm10124_vm1, %v4622_v11, %v4623_v19  ;;  %vm10129_vm1 = vcmask 1040384  }
 0x4a3   : > { %v8957_v13 = vadd.f32 %v8599_v21, %v3629_v4  ;;  %v2753_v6 = vpop.permute.xlu0 %2752  ;;  %2776 = vrot.lane.b32.xlu0 %v2420_v49, %s9972_s15  ;;  %v3764_v49 = vrot.slane %v3606_v0, 6  ;;  %v4257_v0 = vmax.f32 %v3937_v42, %v5882_v20  ;;  %v3250_v4 = vsel %vm1128_vm4, %v3218_v2, %v10127_v7  ;;  %vm10130_vm3 = vmmov %vm10129_vm1 }
 0x4a4   : > { %v3306_v59 = vsel %vm1146_vm6, %v3274_v30, %v2753_v6  ;;  %v4258_v6 = vmax.f32 %v3938_v51, %v5883_v3  ;;  %v3282_v58 = vsel %vm1137_vm5, %v3250_v4, %v8953_v24  ;;  %v4578_v30 = vrot.slane %v8680_v60, 7 }
 0x4a5   : > { %5499 = vst.msk [vmem:[%s7861_s0 + $0xb0] sm:$0xff] %vm526_vm0, %v8957_v13  ;;  %4714 = vrot.lane.b32.xlu2 %v8962_v18, %s9974_s16  ;;  %v8969_v53 = vpop.permute.xlu2 %2674  ;;  %v3939_v61 = vmax.f32 %v3758_v28, %v3764_v49  ;;  %v4322_v1 = vmul.f32 %v8117_v56, %v4257_v0  ;;  %v3338_v31 = vsel %vm1155_vm7, %v3306_v59, %v8896_v29  ;;  %v3760_v49 = vrot.slane %v8735_v48, 4 }
 0x4a6   : > { %v4602_v17 = vsel %vm10130_vm3, %v4578_v30, 0.0  ;;  %vm10134_vm3 = vcmask 1046528  }
 0x4a7   : > { %v5884_v27 = vrot.slane %v3939_v61, 9  ;;  %v4450_v11 = vperm.slane %v4322_v1, 0 }
 0x4a8   : > { %v2945_v43 = vpop.permute.xlu1 %2944  ;;  %3157 = vrot.lane.b32.xlu1 %v10120_v5, %s9973_s22 }
 0x4a9   : > { %v3370_v10 = vsel %vm1164_vm8, %v3338_v31, %v2945_v43  ;;  %v4259_v29 = vmax.f32 %v3939_v61, %v5884_v27  ;;  %v4323_v43 = vmul.f32 %v8117_v56, %v4258_v6 }
 0x4ab   : > { %v2769_v34 = vpop.permute.xlu0 %2768  ;;  %3061 = vrot.lane.b32.xlu0 %v10121_v32, %s9978_s13  ;;  %v4451_v59 = vperm.slane %v4323_v43, 0 }
 0x4ac   : > { %v3314_v62 = vsel %vm1146_vm6, %v3282_v58, %v2769_v34 }
 0x4ad   : > { %4786 = vrot.lane.b32.xlu2 %v8986_v40, %s9975_s1  ;;  %v8996_v8 = vpop.permute.xlu2 %2946  ;;  %v3346_v34 = vsel %vm1155_vm7, %v3314_v62, %v8913_v12  ;;  %v9048_v12 = vsel %vm10129_vm1, 0.0, %v4578_v30  ;;  %vm10132_vm1 = vcmask 1043459  }
 0x4b0   : > { %v2961_v42 = vpop.permute.xlu1 %2960  ;;  %4762 = vrot.lane.b32.xlu1 %v8999_v15, %s9976_s25 }
 0x4b1   : > { %v3378_v25 = vsel %vm1164_vm8, %v3346_v34, %v2961_v42 }
 0x4b3   : > { %v3608_v46 = vpop.f32.mrf.mxu1  ;;  %v3038_v14 = vpop.permute.xlu0 %3037  ;;  %4738 = vrot.lane.b32.xlu0 %v4624_v55, %s9972_s15 }
 0x4b4   : > { %v3609_v22 = vadd.f32 %v8599_v21, %v3608_v46  ;;  %v3402_v26 = vsel %vm1173_vm9, %v3370_v10, %v3038_v14  ;;  %v4629_v10 = vrot.slane %v4602_v17, 1 }
 0x4b5   : > { %4672 = vrot.lane.b32.xlu2 %v4624_v55, %s9968_s24  ;;  %v3434_v32 = vsel %vm1182_vm10, %v3402_v26, %v8936_v16  ;;  %v4324_v16 = vmul.f32 %v8117_v56, %v4259_v29  ;;  %v4517_v55 = vsel %vm9940_vm13, %v4450_v11, %v4449_v52  ;;  %vm10131_vm13 = vcmask 1042434   ;;  %v10135_v52 = vld [vmem:[#allocation34_spill] sm:$0xff] }
 0x4b6   : > { %v3765_v28 = vrot.slane %v3609_v22, 2  ;;  %v3766_v51 = vrot.slane %v3609_v22, 4  ;;  %v3767_v20 = vrot.slane %v3609_v22, 6  ;;  %v3940_v5 = vmax.f32 %v8735_v48, %v3609_v22  ;;  %5492 = vst.msk [vmem:[%s7861_s0 + $0x78] sm:$0xff] %vm526_vm0, %v3609_v22  ;;  %5842 = vmatmul.msk.f32.gmra.mxu1 %vm1194_vm11, %v3434_v32  ;;  %v9033_v48 = vpop.permute.xlu2 %2962 }
 0x4b7   : > { %v4518_v1 = vsel %vm10131_vm13, %v4451_v59, %v4517_v55  ;;  %v4452_v31 = vperm.slane %v4324_v16, 0  ;;  %vm10133_vm13 = vcmask 1044484   ;;  %v10139_v55 = vld [vmem:[#allocation57_spill] sm:$0xff] }
 0x4b8   : > { %v3941_v61 = vmax.f32 %v3759_v47, %v3765_v28  ;;  %v3942_v38 = vmax.f32 %v3760_v49, %v3766_v51  ;;  %v5885_v19 = vrot.slane %v3940_v5, 9  ;;  %v3943_v3 = vmax.f32 %v3761_v33, %v3767_v20  ;;  %v3150_v27 = vpop.permute.xlu1 %3149  ;;  %4828 = vrot.lane.b32.xlu1 %v4648_v36, %s9973_s22 }
 0x4b9   : > { %v4628_v49 = vrot.slane %v9048_v12, 1  ;;  %v4519_v29 = vsel %vm10132_vm1, %v4452_v31, %v4518_v1  ;;  %vm10141_vm1 = vcmask 1040384  }
 0x4ba   : > { %v5886_v0 = vrot.slane %v3941_v61, 9  ;;  %v5887_v24 = vrot.slane %v3942_v38, 9  ;;  %v4260_v41 = vmax.f32 %v3940_v5, %v5885_v19  ;;  %v5888_v7 = vrot.slane %v3943_v3, 9 }
 0x4bb   : > { %v3054_v57 = vpop.permute.xlu0 %3053  ;;  %4807 = vrot.lane.b32.xlu0 %v4627_v45, %s9978_s13  ;;  %v9073_v51 = vsel %vm10134_vm3, %v4628_v49, %v4629_v10  ;;  %v4650_v19 = vrot.slane %v4602_v17, 2 }
 0x4bc   : > { %v4261_v60 = vmax.f32 %v3941_v61, %v5886_v0  ;;  %v4325_v35 = vmul.f32 %v8117_v56, %v4260_v41  ;;  %v4262_v2 = vmax.f32 %v3942_v38, %v5887_v24  ;;  %v3410_v39 = vsel %vm1173_vm9, %v3378_v25, %v3054_v57  ;;  %v10137_v0 = vld [vmem:[#allocation31_spill] sm:$0xff] }
 0x4bd   : > { %v3442_v9 = vsel %vm1182_vm10, %v3410_v39, %v3150_v27  ;;  %4740 = vrot.lane.b32.xlu2 %v4627_v45, %s9972_s15  ;;  %v4263_v14 = vmax.f32 %v3943_v3, %v5888_v7  ;;  %v4649_v38 = vrot.slane %v9048_v12, 2  ;;  %v10136_v3 = vld [vmem:[#allocation40_spill] sm:$0xff] }
 0x4be   : > { %v4326_v4 = vmul.f32 %v8117_v56, %v4261_v60  ;;  %v4453_v6 = vperm.slane %v4325_v35, 0  ;;  %5850 = vmatmul.msk.f32.gmra.mxu2 %vm1194_vm11, %v3442_v9  ;;  %v9056_v42 = vpop.permute.xlu2 %3151  ;;  %v4327_v46 = vmul.f32 %v8117_v56, %v4262_v2  ;;  %v3219_v24 = vsel %vm526_vm0, %v10137_v0, %v10136_v3  ;;  %v10140_v2 = vld [vmem:[#allocation73_spill] sm:$0xff] }
 0x4bf   : > { %v4328_v5 = vmul.f32 %v8117_v56, %v4263_v14  ;;  %v4651_v34 = vsel %vm895_vm2, %v4649_v38, %v4650_v19  ;;  %v10144_v19 = vld [vmem:[#allocation70_spill] sm:$0xff] }
 0x4c0   : > { %v4454_v22 = vperm.slane %v4326_v4, 0  ;;  %v2755_v50 = vpop.permute.xlu1 %2754  ;;  %4716 = vrot.lane.b32.xlu1 %v8986_v40, %s9974_s16  ;;  %v4520_v26 = vsel %vm10133_vm13, %v4453_v6, %v4519_v29  ;;  %v4455_v20 = vperm.slane %v4327_v46, 0  ;;  %vm10142_vm13 = vmmov %vm10141_vm1 }
 0x4c1   : > { %v3632_v47 = vpop.f32.mrf.mxu2  ;;  %v4456_v32 = vperm.slane %v4328_v5, 0 }
 0x4c2   : > { %v9061_v33 = vadd.f32 %v8599_v21, %v3632_v47  ;;  %v4521_v43 = vsel %vm4497_vm15, %v4454_v22, %v4520_v26 }
 0x4c3   : > { %v2579_v28 = vpop.permute.xlu0 %2578  ;;  %4693 = vrot.lane.b32.xlu0 %v8999_v15, %s9977_s2  ;;  %v4522_v11 = vsel %vm4499_vm14, %v4455_v20, %v4521_v43 }
 0x4c4   : > { %5500 = vst.msk [vmem:[%s7861_s0 + $0xb8] sm:$0xff] %vm526_vm0, %v9061_v33  ;;  %v4523_v61 = vsel %vm4501_vm12, %v4456_v32, %v4522_v11  ;;  %v3251_v41 = vsel %vm1128_vm4, %v3219_v24, %v2579_v28 }
 0x4c5   : > { %4809 = vrot.lane.b32.xlu2 %v9073_v51, %s9978_s13  ;;  %v4563_v30 = vadd.f32 %v4523_v61, %v10135_v52  ;;  %v3283_v7 = vsel %vm1137_vm5, %v3251_v41, %v8969_v53  ;;  %v10143_v61 = vld [vmem:[#allocation71_spill] sm:$0xff] }
 0x4c6   : > { %v9080_v58 = vpop.permute.xlu2 %2756  ;;  %v3212_v38 = vsel %vm526_vm0, %v10077_v54, %v10143_v61 }
 0x4c7   : > { %v4579_v27 = vrot.slane %v4563_v30, 7  ;;  %v3244_v52 = vsel %vm1128_vm4, %v3212_v38, %v10144_v19 }
 0x4c8   : > { %v2771_v62 = vpop.permute.xlu1 %2770  ;;  %4788 = vrot.lane.b32.xlu1 %v9048_v12, %s9975_s1 }
 0x4c9   : > { %v3315_v9 = vsel %vm1146_vm6, %v3283_v7, %v2771_v62  ;;  %v9117_v17 = vsel %vm10141_vm1, 0.0, %v4579_v27  ;;  %v4603_v6 = vsel %vm10142_vm13, %v4579_v27, 0.0  ;;  %vm10150_vm1 = vcmask 1041409  }
 0x4ca   : > { %v4652_v53 = vrot.slane %v9117_v17, 2  ;;  %v4653_v31 = vrot.slane %v4603_v6, 2  ;;  %v4631_v26 = vrot.slane %v9117_v17, 1  ;;  %v4632_v28 = vrot.slane %v4603_v6, 1 }
 0x4cb   : > { %v2851_v15 = vpop.permute.xlu0 %2850  ;;  %4764 = vrot.lane.b32.xlu0 %v4648_v36, %s9976_s25  ;;  %vm10151_vm13 = vcmask 1042434  }
 0x4cd   : > { %4695 = vrot.lane.b32.xlu2 %v4648_v36, %s9977_s2  ;;  %v10138_v36 = vld [vmem:[#allocation37_spill] sm:$0xff] }
 0x4ce   : > { %v3211_v25 = vsel %vm526_vm0, %v10139_v55, %v10138_v36  ;;  %v9098_v60 = vpop.permute.xlu2 %2772 }
 0x4cf   : > { %v3243_v39 = vsel %vm1128_vm4, %v3211_v25, %v10140_v2 }
 0x4d0   : > { %v3040_v16 = vpop.permute.xlu1 %3039  ;;  %4674 = vrot.lane.b32.xlu1 %v4627_v45, %s9968_s24  ;;  %v3275_v45 = vsel %vm1137_vm5, %v3243_v39, %v8950_v44 }
 0x4d1   : > { %v3307_v4 = vsel %vm1146_vm6, %v3275_v45, %v2755_v50 }
 0x4d2   : > { %v3339_v1 = vsel %vm1155_vm7, %v3307_v4, %v2851_v15  ;;  %v9197_v4 = vld [vmem:[%s9838_s8] ss:$0 sm:$0xff] }
 0x4d3   : > { %v3611_v59 = vpop.f32.mrf.mxu1  ;;  %v2867_v35 = vpop.permute.xlu0 %2866  ;;  %4830 = vrot.lane.b32.xlu0 %v4651_v34, %s9973_s22  ;;  %v3371_v46 = vsel %vm1164_vm8, %v3339_v1, %v8996_v8 }
 0x4d4   : > { %v9101_v57 = vadd.f32 %v8599_v21, %v3611_v59  ;;  %v3347_v44 = vsel %vm1155_vm7, %v3315_v9, %v2867_v35  ;;  %v3403_v10 = vsel %vm1173_vm9, %v3371_v46, %v3040_v16 }
 0x4d5   : > { %4766 = vrot.lane.b32.xlu2 %v4651_v34, %s9976_s25  ;;  %v3379_v49 = vsel %vm1164_vm8, %v3347_v44, %v9033_v48  ;;  %v9139_v48 = vsel %vm895_vm2, %v4652_v53, %v4653_v31  ;;  %v10146_v31 = vld [vmem:[#allocation58_spill] sm:$0xff] }
 0x4d6   : > { %5493 = vst.msk [vmem:[%s7861_s0 + $0x80] sm:$0xff] %vm526_vm0, %v9101_v57  ;;  %v3042_v50 = vpop.permute.xlu2 %3041  ;;  %v3221_v46 = vsel %vm526_vm0, %v8283_v37, %v10146_v31 }
 0x4d8   : > { %v3056_v47 = vpop.permute.xlu1 %3055  ;;  %4742 = vrot.lane.b32.xlu1 %v9073_v51, %s9972_s15 }
 0x4d9   : > { %v3411_v14 = vsel %vm1173_vm9, %v3379_v49, %v3056_v47 }
 0x4da   : > { %v3443_v8 = vsel %vm1182_vm10, %v3411_v14, %v9056_v42  ;;  %v9148_v42 = vsel %vm10134_vm3, %v4631_v26, %v4632_v28  ;;  %vm10152_vm3 = vcmask 1043459  }
 0x4db   : > { %v3136_v22 = vpop.permute.xlu0 %3135  ;;  %4718 = vrot.lane.b32.xlu0 %v9048_v12, %s9974_s16  ;;  %5851 = vmatmul.msk.f32.gmra.mxu2 %vm1194_vm11, %v3443_v8 }
 0x4dc   : > { %v3435_v29 = vsel %vm1182_vm10, %v3403_v10, %v3136_v22 }
 0x4dd   : > { %5843 = vmatmul.msk.f32.gmra.mxu1 %vm1194_vm11, %v3435_v29  ;;  %4832 = vrot.lane.b32.xlu2 %v9139_v48, %s9973_s22 }
 0x4de   : > { %v3058_v32 = vpop.permute.xlu2 %3057 }
 0x4e0   : > { %v2581_v43 = vpop.permute.xlu1 %2580  ;;  %4811 = vrot.lane.b32.xlu1 %v9148_v42, %s9978_s13 }
 0x4e1   : > { %v3635_v20 = vpop.f32.mrf.mxu2 }
 0x4e2   : > { %v9145_v5 = vadd.f32 %v8599_v21, %v3635_v20 }
 0x4e3   : > { %v2661_v11 = vpop.permute.xlu0 %2660  ;;  %4790 = vrot.lane.b32.xlu0 %v9117_v17, %s9975_s1 }
 0x4e4   : > { %5501 = vst.msk [vmem:[%s7861_s0 + $0xc0] sm:$0xff] %vm526_vm0, %v9145_v5  ;;  %v3276_v3 = vsel %vm1137_vm5, %v3244_v52, %v2661_v11 }
 0x4e5   : > { %4720 = vrot.lane.b32.xlu2 %v9117_v17, %s9974_s16  ;;  %v3308_v54 = vsel %vm1146_vm6, %v3276_v3, %v9080_v58 }
 0x4e6   : > { %v2679_v30 = vpop.permute.xlu2 %2678 }
 0x4e8   : > { %v2853_v62 = vpop.permute.xlu1 %2852  ;;  %4697 = vrot.lane.b32.xlu1 %v4651_v34, %s9977_s2  ;;  %v10145_v34 = vld [vmem:[#allocation59_spill] sm:$0xff] }
 0x4e9   : > { %v3220_v27 = vsel %vm526_vm0, %v8218_v23, %v10145_v34 }
 0x4eb   : > { %v2677_v15 = vpop.permute.xlu0 %2676  ;;  %4676 = vrot.lane.b32.xlu0 %v9073_v51, %s9968_s24  ;;  %v3340_v51 = vsel %vm1155_vm7, %v3308_v54, %v2853_v62  ;;  %v10148_v62 = vld [vmem:[#allocation44_spill] sm:$0xff]  ;;  %v3768_v54 = vrot.slane %v9101_v57, 2 }
 0x4ee   : > { %v3060_v58 = vpop.permute.xlu2 %3059 }
 0x4f0   : > { %v2869_v0 = vpop.permute.xlu1 %2868  ;;  %4768 = vrot.lane.b32.xlu1 %v9139_v48, %s9976_s25 }
 0x4f3   : > { %v3614_v24 = vpop.f32.mrf.mxu1  ;;  %v2949_v41 = vpop.permute.xlu0 %2948  ;;  %4744 = vrot.lane.b32.xlu0 %v9148_v42, %s9972_s15 }
 0x4f4   : > { %v9171_v16 = vadd.f32 %v8599_v21, %v3614_v24  ;;  %v3372_v59 = vsel %vm1164_vm8, %v3340_v51, %v2949_v41  ;;  %v3252_v21 = vsel %vm1128_vm4, %v3220_v27, %v2581_v43 }
 0x4f5   : > { %v3404_v55 = vsel %vm1173_vm9, %v3372_v59, %v3042_v50  ;;  %v3284_v25 = vsel %vm1137_vm5, %v3252_v21, %v2677_v15  ;;  %v10147_v50 = vld [vmem:[#allocation25_spill] sm:$0xff]  ;;  %v3222_v15 = vsel %vm526_vm0, %v8271_v63, %v10148_v62 }
 0x4f6   : > { %5494 = vst.msk [vmem:[%s7861_s0 + $0x88] sm:$0xff] %vm526_vm0, %v9171_v16  ;;  %v3316_v39 = vsel %vm1146_vm6, %v3284_v25, %v9098_v60  ;;  %v2681_v53 = vpop.permute.xlu2 %2680  ;;  %v3769_v25 = vrot.slane %v9101_v57, 4 }
 0x4f7   : > { %v3348_v45 = vsel %vm1155_vm7, %v3316_v39, %v2869_v0 }
 0x4f8   : > { %v3138_v36 = vpop.permute.xlu1 %3137 }
 0x4f9   : > { %v3436_v2 = vsel %vm1182_vm10, %v3404_v55, %v3138_v36 }
 0x4fa   : > { %5844 = vmatmul.msk.f32.gmra.mxu1 %vm1194_vm11, %v3436_v2 }
 0x4fb   : > { %v2965_v35 = vpop.permute.xlu0 %2964 }
 0x4fc   : > { %v3380_v23 = vsel %vm1164_vm8, %v3348_v45, %v2965_v35 }
 0x4fd   : > { %v3412_v60 = vsel %vm1173_vm9, %v3380_v23, %v3058_v32 }
 0x4fe   : > { %v2967_v8 = vpop.permute.xlu2 %2966 }
 0x500   : > { %v2583_v6 = vpop.permute.xlu1 %2582 }
 0x501   : > { %v3638_v7 = vpop.f32.mrf.mxu2  ;;  %v3253_v47 = vsel %vm1128_vm4, %v3221_v46, %v2583_v6  ;;  %v3770_v6 = vrot.slane %v9101_v57, 6 }
 0x502   : > { %v9200_v9 = vadd.f32 %v9197_v4, %v3638_v7  ;;  %v3285_v14 = vsel %vm1137_vm5, %v3253_v47, %v2679_v30 }
 0x503   : > { %v3154_v1 = vpop.permute.xlu0 %3153 }
 0x504   : > { %5502 = vst.msk [vmem:[%s7861_s0 + $0xc8] sm:$0xff] %vm526_vm0, %v9200_v9  ;;  %v3444_v44 = vsel %vm1182_vm10, %v3412_v60, %v3154_v1  ;;  %v10149_v60 = vld [vmem:[#allocation28_spill] sm:$0xff] }
 0x505   : > { %5852 = vmatmul.msk.f32.gmra.mxu2 %vm1194_vm11, %v3444_v44 }
 0x506   : > { %v4715_v61 = vpop.permute.xlu2 %4714 }
 0x507   : > { %v4863_v44 = vsel %vm1137_vm5, %v10149_v60, %v4715_v61  ;;  %v3794_v61 = vrot.slane %v9145_v5, 6 }
 0x508   : > { %v2871_v49 = vpop.permute.xlu1 %2870 }
 0x50b   : > { %v2775_v10 = vpop.permute.xlu0 %2774 }
 0x50c   : > { %v3317_v22 = vsel %vm1146_vm6, %v3285_v14, %v2775_v10  ;;  %v3792_v14 = vrot.slane %v9145_v5, 2 }
 0x50d   : > { %v3349_v29 = vsel %vm1155_vm7, %v3317_v22, %v2871_v49 }
 0x50e   : > { %v3381_v26 = vsel %vm1164_vm8, %v3349_v29, %v10147_v50  ;;  %v4787_v63 = vpop.permute.xlu2 %4786 }
 0x50f   : > { %v3413_v37 = vsel %vm1173_vm9, %v3381_v26, %v3060_v58 }
 0x510   : > { %v2585_v28 = vpop.permute.xlu1 %2584 }
 0x511   : > { %v3254_v38 = vsel %vm1128_vm4, %v3222_v15, %v2585_v28 }
 0x512   : > { %v3286_v30 = vsel %vm1137_vm5, %v3254_v38, %v2681_v53  ;;  %v3771_v38 = vrot.slane %v9171_v16, 2 }
 0x513   : > { %v3617_v20 = vpop.f32.mrf.mxu1  ;;  %v3156_v43 = vpop.permute.xlu0 %3155 }
 0x514   : > { %v3618_v11 = vadd.f32 %v9197_v4, %v3617_v20  ;;  %v3445_v32 = vsel %vm1182_vm10, %v3413_v37, %v3156_v43 }
 0x515   : > { %5853 = vmatmul.msk.f32.gmra.mxu2 %vm1194_vm11, %v3445_v32 }
 0x516   : > { %5495 = vst.msk [vmem:[%s7861_s0 + $0x90] sm:$0xff] %vm526_vm0, %v3618_v11  ;;  %v3774_v0 = vrot.slane %v3618_v11, 2  ;;  %v3775_v27 = vrot.slane %v3618_v11, 4  ;;  %v3944_v58 = vmax.f32 %v9101_v57, %v3618_v11  ;;  %v3776_v45 = vrot.slane %v3618_v11, 6  ;;  %v4673_v49 = vpop.permute.xlu2 %4672 }
 0x518   : > { %v2873_v19 = vpop.permute.xlu1 %2872  ;;  %v3945_v21 = vmax.f32 %v3768_v54, %v3774_v0  ;;  %v3946_v2 = vmax.f32 %v3769_v25, %v3775_v27  ;;  %v5889_v23 = vrot.slane %v3944_v58, 9  ;;  %v3947_v47 = vmax.f32 %v3770_v6, %v3776_v45 }
 0x51a   : > { %v5890_v39 = vrot.slane %v3945_v21, 9  ;;  %v5891_v53 = vrot.slane %v3946_v2, 9  ;;  %v4264_v22 = vmax.f32 %v3944_v58, %v5889_v23  ;;  %v5892_v43 = vrot.slane %v3947_v47, 9 }
 0x51b   : > { %v2777_v52 = vpop.permute.xlu0 %2776 }
 0x51c   : > { %v3318_v3 = vsel %vm1146_vm6, %v3286_v30, %v2777_v52  ;;  %v4265_v31 = vmax.f32 %v3945_v21, %v5890_v39  ;;  %v4266_v26 = vmax.f32 %v3946_v2, %v5891_v53  ;;  %v4329_v11 = vmul.f32 %v8117_v56, %v4264_v22 }
 0x51d   : > { %v3350_v24 = vsel %vm1155_vm7, %v3318_v3, %v2873_v19  ;;  %v3772_v19 = vrot.slane %v9171_v16, 4 }
 0x51e   : > { %v3382_v36 = vsel %vm1164_vm8, %v3350_v24, %v2967_v8  ;;  %v3793_v8 = vrot.slane %v9145_v5, 4  ;;  %v4330_v57 = vmul.f32 %v8117_v56, %v4265_v31  ;;  %v4331_v3 = vmul.f32 %v8117_v56, %v4266_v26 }
 0x51f   : > { %v4457_v27 = vperm.slane %v4329_v11, 0 }
 0x520   : > { %v3158_v59 = vpop.permute.xlu1 %3157  ;;  %v4458_v0 = vperm.slane %v4330_v57, 0  ;;  %v4459_v39 = vperm.slane %v4331_v3, 0 }
 0x521   : > { %v3641_v41 = vpop.f32.mrf.mxu2 }
 0x522   : > { %v3642_v51 = vadd.f32 %v9197_v4, %v3641_v41  ;;  %v4524_v45 = vsel %vm10150_vm1, %v4458_v0, %v4457_v27  ;;  %vm10153_vm1 = vcmask 1044484  }
 0x523   : > { %v3062_v34 = vpop.permute.xlu0 %3061  ;;  %v4525_v57 = vsel %vm10151_vm13, %v4459_v39, %v4524_v45  ;;  %vm10154_vm13 = vcmask 1041409  }
 0x524   : > { %5503 = vst.msk [vmem:[%s7861_s0 + $0xd0] sm:$0xff] %vm526_vm0, %v3642_v51  ;;  %v3414_v55 = vsel %vm1173_vm9, %v3382_v36, %v3062_v34  ;;  %v3798_v46 = vrot.slane %v3642_v51, 2  ;;  %v3799_v29 = vrot.slane %v3642_v51, 4  ;;  %v3800_v37 = vrot.slane %v3642_v51, 6 }
 0x525   : > { %v3446_v35 = vsel %vm1182_vm10, %v3414_v55, %v3158_v59  ;;  %v3960_v32 = vmax.f32 %v9145_v5, %v3642_v51  ;;  %v3773_v51 = vrot.slane %v9171_v16, 6  ;;  %v4267_v59 = vmax.f32 %v3947_v47, %v5892_v43 }
 0x526   : > { %5854 = vmatmul.msk.f32.gmra.mxu2 %vm1194_vm11, %v3446_v35  ;;  %v3961_v28 = vmax.f32 %v3792_v14, %v3798_v46  ;;  %v3962_v62 = vmax.f32 %v3793_v8, %v3799_v29  ;;  %v3963_v21 = vmax.f32 %v3794_v61, %v3800_v37  ;;  %v4849_v8 = vsel %vm526_vm0, %v8962_v18, %v4673_v49 }
 0x527   : > { %v5905_v36 = vrot.slane %v3960_v32, 9 }
 0x528   : > { %v4763_v7 = vpop.permute.xlu1 %4762  ;;  %v5906_v24 = vrot.slane %v3961_v28, 9  ;;  %v5907_v55 = vrot.slane %v3962_v62, 9  ;;  %v5908_v53 = vrot.slane %v3963_v21, 9 }
 0x529   : > { %v4280_v31 = vmax.f32 %v3960_v32, %v5905_v36 }
 0x52a   : > { %v4281_v23 = vmax.f32 %v3961_v28, %v5906_v24  ;;  %v4282_v46 = vmax.f32 %v3962_v62, %v5907_v55  ;;  %v4283_v32 = vmax.f32 %v3963_v21, %v5908_v53 }
 0x52b   : > { %v4739_v1 = vpop.permute.xlu0 %4738  ;;  %v4345_v62 = vmul.f32 %v8117_v56, %v4280_v31 }
 0x52c   : > { %v4871_v10 = vsel %vm1146_vm6, %v4863_v44, %v4739_v1  ;;  %v4332_v44 = vmul.f32 %v8117_v56, %v4267_v59  ;;  %v4346_v26 = vmul.f32 %v8117_v56, %v4281_v23  ;;  %v4347_v61 = vmul.f32 %v8117_v56, %v4282_v46 }
 0x52d   : > { %v4879_v20 = vsel %vm1155_vm7, %v4871_v10, %v4763_v7  ;;  %v4348_v27 = vmul.f32 %v8117_v56, %v4283_v32  ;;  %v4473_v55 = vperm.slane %v4345_v62, 0 }
 0x52e   : > { %v4887_v30 = vsel %vm1164_vm8, %v4879_v20, %v4787_v63  ;;  %v4741_v63 = vpop.permute.xlu2 %4740  ;;  %v4460_v37 = vperm.slane %v4332_v44, 0 }
 0x530   : > { %v4829_v15 = vpop.permute.xlu1 %4828  ;;  %v4526_v3 = vsel %vm10152_vm3, %v4460_v37, %v4525_v57  ;;  %vm10156_vm3 = vcmask 1042434  }
 0x533   : > { %v4808_v52 = vpop.permute.xlu0 %4807  ;;  %v3620_v54 = vpop.f32.mrf.mxu1 }
 0x534   : > { %v4895_v41 = vsel %vm1173_vm9, %v4887_v30, %v4808_v52  ;;  %v3621_v34 = vadd.f32 %v9197_v4, %v3620_v54  ;;  %v4474_v52 = vperm.slane %v4346_v26, 0 }
 0x535   : > { %v4903_v5 = vsel %vm1182_vm10, %v4895_v41, %v4829_v15 }
 0x536   : > { %5921 = vmatmul.msk.f32.vlgmr.msra.gmra.mxu0 %vm1194_vm11, %v4903_v5  ;;  %v3777_v25 = vrot.slane %v3621_v34, 2  ;;  %v3778_v58 = vrot.slane %v3621_v34, 4  ;;  %v3779_v35 = vrot.slane %v3621_v34, 6  ;;  %v3948_v2 = vmax.f32 %v9171_v16, %v3621_v34  ;;  %5496 = vst.msk [vmem:[%s7861_s0 + $0x98] sm:$0xff] %vm526_vm0, %v3621_v34  ;;  %v4810_v0 = vpop.permute.xlu2 %4809 }
 0x537   : > { %v3796_v5 = vrot.slane %v9200_v9, 4  ;;  %v3797_v34 = vrot.slane %v9200_v9, 6 }
 0x538   : > { %v3949_v7 = vmax.f32 %v3771_v38, %v3777_v25  ;;  %v3950_v6 = vmax.f32 %v3772_v19, %v3778_v58  ;;  %v3951_v1 = vmax.f32 %v3773_v51, %v3779_v35  ;;  %v5893_v60 = vrot.slane %v3948_v2, 9  ;;  %v4717_v47 = vpop.permute.xlu1 %4716 }
 0x539   : > { %v3795_v19 = vrot.slane %v9200_v9, 2  ;;  %v4475_v25 = vperm.slane %v4347_v61, 0 }
 0x53a   : > { %v5894_v10 = vrot.slane %v3949_v7, 9  ;;  %v5895_v14 = vrot.slane %v3950_v6, 9  ;;  %v5896_v22 = vrot.slane %v3951_v1, 9  ;;  %v4268_v16 = vmax.f32 %v3948_v2, %v5893_v60 }
 0x53b   : > { %v4694_v29 = vpop.permute.xlu0 %4693 }
 0x53c   : > { %v4269_v28 = vmax.f32 %v3949_v7, %v5894_v10  ;;  %v4270_v20 = vmax.f32 %v3950_v6, %v5895_v14  ;;  %v4333_v43 = vmul.f32 %v8117_v56, %v4268_v16  ;;  %v4856_v11 = vsel %vm1128_vm4, %v4849_v8, %v4694_v29  ;;  %v10155_v8 = vld [vmem:[#allocation35_spill] sm:$0xff] }
 0x53d   : > { %v4271_v15 = vmax.f32 %v3951_v1, %v5896_v22  ;;  %v4864_v30 = vsel %vm1137_vm5, %v4856_v11, %v4717_v47  ;;  %v4538_v6 = vsel %vm10154_vm13, %v4474_v52, %v4473_v55  ;;  %v4476_v29 = vperm.slane %v4348_v27, 0 }
 0x53e   : > { %v4461_v38 = vperm.slane %v4333_v43, 0  ;;  %v4334_v18 = vmul.f32 %v8117_v56, %v4269_v28  ;;  %v4335_v49 = vmul.f32 %v8117_v56, %v4270_v20  ;;  %v4872_v35 = vsel %vm1146_vm6, %v4864_v30, %v4741_v63  ;;  %v4696_v32 = vpop.permute.xlu2 %4695 }
 0x53f   : > { %v4336_v41 = vmul.f32 %v8117_v56, %v4271_v15  ;;  %v4539_v57 = vsel %vm10156_vm3, %v4475_v25, %v4538_v6  ;;  %vm10158_vm13 = vcmask 1040384  }
 0x540   : > { %v4462_v54 = vperm.slane %v4334_v18, 0  ;;  %v4463_v51 = vperm.slane %v4335_v49, 0  ;;  %v4527_v59 = vsel %vm10153_vm1, %v4461_v38, %v4526_v3  ;;  %v4789_v36 = vpop.permute.xlu1 %4788  ;;  %vm10157_vm1 = vcmask 1043459   ;;  %vm10159_vm3 = vmmov %vm10158_vm13 }
 0x541   : > { %v3644_v24 = vpop.f32.mrf.mxu2  ;;  %v4464_v60 = vperm.slane %v4336_v41, 0 }
 0x542   : > { %v3645_v21 = vadd.f32 %v9197_v4, %v3644_v24  ;;  %v4528_v2 = vsel %vm4497_vm15, %v4462_v54, %v4527_v59 }
 0x543   : > { %v4765_v58 = vpop.permute.xlu0 %4764  ;;  %v4529_v44 = vsel %vm4499_vm14, %v4463_v51, %v4528_v2 }
 0x544   : > { %v3801_v39 = vrot.slane %v3645_v21, 2  ;;  %v3802_v45 = vrot.slane %v3645_v21, 4  ;;  %v3803_v23 = vrot.slane %v3645_v21, 6  ;;  %v3964_v7 = vmax.f32 %v9200_v9, %v3645_v21  ;;  %5504 = vst.msk [vmem:[%s7861_s0 + $0xd8] sm:$0xff] %vm526_vm0, %v3645_v21 }
 0x545   : > { %v4880_v1 = vsel %vm1155_vm7, %v4872_v35, %v4765_v58  ;;  %v4530_v10 = vsel %vm4501_vm12, %v4464_v60, %v4529_v44 }
 0x546   : > { %v3965_v53 = vmax.f32 %v3795_v19, %v3801_v39  ;;  %v3966_v31 = vmax.f32 %v3796_v5, %v3802_v45  ;;  %v3967_v46 = vmax.f32 %v3797_v34, %v3803_v23  ;;  %v5909_v63 = vrot.slane %v3964_v7, 9  ;;  %v10162_v23 = vld [vmem:[#allocation39_spill] sm:$0xff] }
 0x547   : > { %v4888_v47 = vsel %vm1164_vm8, %v4880_v1, %v4789_v36  ;;  %v4564_v26 = vadd.f32 %v4530_v10, %v10155_v8  ;;  %v4540_v19 = vsel %vm10157_vm1, %v4476_v29, %v4539_v57  ;;  %vm10160_vm1 = vcmask 1044484  }
 0x548   : > { %v5910_v14 = vrot.slane %v3965_v53, 9  ;;  %v5911_v22 = vrot.slane %v3966_v31, 9  ;;  %v5912_v9 = vrot.slane %v3967_v46, 9  ;;  %v4284_v16 = vmax.f32 %v3964_v7, %v5909_v63  ;;  %v4675_v11 = vpop.permute.xlu1 %4674  ;;  %v4767_v7 = vpop.permute.xlu2 %4766 }
 0x549   : > { %v4580_v62 = vrot.slane %v4564_v26, 7  ;;  %v4896_v61 = vsel %vm1173_vm9, %v4888_v47, %v4810_v0  ;;  %v4850_v36 = vsel %vm526_vm0, %v8986_v40, %v4675_v11  ;;  %v3787_v8 = vrot.slane %v8957_v13, 4 }
 0x54a   : > { %v4285_v28 = vmax.f32 %v3965_v53, %v5910_v14  ;;  %v4286_v20 = vmax.f32 %v3966_v31, %v5911_v22  ;;  %v4349_v43 = vmul.f32 %v8117_v56, %v4284_v16  ;;  %v4287_v37 = vmax.f32 %v3967_v46, %v5912_v9 }
 0x54b   : > { %v4831_v15 = vpop.permute.xlu0 %4830  ;;  %v9302_v52 = vsel %vm10158_vm13, 0.0, %v4580_v62  ;;  %v4604_v30 = vsel %vm10159_vm3, %v4580_v62, 0.0  ;;  %vm10161_vm13 = vcmask 1046528   ;;  %v4857_v45 = vsel %vm1128_vm4, %v4850_v36, %v4696_v32 }
 0x54c   : > { %v4477_v38 = vperm.slane %v4349_v43, 0  ;;  %v4904_v18 = vsel %vm1182_vm10, %v4896_v61, %v4831_v15  ;;  %v4350_v49 = vmul.f32 %v8117_v56, %v4285_v28  ;;  %v4351_v3 = vmul.f32 %v8117_v56, %v4286_v20  ;;  %4792 = vrot.lane.b32.xlu2 %v9302_v52, %s9975_s1 }
 0x54d   : > { %5922 = vmatmul.msk.f32.gmra.mxu0 %vm1194_vm11, %v4904_v18  ;;  %v4352_v24 = vmul.f32 %v8117_v56, %v4287_v37  ;;  %v4655_v0 = vrot.slane %v9302_v52, 2  ;;  %v4656_v41 = vrot.slane %v4604_v30, 2  ;;  %v4634_v54 = vrot.slane %v9302_v52, 1 }
 0x54e   : > { %v4635_v51 = vrot.slane %v4604_v30, 1  ;;  %v4478_v59 = vperm.slane %v4350_v49, 0  ;;  %v4479_v5 = vperm.slane %v4351_v3, 0  ;;  %v4541_v34 = vsel %vm10160_vm1, %v4477_v38, %v4540_v19 }
 0x54f   : > { %v9314_v27 = vsel %vm895_vm2, %v4655_v0, %v4656_v41  ;;  %v4480_v55 = vperm.slane %v4352_v24, 0  ;;  %v3786_v9 = vrot.slane %v8957_v13, 2  ;;  %v3788_v11 = vrot.slane %v8957_v13, 6 }
 0x550   : > { %v9317_v21 = vsel %vm10161_vm13, %v4634_v54, %v4635_v51  ;;  %4834 = vrot.lane.b32.xlu1 %v9314_v27, %s9973_s22  ;;  %v4542_v25 = vsel %vm4497_vm15, %v4478_v59, %v4541_v34  ;;  %v4743_v58 = vpop.permute.xlu1 %4742  ;;  %v4833_v47 = vpop.permute.xlu2 %4832  ;;  %v3789_v24 = vrot.slane %v9061_v33, 2  ;;  %v3791_v41 = vrot.slane %v9061_v33, 6 }
 0x551   : > { %4813 = vrot.lane.b32.xlu0 %v9317_v21, %s9978_s13  ;;  %v4543_v35 = vsel %vm4499_vm14, %v4479_v5, %v4542_v25  ;;  %vm10163_vm3 = vcmask 1041409   ;;  %vm10164_vm1 = vcmask 1042434   ;;  %vm10165_vm13 = vcmask 1043459  }
 0x552   : > { %v4544_v39 = vsel %vm4501_vm12, %v4480_v55, %v4543_v35 }
 0x553   : > { %v4719_v2 = vpop.permute.xlu0 %4718  ;;  %v9330_v40 = vadd.f32 %v4544_v39, %v10162_v23 }
 0x554   : > { %v4865_v6 = vsel %vm1137_vm5, %v4857_v45, %v4719_v2  ;;  %4678 = vrot.lane.b32.xlu2 %v9148_v42, %s9968_s24 }
 0x555   : > { %v4873_v1 = vsel %vm1146_vm6, %v4865_v6, %v4743_v58 }
 0x556   : > { %v4881_v31 = vsel %vm1155_vm7, %v4873_v1, %v4767_v7 }
 0x558   : > { %4722 = vrot.lane.b32.xlu1 %v9302_v52, %s9974_s16  ;;  %v4812_v46 = vpop.permute.xlu1 %4811 }
 0x559   : > { %4699 = vrot.lane.b32.xlu0 %v9139_v48, %s9977_s2 }
 0x55a   : > { %v3623_v60 = vpop.f32.mrf.mxu1 }
 0x55b   : > { %v3624_v44 = vadd.f32 %v9197_v4, %v3623_v60  ;;  %v4791_v53 = vpop.permute.xlu0 %4790 }
 0x55c   : > { %v4889_v63 = vsel %vm1164_vm8, %v4881_v31, %v4791_v53  ;;  %4746 = vrot.lane.b32.xlu2 %v9317_v21, %s9972_s15 }
 0x55d   : > { %5497 = vst.msk [vmem:[%s7861_s0 + $0xa0] sm:$0xff] %vm526_vm0, %v3624_v44  ;;  %v4897_v42 = vsel %vm1173_vm9, %v4889_v63, %v4812_v46  ;;  %v3780_v22 = vrot.slane %v3624_v44, 2  ;;  %v3781_v16 = vrot.slane %v3624_v44, 4  ;;  %v3952_v26 = vmax.f32 %v3624_v44, %v8957_v13 }
 0x55e   : > { %v4905_v48 = vsel %vm1182_vm10, %v4897_v42, %v4833_v47  ;;  %v3647_v10 = vpop.f32.mrf.mxu2  ;;  %v3782_v20 = vrot.slane %v3624_v44, 6  ;;  %v3790_v13 = vrot.slane %v9061_v33, 4 }
 0x55f   : > { %5923 = vmatmul.msk.f32.gmra.mxu0 %vm1194_vm11, %v4905_v48  ;;  %v9353_v14 = vadd.f32 %v9197_v4, %v3647_v10  ;;  %v3953_v29 = vmax.f32 %v3780_v22, %v3786_v9  ;;  %v3954_v57 = vmax.f32 %v3781_v16, %v3787_v8  ;;  %v5897_v43 = vrot.slane %v3952_v26, 9 }
 0x560   : > { %v3955_v62 = vmax.f32 %v3782_v20, %v3788_v11 }
 0x561   : > { %4770 = vrot.lane.b32.xlu0 %v9314_v27, %s9976_s25  ;;  %5505 = vst.msk [vmem:[%s7861_s0 + $0xe0] sm:$0xff] %vm526_vm0, %v9353_v14  ;;  %v5898_v28 = vrot.slane %v3953_v29, 9  ;;  %v5899_v37 = vrot.slane %v3954_v57, 9  ;;  %v4272_v15 = vmax.f32 %v3952_v26, %v5897_v43  ;;  %v10167_v43 = vld [vmem:[#allocation36_spill] sm:$0xff] }
 0x562   : > { %v5900_v18 = vrot.slane %v3955_v62, 9 }
 0x563   : > { %v4273_v32 = vmax.f32 %v3953_v29, %v5898_v28  ;;  %v4274_v61 = vmax.f32 %v3954_v57, %v5899_v37  ;;  %v4337_v49 = vmul.f32 %v8117_v56, %v4272_v15 }
 0x564   : > { %v4275_v54 = vmax.f32 %v3955_v62, %v5900_v18 }
 0x565   : > { %v4338_v38 = vmul.f32 %v8117_v56, %v4273_v32  ;;  %v4339_v19 = vmul.f32 %v8117_v56, %v4274_v61  ;;  %v4465_v51 = vperm.slane %v4337_v49, 0 }
 0x566   : > { %v4340_v45 = vmul.f32 %v8117_v56, %v4275_v54  ;;  %v3805_v54 = vrot.slane %v9353_v14, 4 }
 0x567   : > { %v4466_v30 = vperm.slane %v4338_v38, 0  ;;  %v4467_v55 = vperm.slane %v4339_v19, 0 }
 0x568   : > { %v4468_v46 = vperm.slane %v4340_v45, 0 }
 0x569   : > { %v4531_v25 = vsel %vm10163_vm3, %v4466_v30, %v4465_v51  ;;  %vm10166_vm3 = vcmask 1044484  }
 0x56a   : > { %v4532_v60 = vsel %vm10164_vm1, %v4467_v55, %v4531_v25  ;;  %vm10168_vm1 = vcmask 1040384  }
 0x56b   : > { %v4533_v10 = vsel %vm10165_vm13, %v4468_v46, %v4532_v60  ;;  %vm10169_vm13 = vmmov %vm10168_vm1 }
 0x577   : > { %v3626_v3 = vpop.f32.mrf.mxu1 }
 0x578   : > { %v3627_v0 = vadd.f32 %v9197_v4, %v3626_v3 }
 0x57a   : > { %v3783_v59 = vrot.slane %v3627_v0, 2  ;;  %v3784_v5 = vrot.slane %v3627_v0, 4  ;;  %v3785_v34 = vrot.slane %v3627_v0, 6  ;;  %v3956_v36 = vmax.f32 %v3627_v0, %v9061_v33  ;;  %5498 = vst.msk [vmem:[%s7861_s0 + $0xa8] sm:$0xff] %vm526_vm0, %v3627_v0 }
 0x57c   : > { %v3957_v58 = vmax.f32 %v3783_v59, %v3789_v24  ;;  %v3958_v35 = vmax.f32 %v3784_v5, %v3790_v13  ;;  %v3959_v2 = vmax.f32 %v3785_v34, %v3791_v41  ;;  %v5901_v39 = vrot.slane %v3956_v36, 9 }
 0x57d   : > { %v3804_v24 = vrot.slane %v9353_v14, 2  ;;  %v4582_v41 = vrot.slane %v9330_v40, 7  ;;  %v3806_v40 = vrot.slane %v9353_v14, 6 }
 0x57e   : > { %v5902_v23 = vrot.slane %v3957_v58, 9  ;;  %v5903_v7 = vrot.slane %v3958_v35, 9  ;;  %v5904_v6 = vrot.slane %v3959_v2, 9  ;;  %v4276_v1 = vmax.f32 %v3956_v36, %v5901_v39 }
 0x57f   : > { %v9420_v34 = vsel %vm10168_vm1, 0.0, %v4582_v41 }
 0x580   : > { %v4277_v44 = vmax.f32 %v3957_v58, %v5902_v23  ;;  %v4278_v53 = vmax.f32 %v3958_v35, %v5903_v7  ;;  %v4341_v33 = vmul.f32 %v8117_v56, %v4276_v1  ;;  %v4279_v31 = vmax.f32 %v3959_v2, %v5904_v6 }
 0x581   : > { %v4661_v23 = vrot.slane %v9420_v34, 2 }
 0x582   : > { %v4469_v63 = vperm.slane %v4341_v33, 0  ;;  %v4342_v42 = vmul.f32 %v8117_v56, %v4277_v44  ;;  %v4343_v47 = vmul.f32 %v8117_v56, %v4278_v53  ;;  %v4344_v48 = vmul.f32 %v8117_v56, %v4279_v31 }
 0x584   : > { %v4470_v22 = vperm.slane %v4342_v42, 0  ;;  %v4471_v9 = vperm.slane %v4343_v47, 0  ;;  %v4534_v16 = vsel %vm10166_vm3, %v4469_v63, %v4533_v10  ;;  %v4472_v8 = vperm.slane %v4344_v48, 0 }
 0x585   : > { %vm10170_vm3 = vcmask 1046528  }
 0x586   : > { %v4535_v26 = vsel %vm4497_vm15, %v4470_v22, %v4534_v16 }
 0x587   : > { %v4536_v28 = vsel %vm4499_vm14, %v4471_v9, %v4535_v26 }
 0x588   : > { %v3650_v29 = vpop.f32.mrf.mxu2  ;;  %v4537_v20 = vsel %vm4501_vm12, %v4472_v8, %v4536_v28 }
 0x589   : > { %v9383_v57 = vadd.f32 %v9197_v4, %v3650_v29  ;;  %v4565_v11 = vadd.f32 %v4537_v20, %v10167_v43 }
 0x58b   : > { %5506 = vst.msk [vmem:[%s7861_s0 + $0xe8] sm:$0xff] %vm526_vm0, %v9383_v57  ;;  %v4581_v37 = vrot.slane %v4565_v11, 7  ;;  %v3807_v63 = vrot.slane %v9383_v57, 2  ;;  %v3808_v47 = vrot.slane %v9383_v57, 4  ;;  %v3809_v48 = vrot.slane %v9383_v57, 6 }
 0x58d   : > { %v9392_v32 = vsel %vm10168_vm1, 0.0, %v4581_v37  ;;  %v4605_v62 = vsel %vm10169_vm13, %v4581_v37, 0.0  ;;  %vm10171_vm13 = vmmov %vm10168_vm1  ;;  %vm10172_vm1 = vcmask 1041409   ;;  %v4677_v37 = vpop.permute.xlu0 %4676 }
 0x58e   : > { %4794 = vrot.lane.b32.xlu1 %v9392_v32, %s9975_s1  ;;  %v4658_v15 = vrot.slane %v9392_v32, 2  ;;  %v4659_v61 = vrot.slane %v4605_v62, 2  ;;  %v4637_v38 = vrot.slane %v9392_v32, 1  ;;  %v4638_v18 = vrot.slane %v4605_v62, 1  ;;  %v4698_v62 = vpop.permute.xlu1 %4697 }
 0x58f   : > { %v4606_v36 = vsel %vm10171_vm13, %v4582_v41, 0.0  ;;  %vm10173_vm13 = vcmask 1042434  }
 0x590   : > { %v9400_v49 = vsel %vm895_vm2, %v4658_v15, %v4659_v61  ;;  %v4639_v19 = vsel %vm10170_vm3, %v4637_v38, %v4638_v18  ;;  %v4641_v2 = vrot.slane %v4606_v36, 1  ;;  %v4662_v7 = vrot.slane %v4606_v36, 2 }
 0x591   : > { %4836 = vrot.lane.b32.xlu0 %v9400_v49, %s9973_s22  ;;  %4815 = vrot.lane.b32.xlu2 %v4639_v19, %s9978_s13 }
 0x592   : > { %v9439_v53 = vsel %vm895_vm2, %v4661_v23, %v4662_v7 }
 0x596   : > { %4680 = vrot.lane.b32.xlu1 %v9317_v21, %s9968_s24 }
 0x598   : > { %v3653_v30 = vpop.f32.mrf.mxu2 }
 0x599   : > { %v3654_v3 = vadd.f32 %v9197_v4, %v3653_v30  ;;  %4724 = vrot.lane.b32.xlu0 %v9392_v32, %s9974_s16  ;;  %4701 = vrot.lane.b32.xlu2 %v9314_v27, %s9977_s2  ;;  %v4640_v27 = vrot.slane %v9420_v34, 1 }
 0x59b   : > { %v3810_v0 = vrot.slane %v3654_v3, 2  ;;  %v3811_v13 = vrot.slane %v3654_v3, 4  ;;  %5507 = vst.msk [vmem:[%s7861_s0 + $0xf0] sm:$0xff] %vm526_vm0, %v3654_v3  ;;  %v3968_v21 = vmax.f32 %v9353_v14, %v3654_v3  ;;  %v3812_v55 = vrot.slane %v3654_v3, 6 }
 0x59c   : > { %v9433_v60 = vsel %vm10170_vm3, %v4640_v27, %v4641_v2  ;;  %vm10174_vm3 = vcmask 1043459   ;;  %v4769_v2 = vpop.permute.xlu1 %4768 }
 0x59d   : > { %v3969_v51 = vmax.f32 %v3804_v24, %v3810_v0  ;;  %v3970_v59 = vmax.f32 %v3805_v54, %v3811_v13  ;;  %v5913_v25 = vrot.slane %v3968_v21, 9  ;;  %v3971_v39 = vmax.f32 %v3806_v40, %v3812_v55  ;;  %v9469_v24 = vld [vmem:[%s9838_s8 + $0x1] ss:$0 sm:$0xff] }
 0x59e   : > { %4748 = vrot.lane.b32.xlu1 %v4639_v19, %s9972_s15 }
 0x59f   : > { %v5914_v5 = vrot.slane %v3969_v51, 9  ;;  %v5915_v58 = vrot.slane %v3970_v59, 9  ;;  %v4288_v45 = vmax.f32 %v3968_v21, %v5913_v25  ;;  %v5916_v14 = vrot.slane %v3971_v39, 9 }
 0x5a0   : > { %v4851_v21 = vsel %vm526_vm0, %v9048_v12, %v4677_v37 }
 0x5a1   : > { %v4289_v35 = vmax.f32 %v3969_v51, %v5914_v5  ;;  %4796 = vrot.lane.b32.xlu0 %v9420_v34, %s9975_s1  ;;  %4772 = vrot.lane.b32.xlu2 %v9400_v49, %s9976_s25  ;;  %v4290_v6 = vmax.f32 %v3970_v59, %v5915_v58  ;;  %v4353_v44 = vmul.f32 %v8117_v56, %v4288_v45  ;;  %v4721_v59 = vpop.permute.xlu2 %4720 }
 0x5a2   : > { %v4291_v10 = vmax.f32 %v3971_v39, %v5916_v14  ;;  %v4858_v58 = vsel %vm1128_vm4, %v4851_v21, %v4698_v62  ;;  %v10176_v14 = vld [vmem:[#allocation42_spill] sm:$0xff] }
 0x5a3   : > { %v4354_v1 = vmul.f32 %v8117_v56, %v4289_v35  ;;  %v4355_v33 = vmul.f32 %v8117_v56, %v4290_v6  ;;  %v4481_v22 = vperm.slane %v4353_v44, 0  ;;  %v4745_v35 = vpop.permute.xlu0 %4744  ;;  %v4866_v7 = vsel %vm1137_vm5, %v4858_v58, %v4721_v59 }
 0x5a4   : > { %v4356_v15 = vmul.f32 %v8117_v56, %v4291_v10 }
 0x5a5   : > { %v4482_v31 = vperm.slane %v4354_v1, 0  ;;  %v4483_v26 = vperm.slane %v4355_v33, 0  ;;  %v4874_v1 = vsel %vm1146_vm6, %v4866_v7, %v4745_v35 }
 0x5a6   : > { %4817 = vrot.lane.b32.xlu1 %v9433_v60, %s9978_s13  ;;  %v4484_v41 = vperm.slane %v4356_v15, 0 }
 0x5a7   : > { %v4545_v28 = vsel %vm10172_vm1, %v4482_v31, %v4481_v22  ;;  %vm10175_vm1 = vcmask 1044484  }
 0x5a8   : > { %v4546_v30 = vsel %vm10173_vm13, %v4483_v26, %v4545_v28  ;;  %vm10177_vm13 = vcmask 1040384  }
 0x5a9   : > { %v3656_v46 = vpop.f32.mrf.mxu2  ;;  %4682 = vrot.lane.b32.xlu0 %v4639_v19, %s9968_s24  ;;  %4838 = vrot.lane.b32.xlu2 %v9439_v53, %s9973_s22  ;;  %v4547_v25 = vsel %vm10174_vm3, %v4484_v41, %v4546_v30  ;;  %v4793_v33 = vpop.permute.xlu2 %4792  ;;  %vm10178_vm3 = vmmov %vm10177_vm13 }
 0x5aa   : > { %v3657_v42 = vadd.f32 %v9197_v4, %v3656_v46  ;;  %v4882_v46 = vsel %vm1155_vm7, %v4874_v1, %v4769_v2 }
 0x5ac   : > { %v3813_v9 = vrot.slane %v3657_v42, 2  ;;  %v3814_v16 = vrot.slane %v3657_v42, 4  ;;  %v3815_v29 = vrot.slane %v3657_v42, 6  ;;  %v3972_v8 = vmax.f32 %v9383_v57, %v3657_v42  ;;  %5508 = vst.msk [vmem:[%s7861_s0 + $0xf8] sm:$0xff] %vm526_vm0, %v3657_v42 }
 0x5ae   : > { %v3973_v4 = vmax.f32 %v3807_v63, %v3813_v9  ;;  %v3974_v20 = vmax.f32 %v3808_v47, %v3814_v16  ;;  %v3975_v43 = vmax.f32 %v3809_v48, %v3815_v29  ;;  %v5917_v11 = vrot.slane %v3972_v8, 9  ;;  %4703 = vrot.lane.b32.xlu1 %v9400_v49, %s9977_s2 }
 0x5af   : > { %v4890_v63 = vsel %vm1164_vm8, %v4882_v46, %v4793_v33  ;;  %v10187_v33 = vld [vmem:[#allocation49_spill] sm:$0xff] }
 0x5b0   : > { %v5918_v61 = vrot.slane %v3973_v4, 9  ;;  %v5919_v38 = vrot.slane %v3974_v20, 9  ;;  %v4292_v57 = vmax.f32 %v3972_v8, %v5917_v11  ;;  %v5920_v18 = vrot.slane %v3975_v43, 9 }
 0x5b1   : > { %4750 = vrot.lane.b32.xlu0 %v9433_v60, %s9972_s15  ;;  %4726 = vrot.lane.b32.xlu2 %v9420_v34, %s9974_s16 }
 0x5b2   : > { %v4293_v3 = vmax.f32 %v3973_v4, %v5918_v61  ;;  %v4357_v49 = vmul.f32 %v8117_v56, %v4292_v57  ;;  %v4294_v13 = vmax.f32 %v3974_v20, %v5919_v38  ;;  %v4295_v54 = vmax.f32 %v3975_v43, %v5920_v18 }
 0x5b3   : > { %v4952_v19 = vpop.f32.mrf.mxu0 }
 0x5b4   : > { %v4953_v0 = vadd.f32 %v9469_v24, %v4952_v19  ;;  %v4485_v51 = vperm.slane %v4357_v49, 0  ;;  %v4358_v5 = vmul.f32 %v8117_v56, %v4293_v3  ;;  %v4359_v36 = vmul.f32 %v8117_v56, %v4294_v13 }
 0x5b5   : > { %v4360_v55 = vmul.f32 %v8117_v56, %v4295_v54 }
 0x5b6   : > { %5509 = vst.msk [vmem:[%s9474_s12] sm:$0xff] %vm526_vm0, %v4953_v0  ;;  %4774 = vrot.lane.b32.xlu1 %v9439_v53, %s9976_s25  ;;  %v4548_v12 = vsel %vm10175_vm1, %v4485_v51, %v4547_v25  ;;  %v4486_v27 = vperm.slane %v4358_v5, 0  ;;  %v4487_v40 = vperm.slane %v4359_v36, 0  ;;  %v4996_v11 = vrot.slane %v4953_v0, 2  ;;  %vm10188_vm1 = vmmov %vm10178_vm3 }
 0x5b7   : > { %v4488_v39 = vperm.slane %v4360_v55, 0  ;;  %v4997_v37 = vrot.slane %v4953_v0, 4  ;;  %v4998_v62 = vrot.slane %v4953_v0, 6  ;;  %v10180_v55 = vld [vmem:[#allocation14_spill] sm:$0xff] }
 0x5b8   : > { %v4549_v45 = vsel %vm4497_vm15, %v4486_v27, %v4548_v12  ;;  %v10182_v12 = vld [vmem:[#allocation23_spill] sm:$0xff]  ;;  %v10183_v27 = vld [vmem:[#allocation30_spill] sm:$0xff]  ;;  %vm10186_vm15 = vcmask 1043459  }
 0x5b9   : > { %v4550_v23 = vsel %vm4499_vm14, %v4487_v40, %v4549_v45  ;;  %v4980_v40 = vmul.f32 %v10183_v27, %v10182_v12  ;;  %vm10185_vm14 = vcmask 1042434  }
 0x5ba   : > { %v4551_v6 = vsel %vm4501_vm12, %v4488_v39, %v4550_v23  ;;  %vm10179_vm12 = vcmask 1046528  }
 0x5bb   : > { %v4567_v44 = vadd.f32 %v4551_v6, %v10176_v14 }
 0x5bd   : > { %v4583_v31 = vrot.slane %v4567_v44, 7 }
 0x5bf   : > { %v4599_v42 = vsel %vm10177_vm13, 0.0, %v4583_v31  ;;  %v4607_v47 = vsel %vm10178_vm3, %v4583_v31, 0.0  ;;  %v5246_v31 = vrot.slane %v10187_v33, 4  ;;  %vm10189_vm13 = vcmask 1044480  }
 0x5c0   : > { %4798 = vrot.lane.b32.xlu2 %v4599_v42, %s9975_s1  ;;  %v4666_v22 = vrot.slane %v4599_v42, 1  ;;  %v4669_v9 = vrot.slane %v4599_v42, 2  ;;  %v4670_v16 = vrot.slane %v4607_v47, 2  ;;  %v4667_v29 = vrot.slane %v4607_v47, 1 }
 0x5c1   : > { %vm5250_vm3 = vcmask 1042432  }
 0x5c2   : > { %v4835_v48 = vpop.permute.xlu1 %4834  ;;  %v4671_v28 = vsel %vm895_vm2, %v4669_v9, %v4670_v16  ;;  %v4668_v4 = vsel %vm10179_vm12, %v4666_v22, %v4667_v29  ;;  %vm10184_vm2 = vcmask 1041409   ;;  %vm5251_vm12 = vcmask 1046532  }
 0x5c3   : > { %v4814_v10 = vpop.permute.xlu0 %4813  ;;  %4840 = vrot.lane.b32.xlu1 %v4671_v28, %s9973_s22  ;;  %4819 = vrot.lane.b32.xlu0 %v4668_v4, %s9978_s13 }
 0x5c4   : > { %v4898_v8 = vsel %vm1173_vm9, %v4890_v63, %v4814_v10  ;;  %v5255_v10 = vrot.slane %v5246_v31, 5 }
 0x5c5   : > { %v4906_v26 = vsel %vm1182_vm10, %v4898_v8, %v4835_v48  ;;  %v5955_v48 = vrot.slane %v10187_v33, 9 }
 0x5c6   : > { %5924 = vmatmul.msk.f32.gmra.mxu0 %vm1194_vm11, %v4906_v26 }
 0x5c8   : > { %4684 = vrot.lane.b32.xlu2 %v9433_v60, %s9968_s24 }
 0x5ca   : > { %v4955_v20 = vpop.f32.mrf.mxu0 }
 0x5cb   : > { %v4956_v43 = vadd.f32 %v9469_v24, %v4955_v20  ;;  %4728 = vrot.lane.b32.xlu1 %v4599_v42, %s9974_s16  ;;  %4705 = vrot.lane.b32.xlu0 %v9439_v53, %s9977_s2  ;;  %v10181_v53 = vld [vmem:[#allocation29_spill] sm:$0xff]  ;;  %v5274_v20 = vrot.slane %v5246_v31, 6 }
 0x5cc   : > { %v4976_v25 = vmul.f32 %v10181_v53, %v10180_v55 }
 0x5cd   : > { %v4999_v15 = vrot.slane %v4956_v43, 2  ;;  %v5000_v61 = vrot.slane %v4956_v43, 4  ;;  %v5001_v38 = vrot.slane %v4956_v43, 6  ;;  %5510 = vst.msk [vmem:[%s9474_s12 + $0x8] sm:$0xff] %vm526_vm0, %v4956_v43  ;;  %v5044_v57 = vmax.f32 %v4953_v0, %v4956_v43  ;;  %v5953_v43 = vld [vmem:[%s9837_s7 + $0xd0] sm:$0xff] }
 0x5ce   : > { %v4984_v23 = vadd.f32 %v4980_v40, %v4976_v25  ;;  %5461 = vmatpush.msrb.mxu2 %v5953_v43 }
 0x5cf   : > { %v5045_v18 = vmax.f32 %v4996_v11, %v4999_v15  ;;  %v5046_v19 = vmax.f32 %v4997_v37, %v5000_v61  ;;  %v5047_v30 = vmax.f32 %v4998_v62, %v5001_v38  ;;  %v5929_v60 = vrot.slane %v5044_v57, 9  ;;  %v4700_v61 = vpop.permute.xlu0 %4699 }
 0x5d0   : > { %4752 = vrot.lane.b32.xlu2 %v4668_v4, %s9972_s15  ;;  %v5959_v4 = vrot.slane %v10187_v33, 10 }
 0x5d1   : > { %v5930_v3 = vrot.slane %v5045_v18, 9  ;;  %v5931_v49 = vrot.slane %v5046_v19, 9  ;;  %v5932_v13 = vrot.slane %v5047_v30, 9  ;;  %v5124_v41 = vmax.f32 %v5044_v57, %v5929_v60 }
 0x5d3   : > { %v5125_v54 = vmax.f32 %v5045_v18, %v5930_v3  ;;  %v5126_v21 = vmax.f32 %v5046_v19, %v5931_v49  ;;  %v5127_v51 = vmax.f32 %v5047_v30, %v5932_v13  ;;  %v5140_v0 = vmul.f32 %v5124_v41, %v8117_v56  ;;  %4776 = vrot.lane.b32.xlu0 %v4671_v28, %s9976_s25  ;;  %v4679_v28 = vpop.permute.xlu2 %4678  ;;  %v4723_v19 = vpop.permute.xlu1 %4722 }
 0x5d4   : > { %v4852_v18 = vsel %vm526_vm0, %v9117_v17, %v4679_v28 }
 0x5d5   : > { %v5141_v59 = vmul.f32 %v5125_v54, %v8117_v56  ;;  %v5142_v5 = vmul.f32 %v5126_v21, %v8117_v56  ;;  %v5143_v36 = vmul.f32 %v5127_v51, %v8117_v56  ;;  %v5172_v58 = vperm.slane %v5140_v0, 0 }
 0x5d6   : > { %v4859_v30 = vsel %vm1128_vm4, %v4852_v18, %v4700_v61 }
 0x5d7   : > { %v5173_v35 = vperm.slane %v5141_v59, 0  ;;  %v5174_v2 = vperm.slane %v5142_v5, 0  ;;  %v5175_v39 = vperm.slane %v5143_v36, 0  ;;  %v4771_v3 = vpop.permute.xlu0 %4770  ;;  %v4867_v13 = vsel %vm1137_vm5, %v4859_v30, %v4723_v19 }
 0x5d9   : > { %v5188_v45 = vsel %vm10184_vm2, %v5173_v35, %v5172_v58  ;;  %vm9535_vm2 = vmor %vm5250_vm3, %vm5251_vm12  ;;  %vm10199_vm3 = vcmask 1042434   ;;  %vm10200_vm12 = vcmask 1043459  }
 0x5da   : > { %v5189_v7 = vsel %vm10185_vm14, %v5174_v2, %v5188_v45  ;;  %v9541_v16 = vsel %vm9535_vm2, %v5955_v48, %v5255_v10  ;;  %vm5269_vm14 = vcmask 1041408  }
 0x5db   : > { %v5190_v6 = vsel %vm10186_vm15, %v5175_v39, %v5189_v7  ;;  %vm5270_vm15 = vcmask 1045508   ;;  %v4747_v57 = vpop.permute.xlu2 %4746 }
 0x5dc   : > { %v5204_v1 = vadd.f32 %v5190_v6, %v4984_v23  ;;  %v4958_v44 = vpop.f32.mrf.mxu0  ;;  %v4875_v41 = vsel %vm1146_vm6, %v4867_v13, %v4747_v57 }
 0x5dd   : > { %v9527_v46 = vadd.f32 %v9469_v24, %v4958_v44  ;;  %v4883_v54 = vsel %vm1155_vm7, %v4875_v41, %v4771_v3 }
 0x5de   : > { %v5224_v14 = vrot.slane %v5204_v1, 7 }
 0x5df   : > { %5511 = vst.msk [vmem:[%s9474_s12 + $0x10] sm:$0xff] %vm526_vm0, %v9527_v46  ;;  %v5003_v13 = vrot.slane %v9527_v46, 4  ;;  %v5004_v41 = vrot.slane %v9527_v46, 6 }
 0x5e0   : > { %v5232_v63 = vsel %vm10188_vm1, 0.0, %v5224_v14  ;;  %vm9552_vm1 = vmor %vm5269_vm14, %vm5270_vm15  ;;  %vm10201_vm14 = vcmask 1040384   ;;  %vm10202_vm15 = vcmask 1044480  }
 0x5e1   : > { %v5238_v42 = vsel %vm10189_vm13, %v5232_v63, 0.0  ;;  %v9558_v37 = vsel %vm9552_vm1, %v5959_v4, %v5274_v20  ;;  %vm10198_vm13 = vcmask 1041409  }
 0x5e2   : > { %v5247_v47 = vrot.slane %v5238_v42, 4  ;;  %5300 = vst [vmem:[#allocation1 + $0x1] ss:$2 sm:$0xff] %v5238_v42  ;;  %v5956_v29 = vrot.slane %v5238_v42, 9  ;;  %v5960_v62 = vrot.slane %v5238_v42, 10 }
 0x5e4   : > { %v5259_v9 = vrot.slane %v5247_v47, 5  ;;  %v5278_v11 = vrot.slane %v5247_v47, 6 }
 0x5e6   : > { %v9547_v26 = vsel %vm9535_vm2, %v5956_v29, %v5259_v9  ;;  %v9562_v38 = vsel %vm9552_vm1, %v5960_v62, %v5278_v11 }
 0x5e9   : > { %v9543_v8 = vld.sshfl [vmem:[#allocation1] sm:$0xff pattern:$0x75316420] }
 0x5ea   : > { %5309 = vst [vmem:[#allocation1] ss:$2 sm:$0xff] %v9541_v16 }
 0x5eb   : > { %5311 = vst [vmem:[#allocation1 + $0x1] ss:$2 sm:$0xff] %v9547_v26  ;;  %v4816_v49 = vpop.permute.xlu2 %4815 }
 0x5f2   : > { %v5316_v15 = vld.sshfl [vmem:[#allocation1] sm:$0xff pattern:$0x75316420] }
 0x5f3   : > { %5318 = vrot.lane.b32.xlu1 %v5316_v15, %s9968_s24  ;;  %5324 = vst [vmem:[#allocation1] ss:$2 sm:$0xff] %v9558_v37  ;;  %v4702_v5 = vpop.permute.xlu2 %4701 }
 0x5f4   : > { %5326 = vst [vmem:[#allocation1 + $0x1] ss:$2 sm:$0xff] %v9562_v38 }
 0x5fb   : > { %v5331_v60 = vld.sshfl [vmem:[#allocation1] sm:$0xff pattern:$0x75316420]  ;;  %v4773_v58 = vpop.permute.xlu2 %4772 }
 0x5fc   : > { %5333 = vrot.lane.b32.xlu2 %v5331_v60, %s9977_s2  ;;  %5339 = vst [vmem:[#allocation1] ss:$2 sm:$0xff] %v5238_v42 }
 0x600   : > { %v4795_v21 = vpop.permute.xlu1 %4794 }
 0x601   : > { %v4891_v51 = vsel %vm1164_vm8, %v4883_v54, %v4795_v21 }
 0x602   : > { %v4899_v17 = vsel %vm1173_vm9, %v4891_v51, %v4816_v49  ;;  %v5002_v49 = vrot.slane %v9527_v46, 2 }
 0x603   : > { %v4837_v0 = vpop.permute.xlu0 %4836  ;;  %v4839_v1 = vpop.permute.xlu2 %4838 }
 0x604   : > { %v4907_v59 = vsel %vm1182_vm10, %v4899_v17, %v4837_v0 }
 0x605   : > { %5925 = vmatmul.msk.f32.gmra.mxu0 %vm1194_vm11, %v4907_v59 }
 0x608   : > { %v4681_v36 = vpop.permute.xlu1 %4680 }
 0x609   : > { %v4853_v55 = vsel %vm526_vm0, %v9302_v52, %v4681_v36 }
 0x60a   : > { %v4860_v40 = vsel %vm1128_vm4, %v4853_v55, %v4702_v5 }
 0x60b   : > { %v4725_v25 = vpop.permute.xlu0 %4724  ;;  %v4727_v63 = vpop.permute.xlu2 %4726 }
 0x60c   : > { %v4868_v2 = vsel %vm1137_vm5, %v4860_v40, %v4725_v25 }
 0x610   : > { %v4749_v35 = vpop.permute.xlu1 %4748 }
 0x611   : > { %v4876_v39 = vsel %vm1146_vm6, %v4868_v2, %v4749_v35 }
 0x612   : > { %v4884_v23 = vsel %vm1155_vm7, %v4876_v39, %v4773_v58 }
 0x613   : > { %v4797_v45 = vpop.permute.xlu0 %4796 }
 0x614   : > { %v4892_v7 = vsel %vm1164_vm8, %v4884_v23, %v4797_v45 }
 0x618   : > { %v4818_v6 = vpop.permute.xlu1 %4817 }
 0x619   : > { %v4900_v14 = vsel %vm1173_vm9, %v4892_v7, %v4818_v6 }
 0x61a   : > { %v4908_v52 = vsel %vm1182_vm10, %v4900_v14, %v4839_v1  ;;  %v4799_v29 = vpop.permute.xlu2 %4798 }
 0x61b   : > { %5926 = vmatmul.msk.f32.gmra.mxu0 %vm1194_vm11, %v4908_v52  ;;  %v4683_v31 = vpop.permute.xlu0 %4682 }
 0x61c   : > { %v4854_v42 = vsel %vm526_vm0, %v9392_v32, %v4683_v31  ;;  %v10194_v31 = vld [vmem:[#allocation15_spill] sm:$0xff] }
 0x620   : > { %v4704_v44 = vpop.permute.xlu1 %4703 }
 0x621   : > { %v4861_v47 = vsel %vm1128_vm4, %v4854_v42, %v4704_v44  ;;  %v10195_v42 = vrot.slane %v10182_v12, 4 }
 0x622   : > { %v4869_v9 = vsel %vm1137_vm5, %v4861_v47, %v4727_v63  ;;  %v4685_v32 = vpop.permute.xlu2 %4684  ;;  %v4977_v63 = vmul.f32 %v10181_v53, %v10194_v31 }
 0x623   : > { %v4751_v10 = vpop.permute.xlu0 %4750  ;;  %v4855_v57 = vsel %vm526_vm0, %v9420_v34, %v4685_v32  ;;  %v4981_v47 = vmul.f32 %v10183_v27, %v10195_v42  ;;  %v10203_v42 = vld [vmem:[#allocation16_spill] sm:$0xff] }
 0x624   : > { %v4877_v28 = vsel %vm1146_vm6, %v4869_v9, %v4751_v10 }
 0x628   : > { %v4775_v48 = vpop.permute.xlu1 %4774 }
 0x629   : > { %v4885_v4 = vsel %vm1155_vm7, %v4877_v28, %v4775_v48  ;;  %v10196_v48 = vld [vmem:[#allocation26_spill] sm:$0xff] }
 0x62a   : > { %v4893_v62 = vsel %vm1164_vm8, %v4885_v4, %v4799_v29  ;;  %v4753_v0 = vpop.permute.xlu2 %4752 }
 0x635   : > { %v4841_v20 = vpop.permute.xlu1 %4840  ;;  %v4820_v11 = vpop.permute.xlu0 %4819 }
 0x636   : > { %v4901_v15 = vsel %vm1173_vm9, %v4893_v62, %v4820_v11  ;;  %v4985_v62 = vadd.f32 %v4981_v47, %v4977_v63  ;;  %v4978_v47 = vmul.f32 %v10181_v53, %v10203_v42  ;;  %v10205_v42 = vld [vmem:[#allocation17_spill] sm:$0xff] }
 0x637   : > { %v4909_v61 = vsel %vm1182_vm10, %v4901_v15, %v4841_v20 }
 0x638   : > { %5927 = vmatmul.msk.f32.gmra.mxu0 %vm1194_vm11, %v4909_v61 }
 0x63d   : > { %v4706_v18 = vpop.permute.xlu0 %4705  ;;  %v4729_v19 = vpop.permute.xlu1 %4728 }
 0x63e   : > { %v4862_v30 = vsel %vm1128_vm4, %v4855_v57, %v4706_v18 }
 0x63f   : > { %v4870_v54 = vsel %vm1137_vm5, %v4862_v30, %v4729_v19 }
 0x640   : > { %v4878_v40 = vsel %vm1146_vm6, %v4870_v54, %v4753_v0 }
 0x643   : > { %v4961_v60 = vpop.f32.mrf.mxu0 }
 0x644   : > { %v4962_v3 = vadd.f32 %v9469_v24, %v4961_v60 }
 0x645   : > { %v4777_v25 = vpop.permute.xlu0 %4776 }
 0x646   : > { %v5005_v21 = vrot.slane %v4962_v3, 2  ;;  %v5006_v51 = vrot.slane %v4962_v3, 4  ;;  %v5007_v17 = vrot.slane %v4962_v3, 6  ;;  %v5048_v34 = vmax.f32 %v9527_v46, %v4962_v3  ;;  %5512 = vst.msk [vmem:[%s9474_s12 + $0x18] sm:$0xff] %vm526_vm0, %v4962_v3 }
 0x647   : > { %v4886_v45 = vsel %vm1155_vm7, %v4878_v40, %v4777_v25 }
 0x648   : > { %v5049_v59 = vmax.f32 %v5002_v49, %v5005_v21  ;;  %v5050_v5 = vmax.f32 %v5003_v13, %v5006_v51  ;;  %v5051_v36 = vmax.f32 %v5004_v41, %v5007_v17  ;;  %v5933_v55 = vrot.slane %v5048_v34, 9 }
 0x649   : > { %v4894_v1 = vsel %vm1164_vm8, %v4886_v45, %v10147_v50  ;;  %v10197_v50 = vld [vmem:[#allocation27_spill] sm:$0xff] }
 0x64a   : > { %v5934_v58 = vrot.slane %v5049_v59, 9  ;;  %v5935_v35 = vrot.slane %v5050_v5, 9  ;;  %v5936_v2 = vrot.slane %v5051_v36, 9  ;;  %v5128_v39 = vmax.f32 %v5048_v34, %v5933_v55 }
 0x64b   : > { %v4902_v10 = vsel %vm1173_vm9, %v4894_v1, %v10196_v48  ;;  %v10204_v48 = vld [vmem:[#allocation24_spill] sm:$0xff] }
 0x64c   : > { %v5129_v23 = vmax.f32 %v5049_v59, %v5934_v58  ;;  %v5130_v7 = vmax.f32 %v5050_v5, %v5935_v35  ;;  %v5131_v6 = vmax.f32 %v5051_v36, %v5936_v2  ;;  %v5144_v46 = vmul.f32 %v5128_v39, %v8117_v56 }
 0x64d   : > { %v4910_v4 = vsel %vm1182_vm10, %v4902_v10, %v10197_v50  ;;  %v4982_v10 = vmul.f32 %v10183_v27, %v10204_v48 }
 0x64e   : > { %v5145_v14 = vmul.f32 %v5129_v23, %v8117_v56  ;;  %v5146_v52 = vmul.f32 %v5130_v7, %v8117_v56  ;;  %v5147_v44 = vmul.f32 %v5131_v6, %v8117_v56  ;;  %v5176_v9 = vperm.slane %v5144_v46, 0  ;;  %5928 = vmatmul.msk.f32.gmra.mxu0 %vm1194_vm11, %v4910_v4 }
 0x650   : > { %v5177_v29 = vperm.slane %v5145_v14, 0  ;;  %v5178_v28 = vperm.slane %v5146_v52, 0  ;;  %v5179_v20 = vperm.slane %v5147_v44, 0 }
 0x652   : > { %v5191_v11 = vsel %vm10198_vm13, %v5177_v29, %v5176_v9 }
 0x653   : > { %v5192_v15 = vsel %vm10199_vm3, %v5178_v28, %v5191_v11 }
 0x654   : > { %v5193_v12 = vsel %vm10200_vm12, %v5179_v20, %v5192_v15  ;;  %v4986_v20 = vadd.f32 %v4982_v10, %v4978_v47  ;;  %v4979_v47 = vmul.f32 %v10181_v53, %v10205_v42  ;;  %v10206_v10 = vrot.slane %v10204_v48, 4 }
 0x655   : > { %v5205_v61 = vadd.f32 %v5193_v12, %v4985_v62 }
 0x657   : > { %v5225_v32 = vrot.slane %v5205_v61, 7 }
 0x659   : > { %v5233_v57 = vsel %vm10201_vm14, 0.0, %v5225_v32 }
 0x65a   : > { %v5239_v18 = vsel %vm10202_vm15, %v5233_v57, 0.0 }
 0x65b   : > { %5302 = vst [vmem:[#allocation1 + $0x10] ss:$2 sm:$0xff] %v5239_v18  ;;  %v5248_v19 = vrot.slane %v5239_v18, 4  ;;  %v5957_v60 = vrot.slane %v5239_v18, 9  ;;  %v5961_v41 = vrot.slane %v5239_v18, 10 }
 0x65c   : > { %5341 = vst [vmem:[#allocation1 + $0x1] ss:$2 sm:$0xff] %v5239_v18 }
 0x65d   : > { %v5263_v30 = vrot.slane %v5248_v19, 5  ;;  %v5282_v13 = vrot.slane %v5248_v19, 6 }
 0x65f   : > { %v9634_v49 = vsel %vm9535_vm2, %v5957_v60, %v5263_v30  ;;  %v9641_v21 = vsel %vm9552_vm1, %v5961_v41, %v5282_v13 }
 0x663   : > { %v5346_v3 = vld.sshfl [vmem:[#allocation1] sm:$0xff pattern:$0x75316420] }
 0x664   : > { %5348 = vrot.lane.b32.xlu0 %v5346_v3, %s9974_s16  ;;  %5354 = vst [vmem:[#allocation1] ss:$2 sm:$0xff] %v9547_v26 }
 0x665   : > { %5356 = vst [vmem:[#allocation1 + $0x1] ss:$2 sm:$0xff] %v9634_v49 }
 0x66c   : > { %v5361_v54 = vld.sshfl [vmem:[#allocation1] sm:$0xff pattern:$0x75316420] }
 0x66d   : > { %5363 = vrot.lane.b32.xlu1 %v5361_v54, %s9972_s15  ;;  %5369 = vst [vmem:[#allocation1] ss:$2 sm:$0xff] %v9562_v38 }
 0x66e   : > { %5371 = vst [vmem:[#allocation1 + $0x1] ss:$2 sm:$0xff] %v9641_v21 }
 0x675   : > { %v5376_v51 = vld.sshfl [vmem:[#allocation1] sm:$0xff pattern:$0x75316420] }
 0x676   : > { %5378 = vrot.lane.b32.xlu2 %v5376_v51, %s9976_s25  ;;  %5384 = vst [vmem:[#allocation1] ss:$2 sm:$0xff] %v5239_v18 }
 0x682   : > { %v4964_v26 = vpop.f32.mrf.mxu0 }
 0x683   : > { %v4965_v17 = vadd.f32 %v9469_v24, %v4964_v26 }
 0x685   : > { %5513 = vst.msk [vmem:[%s9474_s12 + $0x20] sm:$0xff] %vm526_vm0, %v4965_v17  ;;  %v5008_v59 = vrot.slane %v4965_v17, 2  ;;  %v5009_v5 = vrot.slane %v4965_v17, 4  ;;  %v5010_v36 = vrot.slane %v4965_v17, 6 }
 0x698   : > { %v4967_v34 = vpop.f32.mrf.mxu0 }
 0x699   : > { %v4968_v0 = vadd.f32 %v9469_v24, %v4967_v34 }
 0x69b   : > { %v5011_v55 = vrot.slane %v4968_v0, 2  ;;  %v5012_v38 = vrot.slane %v4968_v0, 4  ;;  %v5013_v25 = vrot.slane %v4968_v0, 6  ;;  %v5052_v40 = vmax.f32 %v4965_v17, %v4968_v0  ;;  %5514 = vst.msk [vmem:[%s9474_s12 + $0x28] sm:$0xff] %vm526_vm0, %v4968_v0 }
 0x69d   : > { %v5053_v58 = vmax.f32 %v5008_v59, %v5011_v55  ;;  %v5054_v35 = vmax.f32 %v5009_v5, %v5012_v38  ;;  %v5055_v2 = vmax.f32 %v5010_v36, %v5013_v25  ;;  %v5937_v39 = vrot.slane %v5052_v40, 9 }
 0x69f   : > { %v5938_v45 = vrot.slane %v5053_v58, 9  ;;  %v5939_v23 = vrot.slane %v5054_v35, 9  ;;  %v5940_v7 = vrot.slane %v5055_v2, 9  ;;  %v5132_v6 = vmax.f32 %v5052_v40, %v5937_v39 }
 0x6a1   : > { %v5133_v46 = vmax.f32 %v5053_v58, %v5938_v45  ;;  %v5134_v1 = vmax.f32 %v5054_v35, %v5939_v23  ;;  %v5135_v14 = vmax.f32 %v5055_v2, %v5940_v7  ;;  %v5148_v52 = vmul.f32 %v5132_v6, %v8117_v56 }
 0x6a3   : > { %v5149_v44 = vmul.f32 %v5133_v46, %v8117_v56  ;;  %v5150_v31 = vmul.f32 %v5134_v1, %v8117_v56  ;;  %v5151_v63 = vmul.f32 %v5135_v14, %v8117_v56  ;;  %v5180_v9 = vperm.slane %v5148_v52, 0 }
 0x6a5   : > { %v5181_v29 = vperm.slane %v5149_v44, 0  ;;  %v5182_v28 = vperm.slane %v5150_v31, 0  ;;  %v5183_v50 = vperm.slane %v5151_v63, 0 }
 0x6a7   : > { %v5194_v4 = vsel %vm10198_vm13, %v5181_v29, %v5180_v9  ;;  %v4983_v9 = vmul.f32 %v10183_v27, %v10206_v10 }
 0x6a8   : > { %v5195_v11 = vsel %vm10199_vm3, %v5182_v28, %v5194_v4 }
 0x6a9   : > { %v5196_v62 = vsel %vm10200_vm12, %v5183_v50, %v5195_v11  ;;  %v4987_v11 = vadd.f32 %v4983_v9, %v4979_v47 }
 0x6aa   : > { %v5206_v15 = vadd.f32 %v5196_v62, %v4986_v20 }
 0x6ac   : > { %v5226_v12 = vrot.slane %v5206_v15, 7 }
 0x6ae   : > { %v5234_v61 = vsel %vm10201_vm14, 0.0, %v5226_v12 }
 0x6af   : > { %v5240_v32 = vsel %vm10202_vm15, %v5234_v61, 0.0 }
 0x6b0   : > { %v5249_v57 = vrot.slane %v5240_v32, 4  ;;  %5304 = vst [vmem:[#allocation1 + $0x11] ss:$2 sm:$0xff] %v5240_v32  ;;  %v5958_v19 = vrot.slane %v5240_v32, 9  ;;  %v5962_v51 = vrot.slane %v5240_v32, 10 }
 0x6b1   : > { %5386 = vst [vmem:[#allocation1 + $0x1] ss:$2 sm:$0xff] %v5240_v32 }
 0x6b2   : > { %v5267_v18 = vrot.slane %v5249_v57, 5  ;;  %v5286_v54 = vrot.slane %v5249_v57, 6 }
 0x6b4   : > { %v9670_v3 = vsel %vm9535_vm2, %v5958_v19, %v5267_v18  ;;  %v9682_v17 = vsel %vm9552_vm1, %v5962_v51, %v5286_v54  ;;  %v5951_v51 = vld [vmem:[%s9837_s7 + $0xc0] sm:$0xff] }
 0x6b5   : > { %v4970_v60 = vpop.f32.mrf.mxu0 }
 0x6b6   : > { %v4971_v13 = vadd.f32 %v9469_v24, %v4970_v60 }
 0x6b7   : > { %v9666_v30 = vld.sshfl [vmem:[#allocation1 + $0x10] sm:$0xff pattern:$0x75316420] }
 0x6b8   : > { %5313 = vst [vmem:[#allocation1 + $0x10] ss:$2 sm:$0xff] %v9634_v49  ;;  %v5391_v41 = vld.sshfl [vmem:[#allocation1] sm:$0xff pattern:$0x75316420]  ;;  %v5014_v36 = vrot.slane %v4971_v13, 2 }
 0x6b9   : > { %5315 = vst [vmem:[#allocation1 + $0x11] ss:$2 sm:$0xff] %v9670_v3  ;;  %5393 = vrot.lane.b32.xlu0 %v5391_v41, %s9975_s1  ;;  %v5015_v55 = vrot.slane %v4971_v13, 4  ;;  %v5016_v38 = vrot.slane %v4971_v13, 6 }
 0x6ba   : > { %5515 = vst.msk [vmem:[%s9474_s12 + $0x30] sm:$0xff] %vm526_vm0, %v4971_v13 }
 0x6bb   : > { %5399 = vst [vmem:[#allocation1] ss:$2 sm:$0xff] %v9634_v49 }
 0x6bc   : > { %5401 = vst [vmem:[#allocation1 + $0x1] ss:$2 sm:$0xff] %v9670_v3 }
 0x6c0   : > { %v5317_v26 = vld.sshfl [vmem:[#allocation1 + $0x10] sm:$0xff pattern:$0x75316420] }
 0x6c1   : > { %5328 = vst [vmem:[#allocation1 + $0x10] ss:$2 sm:$0xff] %v9641_v21  ;;  %5320 = vrot.lane.b32.xlu0 %v5317_v26, %s9968_s24  ;;  %v5949_v26 = vld [vmem:[%s9837_s7 + $0xb0] sm:$0xff] }
 0x6c2   : > { %5330 = vst [vmem:[#allocation1 + $0x11] ss:$2 sm:$0xff] %v9682_v17 }
 0x6c3   : > { %v5406_v34 = vld.sshfl [vmem:[#allocation1] sm:$0xff pattern:$0x75316420] }
 0x6c4   : > { %5408 = vrot.lane.b32.xlu1 %v5406_v34, %s9978_s13  ;;  %5414 = vst [vmem:[#allocation1] ss:$2 sm:$0xff] %v9641_v21  ;;  %v5947_v34 = vld [vmem:[%s9837_s7 + $0xa0] sm:$0xff] }
 0x6c5   : > { %5416 = vst [vmem:[#allocation1 + $0x1] ss:$2 sm:$0xff] %v9682_v17 }
 0x6c9   : > { %v5332_v49 = vld.sshfl [vmem:[#allocation1 + $0x10] sm:$0xff pattern:$0x75316420] }
 0x6ca   : > { %5343 = vst [vmem:[#allocation1 + $0x10] ss:$2 sm:$0xff] %v5240_v32 }
 0x6cb   : > { %v4973_v0 = vpop.f32.mrf.mxu0 }
 0x6cc   : > { %v5421_v59 = vld.sshfl [vmem:[#allocation1] sm:$0xff pattern:$0x75316420]  ;;  %5335 = vrot.lane.b32.xlu1 %v5332_v49, %s9977_s2  ;;  %v4974_v5 = vadd.f32 %v9469_v24, %v4973_v0  ;;  %v5946_v49 = vld [vmem:[%s9837_s7 + $0x98] sm:$0xff] }
 0x6cd   : > { %5423 = vrot.lane.b32.xlu2 %v5421_v59, %s9973_s22  ;;  %v5945_v59 = vld [vmem:[%s9837_s7 + $0x90] sm:$0xff] }
 0x6ce   : > { %v5017_v25 = vrot.slane %v4974_v5, 2  ;;  %v5018_v40 = vrot.slane %v4974_v5, 4  ;;  %v5019_v58 = vrot.slane %v4974_v5, 6  ;;  %v5056_v21 = vmax.f32 %v4971_v13, %v4974_v5  ;;  %5516 = vst.msk [vmem:[%s9474_s12 + $0x38] sm:$0xff] %vm526_vm0, %v4974_v5  ;;  %v5334_v5 = vpop.permute.xlu2 %5333 }
 0x6d0   : > { %v5057_v35 = vmax.f32 %v5014_v36, %v5017_v25  ;;  %v5058_v2 = vmax.f32 %v5015_v55, %v5018_v40  ;;  %v5059_v39 = vmax.f32 %v5016_v38, %v5019_v58  ;;  %v5941_v45 = vrot.slane %v5056_v21, 9 }
 0x6d2   : > { %v5942_v23 = vrot.slane %v5057_v35, 9  ;;  %v5943_v7 = vrot.slane %v5058_v2, 9  ;;  %v5944_v6 = vrot.slane %v5059_v39, 9  ;;  %v5136_v46 = vmax.f32 %v5056_v21, %v5941_v45 }
 0x6d4   : > { %v5137_v24 = vmax.f32 %v5057_v35, %v5942_v23  ;;  %v5138_v1 = vmax.f32 %v5058_v2, %v5943_v7  ;;  %v5139_v14 = vmax.f32 %v5059_v39, %v5944_v6  ;;  %v5152_v52 = vmul.f32 %v5136_v46, %v8117_v56 }
 0x6d6   : > { %v5153_v44 = vmul.f32 %v5137_v24, %v8117_v56  ;;  %v5154_v31 = vmul.f32 %v5138_v1, %v8117_v56  ;;  %v5155_v63 = vmul.f32 %v5139_v14, %v8117_v56  ;;  %v5184_v29 = vperm.slane %v5152_v52, 0  ;;  %v5349_v36 = vpop.permute.xlu0 %5348  ;;  %v5379_v25 = vpop.permute.xlu2 %5378 }
 0x6d8   : > { %v5185_v28 = vperm.slane %v5153_v44, 0  ;;  %v5186_v50 = vperm.slane %v5154_v31, 0  ;;  %v5187_v4 = vperm.slane %v5155_v63, 0 }
 0x6da   : > { %v5197_v20 = vsel %vm10198_vm13, %v5185_v28, %v5184_v29 }
 0x6db   : > { %v5198_v62 = vsel %vm10199_vm3, %v5186_v50, %v5197_v20 }
 0x6dc   : > { %v5199_v15 = vsel %vm10200_vm12, %v5187_v4, %v5198_v62 }
 0x6dd   : > { %v5207_v12 = vadd.f32 %v5199_v15, %v4987_v11 }
 0x6df   : > { %v5227_v56 = vrot.slane %v5207_v12, 7 }
 0x6e1   : > { %v5235_v61 = vsel %vm10201_vm14, 0.0, %v5227_v56 }
 0x6e2   : > { %v5241_v53 = vsel %vm10202_vm15, %v5235_v61, 0.0 }
 0x6e3   : > { %v5289_v48 = vrot.slane %v5241_v53, 4  ;;  %5345 = vst [vmem:[#allocation1 + $0x11] ss:$2 sm:$0xff] %v5241_v53  ;;  %v5963_v32 = vrot.slane %v5241_v53, 9  ;;  %v5964_v60 = vrot.slane %v5241_v53, 10 }
 0x6e5   : > { %v5292_v27 = vrot.slane %v5289_v48, 5  ;;  %v5296_v19 = vrot.slane %v5289_v48, 6 }
 0x6e7   : > { %v5293_v18 = vsel %vm9535_vm2, %v5963_v32, %v5292_v27  ;;  %v5297_v41 = vsel %vm9552_vm1, %v5964_v60, %v5296_v19 }
 0x6ea   : > { %v5347_v57 = vld.sshfl [vmem:[#allocation1 + $0x10] sm:$0xff pattern:$0x75316420] }
 0x6eb   : > { %5350 = vrot.lane.b32.xlu2 %v5347_v57, %s9974_s16  ;;  %5358 = vst [vmem:[#allocation1 + $0x10] ss:$2 sm:$0xff] %v9670_v3  ;;  %v5952_v3 = vld [vmem:[%s9837_s7 + $0xc8] sm:$0xff]  ;;  %s5554_s16 = sshll.u32 %s9474_s12, 4  ;;  %s5555_s16 = int_to_ptr.vmem [resolvable:$true] %s5554_s16 }
 0x6ec   : > { %5360 = vst [vmem:[#allocation1 + $0x11] ss:$2 sm:$0xff] %v5293_v18  ;;  %5462 = vmatpush.msrb.mxu2 %v5952_v3 }
 0x6ee   : > { %5463 = vmatpush.msrb.mxu2 %v5951_v51 }
 0x6f3   : > { %v5362_v13 = vld.sshfl [vmem:[#allocation1 + $0x10] sm:$0xff pattern:$0x75316420] }
 0x6f4   : > { %5365 = vrot.lane.b32.xlu0 %v5362_v13, %s9972_s15  ;;  %5373 = vst [vmem:[#allocation1 + $0x10] ss:$2 sm:$0xff] %v9682_v17 }
 0x6f5   : > { %5375 = vst [vmem:[#allocation1 + $0x11] ss:$2 sm:$0xff] %v5297_v41 }
 0x6fc   : > { %v5377_v54 = vld.sshfl [vmem:[#allocation1 + $0x10] sm:$0xff pattern:$0x75316420] }
 0x6fd   : > { %5380 = vrot.lane.b32.xlu1 %v5377_v54, %s9976_s25  ;;  %5388 = vst [vmem:[#allocation1 + $0x10] ss:$2 sm:$0xff] %v5241_v53  ;;  %s5534_s25 = scalar_lea.sflag [#allocation3], %s9450_s30 }
 0x6fe   : > { %5390 = vst [vmem:[#allocation1 + $0x11] ss:$2 sm:$0xff] %v10187_v33  ;;  %v5950_v33 = vld [vmem:[%s9837_s7 + $0xb8] sm:$0xff] }
 0x6ff   : > { %5464 = vmatpush.msrb.mxu2 %v5950_v33 }
 0x701   : > { %5465 = vmatpush.msrb.mxu2 %v5949_v26 }
 0x705   : > { %v5392_v22 = vld.sshfl [vmem:[#allocation1 + $0x10] sm:$0xff pattern:$0x75316420] }
 0x706   : > { %5395 = vrot.lane.b32.xlu2 %v5392_v22, %s9975_s1  ;;  %5403 = vst [vmem:[#allocation1 + $0x10] ss:$2 sm:$0xff] %v5293_v18 }
 0x707   : > { %5405 = vst [vmem:[#allocation1 + $0x11] ss:$2 sm:$0xff] %v9541_v16  ;;  %v5948_v16 = vld [vmem:[%s9837_s7 + $0xa8] sm:$0xff] }
 0x708   : > { %5466 = vmatpush.msrb.mxu2 %v5948_v16 }
 0x70a   : > { %5467 = vmatpush.msrb.mxu2 %v5947_v34 }
 0x70c   : > { %5468 = vmatpush.msrb.mxu2 %v5946_v49 }
 0x70e   : > { %v5407_v17 = vld.sshfl [vmem:[#allocation1 + $0x10] sm:$0xff pattern:$0x75316420]  ;;  %5469 = vmatpush.msrb.mxu2 %v5945_v59 }
 0x70f   : > { %5410 = vrot.lane.b32.xlu0 %v5407_v17, %s9978_s13  ;;  %5418 = vst [vmem:[#allocation1 + $0x10] ss:$2 sm:$0xff] %v5297_v41  ;;  %s5979_s13 = sshll.u32 %s6324_s21, 6 }
 0x710   : > { %5420 = vst [vmem:[#allocation1 + $0x11] ss:$2 sm:$0xff] %v9558_v37  ;;  %v5319_v37 = vpop.permute.xlu1 %5318  ;;  %s5553_s14 = scalar_lea.hbm %s9840_s10, %s5979_s13 }
 0x711   : > { %v5429_v55 = vsel %vm526_vm0, %v9543_v8, %v5319_v37  ;;  %s5556_s15 = sshll.u32 %s5553_s14, 4  ;;  %s5557_s15 = int_to_ptr.hbm [resolvable:$true] %s5556_s15 }
 0x712   : > { %v5431_v40 = vsel %vm1128_vm4, %v5429_v55, %v5334_v5  ;;  %s6140_s0 = sshra.s32 %s5557_s15, 4  ;;  %s6141_s0 = int_to_ptr.hbm [resolvable:$true] %s6140_s0 }
 0x713   : > { %v5433_v58 = vsel %vm1137_vm5, %v5431_v40, %v5349_v36  ;;  %s6142_s29 = scalar_lea.hbm %s6141_s0, 64  ;;  %p6147_p3 = scmp.lt.s32.totalorder %s6141_s0, %s9840_s10 }
 0x714   : > { %p6143_p0 = scmp.ne.s32.totalorder %s6141_s0, %s6142_s29  ;;  %p6148_p4 = scmp.lt.s32.totalorder %s6146_s5, %s6142_s29 }
 0x716   : > { %p6144_p1 = pnand %p6143_p0, %p6341_p5  ;;  %p6149_p7 = por %p6148_p4, %p6147_p3 }
 0x717   : > { %v5422_v0 = vld.sshfl [vmem:[#allocation1 + $0x10] sm:$0xff pattern:$0x75316420] }
 0x718   : > { %5425 = vrot.lane.b32.xlu1 %v5422_v0, %s9973_s22  ;;  %v5364_v38 = vpop.permute.xlu1 %5363  ;;  %p6145_p2 = pneg %p6144_p1 }
 0x719   : > { %v5435_v21 = vsel %vm1146_vm6, %v5433_v58, %v5364_v38 }
 0x71a   : > { %v5437_v2 = vsel %vm1155_vm7, %v5435_v21, %v5379_v25  ;;  %p6150_p8 = pnand %p6149_p7, %p6145_p2 }
 0x727   : > { %v5424_v23 = vpop.permute.xlu2 %5423 }
 0x72b   : > { %v5394_v35 = vpop.permute.xlu0 %5393 }
 0x72c   : > { %v5439_v39 = vsel %vm1164_vm8, %v5437_v2, %v5394_v35 }
 0x733   : > { %v5321_v8 = vpop.permute.xlu0 %5320 }
 0x734   : > { %v5430_v14 = vsel %vm526_vm0, %v9666_v30, %v5321_v8 }
 0x736   : > { %v5409_v45 = vpop.permute.xlu1 %5408 }
 0x737   : > { %v5441_v7 = vsel %vm1173_vm9, %v5439_v39, %v5409_v45 }
 0x738   : > { %v5443_v6 = vsel %vm1182_vm10, %v5441_v7, %v5424_v23 }
 0x739   : > { %5965 = vmatmul.msk.f32.vlgmr.msrb.gmra.mxu2 %vm1194_vm11, %v5443_v6 }
 0x73e   : > { %v5336_v46 = vpop.permute.xlu1 %5335 }
 0x73f   : > { %v5432_v44 = vsel %vm1128_vm4, %v5430_v14, %v5336_v46 }
 0x745   : > { %v5351_v1 = vpop.permute.xlu2 %5350 }
 0x746   : > { %v5434_v31 = vsel %vm1137_vm5, %v5432_v44, %v5351_v1 }
 0x760   : > { %v5396_v10 = vpop.permute.xlu2 %5395 }
 0x766   : > { %v5366_v24 = vpop.permute.xlu0 %5365 }
 0x767   : > { %v5436_v63 = vsel %vm1146_vm6, %v5434_v31, %v5366_v24 }
 0x76f   : > { %v5381_v52 = vpop.permute.xlu1 %5380 }
 0x770   : > { %v5438_v42 = vsel %vm1155_vm7, %v5436_v63, %v5381_v52 }
 0x771   : > { %v5440_v9 = vsel %vm1164_vm8, %v5438_v42, %v5396_v10 }
 0x781   : > { %v5411_v47 = vpop.permute.xlu0 %5410 }
 0x782   : > { %v5442_v29 = vsel %vm1173_vm9, %v5440_v9, %v5411_v47 }
 0x78a   : > { %v5426_v28 = vpop.permute.xlu1 %5425 }
 0x78b   : > { %v5444_v30 = vsel %vm1182_vm10, %v5442_v29, %v5426_v28 }
 0x78c   : > { %5966 = vmatmul.msk.f32.gmra.mxu2 %vm1194_vm11, %v5444_v30 }
 0x78d   : > { %6153 = shalt.err (!%p6150_p8)
}
 0x78e   : > { %s6241_s13 = smov 128   ;;  %s5749_s2 = sshll.u32 %s9450_s30, 4  ;;  %v6082_v50 = vld [vmem:[%s9838_s8 + $0x2] ss:$0 sm:$0xff]  ;;  %vm5523_vm0 = vcmask 60416  }
 0x78f   : > { %5999 = dma.vmem_to_hbm [thread:$0]  (%p6341_p5), %s5555_s16, 1024, %s5557_s15, %s5534_s25, %s6241_s13, %s6241_s13, %s9968_s24  }
 0x790   : > { %s454_s4 = scalar_lea.vmem [#allocation8], %s5749_s2  ;;  %s5980_s5 = sshll.u32 %s6324_s21, 4 }
 0x791   : > { %s5570_s24 = scalar_lea.hbm %s9841_s11, %s5980_s5  ;;  %s5571_s16 = sshll.u32 %s454_s4, 4  ;;  %s5572_s16 = int_to_ptr.vmem [resolvable:$true] %s5571_s16 }
 0x792   : > { %s5573_s15 = sshll.u32 %s5570_s24, 4  ;;  %s5539_s25 = scalar_lea.sflag [#allocation9], %s9450_s30  ;;  %s5574_s15 = int_to_ptr.hbm [resolvable:$true] %s5573_s15 }
 0x793   : > { %s6168_s29 = sshra.s32 %s5574_s15, 4  ;;  %s6174_s13 = scalar_lea.hbm %s9841_s11, 32  ;;  %s6169_s29 = int_to_ptr.hbm [resolvable:$true] %s6168_s29 }
 0x794   : > { %s6170_s21 = scalar_lea.hbm %s6169_s29, 16  ;;  %p6175_p12 = scmp.lt.s32.totalorder %s6169_s29, %s9841_s11 }
 0x795   : > { %p6171_p9 = scmp.ne.s32.totalorder %s6169_s29, %s6170_s21  ;;  %p6176_p13 = scmp.lt.s32.totalorder %s6174_s13, %s6170_s21 }
 0x797   : > { %p6172_p10 = pnand %p6171_p9, %p6341_p5  ;;  %p6177_p0 = por %p6176_p13, %p6175_p12 }
 0x799   : > { %p6173_p11 = pneg %p6172_p10 }
 0x79b   : > { %p6178_p1 = pnand %p6177_p0, %p6173_p11 }
 0x7bc   : > { %v5471_v4 = vpop.f32.mrf.mxu2 }
 0x7bd   : > { %v5472_v20 = vadd.f32 %v6082_v50, %v5471_v4 }
 0x7bf   : > { %v5519_v11 = vrot.slane %v5472_v20, 4  ;;  %5524 = vst.msk [vmem:[%s454_s4] sm:$0xf] %vm5523_vm0, %v5472_v20 }
 0x7c1   : > { %5525 = vst.msk [vmem:[%s454_s4 + $0x4] sm:$0xf] %vm5523_vm0, %v5519_v11 }
 0x80f   : > { %v5474_v62 = vpop.f32.mrf.mxu2 }
 0x810   : > { %v5475_v15 = vadd.f32 %v6082_v50, %v5474_v62 }
 0x812   : > { %v5520_v12 = vrot.slane %v5475_v15, 4  ;;  %5526 = vst.msk [vmem:[%s454_s4 + $0x8] sm:$0xf] %vm5523_vm0, %v5475_v15 }
 0x814   : > { %5527 = vst.msk [vmem:[%s454_s4 + $0xc] sm:$0xf] %vm5523_vm0, %v5520_v12 }
 0x815   : > { %6181 = shalt.err (!%p6178_p1)
}
 0x816   : > { %s6242_s30 = smov 4  }
 0x817   : > { %6000 = dma.vmem_to_hbm [thread:$0]  (%p6341_p5), %s5572_s16, 256, %s5574_s15, %s5539_s25, %s9973_s22, %s9973_s22, %s6242_s30  }
 0x818 PF: > { %p6021_p2 = scmp.ge.s32.totalorder %s6228_s20, 2  ;;  %s5596_s14 = sand.u32 1, %s6216_s17  }
 0x819   : > { %s5597_s4 = scalar_lea.sflag [#allocation3], %s5596_s14 }
 0x81a   : > { %p6011_p3 = pnand %p6021_p2, %p6345_p6 }
 0x81c   : > { %p6012_p4 = pneg %p6011_p3 }
 0x81e   : > { %6207 = dma.done.wait (%p6012_p4), %s5597_s4, 1024  }
 0x81f   : > { %6209 = vsyncadd (%p6012_p4), %s5597_s4, 4294966272  ;;  %s5607_s5 = scalar_lea.sflag [#allocation9], %s5596_s14 }
 0x820   : > { %6211 = dma.done.wait (%p6012_p4), %s5607_s5, 256  }
 0x821   : > { %6213 = vsyncadd (%p6012_p4), %s5607_s5, 4294967040  ;;  %p27_p5 = scmp.ge.s32.totalorder %s6328_s23, 4   ;;  %s10207_s17 = smov %s6220_s18 }
 0x822   : > { %s10208_s18 = smov %s6224_s19  ;;  %s10209_s19 = smov %s6339_s26 }
 0x823   : > { %s10210_s20 = smov %s6328_s23  ;;  %29 = sbr.rel (!%p27_p5) target bundleno = 15 (0xf), region = 187 }
 0x828   :  { %5613 = vsyncpa [#allocation3], 1 }
 0x829   :  { %5615 = vsyncpa [#allocation3 + $0x1], 1 }
 0x82a   :  { %5616 = vsyncpa [#allocation9], 1 }
 0x82b   :  { %5618 = vsyncpa [#allocation9 + $0x1], 1 }
 0x82c   :  { %5619 = vsyncpa [#allocation4], 1 }
 0x82d   :  { %5621 = vsyncpa [#allocation4 + $0x1], 1 }
 0x82e   :  { %5622 = vsyncpa [#allocation6], 1 }

</bundles_post_ra>
